<compile_context>
chip_gen: v7x
topology: tpu7x:2x2x1
jax: 0.10.0
libtpu: 0.0.40
codegen_flags: <defaults>
</compile_context>

<pallas_src>
import math

import jax
import jax.numpy as jnp
from jax.experimental import pallas as pl
from jax.experimental.pallas import tpu as pltpu

# ----------------------- small, self-consistent hyper-parameters ---------------
NGAME_CONT = 6
NPLAYER_CONT = 4
NITEMS = 8
NCHAMPIONS = 8
NRUNES = 16
GAME_DIM = 16
ITEM_DIM = 16
PLAYER_DIM = 8
CHAMPION_DIM = 4
RUNES_DIM = 4
OUTPUT_DIM = 16
NHEAD = 4
NLAYERS = 2
DIM_FF = 2048  # torch TransformerEncoderLayer default dim_feedforward
INPUT_DIM = GAME_DIM + ITEM_DIM + 10 * (PLAYER_DIM + CHAMPION_DIM + 9 * RUNES_DIM)  # 512
HEAD_DIM = INPUT_DIM // NHEAD  # 128
BATCH = 2
SEQ = 8
NFEAT = NGAME_CONT + 1 + 10 * (NPLAYER_CONT + 10)  # 147
LN_EPS = 1e-5
BN_EPS = 1e-5
NEG_INF = -1e30
LRELU_SLOPE = 0.01  # nn.LeakyReLU default

BHS = BATCH * NHEAD * SEQ          # 64 (all (batch, head) rows for attention)
DEC_H1 = 256                       # 200 padded to lane multiple
DEC_H2 = 128                       # 100 padded to lane multiple
DEC_OUT = 128                      # 16 padded to lane multiple (sliced in wrapper)


# ------------------------------- Pallas kernel ----------------------------------
def _ln_affine(x, w, b):
    mu = jnp.mean(x, axis=-1, keepdims=True)
    var = jnp.mean(jnp.square(x - mu), axis=-1, keepdims=True)
    return (x - mu) * jax.lax.rsqrt(var + LN_EPS) * w + b


def _ln_noaffine(x):
    mu = jnp.mean(x, axis=-1, keepdims=True)
    var = jnp.mean(jnp.square(x - mu), axis=-1, keepdims=True)
    return (x - mu) * jax.lax.rsqrt(var + LN_EPS)


def fused_forward_kernel(
        x0_ref, scale_ref, shift_ref, pe_ref, mask_ref,
        wqkv_ref, bqkv_ref, wo_ref, bo_ref, ln1w_ref, ln1b_ref,
        w1_ref, b1_ref, w2_ref, b2_ref, ln2w_ref, ln2b_ref,
        dw1_ref, db1_ref, dw2_ref, db2_ref, dw3_ref, db3_ref,
        o_ref, x_vmem):
    """grid=(NLAYERS,). One post-norm TransformerEncoderLayer per grid step,
    preprocess fused at l==0, final LayerNorm + decoder MLP fused at l==last."""
    l = pl.program_id(0)
    bf16 = jnp.bfloat16
    f32 = jnp.float32

    # ---- fused preprocess (folded BatchNorm affine + positional encoding) ----
    @pl.when(l == 0)
    def _():
        pre = x0_ref[...] * scale_ref[...] + shift_ref[...]          # eval BN
        pe_full = jnp.concatenate([pe_ref[...]] * BATCH, axis=0)      # (B*S, E)
        x_vmem[...] = pre + pe_full

    x = x_vmem[...]                                                   # (B*S, E) f32
    inv_sqrt_d = 1.0 / math.sqrt(HEAD_DIM)

    # ---- fused q/k/v projection: one bf16 (E, 3E) MXU matmul -----------------
    qkv = jnp.dot(x.astype(bf16), wqkv_ref[...],
                  preferred_element_type=f32) + bqkv_ref[...]
    q = qkv[:, :INPUT_DIM]
    k = qkv[:, INPUT_DIM:2 * INPUT_DIM]
    v = qkv[:, 2 * INPUT_DIM:]

    # ---- batched attention over all (batch, head) pairs ----------------------
    def split_heads(t):  # (B*S, E) -> (B*H*S, D), rows ordered (b, h, s)
        parts = []
        for b in range(BATCH):
            tb = t[b * SEQ:(b + 1) * SEQ, :]
            for h in range(NHEAD):
                parts.append(tb[:, h * HEAD_DIM:(h + 1) * HEAD_DIM])
        return jnp.concatenate(parts, axis=0)

    q_r = split_heads(q)
    k_r = split_heads(k)
    v_r = split_heads(v)

    s = jax.lax.dot_general(q_r, k_r, (((1,), (1,)), ((), ())),
                            preferred_element_type=f32) * inv_sqrt_d
    s = s + mask_ref[...]                                             # block-diag causal
    s = s - jnp.max(s, axis=-1, keepdims=True)
    p = jnp.exp(s)
    p = p * pl.reciprocal(jnp.sum(p, axis=-1, keepdims=True), approx=True)
    a_r = jnp.dot(p, v_r, preferred_element_type=f32)                 # (B*H*S, D)

    rows = []
    for b in range(BATCH):
        heads = [a_r[(b * NHEAD + h) * SEQ:(b * NHEAD + h + 1) * SEQ, :]
                 for h in range(NHEAD)]
        rows.append(jnp.concatenate(heads, axis=1))                   # (S, E)
    attn = jnp.concatenate(rows, axis=0)                              # (B*S, E)

    attn = jnp.dot(attn.astype(bf16), wo_ref[...],
                   preferred_element_type=f32) + bo_ref[...]
    h1 = _ln_affine(x + attn, ln1w_ref[...], ln1b_ref[...])

    # ---- FFN: two full-width bf16 MXU matmuls, f32 accumulation ---------------
    a1 = jnp.dot(h1.astype(bf16), w1_ref[...],
                 preferred_element_type=f32) + b1_ref[...]            # (B*S, DIM_FF)
    a1 = jnp.maximum(a1, 0.0)                                         # default relu
    ff = jnp.dot(a1.astype(bf16), w2_ref[...],
                 preferred_element_type=f32) + b2_ref[...]

    x_new = _ln_affine(h1 + ff, ln2w_ref[...], ln2b_ref[...])
    x_vmem[...] = x_new                                               # stays resident

    # ---- fused final LayerNorm (no affine) + decoder head ---------------------
    @pl.when(l == NLAYERS - 1)
    def _():
        xn = _ln_noaffine(x_new)
        hh = jnp.dot(xn.astype(bf16), dw1_ref[...],
                     preferred_element_type=f32) + db1_ref[...]
        hh = jnp.where(hh >= 0, hh, LRELU_SLOPE * hh)
        hh = jnp.dot(hh.astype(bf16), dw2_ref[...],
                     preferred_element_type=f32) + db2_ref[...]
        hh = jnp.where(hh >= 0, hh, LRELU_SLOPE * hh)
        o_ref[...] = jnp.dot(hh.astype(bf16), dw3_ref[...],
                             preferred_element_type=f32) + db3_ref[...]


# ------------------------------ pallas_call wiring -------------------------------
def _build_fused_call():
    E = INPUT_DIM
    m = BATCH * SEQ

    def const_spec(shape):
        return pl.BlockSpec(shape, lambda l: (0, 0))

    def layer_spec(shape):  # stacked (NLAYERS, *shape); kernel sees `shape`
        return pl.BlockSpec((None,) + shape, lambda l: (l, 0, 0))

    in_specs = [
        const_spec((m, E)),            # x0
        const_spec((1, E)),            # bn scale
        const_spec((1, E)),            # bn shift
        const_spec((SEQ, E)),          # positional encoding
        const_spec((BHS, BHS)),        # block-diagonal causal mask
        layer_spec((E, 3 * E)),        # w_qkv (bf16)
        layer_spec((1, 3 * E)),        # b_qkv
        layer_spec((E, E)),            # wo (bf16)
        layer_spec((1, E)),            # bo
        layer_spec((1, E)),            # ln1w
        layer_spec((1, E)),            # ln1b
        layer_spec((E, DIM_FF)),       # w1 (bf16)
        layer_spec((1, DIM_FF)),       # b1
        layer_spec((DIM_FF, E)),       # w2 (bf16)
        layer_spec((1, E)),            # b2
        layer_spec((1, E)),            # ln2w
        layer_spec((1, E)),            # ln2b
        const_spec((E, DEC_H1)),       # dec w1 (bf16, padded)
        const_spec((1, DEC_H1)),       # dec b1
        const_spec((DEC_H1, DEC_H2)),  # dec w2 (bf16, padded)
        const_spec((1, DEC_H2)),       # dec b2
        const_spec((DEC_H2, DEC_OUT)), # dec w3 (bf16, padded)
        const_spec((1, DEC_OUT)),      # dec b3
    ]
    out_specs = pl.BlockSpec((m, DEC_OUT), lambda l: (0, 0))

    # advisory cost estimate for XLA scheduling
    flops_layer = (2 * m * E * 3 * E            # qkv
                   + 2 * BHS * HEAD_DIM * BHS   # scores
                   + 2 * BHS * BHS * HEAD_DIM   # p @ v
                   + 2 * m * E * E              # out proj
                   + 4 * m * E * DIM_FF)        # ffn
    flops = NLAYERS * flops_layer + 2 * m * (E * DEC_H1 + DEC_H1 * DEC_H2 + DEC_H2 * DEC_OUT)
    trans = NLAYERS * (BHS * BHS + BHS) + 8 * m * (NLAYERS + 1)
    w_bytes = (NLAYERS * 2 * (E * 3 * E + E * E + 2 * E * DIM_FF)
               + 2 * (E * DEC_H1 + DEC_H1 * DEC_H2 + DEC_H2 * DEC_OUT)
               + 4 * (m * E + BHS * BHS + m * DEC_OUT))

    return pl.pallas_call(
        fused_forward_kernel,
        out_shape=jax.ShapeDtypeStruct((m, DEC_OUT), jnp.float32),
        grid_spec=pltpu.PrefetchScalarGridSpec(
            num_scalar_prefetch=0,
            grid=(NLAYERS,),
            in_specs=in_specs,
            out_specs=out_specs,
            scratch_shapes=[pltpu.VMEM((m, E), jnp.float32)],   # resident activations
        ),
        compiler_params=pltpu.CompilerParams(
            dimension_semantics=("arbitrary",),
            vmem_limit_bytes=48 * 1024 * 1024,   # fits v7x's 64 MiB VMEM
        ),
        cost_estimate=pl.CostEstimate(flops=flops, transcendentals=trans,
                                      bytes_accessed=w_bytes),
    )


_fused_call = _build_fused_call()


# ------------------------- front-end glue (plain JAX) ---------------------------
def embed_frontend(src, params):
    """Slice mixed continuous/index features, embed & project, concat -> (B,S,E)."""
    game = src[:, :, :NGAME_CONT]
    item_idx = src[:, :, NGAME_CONT].astype(jnp.int32)
    base, blk = NGAME_CONT + 1, NPLAYER_CONT + 10
    pieces = [
        jnp.dot(game, params['game_w']) + params['game_b'],
        jnp.take(params['item_emb'], item_idx, axis=0) * math.sqrt(ITEM_DIM),
    ]
    for i in range(10):
        off = base + i * blk
        cont = src[:, :, off:off + NPLAYER_CONT]
        champ = src[:, :, off + NPLAYER_CONT].astype(jnp.int32)
        runes = src[:, :, off + NPLAYER_CONT + 1:off + blk].astype(jnp.int32)
        pieces.append(jnp.dot(cont, params['player_w']) + params['player_b'])
        pieces.append(jnp.take(params['champ_emb'], champ, axis=0) * math.sqrt(CHAMPION_DIM))
        r = jnp.take(params['runes_emb'], runes, axis=0) * math.sqrt(RUNES_DIM)
        pieces.append(r.reshape(BATCH, SEQ, 9 * RUNES_DIM))
    return jnp.concatenate(pieces, axis=-1)  # (B, S, INPUT_DIM)


def build_attention_mask():
    """(B*H*S, B*H*S) additive mask: causal within each (batch, head) block,
    NEG_INF everywhere else (off-diagonal blocks)."""
    causal = jnp.tril(jnp.ones((SEQ, SEQ), dtype=bool))
    bh = BATCH * NHEAD
    same = jnp.eye(bh, dtype=bool)
    same_full = jnp.repeat(jnp.repeat(same, SEQ, axis=0), SEQ, axis=1)
    causal_full = jnp.tile(causal, (bh, bh))
    return jnp.where(same_full & causal_full, 0.0, NEG_INF).astype(jnp.float32)


def pack_params(params):
    """One-time packing into the fused-kernel operand layout (stacked per-layer
    weights, folded BN affine, padded decoder head). Called once, outside jit."""
    bn = params['bn']
    scale = bn['weight'] / jnp.sqrt(bn['var'] + BN_EPS)      # (1, E)
    shift = bn['bias'] - bn['mean'] * scale                  # (1, E)

    def stack(key):
        return jnp.stack([p[key] for p in params['layers']], axis=0)

    def pad2(w, rows, cols):
        return jnp.pad(w, ((0, rows - w.shape[0]), (0, cols - w.shape[1])))

    return dict(
        scale=scale, shift=shift, pe=params['pe'], mask=build_attention_mask(),
        w_qkv=jnp.concatenate([stack('wq'), stack('wk'), stack('wv')], axis=-1),
        b_qkv=jnp.concatenate([stack('bq'), stack('bk'), stack('bv')], axis=-1),
        wo=stack('wo'), bo=stack('bo'),
        ln1w=stack('ln1w'), ln1b=stack('ln1b'),
        w1=stack('w1'), b1=stack('b1'), w2=stack('w2'), b2=stack('b2'),
        ln2w=stack('ln2w'), ln2b=stack('ln2b'),
        dw1=pad2(params['dec_w1'], INPUT_DIM, DEC_H1),
        db1=pad2(params['dec_b1'], 1, DEC_H1),
        dw2=pad2(params['dec_w2'], DEC_H1, DEC_H2),
        db2=pad2(params['dec_b2'], 1, DEC_H2),
        dw3=pad2(params['dec_w3'], DEC_H2, DEC_OUT),
        db3=pad2(params['dec_b3'], 1, DEC_OUT),
    )


@jax.jit
def transformer_forward(src, params, kparams):
    feats = embed_frontend(src, params)
    x0 = feats.reshape(BATCH * SEQ, INPUT_DIM)
    out_pad = _fused_call(
        x0, kparams['scale'], kparams['shift'], kparams['pe'], kparams['mask'],
        kparams['w_qkv'], kparams['b_qkv'], kparams['wo'], kparams['bo'],
        kparams['ln1w'], kparams['ln1b'],
        kparams['w1'], kparams['b1'], kparams['w2'], kparams['b2'],
        kparams['ln2w'], kparams['ln2b'],
        kparams['dw1'], kparams['db1'], kparams['dw2'], kparams['db2'],
        kparams['dw3'], kparams['db3'])
    return out_pad[:, :OUTPUT_DIM].reshape(BATCH, SEQ, OUTPUT_DIM)


# ---------------------------- parameter construction ----------------------------
def init_params(key):
    ks = jax.random.split(key, 64)
    it = iter(ks)

    def lin(fan_in, fan_out, w_dtype=jnp.float32):
        kw, kb = jax.random.split(next(it))
        bound = 1.0 / math.sqrt(fan_in)
        w = jax.random.uniform(kw, (fan_in, fan_out), jnp.float32, -bound, bound)
        b = jax.random.uniform(kb, (1, fan_out), jnp.float32, -bound, bound)
        return w.astype(w_dtype), b

    params = {}
    params['game_w'], params['game_b'] = lin(NGAME_CONT, GAME_DIM)
    params['player_w'], params['player_b'] = lin(NPLAYER_CONT, PLAYER_DIM)
    params['item_emb'] = jax.random.normal(next(it), (NITEMS, ITEM_DIM), jnp.float32)
    params['champ_emb'] = jax.random.normal(next(it), (NCHAMPIONS, CHAMPION_DIM), jnp.float32)
    params['runes_emb'] = jax.random.normal(next(it), (NRUNES, RUNES_DIM), jnp.float32)

    params['bn'] = dict(mean=jnp.zeros((1, INPUT_DIM), jnp.float32),
                        var=jnp.ones((1, INPUT_DIM), jnp.float32),
                        weight=jnp.ones((1, INPUT_DIM), jnp.float32),
                        bias=jnp.zeros((1, INPUT_DIM), jnp.float32))

    pos = jnp.arange(SEQ, dtype=jnp.float32)[:, None]
    div = jnp.exp(jnp.arange(0, INPUT_DIM, 2, dtype=jnp.float32)
                  * (-math.log(10000.0) / INPUT_DIM))
    pe = jnp.zeros((SEQ, INPUT_DIM), jnp.float32)
    pe = pe.at[:, 0::2].set(jnp.sin(pos * div))
    pe = pe.at[:, 1::2].set(jnp.cos(pos * div))
    params['pe'] = pe

    # _generate_square_subsequent_mask: 0 on/below diag, -inf above (use -1e30)
    params['mask'] = jnp.where(jnp.tril(jnp.ones((SEQ, SEQ), bool)),
                               0.0, NEG_INF).astype(jnp.float32)

    # Large weights live in bf16 (HBM traffic); biases / LN / BN stay f32.
    layers = []
    for _ in range(NLAYERS):
        p = {}
        p['wq'], p['bq'] = lin(INPUT_DIM, INPUT_DIM, jnp.bfloat16)
        p['wk'], p['bk'] = lin(INPUT_DIM, INPUT_DIM, jnp.bfloat16)
        p['wv'], p['bv'] = lin(INPUT_DIM, INPUT_DIM, jnp.bfloat16)
        p['wo'], p['bo'] = lin(INPUT_DIM, INPUT_DIM, jnp.bfloat16)
        p['ln1w'] = jnp.ones((1, INPUT_DIM), jnp.float32)
        p['ln1b'] = jnp.zeros((1, INPUT_DIM), jnp.float32)
        p['w1'], p['b1'] = lin(INPUT_DIM, DIM_FF, jnp.bfloat16)
        p['w2'], p['b2'] = lin(DIM_FF, INPUT_DIM, jnp.bfloat16)
        p['ln2w'] = jnp.ones((1, INPUT_DIM), jnp.float32)
        p['ln2b'] = jnp.zeros((1, INPUT_DIM), jnp.float32)
        layers.append(p)
    params['layers'] = layers

    params['dec_w1'], params['dec_b1'] = lin(INPUT_DIM, 200, jnp.bfloat16)
    params['dec_w2'], params['dec_b2'] = lin(200, 100, jnp.bfloat16)
    params['dec_w3'], params['dec_b3'] = lin(100, OUTPUT_DIM, jnp.bfloat16)
    return params


# ------------------------------ pure-JAX reference ------------------------------
def _ln(x):
    mu = jnp.mean(x, axis=-1, keepdims=True)
    var = jnp.mean(jnp.square(x - mu), axis=-1, keepdims=True)
    return (x - mu) / jnp.sqrt(var + LN_EPS)


def ref_forward(src, params):
    HI = jax.lax.Precision.HIGHEST
    f32 = jnp.float32
    x = embed_frontend(src, params).reshape(BATCH * SEQ, INPUT_DIM)
    bn = params['bn']
    x = (x - bn['mean']) / jnp.sqrt(bn['var'] + BN_EPS) * bn['weight'] + bn['bias']
    x = x + jnp.tile(params['pe'], (BATCH, 1))
    for p in params['layers']:
        q = (jnp.dot(x, p['wq'].astype(f32), precision=HI) + p['bq']).reshape(BATCH, SEQ, NHEAD, HEAD_DIM)
        k = (jnp.dot(x, p['wk'].astype(f32), precision=HI) + p['bk']).reshape(BATCH, SEQ, NHEAD, HEAD_DIM)
        v = (jnp.dot(x, p['wv'].astype(f32), precision=HI) + p['bv']).reshape(BATCH, SEQ, NHEAD, HEAD_DIM)
        s = jnp.einsum('bqhd,bkhd->bhqk', q, k, precision=HI) / math.sqrt(HEAD_DIM)
        s = s + params['mask'][None, None]
        w = jax.nn.softmax(s, axis=-1)
        a = jnp.einsum('bhqk,bkhd->bqhd', w, v, precision=HI).reshape(BATCH * SEQ, INPUT_DIM)
        a = jnp.dot(a, p['wo'].astype(f32), precision=HI) + p['bo']
        x = _ln(x + a) * p['ln1w'] + p['ln1b']
        f = jax.nn.relu(jnp.dot(x, p['w1'].astype(f32), precision=HI) + p['b1'])
        f = jnp.dot(f, p['w2'].astype(f32), precision=HI) + p['b2']
        x = _ln(x + f) * p['ln2w'] + p['ln2b']
    x = _ln(x)
    h = jnp.dot(x, params['dec_w1'].astype(f32), precision=HI) + params['dec_b1']
    h = jnp.where(h >= 0, h, LRELU_SLOPE * h)
    h = jnp.dot(h, params['dec_w2'].astype(f32), precision=HI) + params['dec_b2']
    h = jnp.where(h >= 0, h, LRELU_SLOPE * h)
    out = jnp.dot(h, params['dec_w3'].astype(f32), precision=HI) + params['dec_b3']
    return out.reshape(BATCH, SEQ, OUTPUT_DIM)


# -------------------------------------- main -------------------------------------
if __name__ == "__main__":
    key = jax.random.PRNGKey(0)
    kp, kc, k1, k2, k3 = jax.random.split(key, 5)
    params = init_params(kp)
    kparams = pack_params(params)

    # Build src: continuous features ~ N(0,1); index columns hold integer values as floats.
    src = jax.random.normal(kc, (BATCH, SEQ, NFEAT), jnp.float32)
    item_col = jax.random.randint(k1, (BATCH, SEQ), 0, NITEMS).astype(jnp.float32)
    src = src.at[:, :, NGAME_CONT].set(item_col)
    champ = jax.random.randint(k2, (BATCH, SEQ, 10), 0, NCHAMPIONS).astype(jnp.float32)
    runes = jax.random.randint(k3, (BATCH, SEQ, 10, 9), 0, NRUNES).astype(jnp.float32)
    base, blk = NGAME_CONT + 1, NPLAYER_CONT + 10
    for i in range(10):
        off = base + i * blk
        src = src.at[:, :, off + NPLAYER_CONT].set(champ[:, :, i])
        src = src.at[:, :, off + NPLAYER_CONT + 1:off + blk].set(runes[:, :, i])

    out = jax.block_until_ready(transformer_forward(src, params, kparams))
    assert out.shape == (BATCH, SEQ, OUTPUT_DIM)
    assert bool(jnp.all(jnp.isfinite(out)))

    ref = jax.block_until_ready(ref_forward(src, params))
    err = float(jnp.max(jnp.abs(out - ref)))
    assert err < 5e-2, f"kernel vs reference mismatch: {err}"

    print("KERNEL_OK")
</pallas_src>

<mosaic_0001>
module attributes {stable_mosaic.version = 11 : i64} {
  func.func @fused_forward_kernel(%arg0: i32, %arg1: memref<16x512xf32, #tpu.memory_space<vmem>>, %arg2: memref<1x512xf32, #tpu.memory_space<vmem>>, %arg3: memref<1x512xf32, #tpu.memory_space<vmem>>, %arg4: memref<8x512xf32, #tpu.memory_space<vmem>>, %arg5: memref<64x64xf32, #tpu.memory_space<vmem>>, %arg6: memref<1x512x1536xbf16, #tpu.memory_space<vmem>>, %arg7: memref<1x1x1536xf32, #tpu.memory_space<vmem>>, %arg8: memref<1x512x512xbf16, #tpu.memory_space<vmem>>, %arg9: memref<1x1x512xf32, #tpu.memory_space<vmem>>, %arg10: memref<1x1x512xf32, #tpu.memory_space<vmem>>, %arg11: memref<1x1x512xf32, #tpu.memory_space<vmem>>, %arg12: memref<1x512x2048xbf16, #tpu.memory_space<vmem>>, %arg13: memref<1x1x2048xf32, #tpu.memory_space<vmem>>, %arg14: memref<1x2048x512xbf16, #tpu.memory_space<vmem>>, %arg15: memref<1x1x512xf32, #tpu.memory_space<vmem>>, %arg16: memref<1x1x512xf32, #tpu.memory_space<vmem>>, %arg17: memref<1x1x512xf32, #tpu.memory_space<vmem>>, %arg18: memref<512x256xbf16, #tpu.memory_space<vmem>>, %arg19: memref<1x256xf32, #tpu.memory_space<vmem>>, %arg20: memref<256x128xbf16, #tpu.memory_space<vmem>>, %arg21: memref<1x128xf32, #tpu.memory_space<vmem>>, %arg22: memref<128x128xbf16, #tpu.memory_space<vmem>>, %arg23: memref<1x128xf32, #tpu.memory_space<vmem>>, %arg24: memref<16x128xf32, #tpu.memory_space<vmem>>, %arg25: memref<16x512xf32, #tpu.memory_space<vmem>>) attributes {dimension_semantics = [#tpu.dimension_semantics<arbitrary>], iteration_bounds = array<i64: 2>, scalar_prefetch = 0 : i64, scratch_operands = 1 : i64, tpu.core_type = #tpu.core_type<tc>, window_params = [{pipeline_mode = #tpu.pipeline_mode<synchronous>, transform_indices = @transform_0, window_bounds = array<i64: 16, 512>}, {pipeline_mode = #tpu.pipeline_mode<synchronous>, transform_indices = @transform_1, window_bounds = array<i64: 1, 512>}, {pipeline_mode = #tpu.pipeline_mode<synchronous>, transform_indices = @transform_2, window_bounds = array<i64: 1, 512>}, {pipeline_mode = #tpu.pipeline_mode<synchronous>, transform_indices = @transform_3, window_bounds = array<i64: 8, 512>}, {pipeline_mode = #tpu.pipeline_mode<synchronous>, transform_indices = @transform_4, window_bounds = array<i64: 64, 64>}, {transform_indices = @transform_5, window_bounds = array<i64: 1, 512, 1536>}, {transform_indices = @transform_6, window_bounds = array<i64: 1, 1, 1536>}, {transform_indices = @transform_7, window_bounds = array<i64: 1, 512, 512>}, {transform_indices = @transform_8, window_bounds = array<i64: 1, 1, 512>}, {transform_indices = @transform_9, window_bounds = array<i64: 1, 1, 512>}, {transform_indices = @transform_10, window_bounds = array<i64: 1, 1, 512>}, {transform_indices = @transform_11, window_bounds = array<i64: 1, 512, 2048>}, {transform_indices = @transform_12, window_bounds = array<i64: 1, 1, 2048>}, {transform_indices = @transform_13, window_bounds = array<i64: 1, 2048, 512>}, {transform_indices = @transform_14, window_bounds = array<i64: 1, 1, 512>}, {transform_indices = @transform_15, window_bounds = array<i64: 1, 1, 512>}, {transform_indices = @transform_16, window_bounds = array<i64: 1, 1, 512>}, {pipeline_mode = #tpu.pipeline_mode<synchronous>, transform_indices = @transform_17, window_bounds = array<i64: 512, 256>}, {pipeline_mode = #tpu.pipeline_mode<synchronous>, transform_indices = @transform_18, window_bounds = array<i64: 1, 256>}, {pipeline_mode = #tpu.pipeline_mode<synchronous>, transform_indices = @transform_19, window_bounds = array<i64: 256, 128>}, {pipeline_mode = #tpu.pipeline_mode<synchronous>, transform_indices = @transform_20, window_bounds = array<i64: 1, 128>}, {pipeline_mode = #tpu.pipeline_mode<synchronous>, transform_indices = @transform_21, window_bounds = array<i64: 128, 128>}, {pipeline_mode = #tpu.pipeline_mode<synchronous>, transform_indices = @transform_22, window_bounds = array<i64: 1, 128>}, {pipeline_mode = #tpu.pipeline_mode<synchronous>, transform_indices = @transform_23, window_bounds = array<i64: 16, 128>}]} {
    %c0_i32 = arith.constant 0 : i32
    %0 = arith.cmpi eq, %arg0, %c0_i32 : i32
    %1 = arith.extui %0 : i1 to i32
    %c0_i32_0 = arith.constant 0 : i32
    %2 = arith.cmpi ne, %1, %c0_i32_0 : i32
    scf.if %2 {
      %c0_62 = arith.constant 0 : index
      %c0_63 = arith.constant 0 : index
      %159 = vector.load %arg1[%c0_62, %c0_63] : memref<16x512xf32, #tpu.memory_space<vmem>>, vector<16x512xf32>
      %c0_64 = arith.constant 0 : index
      %c0_65 = arith.constant 0 : index
      %160 = vector.load %arg2[%c0_64, %c0_65] : memref<1x512xf32, #tpu.memory_space<vmem>>, vector<1x512xf32>
      %161 = vector.broadcast %160 : vector<1x512xf32> to vector<16x512xf32>
      %162 = arith.mulf %159, %161 : vector<16x512xf32>
      %c0_66 = arith.constant 0 : index
      %c0_67 = arith.constant 0 : index
      %163 = vector.load %arg3[%c0_66, %c0_67] : memref<1x512xf32, #tpu.memory_space<vmem>>, vector<1x512xf32>
      %164 = vector.broadcast %163 : vector<1x512xf32> to vector<16x512xf32>
      %165 = arith.addf %162, %164 : vector<16x512xf32>
      %c0_68 = arith.constant 0 : index
      %c0_69 = arith.constant 0 : index
      %166 = vector.load %arg4[%c0_68, %c0_69] : memref<8x512xf32, #tpu.memory_space<vmem>>, vector<8x512xf32>
      %167 = tpu.concatenate %166, %166 in 0 : vector<8x512xf32>, vector<8x512xf32> -> vector<16x512xf32>
      %168 = arith.addf %165, %167 : vector<16x512xf32>
      %c0_70 = arith.constant 0 : index
      %c0_71 = arith.constant 0 : index
      %169 = vector.load %arg25[%c0_70, %c0_71] : memref<16x512xf32, #tpu.memory_space<vmem>>, vector<16x512xf32>
      tpu.vector_store %arg25[%c0_70, %c0_71], %168 {strides = array<i32>} : memref<16x512xf32, #tpu.memory_space<vmem>>, vector<16x512xf32>,
    } else {
    }
    %c0 = arith.constant 0 : index
    %c0_1 = arith.constant 0 : index
    %3 = vector.load %arg25[%c0, %c0_1] : memref<16x512xf32, #tpu.memory_space<vmem>>, vector<16x512xf32>
    %4 = arith.truncf %3 : vector<16x512xf32> to vector<16x512xbf16>
    %c0_2 = arith.constant 0 : index
    %c0_3 = arith.constant 0 : index
    %c0_4 = arith.constant 0 : index
    %5 = vector.load %arg6[%c0_2, %c0_3, %c0_4] : memref<1x512x1536xbf16, #tpu.memory_space<vmem>>, vector<1x512x1536xbf16>
    %6 = vector.shape_cast %5 : vector<1x512x1536xbf16> to vector<512x1536xbf16>
    %cst = arith.constant dense<0.000000e+00> : vector<16x1536xf32>
    %7 = tpu.matmul %4, %6, %cst {dimension_numbers = #tpu.dot_dimension_numbers<[1], [0], [0], [1], [0, 0, 1, 1], [], []>} : vector<16x512xbf16>, vector<512x1536xbf16>, vector<16x1536xf32> -> vector<16x1536xf32>
    %c0_5 = arith.constant 0 : index
    %c0_6 = arith.constant 0 : index
    %c0_7 = arith.constant 0 : index
    %8 = vector.load %arg7[%c0_5, %c0_6, %c0_7] : memref<1x1x1536xf32, #tpu.memory_space<vmem>>, vector<1x1x1536xf32>
    %9 = vector.shape_cast %8 : vector<1x1x1536xf32> to vector<1x1536xf32>
    %10 = vector.broadcast %9 : vector<1x1536xf32> to vector<16x1536xf32>
    %11 = arith.addf %7, %10 : vector<16x1536xf32>
    %12 = vector.extract_strided_slice %11 {offsets = [0, 0], sizes = [16, 512], strides = [1, 1]} : vector<16x1536xf32> to vector<16x512xf32>
    %13 = vector.extract_strided_slice %11 {offsets = [0, 512], sizes = [16, 512], strides = [1, 1]} : vector<16x1536xf32> to vector<16x512xf32>
    %14 = vector.extract_strided_slice %11 {offsets = [0, 1024], sizes = [16, 512], strides = [1, 1]} : vector<16x1536xf32> to vector<16x512xf32>
    %15 = vector.extract_strided_slice %12 {offsets = [0, 0], sizes = [8, 512], strides = [1, 1]} : vector<16x512xf32> to vector<8x512xf32>
    %16 = vector.extract_strided_slice %15 {offsets = [0, 0], sizes = [8, 128], strides = [1, 1]} : vector<8x512xf32> to vector<8x128xf32>
    %17 = vector.extract_strided_slice %15 {offsets = [0, 128], sizes = [8, 128], strides = [1, 1]} : vector<8x512xf32> to vector<8x128xf32>
    %18 = vector.extract_strided_slice %15 {offsets = [0, 256], sizes = [8, 128], strides = [1, 1]} : vector<8x512xf32> to vector<8x128xf32>
    %19 = vector.extract_strided_slice %15 {offsets = [0, 384], sizes = [8, 128], strides = [1, 1]} : vector<8x512xf32> to vector<8x128xf32>
    %20 = vector.extract_strided_slice %12 {offsets = [8, 0], sizes = [8, 512], strides = [1, 1]} : vector<16x512xf32> to vector<8x512xf32>
    %21 = vector.extract_strided_slice %20 {offsets = [0, 0], sizes = [8, 128], strides = [1, 1]} : vector<8x512xf32> to vector<8x128xf32>
    %22 = vector.extract_strided_slice %20 {offsets = [0, 128], sizes = [8, 128], strides = [1, 1]} : vector<8x512xf32> to vector<8x128xf32>
    %23 = vector.extract_strided_slice %20 {offsets = [0, 256], sizes = [8, 128], strides = [1, 1]} : vector<8x512xf32> to vector<8x128xf32>
    %24 = vector.extract_strided_slice %20 {offsets = [0, 384], sizes = [8, 128], strides = [1, 1]} : vector<8x512xf32> to vector<8x128xf32>
    %25 = tpu.concatenate %16, %17, %18, %19, %21, %22, %23, %24 in 0 : vector<8x128xf32>, vector<8x128xf32>, vector<8x128xf32>, vector<8x128xf32>, vector<8x128xf32>, vector<8x128xf32>, vector<8x128xf32>, vector<8x128xf32> -> vector<64x128xf32>
    %26 = vector.extract_strided_slice %13 {offsets = [0, 0], sizes = [8, 512], strides = [1, 1]} : vector<16x512xf32> to vector<8x512xf32>
    %27 = vector.extract_strided_slice %26 {offsets = [0, 0], sizes = [8, 128], strides = [1, 1]} : vector<8x512xf32> to vector<8x128xf32>
    %28 = vector.extract_strided_slice %26 {offsets = [0, 128], sizes = [8, 128], strides = [1, 1]} : vector<8x512xf32> to vector<8x128xf32>
    %29 = vector.extract_strided_slice %26 {offsets = [0, 256], sizes = [8, 128], strides = [1, 1]} : vector<8x512xf32> to vector<8x128xf32>
    %30 = vector.extract_strided_slice %26 {offsets = [0, 384], sizes = [8, 128], strides = [1, 1]} : vector<8x512xf32> to vector<8x128xf32>
    %31 = vector.extract_strided_slice %13 {offsets = [8, 0], sizes = [8, 512], strides = [1, 1]} : vector<16x512xf32> to vector<8x512xf32>
    %32 = vector.extract_strided_slice %31 {offsets = [0, 0], sizes = [8, 128], strides = [1, 1]} : vector<8x512xf32> to vector<8x128xf32>
    %33 = vector.extract_strided_slice %31 {offsets = [0, 128], sizes = [8, 128], strides = [1, 1]} : vector<8x512xf32> to vector<8x128xf32>
    %34 = vector.extract_strided_slice %31 {offsets = [0, 256], sizes = [8, 128], strides = [1, 1]} : vector<8x512xf32> to vector<8x128xf32>
    %35 = vector.extract_strided_slice %31 {offsets = [0, 384], sizes = [8, 128], strides = [1, 1]} : vector<8x512xf32> to vector<8x128xf32>
    %36 = tpu.concatenate %27, %28, %29, %30, %32, %33, %34, %35 in 0 : vector<8x128xf32>, vector<8x128xf32>, vector<8x128xf32>, vector<8x128xf32>, vector<8x128xf32>, vector<8x128xf32>, vector<8x128xf32>, vector<8x128xf32> -> vector<64x128xf32>
    %37 = vector.extract_strided_slice %14 {offsets = [0, 0], sizes = [8, 512], strides = [1, 1]} : vector<16x512xf32> to vector<8x512xf32>
    %38 = vector.extract_strided_slice %37 {offsets = [0, 0], sizes = [8, 128], strides = [1, 1]} : vector<8x512xf32> to vector<8x128xf32>
    %39 = vector.extract_strided_slice %37 {offsets = [0, 128], sizes = [8, 128], strides = [1, 1]} : vector<8x512xf32> to vector<8x128xf32>
    %40 = vector.extract_strided_slice %37 {offsets = [0, 256], sizes = [8, 128], strides = [1, 1]} : vector<8x512xf32> to vector<8x128xf32>
    %41 = vector.extract_strided_slice %37 {offsets = [0, 384], sizes = [8, 128], strides = [1, 1]} : vector<8x512xf32> to vector<8x128xf32>
    %42 = vector.extract_strided_slice %14 {offsets = [8, 0], sizes = [8, 512], strides = [1, 1]} : vector<16x512xf32> to vector<8x512xf32>
    %43 = vector.extract_strided_slice %42 {offsets = [0, 0], sizes = [8, 128], strides = [1, 1]} : vector<8x512xf32> to vector<8x128xf32>
    %44 = vector.extract_strided_slice %42 {offsets = [0, 128], sizes = [8, 128], strides = [1, 1]} : vector<8x512xf32> to vector<8x128xf32>
    %45 = vector.extract_strided_slice %42 {offsets = [0, 256], sizes = [8, 128], strides = [1, 1]} : vector<8x512xf32> to vector<8x128xf32>
    %46 = vector.extract_strided_slice %42 {offsets = [0, 384], sizes = [8, 128], strides = [1, 1]} : vector<8x512xf32> to vector<8x128xf32>
    %47 = tpu.concatenate %38, %39, %40, %41, %43, %44, %45, %46 in 0 : vector<8x128xf32>, vector<8x128xf32>, vector<8x128xf32>, vector<8x128xf32>, vector<8x128xf32>, vector<8x128xf32>, vector<8x128xf32>, vector<8x128xf32> -> vector<64x128xf32>
    %cst_8 = arith.constant dense<0.000000e+00> : vector<64x64xf32>
    %48 = tpu.matmul %25, %36, %cst_8 {dimension_numbers = #tpu.dot_dimension_numbers<[1], [1], [0], [0], [0, 0, 1, 0], [], []>} : vector<64x128xf32>, vector<64x128xf32>, vector<64x64xf32> -> vector<64x64xf32>
    %cst_9 = arith.constant 0.0883883461 : f32
    %49 = vector.broadcast %cst_9 : f32 to vector<64x64xf32>
    %50 = arith.mulf %48, %49 : vector<64x64xf32>
    %c0_10 = arith.constant 0 : index
    %c0_11 = arith.constant 0 : index
    %51 = vector.load %arg5[%c0_10, %c0_11] : memref<64x64xf32, #tpu.memory_space<vmem>>, vector<64x64xf32>
    %52 = arith.addf %50, %51 : vector<64x64xf32>
    %cst_12 = arith.constant dense<0xFF800000> : vector<64xf32>
    %53 = vector.multi_reduction <maximumf>, %52, %cst_12 [1] : vector<64x64xf32> to vector<64xf32>
    %54 = vector.shape_cast %53 : vector<64xf32> to vector<64x1xf32>
    %55 = vector.broadcast %54 : vector<64x1xf32> to vector<64x64xf32>
    %56 = arith.subf %52, %55 : vector<64x64xf32>
    %57 = math.exp %56 : vector<64x64xf32>
    %cst_13 = arith.constant dense<0.000000e+00> : vector<64xf32>
    %58 = vector.multi_reduction <add>, %57, %cst_13 [1] : vector<64x64xf32> to vector<64xf32>
    %59 = vector.shape_cast %58 : vector<64xf32> to vector<64x1xf32>
    %60 = tpu.reciprocal %59 {approx = true} : vector<64x1xf32> -> vector<64x1xf32>
    %61 = vector.broadcast %60 : vector<64x1xf32> to vector<64x64xf32>
    %62 = arith.mulf %57, %61 : vector<64x64xf32>
    %cst_14 = arith.constant dense<0.000000e+00> : vector<64x128xf32>
    %63 = tpu.matmul %62, %47, %cst_14 {dimension_numbers = #tpu.dot_dimension_numbers<[1], [0], [0], [1], [0, 0, 1, 1], [], []>} : vector<64x64xf32>, vector<64x128xf32>, vector<64x128xf32> -> vector<64x128xf32>
    %64 = vector.extract_strided_slice %63 {offsets = [0, 0], sizes = [8, 128], strides = [1, 1]} : vector<64x128xf32> to vector<8x128xf32>
    %65 = vector.extract_strided_slice %63 {offsets = [8, 0], sizes = [8, 128], strides = [1, 1]} : vector<64x128xf32> to vector<8x128xf32>
    %66 = vector.extract_strided_slice %63 {offsets = [16, 0], sizes = [8, 128], strides = [1, 1]} : vector<64x128xf32> to vector<8x128xf32>
    %67 = vector.extract_strided_slice %63 {offsets = [24, 0], sizes = [8, 128], strides = [1, 1]} : vector<64x128xf32> to vector<8x128xf32>
    %68 = tpu.concatenate %64, %65, %66, %67 in 1 : vector<8x128xf32>, vector<8x128xf32>, vector<8x128xf32>, vector<8x128xf32> -> vector<8x512xf32>
    %69 = vector.extract_strided_slice %63 {offsets = [32, 0], sizes = [8, 128], strides = [1, 1]} : vector<64x128xf32> to vector<8x128xf32>
    %70 = vector.extract_strided_slice %63 {offsets = [40, 0], sizes = [8, 128], strides = [1, 1]} : vector<64x128xf32> to vector<8x128xf32>
    %71 = vector.extract_strided_slice %63 {offsets = [48, 0], sizes = [8, 128], strides = [1, 1]} : vector<64x128xf32> to vector<8x128xf32>
    %72 = vector.extract_strided_slice %63 {offsets = [56, 0], sizes = [8, 128], strides = [1, 1]} : vector<64x128xf32> to vector<8x128xf32>
    %73 = tpu.concatenate %69, %70, %71, %72 in 1 : vector<8x128xf32>, vector<8x128xf32>, vector<8x128xf32>, vector<8x128xf32> -> vector<8x512xf32>
    %74 = tpu.concatenate %68, %73 in 0 : vector<8x512xf32>, vector<8x512xf32> -> vector<16x512xf32>
    %75 = arith.truncf %74 : vector<16x512xf32> to vector<16x512xbf16>
    %c0_15 = arith.constant 0 : index
    %c0_16 = arith.constant 0 : index
    %c0_17 = arith.constant 0 : index
    %76 = vector.load %arg8[%c0_15, %c0_16, %c0_17] : memref<1x512x512xbf16, #tpu.memory_space<vmem>>, vector<1x512x512xbf16>
    %77 = vector.shape_cast %76 : vector<1x512x512xbf16> to vector<512x512xbf16>
    %cst_18 = arith.constant dense<0.000000e+00> : vector<16x512xf32>
    %78 = tpu.matmul %75, %77, %cst_18 {dimension_numbers = #tpu.dot_dimension_numbers<[1], [0], [0], [1], [0, 0, 1, 1], [], []>} : vector<16x512xbf16>, vector<512x512xbf16>, vector<16x512xf32> -> vector<16x512xf32>
    %c0_19 = arith.constant 0 : index
    %c0_20 = arith.constant 0 : index
    %c0_21 = arith.constant 0 : index
    %79 = vector.load %arg9[%c0_19, %c0_20, %c0_21] : memref<1x1x512xf32, #tpu.memory_space<vmem>>, vector<1x1x512xf32>
    %80 = vector.shape_cast %79 : vector<1x1x512xf32> to vector<1x512xf32>
    %81 = vector.broadcast %80 : vector<1x512xf32> to vector<16x512xf32>
    %82 = arith.addf %78, %81 : vector<16x512xf32>
    %83 = arith.addf %3, %82 : vector<16x512xf32>
    %c0_22 = arith.constant 0 : index
    %c0_23 = arith.constant 0 : index
    %c0_24 = arith.constant 0 : index
    %84 = vector.load %arg10[%c0_22, %c0_23, %c0_24] : memref<1x1x512xf32, #tpu.memory_space<vmem>>, vector<1x1x512xf32>
    %85 = vector.shape_cast %84 : vector<1x1x512xf32> to vector<1x512xf32>
    %c0_25 = arith.constant 0 : index
    %c0_26 = arith.constant 0 : index
    %c0_27 = arith.constant 0 : index
    %86 = vector.load %arg11[%c0_25, %c0_26, %c0_27] : memref<1x1x512xf32, #tpu.memory_space<vmem>>, vector<1x1x512xf32>
    %87 = vector.shape_cast %86 : vector<1x1x512xf32> to vector<1x512xf32>
    %cst_28 = arith.constant dense<0.000000e+00> : vector<16xf32>
    %88 = vector.multi_reduction <add>, %83, %cst_28 [1] : vector<16x512xf32> to vector<16xf32>
    %89 = vector.shape_cast %88 : vector<16xf32> to vector<16x1xf32>
    %cst_29 = arith.constant 5.120000e+02 : f32
    %90 = vector.broadcast %cst_29 : f32 to vector<16x1xf32>
    %91 = arith.divf %89, %90 : vector<16x1xf32>
    %92 = vector.broadcast %91 : vector<16x1xf32> to vector<16x512xf32>
    %93 = arith.subf %83, %92 : vector<16x512xf32>
    %94 = arith.mulf %93, %93 : vector<16x512xf32>
    %cst_30 = arith.constant dense<0.000000e+00> : vector<16xf32>
    %95 = vector.multi_reduction <add>, %94, %cst_30 [1] : vector<16x512xf32> to vector<16xf32>
    %96 = vector.shape_cast %95 : vector<16xf32> to vector<16x1xf32>
    %cst_31 = arith.constant 5.120000e+02 : f32
    %97 = vector.broadcast %cst_31 : f32 to vector<16x1xf32>
    %98 = arith.divf %96, %97 : vector<16x1xf32>
    %99 = vector.broadcast %91 : vector<16x1xf32> to vector<16x512xf32>
    %100 = arith.subf %83, %99 : vector<16x512xf32>
    %cst_32 = arith.constant 9.99999974E-6 : f32
    %101 = vector.broadcast %cst_32 : f32 to vector<16x1xf32>
    %102 = arith.addf %98, %101 : vector<16x1xf32>
    %103 = math.rsqrt %102 : vector<16x1xf32>
    %104 = vector.broadcast %103 : vector<16x1xf32> to vector<16x512xf32>
    %105 = arith.mulf %100, %104 : vector<16x512xf32>
    %106 = vector.broadcast %85 : vector<1x512xf32> to vector<16x512xf32>
    %107 = arith.mulf %105, %106 : vector<16x512xf32>
    %108 = vector.broadcast %87 : vector<1x512xf32> to vector<16x512xf32>
    %109 = arith.addf %107, %108 : vector<16x512xf32>
    %110 = arith.truncf %109 : vector<16x512xf32> to vector<16x512xbf16>
    %c0_33 = arith.constant 0 : index
    %c0_34 = arith.constant 0 : index
    %c0_35 = arith.constant 0 : index
    %111 = vector.load %arg12[%c0_33, %c0_34, %c0_35] : memref<1x512x2048xbf16, #tpu.memory_space<vmem>>, vector<1x512x2048xbf16>
    %112 = vector.shape_cast %111 : vector<1x512x2048xbf16> to vector<512x2048xbf16>
    %cst_36 = arith.constant dense<0.000000e+00> : vector<16x2048xf32>
    %113 = tpu.matmul %110, %112, %cst_36 {dimension_numbers = #tpu.dot_dimension_numbers<[1], [0], [0], [1], [0, 0, 1, 1], [], []>} : vector<16x512xbf16>, vector<512x2048xbf16>, vector<16x2048xf32> -> vector<16x2048xf32>
    %c0_37 = arith.constant 0 : index
    %c0_38 = arith.constant 0 : index
    %c0_39 = arith.constant 0 : index
    %114 = vector.load %arg13[%c0_37, %c0_38, %c0_39] : memref<1x1x2048xf32, #tpu.memory_space<vmem>>, vector<1x1x2048xf32>
    %115 = vector.shape_cast %114 : vector<1x1x2048xf32> to vector<1x2048xf32>
    %116 = vector.broadcast %115 : vector<1x2048xf32> to vector<16x2048xf32>
    %117 = arith.addf %113, %116 : vector<16x2048xf32>
    %cst_40 = arith.constant 0.000000e+00 : f32
    %118 = vector.broadcast %cst_40 : f32 to vector<16x2048xf32>
    %119 = arith.maximumf %117, %118 : vector<16x2048xf32>
    %120 = arith.truncf %119 : vector<16x2048xf32> to vector<16x2048xbf16>
    %c0_41 = arith.constant 0 : index
    %c0_42 = arith.constant 0 : index
    %c0_43 = arith.constant 0 : index
    %121 = vector.load %arg14[%c0_41, %c0_42, %c0_43] : memref<1x2048x512xbf16, #tpu.memory_space<vmem>>, vector<1x2048x512xbf16>
    %122 = vector.shape_cast %121 : vector<1x2048x512xbf16> to vector<2048x512xbf16>
    %cst_44 = arith.constant dense<0.000000e+00> : vector<16x512xf32>
    %123 = tpu.matmul %120, %122, %cst_44 {dimension_numbers = #tpu.dot_dimension_numbers<[1], [0], [0], [1], [0, 0, 1, 1], [], []>} : vector<16x2048xbf16>, vector<2048x512xbf16>, vector<16x512xf32> -> vector<16x512xf32>
    %c0_45 = arith.constant 0 : index
    %c0_46 = arith.constant 0 : index
    %c0_47 = arith.constant 0 : index
    %124 = vector.load %arg15[%c0_45, %c0_46, %c0_47] : memref<1x1x512xf32, #tpu.memory_space<vmem>>, vector<1x1x512xf32>
    %125 = vector.shape_cast %124 : vector<1x1x512xf32> to vector<1x512xf32>
    %126 = vector.broadcast %125 : vector<1x512xf32> to vector<16x512xf32>
    %127 = arith.addf %123, %126 : vector<16x512xf32>
    %128 = arith.addf %109, %127 : vector<16x512xf32>
    %c0_48 = arith.constant 0 : index
    %c0_49 = arith.constant 0 : index
    %c0_50 = arith.constant 0 : index
    %129 = vector.load %arg16[%c0_48, %c0_49, %c0_50] : memref<1x1x512xf32, #tpu.memory_space<vmem>>, vector<1x1x512xf32>
    %130 = vector.shape_cast %129 : vector<1x1x512xf32> to vector<1x512xf32>
    %c0_51 = arith.constant 0 : index
    %c0_52 = arith.constant 0 : index
    %c0_53 = arith.constant 0 : index
    %131 = vector.load %arg17[%c0_51, %c0_52, %c0_53] : memref<1x1x512xf32, #tpu.memory_space<vmem>>, vector<1x1x512xf32>
    %132 = vector.shape_cast %131 : vector<1x1x512xf32> to vector<1x512xf32>
    %cst_54 = arith.constant dense<0.000000e+00> : vector<16xf32>
    %133 = vector.multi_reduction <add>, %128, %cst_54 [1] : vector<16x512xf32> to vector<16xf32>
    %134 = vector.shape_cast %133 : vector<16xf32> to vector<16x1xf32>
    %cst_55 = arith.constant 5.120000e+02 : f32
    %135 = vector.broadcast %cst_55 : f32 to vector<16x1xf32>
    %136 = arith.divf %134, %135 : vector<16x1xf32>
    %137 = vector.broadcast %136 : vector<16x1xf32> to vector<16x512xf32>
    %138 = arith.subf %128, %137 : vector<16x512xf32>
    %139 = arith.mulf %138, %138 : vector<16x512xf32>
    %cst_56 = arith.constant dense<0.000000e+00> : vector<16xf32>
    %140 = vector.multi_reduction <add>, %139, %cst_56 [1] : vector<16x512xf32> to vector<16xf32>
    %141 = vector.shape_cast %140 : vector<16xf32> to vector<16x1xf32>
    %cst_57 = arith.constant 5.120000e+02 : f32
    %142 = vector.broadcast %cst_57 : f32 to vector<16x1xf32>
    %143 = arith.divf %141, %142 : vector<16x1xf32>
    %144 = vector.broadcast %136 : vector<16x1xf32> to vector<16x512xf32>
    %145 = arith.subf %128, %144 : vector<16x512xf32>
    %cst_58 = arith.constant 9.99999974E-6 : f32
    %146 = vector.broadcast %cst_58 : f32 to vector<16x1xf32>
    %147 = arith.addf %143, %146 : vector<16x1xf32>
    %148 = math.rsqrt %147 : vector<16x1xf32>
    %149 = vector.broadcast %148 : vector<16x1xf32> to vector<16x512xf32>
    %150 = arith.mulf %145, %149 : vector<16x512xf32>
    %151 = vector.broadcast %130 : vector<1x512xf32> to vector<16x512xf32>
    %152 = arith.mulf %150, %151 : vector<16x512xf32>
    %153 = vector.broadcast %132 : vector<1x512xf32> to vector<16x512xf32>
    %154 = arith.addf %152, %153 : vector<16x512xf32>
    %c0_59 = arith.constant 0 : index
    %c0_60 = arith.constant 0 : index
    %155 = vector.load %arg25[%c0_59, %c0_60] : memref<16x512xf32, #tpu.memory_space<vmem>>, vector<16x512xf32>
    tpu.vector_store %arg25[%c0_59, %c0_60], %154 {strides = array<i32>} : memref<16x512xf32, #tpu.memory_space<vmem>>, vector<16x512xf32>,
    %c1_i32 = arith.constant 1 : i32
    %156 = arith.cmpi eq, %arg0, %c1_i32 : i32
    %157 = arith.extui %156 : i1 to i32
    %c0_i32_61 = arith.constant 0 : i32
    %158 = arith.cmpi ne, %157, %c0_i32_61 : i32
    scf.if %158 {
      %cst_62 = arith.constant dense<0.000000e+00> : vector<16xf32>
      %159 = vector.multi_reduction <add>, %154, %cst_62 [1] : vector<16x512xf32> to vector<16xf32>
      %160 = vector.shape_cast %159 : vector<16xf32> to vector<16x1xf32>
      %cst_63 = arith.constant 5.120000e+02 : f32
      %161 = vector.broadcast %cst_63 : f32 to vector<16x1xf32>
      %162 = arith.divf %160, %161 : vector<16x1xf32>
      %163 = vector.broadcast %162 : vector<16x1xf32> to vector<16x512xf32>
      %164 = arith.subf %154, %163 : vector<16x512xf32>
      %165 = arith.mulf %164, %164 : vector<16x512xf32>
      %cst_64 = arith.constant dense<0.000000e+00> : vector<16xf32>
      %166 = vector.multi_reduction <add>, %165, %cst_64 [1] : vector<16x512xf32> to vector<16xf32>
      %167 = vector.shape_cast %166 : vector<16xf32> to vector<16x1xf32>
      %cst_65 = arith.constant 5.120000e+02 : f32
      %168 = vector.broadcast %cst_65 : f32 to vector<16x1xf32>
      %169 = arith.divf %167, %168 : vector<16x1xf32>
      %170 = vector.broadcast %162 : vector<16x1xf32> to vector<16x512xf32>
      %171 = arith.subf %154, %170 : vector<16x512xf32>
      %cst_66 = arith.constant 9.99999974E-6 : f32
      %172 = vector.broadcast %cst_66 : f32 to vector<16x1xf32>
      %173 = arith.addf %169, %172 : vector<16x1xf32>
      %174 = math.rsqrt %173 : vector<16x1xf32>
      %175 = vector.broadcast %174 : vector<16x1xf32> to vector<16x512xf32>
      %176 = arith.mulf %171, %175 : vector<16x512xf32>
      %177 = arith.truncf %176 : vector<16x512xf32> to vector<16x512xbf16>
      %c0_67 = arith.constant 0 : index
      %c0_68 = arith.constant 0 : index
      %178 = vector.load %arg18[%c0_67, %c0_68] : memref<512x256xbf16, #tpu.memory_space<vmem>>, vector<512x256xbf16>
      %cst_69 = arith.constant dense<0.000000e+00> : vector<16x256xf32>
      %179 = tpu.matmul %177, %178, %cst_69 {dimension_numbers = #tpu.dot_dimension_numbers<[1], [0], [0], [1], [0, 0, 1, 1], [], []>} : vector<16x512xbf16>, vector<512x256xbf16>, vector<16x256xf32> -> vector<16x256xf32>
      %c0_70 = arith.constant 0 : index
      %c0_71 = arith.constant 0 : index
      %180 = vector.load %arg19[%c0_70, %c0_71] : memref<1x256xf32, #tpu.memory_space<vmem>>, vector<1x256xf32>
      %181 = vector.broadcast %180 : vector<1x256xf32> to vector<16x256xf32>
      %182 = arith.addf %179, %181 : vector<16x256xf32>
      %cst_72 = arith.constant 0.000000e+00 : f32
      %183 = vector.broadcast %cst_72 : f32 to vector<16x256xf32>
      %184 = arith.cmpf oge, %182, %183 : vector<16x256xf32>
      %cst_73 = arith.constant 0.00999999977 : f32
      %185 = vector.broadcast %cst_73 : f32 to vector<16x256xf32>
      %186 = arith.mulf %185, %182 : vector<16x256xf32>
      %187 = arith.select %184, %182, %186 : vector<16x256xi1>, vector<16x256xf32>
      %188 = arith.truncf %187 : vector<16x256xf32> to vector<16x256xbf16>
      %c0_74 = arith.constant 0 : index
      %c0_75 = arith.constant 0 : index
      %189 = vector.load %arg20[%c0_74, %c0_75] : memref<256x128xbf16, #tpu.memory_space<vmem>>, vector<256x128xbf16>
      %cst_76 = arith.constant dense<0.000000e+00> : vector<16x128xf32>
      %190 = tpu.matmul %188, %189, %cst_76 {dimension_numbers = #tpu.dot_dimension_numbers<[1], [0], [0], [1], [0, 0, 1, 1], [], []>} : vector<16x256xbf16>, vector<256x128xbf16>, vector<16x128xf32> -> vector<16x128xf32>
      %c0_77 = arith.constant 0 : index
      %c0_78 = arith.constant 0 : index
      %191 = vector.load %arg21[%c0_77, %c0_78] : memref<1x128xf32, #tpu.memory_space<vmem>>, vector<1x128xf32>
      %192 = vector.broadcast %191 : vector<1x128xf32> to vector<16x128xf32>
      %193 = arith.addf %190, %192 : vector<16x128xf32>
      %cst_79 = arith.constant 0.000000e+00 : f32
      %194 = vector.broadcast %cst_79 : f32 to vector<16x128xf32>
      %195 = arith.cmpf oge, %193, %194 : vector<16x128xf32>
      %cst_80 = arith.constant 0.00999999977 : f32
      %196 = vector.broadcast %cst_80 : f32 to vector<16x128xf32>
      %197 = arith.mulf %196, %193 : vector<16x128xf32>
      %198 = arith.select %195, %193, %197 : vector<16x128xi1>, vector<16x128xf32>
      %199 = arith.truncf %198 : vector<16x128xf32> to vector<16x128xbf16>
      %c0_81 = arith.constant 0 : index
      %c0_82 = arith.constant 0 : index
      %200 = vector.load %arg22[%c0_81, %c0_82] : memref<128x128xbf16, #tpu.memory_space<vmem>>, vector<128x128xbf16>
      %cst_83 = arith.constant dense<0.000000e+00> : vector<16x128xf32>
      %201 = tpu.matmul %199, %200, %cst_83 {dimension_numbers = #tpu.dot_dimension_numbers<[1], [0], [0], [1], [0, 0, 1, 1], [], []>} : vector<16x128xbf16>, vector<128x128xbf16>, vector<16x128xf32> -> vector<16x128xf32>
      %c0_84 = arith.constant 0 : index
      %c0_85 = arith.constant 0 : index
      %202 = vector.load %arg23[%c0_84, %c0_85] : memref<1x128xf32, #tpu.memory_space<vmem>>, vector<1x128xf32>
      %203 = vector.broadcast %202 : vector<1x128xf32> to vector<16x128xf32>
      %204 = arith.addf %201, %203 : vector<16x128xf32>
      %c0_86 = arith.constant 0 : index
      %c0_87 = arith.constant 0 : index
      %205 = vector.load %arg24[%c0_86, %c0_87] : memref<16x128xf32, #tpu.memory_space<vmem>>, vector<16x128xf32>
      tpu.vector_store %arg24[%c0_86, %c0_87], %204 {strides = array<i32>} : memref<16x128xf32, #tpu.memory_space<vmem>>, vector<16x128xf32>,
    } else {
    }
    return
  }
  func.func @transform_0(%arg0: i32) -> (i32, i32) {
    %c0_i32 = arith.constant 0 : i32
    %c0_i32_0 = arith.constant 0 : i32
    %c0_i32_1 = arith.constant 0 : i32
    return %c0_i32, %c0_i32_0 : i32, i32
  }
  func.func @transform_1(%arg0: i32) -> (i32, i32) {
    %c0_i32 = arith.constant 0 : i32
    %c0_i32_0 = arith.constant 0 : i32
    %c0_i32_1 = arith.constant 0 : i32
    return %c0_i32, %c0_i32_0 : i32, i32
  }
  func.func @transform_2(%arg0: i32) -> (i32, i32) {
    %c0_i32 = arith.constant 0 : i32
    %c0_i32_0 = arith.constant 0 : i32
    %c0_i32_1 = arith.constant 0 : i32
    return %c0_i32, %c0_i32_0 : i32, i32
  }
  func.func @transform_3(%arg0: i32) -> (i32, i32) {
    %c0_i32 = arith.constant 0 : i32
    %c0_i32_0 = arith.constant 0 : i32
    %c0_i32_1 = arith.constant 0 : i32
    return %c0_i32, %c0_i32_0 : i32, i32
  }
  func.func @transform_4(%arg0: i32) -> (i32, i32) {
    %c0_i32 = arith.constant 0 : i32
    %c0_i32_0 = arith.constant 0 : i32
    %c0_i32_1 = arith.constant 0 : i32
    return %c0_i32, %c0_i32_0 : i32, i32
  }
  func.func @transform_5(%arg0: i32) -> (i32, i32, i32) {
    %c0_i32 = arith.constant 0 : i32
    %c0_i32_0 = arith.constant 0 : i32
    %c0_i32_1 = arith.constant 0 : i32
    return %arg0, %c0_i32, %c0_i32_0 : i32, i32, i32
  }
  func.func @transform_6(%arg0: i32) -> (i32, i32, i32) {
    %c0_i32 = arith.constant 0 : i32
    %c0_i32_0 = arith.constant 0 : i32
    %c0_i32_1 = arith.constant 0 : i32
    return %arg0, %c0_i32, %c0_i32_0 : i32, i32, i32
  }
  func.func @transform_7(%arg0: i32) -> (i32, i32, i32) {
    %c0_i32 = arith.constant 0 : i32
    %c0_i32_0 = arith.constant 0 : i32
    %c0_i32_1 = arith.constant 0 : i32
    return %arg0, %c0_i32, %c0_i32_0 : i32, i32, i32
  }
  func.func @transform_8(%arg0: i32) -> (i32, i32, i32) {
    %c0_i32 = arith.constant 0 : i32
    %c0_i32_0 = arith.constant 0 : i32
    %c0_i32_1 = arith.constant 0 : i32
    return %arg0, %c0_i32, %c0_i32_0 : i32, i32, i32
  }
  func.func @transform_9(%arg0: i32) -> (i32, i32, i32) {
    %c0_i32 = arith.constant 0 : i32
    %c0_i32_0 = arith.constant 0 : i32
    %c0_i32_1 = arith.constant 0 : i32
    return %arg0, %c0_i32, %c0_i32_0 : i32, i32, i32
  }
  func.func @transform_10(%arg0: i32) -> (i32, i32, i32) {
    %c0_i32 = arith.constant 0 : i32
    %c0_i32_0 = arith.constant 0 : i32
    %c0_i32_1 = arith.constant 0 : i32
    return %arg0, %c0_i32, %c0_i32_0 : i32, i32, i32
  }
  func.func @transform_11(%arg0: i32) -> (i32, i32, i32) {
    %c0_i32 = arith.constant 0 : i32
    %c0_i32_0 = arith.constant 0 : i32
    %c0_i32_1 = arith.constant 0 : i32
    return %arg0, %c0_i32, %c0_i32_0 : i32, i32, i32
  }
  func.func @transform_12(%arg0: i32) -> (i32, i32, i32) {
    %c0_i32 = arith.constant 0 : i32
    %c0_i32_0 = arith.constant 0 : i32
    %c0_i32_1 = arith.constant 0 : i32
    return %arg0, %c0_i32, %c0_i32_0 : i32, i32, i32
  }
  func.func @transform_13(%arg0: i32) -> (i32, i32, i32) {
    %c0_i32 = arith.constant 0 : i32
    %c0_i32_0 = arith.constant 0 : i32
    %c0_i32_1 = arith.constant 0 : i32
    return %arg0, %c0_i32, %c0_i32_0 : i32, i32, i32
  }
  func.func @transform_14(%arg0: i32) -> (i32, i32, i32) {
    %c0_i32 = arith.constant 0 : i32
    %c0_i32_0 = arith.constant 0 : i32
    %c0_i32_1 = arith.constant 0 : i32
    return %arg0, %c0_i32, %c0_i32_0 : i32, i32, i32
  }
  func.func @transform_15(%arg0: i32) -> (i32, i32, i32) {
    %c0_i32 = arith.constant 0 : i32
    %c0_i32_0 = arith.constant 0 : i32
    %c0_i32_1 = arith.constant 0 : i32
    return %arg0, %c0_i32, %c0_i32_0 : i32, i32, i32
  }
  func.func @transform_16(%arg0: i32) -> (i32, i32, i32) {
    %c0_i32 = arith.constant 0 : i32
    %c0_i32_0 = arith.constant 0 : i32
    %c0_i32_1 = arith.constant 0 : i32
    return %arg0, %c0_i32, %c0_i32_0 : i32, i32, i32
  }
  func.func @transform_17(%arg0: i32) -> (i32, i32) {
    %c0_i32 = arith.constant 0 : i32
    %c0_i32_0 = arith.constant 0 : i32
    %c0_i32_1 = arith.constant 0 : i32
    return %c0_i32, %c0_i32_0 : i32, i32
  }
  func.func @transform_18(%arg0: i32) -> (i32, i32) {
    %c0_i32 = arith.constant 0 : i32
    %c0_i32_0 = arith.constant 0 : i32
    %c0_i32_1 = arith.constant 0 : i32
    return %c0_i32, %c0_i32_0 : i32, i32
  }
  func.func @transform_19(%arg0: i32) -> (i32, i32) {
    %c0_i32 = arith.constant 0 : i32
    %c0_i32_0 = arith.constant 0 : i32
    %c0_i32_1 = arith.constant 0 : i32
    return %c0_i32, %c0_i32_0 : i32, i32
  }
  func.func @transform_20(%arg0: i32) -> (i32, i32) {
    %c0_i32 = arith.constant 0 : i32
    %c0_i32_0 = arith.constant 0 : i32
    %c0_i32_1 = arith.constant 0 : i32
    return %c0_i32, %c0_i32_0 : i32, i32
  }
  func.func @transform_21(%arg0: i32) -> (i32, i32) {
    %c0_i32 = arith.constant 0 : i32
    %c0_i32_0 = arith.constant 0 : i32
    %c0_i32_1 = arith.constant 0 : i32
    return %c0_i32, %c0_i32_0 : i32, i32
  }
  func.func @transform_22(%arg0: i32) -> (i32, i32) {
    %c0_i32 = arith.constant 0 : i32
    %c0_i32_0 = arith.constant 0 : i32
    %c0_i32_1 = arith.constant 0 : i32
    return %c0_i32, %c0_i32_0 : i32, i32
  }
  func.func @transform_23(%arg0: i32) -> (i32, i32) {
    %c0_i32 = arith.constant 0 : i32
    %c0_i32_0 = arith.constant 0 : i32
    %c0_i32_1 = arith.constant 0 : i32
    return %c0_i32, %c0_i32_0 : i32, i32
  }
}

</mosaic_0001>

<bundles_post_ra>
// kernel: transformer_forward.1
= control target key start
LH: loop header
LB: loop body
LE: loop exit
PB: predicated region body
PF: predicated region fallthrough
CT: control target
= control target key end

     0   :  { %s20558_s0 = inlined_call_operand.vmem [shape: f32[16,512], index: 0, kind: input, shape index: {}]   ;;  %s20559_s1 = inlined_call_operand.vmem [shape: f32[1,512], index: 1, kind: input, shape index: {}]   ;;  %s20560_s2 = inlined_call_operand.vmem [shape: f32[1,512], index: 2, kind: input, shape index: {}]   ;;  %s20561_s3 = inlined_call_operand.vmem [shape: f32[8,512], index: 3, kind: input, shape index: {}]   ;;  %s20562_s4 = inlined_call_operand.vmem [shape: f32[64,64], index: 4, kind: input, shape index: {}]   ;;  %s20563_s5 = inlined_call_operand.vmem [shape: bf16[2,512,1536], index: 5, kind: input, shape index: {}]   ;;  %s20564_s6 = inlined_call_operand.vmem [shape: f32[2,1,1536], index: 6, kind: input, shape index: {}]   ;;  %s20565_s7 = inlined_call_operand.vmem [shape: bf16[2,512,512], index: 7, kind: input, shape index: {}]   ;;  %s20566_s8 = inlined_call_operand.vmem [shape: f32[2,1,512], index: 8, kind: input, shape index: {}]   ;;  %s20567_s9 = inlined_call_operand.vmem [shape: f32[2,1,512], index: 9, kind: input, shape index: {}]   ;;  %s20568_s10 = inlined_call_operand.vmem [shape: f32[2,1,512], index: 10, kind: input, shape index: {}]   ;;  %s20569_s11 = inlined_call_operand.vmem [shape: bf16[2,512,2048], index: 11, kind: input, shape index: {}]   ;;  %s20570_s12 = inlined_call_operand.vmem [shape: f32[2,1,2048], index: 12, kind: input, shape index: {}]   ;;  %s20571_s13 = inlined_call_operand.vmem [shape: bf16[2,2048,512], index: 13, kind: input, shape index: {}]   ;;  %s20572_s14 = inlined_call_operand.vmem [shape: f32[2,1,512], index: 14, kind: input, shape index: {}]   ;;  %s20573_s15 = inlined_call_operand.vmem [shape: f32[2,1,512], index: 15, kind: input, shape index: {}]   ;;  %s20574_s16 = inlined_call_operand.vmem [shape: f32[2,1,512], index: 16, kind: input, shape index: {}]   ;;  %s20575_s17 = inlined_call_operand.vmem [shape: bf16[512,256], index: 17, kind: input, shape index: {}]   ;;  %s20576_s18 = inlined_call_operand.vmem [shape: f32[1,256], index: 18, kind: input, shape index: {}]   ;;  %s20577_s19 = inlined_call_operand.vmem [shape: bf16[256,128], index: 19, kind: input, shape index: {}]   ;;  %s20578_s20 = inlined_call_operand.vmem [shape: f32[1,128], index: 20, kind: input, shape index: {}]   ;;  %s20579_s21 = inlined_call_operand.vmem [shape: bf16[128,128], index: 21, kind: input, shape index: {}]   ;;  %s20580_s22 = inlined_call_operand.vmem [shape: f32[1,128], index: 22, kind: input, shape index: {}]   ;;  %s20581_s23 = inlined_call_operand.vmem [shape: f32[16,128], index: 23, kind: output, shape index: {}]  }
   0x1   :  { %20590 = sst [smem:[#allocation4_spill]] %s20558_s0 }
   0x2   :  { %20591 = sst [smem:[#allocation5_spill]] %s20559_s1 }
   0x3   :  { %20592 = sst [smem:[#allocation6_spill]] %s20560_s2 }
   0x4   :  { %20593 = sst [smem:[#allocation7_spill]] %s20561_s3 }
   0x5   :  { %20594 = sst [smem:[#allocation8_spill]] %s20562_s4  ;;  %s18015_s4 = smov 0  }
   0x6   :  { %20595 = sst [smem:[#allocation9_spill]] %s20563_s5 }
   0x7   :  { %20596 = sst [smem:[#allocation10_spill]] %s20564_s6 }
   0x8   :  { %20597 = sst [smem:[#allocation11_spill]] %s20565_s7 }
   0x9   :  { %20598 = sst [smem:[#allocation12_spill]] %s20569_s11 }
   0xa   :  { %20599 = sst [smem:[#allocation13_spill]] %s20575_s17 }
   0xb   :  { %20600 = sst [smem:[#allocation14_spill]] %s20576_s18 }
   0xc   :  { %20601 = sst [smem:[#allocation15_spill]] %s20577_s19 }
   0xd   :  { %20602 = sst [smem:[#allocation16_spill]] %s20578_s20 }
   0xe   :  { %20603 = sst [smem:[#allocation17_spill]] %s20579_s21 }
   0xf   :  { %20604 = sst [smem:[#allocation18_spill]] %s20580_s22 }
  0x10   :  { %20605 = sst [smem:[#allocation19_spill]] %s20581_s23 }
  0x11 LB: > { %20606 = sst [smem:[#allocation3_spill]] %s17891_s4  ;;  %s18021_s30 = sadd.s32 4294967295, %s17891_s4   ;;  %s17891_s4 = sphi %s18015_s4, %s33_s4  }
  0x12   : > { %p14137_p0 = scmp.ge.s32.totalorder %s17891_s4, 1  ;;  %p734_p1 = scmp.lt.s32.totalorder %s17891_s4, 3 }
  0x14   : > { %p735_p2 = pnand %p14137_p0, %p734_p1 }
  0x15   : > { %p840_p3 = scmp.lt.s32.totalorder (!%p735_p2), %s18021_s30, 1  ;;  %s20607_s6 = sld [smem:[#allocation11_spill]] (!%p735_p2) }
  0x16   : > { %738 = sbr.rel (%p735_p2) target bundleno = 4484 (0x1184), region = 112  ;;  %s20608_s29 = sld [smem:[#allocation9_spill]] (!%p735_p2) }
  0x17   : > { %s20609_s22 = sld [smem:[#allocation10_spill]] (!%p735_p2)  ;;  %s20610_s11 = sld [smem:[#allocation12_spill]] (!%p735_p2) }
  0x18   : > { %p14152_p4 = scmp.ne.s32.totalorder (!%p735_p2), %s18021_s30, 0 }
  0x1d   : > { %s841_s24 = scalar_select %p840_p3, %s18021_s30, 1 }
  0x1e   : > { %v907_v0 = vlaneseq (!%p14152_p4)  ;;  %s20612_s26 = sld [smem:[#allocation6_spill]] (!%p14152_p4)  ;;  %s20613_s28 = sld [smem:[#allocation4_spill]] (!%p14152_p4) }
  0x1f   : > { %s16164_s25 = smul.u32 3072, %s841_s24  ;;  %s15790_s5 = sshll.u32 %s841_s24, 10 }
  0x20   : > { %s16165_s1 = smul.u32 12, %s841_s24  ;;  %s18030_s27 = scalar_lea.vmem %s20607_s6, %s15790_s5  ;;  %v908_v1 = vshrl.u32 (!%p14152_p4), %v907_v0, 7 }
  0x21   : > { %s18035_s3 = scalar_lea.vmem %s20608_s29, %s16164_s25  ;;  %s18037_s0 = sshll.u32 %s841_s24, 2 }
  0x22   : > { %s18042_s20 = scalar_lea.vmem %s20609_s22, %s16165_s1  ;;  %s15791_s4 = sshll.u32 %s841_s24, 12  ;;  %v909_v5 = vsub.s32 (!%p14152_p4), 0, %v908_v1  ;;  %v913_v7 = vsub.s32 (!%p14152_p4), 1, %v908_v1  ;;  %v917_v8 = vsub.s32 (!%p14152_p4), 2, %v908_v1  ;;  %v921_v9 = vsub.s32 (!%p14152_p4), 3, %v908_v1 }
  0x23   : > { %s14146_s21 = sshll.u32 %s841_s24, 4  ;;  %s18059_s17 = scalar_lea.vmem %s20610_s11, %s15791_s4 }
  0x24   : > { %s18064_s5 = scalar_lea.vmem %s20570_s12, %s14146_s21  ;;  %s18069_s6 = scalar_lea.vmem %s20571_s13, %s15791_s4  ;;  %v935_v3 = vld [vmem:[%s20612_s26] sm:$0xf] (!%p14152_p4)  ;;  %v898_v6 = vld [vmem:[%s20613_s28 + $0x8] sm:$0xff] (!%p14152_p4)  ;;  %v899_v10 = vld [vmem:[%s20613_s28 + $0x10] sm:$0xff] (!%p14152_p4) }
  0x25   : > { %s883_s29 = scalar_lea.vmem %s20572_s14, %s18037_s0  ;;  %s887_s18 = scalar_lea.vmem %s20573_s15, %s18037_s0  ;;  %v897_v4 = vld [vmem:[%s20613_s28] sm:$0xff] (!%p14152_p4)  ;;  %v902_v12 = vld [vmem:[%s20613_s28 + $0x28] sm:$0xff] (!%p14152_p4)  ;;  %v940_v14 = vrot.slane (!%p14152_p4), %v935_v3, %v909_v5  ;;  %v944_v16 = vrot.slane (!%p14152_p4), %v935_v3, %v913_v7  ;;  %v900_v17 = vld [vmem:[%s20613_s28 + $0x18] sm:$0xff] (!%p14152_p4)  ;;  %v948_v21 = vrot.slane (!%p14152_p4), %v935_v3, %v917_v8  ;;  %v952_v23 = vrot.slane (!%p14152_p4), %v935_v3, %v921_v9 }
  0x26   : > { %896 = sbr.rel (%p14152_p4) target bundleno = 57 (0x39), region = 116  ;;  %s20611_s4 = sld [smem:[#allocation5_spill]] (!%p14152_p4)  ;;  %v901_v11 = vld [vmem:[%s20613_s28 + $0x20] sm:$0xff] (!%p14152_p4)  ;;  %v903_v18 = vld [vmem:[%s20613_s28 + $0x30] sm:$0xff] (!%p14152_p4)  ;;  %v904_v19 = vld [vmem:[%s20613_s28 + $0x38] sm:$0xff] (!%p14152_p4) }
  0x27   : > { %s20614_s21 = sld [smem:[#allocation7_spill]] (!%p14152_p4) }
  0x2c   : > { %v905_v2 = vld [vmem:[%s20611_s4] sm:$0xf] (!%p14152_p4) }
  0x2d   : > { %v910_v13 = vrot.slane %v905_v2, %v909_v5  ;;  %v914_v15 = vrot.slane %v905_v2, %v913_v7  ;;  %v918_v20 = vrot.slane %v905_v2, %v917_v8  ;;  %v922_v22 = vrot.slane %v905_v2, %v921_v9  ;;  %v965_v28 = vld [vmem:[%s20614_s21] sm:$0xff]  ;;  %v966_v29 = vld [vmem:[%s20614_s21 + $0x8] sm:$0xff]  ;;  %v967_v36 = vld [vmem:[%s20614_s21 + $0x10] sm:$0xff] }
  0x2e   : > { %v968_v37 = vld [vmem:[%s20614_s21 + $0x18] sm:$0xff] }
  0x2f   : > { %v927_v24 = vmul.f32 %v910_v13, %v897_v4  ;;  %v928_v25 = vmul.f32 %v914_v15, %v898_v6  ;;  %v931_v26 = vmul.f32 %v910_v13, %v901_v11  ;;  %v932_v27 = vmul.f32 %v914_v15, %v902_v12 }
  0x30   : > { %v929_v30 = vmul.f32 %v918_v20, %v899_v10  ;;  %v930_v31 = vmul.f32 %v922_v22, %v900_v17  ;;  %v933_v32 = vmul.f32 %v918_v20, %v903_v18  ;;  %v934_v33 = vmul.f32 %v922_v22, %v904_v19 }
  0x31   : > { %v957_v34 = vadd.f32 %v940_v14, %v927_v24  ;;  %v958_v35 = vadd.f32 %v944_v16, %v928_v25  ;;  %v961_v38 = vadd.f32 %v940_v14, %v931_v26  ;;  %v962_v39 = vadd.f32 %v944_v16, %v932_v27 }
  0x32   : > { %v959_v40 = vadd.f32 %v948_v21, %v929_v30  ;;  %v960_v41 = vadd.f32 %v952_v23, %v930_v31  ;;  %v963_v42 = vadd.f32 %v948_v21, %v933_v32  ;;  %v964_v43 = vadd.f32 %v952_v23, %v934_v33 }
  0x33   : > { %v969_v44 = vadd.f32 %v965_v28, %v957_v34  ;;  %v970_v45 = vadd.f32 %v966_v29, %v958_v35  ;;  %v973_v46 = vadd.f32 %v965_v28, %v961_v38  ;;  %v974_v47 = vadd.f32 %v966_v29, %v962_v39 }
  0x34   : > { %v971_v48 = vadd.f32 %v967_v36, %v959_v40  ;;  %v972_v49 = vadd.f32 %v968_v37, %v960_v41  ;;  %v975_v50 = vadd.f32 %v967_v36, %v963_v42  ;;  %v976_v51 = vadd.f32 %v968_v37, %v964_v43 }
  0x35   : > { %977 = vst [vmem:[#allocation2] sm:$0xff] %v969_v44  ;;  %978 = vst [vmem:[#allocation2 + $0x8] sm:$0xff] %v970_v45 }
  0x36   : > { %981 = vst [vmem:[#allocation2 + $0x20] sm:$0xff] %v973_v46  ;;  %982 = vst [vmem:[#allocation2 + $0x28] sm:$0xff] %v974_v47 }
  0x37   : > { %979 = vst [vmem:[#allocation2 + $0x10] sm:$0xff] %v971_v48  ;;  %980 = vst [vmem:[#allocation2 + $0x18] sm:$0xff] %v972_v49 }
  0x38   : > { %983 = vst [vmem:[#allocation2 + $0x30] sm:$0xff] %v975_v50  ;;  %984 = vst [vmem:[#allocation2 + $0x38] sm:$0xff] %v976_v51 }
  0x39 PF: > { %v16176_v52 = vld [vmem:[%s18035_s3 + $0x4] ss:$48 sps:$4 sm:$0xff]   ;;  %v16178_v53 = vld [vmem:[%s18035_s3 + $0xc] ss:$48 sps:$4 sm:$0xff]   ;;  %v16180_v54 = vld [vmem:[%s18035_s3] ss:$48 sps:$4 sm:$0xff]   ;;  %s20616_s2 = scalar_lea.vmem %s20566_s8, %s18037_s0  ;;  %s20617_s22 = scalar_lea.vmem %s20567_s9, %s18037_s0 }
  0x3a   : > { %3365 = vmatprep.subr.bf16.mxu0 %v16176_v52  ;;  %v16181_v55 = vld [vmem:[%s18035_s3 + $0x8] ss:$48 sps:$4 sm:$0xff]   ;;  %3451 = vmatprep.subr.bf16.mxu1 %v16178_v53  ;;  %v16182_v56 = vld [vmem:[%s18035_s3 + $0x64] ss:$48 sps:$4 sm:$0xff]   ;;  %v16184_v57 = vld [vmem:[%s18035_s3 + $0x6c] ss:$48 sps:$4 sm:$0xff]   ;;  %s20618_s25 = scalar_lea.vmem %s20568_s10, %s18037_s0  ;;  %s20619_s11 = scalar_lea.vmem %s20574_s16, %s18037_s0 }
  0x3b   : > { %3366 = vmatpush1.bf16.msra.mxu0 %v16180_v54  ;;  %3452 = vmatpush1.bf16.msra.mxu1 %v16181_v55  ;;  %v16186_v58 = vld [vmem:[%s18035_s3 + $0x60] ss:$48 sps:$4 sm:$0xff]   ;;  %v16187_v59 = vld [vmem:[%s18035_s3 + $0x68] ss:$48 sps:$4 sm:$0xff]   ;;  %v16188_v60 = vld [vmem:[%s18035_s3 + $0xc4] ss:$48 sps:$4 sm:$0xff]  }
  0x3c   : > { %3367 = vmatprep.subr.bf16.mxu0 %v16182_v56  ;;  %3453 = vmatprep.subr.bf16.mxu1 %v16184_v57  ;;  %v16190_v61 = vld [vmem:[%s18035_s3 + $0xcc] ss:$48 sps:$4 sm:$0xff]   ;;  %v16192_v62 = vld [vmem:[%s18035_s3 + $0xc0] ss:$48 sps:$4 sm:$0xff]   ;;  %v16193_v63 = vld [vmem:[%s18035_s3 + $0xc8] ss:$48 sps:$4 sm:$0xff]  }
  0x3d   : > { %v16194_v0 = vld [vmem:[%s18035_s3 + $0x124] ss:$48 sps:$4 sm:$0xff]   ;;  %v16196_v1 = vld [vmem:[%s18035_s3 + $0x12c] ss:$48 sps:$4 sm:$0xff]   ;;  %v16198_v2 = vld [vmem:[%s18035_s3 + $0x120] ss:$48 sps:$4 sm:$0xff]  }
  0x3e   : > { %v16199_v3 = vld [vmem:[%s18035_s3 + $0x128] ss:$48 sps:$4 sm:$0xff]   ;;  %v16200_v4 = vld [vmem:[%s18035_s3 + $0x184] ss:$48 sps:$4 sm:$0xff]   ;;  %v16202_v5 = vld [vmem:[%s18035_s3 + $0x18c] ss:$48 sps:$4 sm:$0xff]  }
  0x3f   : > { %3368 = vmatpush1.bf16.msra.mxu0 %v16186_v58  ;;  %3454 = vmatpush1.bf16.msra.mxu1 %v16187_v59  ;;  %v16204_v6 = vld [vmem:[%s18035_s3 + $0x180] ss:$48 sps:$4 sm:$0xff]   ;;  %v16205_v7 = vld [vmem:[%s18035_s3 + $0x188] ss:$48 sps:$4 sm:$0xff]   ;;  %v16206_v8 = vld [vmem:[%s18035_s3 + $0x1e4] ss:$48 sps:$4 sm:$0xff]  }
  0x40   : > { %3369 = vmatprep.subr.bf16.mxu0 %v16188_v60  ;;  %3455 = vmatprep.subr.bf16.mxu1 %v16190_v61  ;;  %v16208_v9 = vld [vmem:[%s18035_s3 + $0x1ec] ss:$48 sps:$4 sm:$0xff]   ;;  %v16210_v10 = vld [vmem:[%s18035_s3 + $0x1e0] ss:$48 sps:$4 sm:$0xff]   ;;  %v16211_v11 = vld [vmem:[%s18035_s3 + $0x1e8] ss:$48 sps:$4 sm:$0xff]  }
  0x41   : > { %v16212_v12 = vld [vmem:[%s18035_s3 + $0x244] ss:$48 sps:$4 sm:$0xff]   ;;  %v16214_v13 = vld [vmem:[%s18035_s3 + $0x24c] ss:$48 sps:$4 sm:$0xff]   ;;  %v16216_v14 = vld [vmem:[%s18035_s3 + $0x240] ss:$48 sps:$4 sm:$0xff]  }
  0x42   : > { %v16217_v15 = vld [vmem:[%s18035_s3 + $0x248] ss:$48 sps:$4 sm:$0xff]   ;;  %v16218_v16 = vld [vmem:[%s18035_s3 + $0x2a4] ss:$48 sps:$4 sm:$0xff]   ;;  %v16220_v17 = vld [vmem:[%s18035_s3 + $0x2ac] ss:$48 sps:$4 sm:$0xff]  }
  0x43   : > { %3370 = vmatpush1.bf16.msra.mxu0 %v16192_v62  ;;  %3456 = vmatpush1.bf16.msra.mxu1 %v16193_v63  ;;  %v16222_v18 = vld [vmem:[%s18035_s3 + $0x2a0] ss:$48 sps:$4 sm:$0xff]   ;;  %v16223_v19 = vld [vmem:[%s18035_s3 + $0x2a8] ss:$48 sps:$4 sm:$0xff]   ;;  %v16224_v20 = vld [vmem:[%s18035_s3 + $0x304] ss:$48 sps:$4 sm:$0xff]  }
  0x44   : > { %3371 = vmatprep.subr.bf16.mxu0 %v16194_v0  ;;  %3457 = vmatprep.subr.bf16.mxu1 %v16196_v1  ;;  %v16226_v21 = vld [vmem:[%s18035_s3 + $0x30c] ss:$48 sps:$4 sm:$0xff]   ;;  %v16228_v22 = vld [vmem:[%s18035_s3 + $0x300] ss:$48 sps:$4 sm:$0xff]   ;;  %v16229_v23 = vld [vmem:[%s18035_s3 + $0x308] ss:$48 sps:$4 sm:$0xff]  }
  0x45   : > { %v16230_v24 = vld [vmem:[%s18035_s3 + $0x364] ss:$48 sps:$4 sm:$0xff]   ;;  %v16232_v25 = vld [vmem:[%s18035_s3 + $0x36c] ss:$48 sps:$4 sm:$0xff]   ;;  %v16234_v26 = vld [vmem:[%s18035_s3 + $0x360] ss:$48 sps:$4 sm:$0xff]  }
  0x46   : > { %v16235_v27 = vld [vmem:[%s18035_s3 + $0x368] ss:$48 sps:$4 sm:$0xff]   ;;  %v16236_v28 = vld [vmem:[%s18035_s3 + $0x3c4] ss:$48 sps:$4 sm:$0xff]   ;;  %v16238_v29 = vld [vmem:[%s18035_s3 + $0x3cc] ss:$48 sps:$4 sm:$0xff]  }
  0x47   : > { %3372 = vmatpush1.bf16.msra.mxu0 %v16198_v2  ;;  %3458 = vmatpush1.bf16.msra.mxu1 %v16199_v3  ;;  %v16240_v30 = vld [vmem:[%s18035_s3 + $0x3c0] ss:$48 sps:$4 sm:$0xff]   ;;  %v16241_v31 = vld [vmem:[%s18035_s3 + $0x3c8] ss:$48 sps:$4 sm:$0xff]   ;;  %v16242_v32 = vld [vmem:[%s18035_s3 + $0x424] ss:$48 sps:$4 sm:$0xff]  }
  0x48   : > { %3373 = vmatprep.subr.bf16.mxu0 %v16200_v4  ;;  %3459 = vmatprep.subr.bf16.mxu1 %v16202_v5  ;;  %v16244_v33 = vld [vmem:[%s18035_s3 + $0x42c] ss:$48 sps:$4 sm:$0xff]   ;;  %v16246_v36 = vld [vmem:[%s18035_s3 + $0x420] ss:$48 sps:$4 sm:$0xff]   ;;  %v16247_v37 = vld [vmem:[%s18035_s3 + $0x428] ss:$48 sps:$4 sm:$0xff]  }
  0x49   : > { %v986_v34 = vld [vmem:[#allocation2 + $0x8] sm:$0xff]  ;;  %v16248_v39 = vld [vmem:[%s18035_s3 + $0x484] ss:$48 sps:$4 sm:$0xff]   ;;  %v16252_v41 = vld [vmem:[%s18035_s3 + $0x480] ss:$48 sps:$4 sm:$0xff]   ;;  %s20615_s23 = sld [smem:[#allocation8_spill]] }
  0x4a   : > { %v990_v35 = vld [vmem:[#allocation2 + $0x28] sm:$0xff]  ;;  %v16254_v43 = vld [vmem:[%s18035_s3 + $0x4e4] ss:$48 sps:$4 sm:$0xff]   ;;  %v16258_v45 = vld [vmem:[%s18035_s3 + $0x4e0] ss:$48 sps:$4 sm:$0xff]   ;;  %vm4010_vm0 = vcmask 523264  }
  0x4b   : > { %3374 = vmatpush1.bf16.msra.mxu0 %v16204_v6  ;;  %3460 = vmatpush1.bf16.msra.mxu1 %v16205_v7  ;;  %v18174_v38 = vpack.c.bf16 %v990_v35, %v986_v34  ;;  %v16250_v40 = vld [vmem:[%s18035_s3 + $0x48c] ss:$48 sps:$4 sm:$0xff]   ;;  %v16253_v42 = vld [vmem:[%s18035_s3 + $0x488] ss:$48 sps:$4 sm:$0xff]   ;;  %v16260_v47 = vld [vmem:[%s18035_s3 + $0x544] ss:$48 sps:$4 sm:$0xff]  }
  0x4c   : > { %3375 = vmatprep.subr.bf16.mxu0 %v16206_v8  ;;  %3461 = vmatprep.subr.bf16.mxu1 %v16208_v9  ;;  %v16256_v44 = vld [vmem:[%s18035_s3 + $0x4ec] ss:$48 sps:$4 sm:$0xff]   ;;  %v16259_v46 = vld [vmem:[%s18035_s3 + $0x4e8] ss:$48 sps:$4 sm:$0xff]   ;;  %v16264_v49 = vld [vmem:[%s18035_s3 + $0x540] ss:$48 sps:$4 sm:$0xff]  }
  0x4d   : > { %3397 = vmatprep.mubr.bf16.mxu0 %v18174_v38  ;;  %3483 = vmatprep.mubr.bf16.mxu1 %v18174_v38  ;;  %v16262_v48 = vld [vmem:[%s18035_s3 + $0x54c] ss:$48 sps:$4 sm:$0xff]   ;;  %v16265_v50 = vld [vmem:[%s18035_s3 + $0x548] ss:$48 sps:$4 sm:$0xff]   ;;  %v16266_v51 = vld [vmem:[%s18035_s3 + $0x5a4] ss:$48 sps:$4 sm:$0xff]  }
  0x4e   : > { %v16268_v52 = vld [vmem:[%s18035_s3 + $0x5ac] ss:$48 sps:$4 sm:$0xff]   ;;  %v16270_v53 = vld [vmem:[%s18035_s3 + $0x5a0] ss:$48 sps:$4 sm:$0xff]   ;;  %v16271_v54 = vld [vmem:[%s18035_s3 + $0x5a8] ss:$48 sps:$4 sm:$0xff]  }
  0x4f   : > { %3376 = vmatpush1.bf16.msra.mxu0 %v16210_v10  ;;  %3462 = vmatpush1.bf16.msra.mxu1 %v16211_v11  ;;  %v16274_v55 = vld [vmem:[%s18035_s3 + $0x604] ss:$48 sps:$4 sm:$0xff]   ;;  %v16277_v58 = vld [vmem:[%s18035_s3 + $0x60c] ss:$48 sps:$4 sm:$0xff]   ;;  %v16272_v59 = vld [vmem:[%s18035_s3 + $0x600] ss:$48 sps:$4 sm:$0xff]  }
  0x50   : > { %3377 = vmatprep.subr.bf16.mxu0 %v16212_v12  ;;  %3463 = vmatprep.subr.bf16.mxu1 %v16214_v13  ;;  %v985_v56 = vld [vmem:[#allocation2] sm:$0xff]  ;;  %v16275_v60 = vld [vmem:[%s18035_s3 + $0x608] ss:$48 sps:$4 sm:$0xff]   ;;  %v16283_v63 = vld [vmem:[%s18035_s3 + $0x66c] ss:$48 sps:$4 sm:$0xff]   ;;  %p15697_p5 = scmp.ne.s32.totalorder %s18021_s30, 1 }
  0x51   : > { %v989_v57 = vld [vmem:[#allocation2 + $0x20] sm:$0xff]  ;;  %v16281_v1 = vld [vmem:[%s18035_s3 + $0x668] ss:$48 sps:$4 sm:$0xff]   ;;  %v16289_v3 = vld [vmem:[%s18035_s3 + $0x6cc] ss:$48 sps:$4 sm:$0xff]   ;;  %s20620_s30 = sld [smem:[#allocation13_spill]] (!%p15697_p5) }
  0x52   : > { %v18198_v61 = vpack.c.bf16 %v989_v57, %v985_v56  ;;  %v16280_v62 = vld [vmem:[%s18035_s3 + $0x664] ss:$48 sps:$4 sm:$0xff]   ;;  %v16278_v0 = vld [vmem:[%s18035_s3 + $0x660] ss:$48 sps:$4 sm:$0xff]   ;;  %v16287_v5 = vld [vmem:[%s18035_s3 + $0x6c8] ss:$48 sps:$4 sm:$0xff]  }
  0x53   : > { %3378 = vmatpush1.bf16.msra.mxu0 %v16216_v14  ;;  %3464 = vmatpush1.bf16.msra.mxu1 %v16217_v15  ;;  %v16286_v2 = vld [vmem:[%s18035_s3 + $0x6c4] ss:$48 sps:$4 sm:$0xff]   ;;  %v16284_v4 = vld [vmem:[%s18035_s3 + $0x6c0] ss:$48 sps:$4 sm:$0xff]   ;;  %v16295_v7 = vld [vmem:[%s18035_s3 + $0x72c] ss:$48 sps:$4 sm:$0xff]  }
  0x54   : > { %3379 = vmatprep.subr.bf16.mxu0 %v16218_v16  ;;  %3465 = vmatprep.subr.bf16.mxu1 %v16220_v17  ;;  %v16292_v6 = vld [vmem:[%s18035_s3 + $0x724] ss:$48 sps:$4 sm:$0xff]   ;;  %v16290_v8 = vld [vmem:[%s18035_s3 + $0x720] ss:$48 sps:$4 sm:$0xff]   ;;  %v16293_v9 = vld [vmem:[%s18035_s3 + $0x728] ss:$48 sps:$4 sm:$0xff]  }
  0x55   : > { %v16298_v10 = vld [vmem:[%s18035_s3 + $0x784] ss:$48 sps:$4 sm:$0xff]   ;;  %v16301_v11 = vld [vmem:[%s18035_s3 + $0x78c] ss:$48 sps:$4 sm:$0xff]   ;;  %v16296_v12 = vld [vmem:[%s18035_s3 + $0x780] ss:$48 sps:$4 sm:$0xff]  }
  0x56   : > { %v16299_v13 = vld [vmem:[%s18035_s3 + $0x788] ss:$48 sps:$4 sm:$0xff]   ;;  %v16304_v14 = vld [vmem:[%s18035_s3 + $0x7e4] ss:$48 sps:$4 sm:$0xff]   ;;  %v16307_v15 = vld [vmem:[%s18035_s3 + $0x7ec] ss:$48 sps:$4 sm:$0xff]  }
  0x57   : > { %3380 = vmatpush1.bf16.msra.mxu0 %v16222_v18  ;;  %3466 = vmatpush1.bf16.msra.mxu1 %v16223_v19  ;;  %v16302_v16 = vld [vmem:[%s18035_s3 + $0x7e0] ss:$48 sps:$4 sm:$0xff]   ;;  %v16305_v17 = vld [vmem:[%s18035_s3 + $0x7e8] ss:$48 sps:$4 sm:$0xff]   ;;  %v16310_v18 = vld [vmem:[%s18035_s3 + $0x844] ss:$48 sps:$4 sm:$0xff]  }
  0x58   : > { %3381 = vmatprep.subr.bf16.mxu0 %v16224_v20  ;;  %3467 = vmatprep.subr.bf16.mxu1 %v16226_v21  ;;  %v16313_v19 = vld [vmem:[%s18035_s3 + $0x84c] ss:$48 sps:$4 sm:$0xff]   ;;  %v16308_v21 = vld [vmem:[%s18035_s3 + $0x840] ss:$48 sps:$4 sm:$0xff]   ;;  %v16359_v57 = vld [vmem:[%s18035_s3 + $0xb48] ss:$48 sps:$4 sm:$0xff]  }
  0x59   : > { %v988_v20 = vld [vmem:[#allocation2 + $0x18] sm:$0xff]  ;;  %v16326_v35 = vld [vmem:[%s18035_s3 + $0x960] ss:$48 sps:$4 sm:$0xff]   ;;  %s20623_s0 = sld [smem:[#allocation17_spill]] (!%p15697_p5)  ;;  %vm17894_vm5 = vmmov (!%p15697_p5), 0   ;;  %s20625_s24 = sld [smem:[#allocation18_spill]] (!%p15697_p5) }
  0x5a   : > { %v16331_v34 = vld [vmem:[%s18035_s3 + $0x96c] ss:$48 sps:$4 sm:$0xff]   ;;  %v16356_v56 = vld [vmem:[%s18035_s3 + $0xb40] ss:$48 sps:$4 sm:$0xff]  }
  0x5b   : > { %3382 = vmatpush1.bf16.msra.mxu0 %v16228_v22  ;;  %3468 = vmatpush1.bf16.msra.mxu1 %v16229_v23  ;;  %v16311_v22 = vld [vmem:[%s18035_s3 + $0x848] ss:$48 sps:$4 sm:$0xff]  }
  0x5c   : > { %3383 = vmatprep.subr.bf16.mxu0 %v16230_v24  ;;  %3469 = vmatprep.subr.bf16.mxu1 %v16232_v25  ;;  %v992_v23 = vld [vmem:[#allocation2 + $0x38] sm:$0xff]  ;;  %v16316_v24 = vld [vmem:[%s18035_s3 + $0x8a4] ss:$48 sps:$4 sm:$0xff]  }
  0x5d   : > { %v18227_v25 = vpack.c.bf16 %v992_v23, %v988_v20  ;;  %v16392_v20 = vld [vmem:[%s18035_s3 + $0x190] ss:$48 sps:$4 sm:$0xff]   ;;  %v16403_v23 = vld [vmem:[%s18035_s3 + $0x1fc] ss:$48 sps:$4 sm:$0xff]  }
  0x5f   : > { %3384 = vmatpush1.bf16.msra.mxu0 %v16234_v26  ;;  %3470 = vmatpush1.bf16.msra.mxu1 %v16235_v27  ;;  %v16319_v26 = vld [vmem:[%s18035_s3 + $0x8ac] ss:$48 sps:$4 sm:$0xff]   ;;  %v16314_v27 = vld [vmem:[%s18035_s3 + $0x8a0] ss:$48 sps:$4 sm:$0xff]  }
  0x60   : > { %3385 = vmatprep.subr.bf16.mxu0 %v16236_v28  ;;  %3471 = vmatprep.subr.bf16.mxu1 %v16238_v29  ;;  %v16317_v28 = vld [vmem:[%s18035_s3 + $0x8a8] ss:$48 sps:$4 sm:$0xff]   ;;  %v16322_v29 = vld [vmem:[%s18035_s3 + $0x904] ss:$48 sps:$4 sm:$0xff]  }
  0x63   : > { %3386 = vmatpush1.bf16.msra.mxu0 %v16240_v30  ;;  %3472 = vmatpush1.bf16.msra.mxu1 %v16241_v31  ;;  %v16325_v30 = vld [vmem:[%s18035_s3 + $0x90c] ss:$48 sps:$4 sm:$0xff]   ;;  %v16320_v31 = vld [vmem:[%s18035_s3 + $0x900] ss:$48 sps:$4 sm:$0xff]  }
  0x64   : > { %3387 = vmatprep.subr.bf16.mxu0 %v16242_v32  ;;  %3473 = vmatprep.subr.bf16.mxu1 %v16244_v33  ;;  %v16323_v32 = vld [vmem:[%s18035_s3 + $0x908] ss:$48 sps:$4 sm:$0xff]   ;;  %v16328_v33 = vld [vmem:[%s18035_s3 + $0x964] ss:$48 sps:$4 sm:$0xff]  }
  0x67   : > { %3388 = vmatpush1.bf16.msra.mxu0 %v16246_v36  ;;  %3474 = vmatpush1.bf16.msra.mxu1 %v16247_v37  ;;  %v16329_v36 = vld [vmem:[%s18035_s3 + $0x968] ss:$48 sps:$4 sm:$0xff]   ;;  %v16334_v37 = vld [vmem:[%s18035_s3 + $0x9c4] ss:$48 sps:$4 sm:$0xff]  }
  0x68   : > { %3389 = vmatprep.subr.bf16.mxu0 %v16248_v39  ;;  %3475 = vmatprep.subr.bf16.mxu1 %v16250_v40  ;;  %v16337_v39 = vld [vmem:[%s18035_s3 + $0x9cc] ss:$48 sps:$4 sm:$0xff]   ;;  %v16332_v40 = vld [vmem:[%s18035_s3 + $0x9c0] ss:$48 sps:$4 sm:$0xff]  }
  0x6b   : > { %3390 = vmatpush1.bf16.msra.mxu0 %v16252_v41  ;;  %3476 = vmatpush1.bf16.msra.mxu1 %v16253_v42  ;;  %v16335_v41 = vld [vmem:[%s18035_s3 + $0x9c8] ss:$48 sps:$4 sm:$0xff]   ;;  %v16340_v42 = vld [vmem:[%s18035_s3 + $0xa24] ss:$48 sps:$4 sm:$0xff]  }
  0x6c   : > { %3391 = vmatprep.subr.bf16.mxu0 %v16254_v43  ;;  %3477 = vmatprep.subr.bf16.mxu1 %v16256_v44  ;;  %v16343_v43 = vld [vmem:[%s18035_s3 + $0xa2c] ss:$48 sps:$4 sm:$0xff]   ;;  %v16338_v44 = vld [vmem:[%s18035_s3 + $0xa20] ss:$48 sps:$4 sm:$0xff]  }
  0x6f   : > { %3392 = vmatpush1.bf16.msra.mxu0 %v16258_v45  ;;  %3478 = vmatpush1.bf16.msra.mxu1 %v16259_v46  ;;  %v16341_v45 = vld [vmem:[%s18035_s3 + $0xa28] ss:$48 sps:$4 sm:$0xff]   ;;  %v16346_v46 = vld [vmem:[%s18035_s3 + $0xa84] ss:$48 sps:$4 sm:$0xff]  }
  0x70   : > { %3393 = vmatprep.subr.bf16.mxu0 %v16260_v47  ;;  %3479 = vmatprep.subr.bf16.mxu1 %v16262_v48  ;;  %v16349_v47 = vld [vmem:[%s18035_s3 + $0xa8c] ss:$48 sps:$4 sm:$0xff]   ;;  %v16344_v48 = vld [vmem:[%s18035_s3 + $0xa80] ss:$48 sps:$4 sm:$0xff]  }
  0x73   : > { %3394 = vmatpush1.bf16.msra.mxu0 %v16264_v49  ;;  %3480 = vmatpush1.bf16.msra.mxu1 %v16265_v50  ;;  %v16347_v49 = vld [vmem:[%s18035_s3 + $0xa88] ss:$48 sps:$4 sm:$0xff]   ;;  %v16352_v50 = vld [vmem:[%s18035_s3 + $0xae4] ss:$48 sps:$4 sm:$0xff]  }
  0x74   : > { %3395 = vmatprep.subr.bf16.mxu0 %v16266_v51  ;;  %3481 = vmatprep.subr.bf16.mxu1 %v16268_v52  ;;  %v16355_v51 = vld [vmem:[%s18035_s3 + $0xaec] ss:$48 sps:$4 sm:$0xff]   ;;  %v16350_v52 = vld [vmem:[%s18035_s3 + $0xae0] ss:$48 sps:$4 sm:$0xff]  }
  0x77   : > { %3396 = vmatpush1.bf16.msra.mxu0 %v16270_v53  ;;  %3482 = vmatpush1.bf16.msra.mxu1 %v16271_v54  ;;  %v16353_v53 = vld [vmem:[%s18035_s3 + $0xae8] ss:$48 sps:$4 sm:$0xff]   ;;  %v16358_v54 = vld [vmem:[%s18035_s3 + $0xb44] ss:$48 sps:$4 sm:$0xff]  }
  0x78   : > { %3408 = vmatprep.subr.bf16.mxu0 %v16274_v55  ;;  %3494 = vmatprep.subr.bf16.mxu1 %v16277_v58  ;;  %v16361_v55 = vld [vmem:[%s18035_s3 + $0xb4c] ss:$48 sps:$4 sm:$0xff]   ;;  %v16364_v58 = vld [vmem:[%s18035_s3 + $0xba4] ss:$48 sps:$4 sm:$0xff]  }
  0x7a   : > { %3398 = vmatmul.mubr.bf16.vlgmr.msra.gmra.mrb[0].mxu0 %v18198_v61  ;;  %3484 = vmatmul.mubr.bf16.vlgmr.msra.gmra.mrb[0].mxu1 %v18198_v61 }
  0x7b   : > { %3409 = vmatpush1.bf16.msra.mxu0 %v16272_v59  ;;  %3495 = vmatpush1.bf16.msra.mxu1 %v16275_v60  ;;  %v16367_v59 = vld [vmem:[%s18035_s3 + $0xbac] ss:$48 sps:$4 sm:$0xff]   ;;  %v16362_v60 = vld [vmem:[%s18035_s3 + $0xba0] ss:$48 sps:$4 sm:$0xff]  }
  0x7c   : > { %3410 = vmatprep.subr.bf16.mxu0 %v16280_v62  ;;  %3496 = vmatprep.subr.bf16.mxu1 %v16283_v63  ;;  %v16365_v62 = vld [vmem:[%s18035_s3 + $0xba8] ss:$48 sps:$4 sm:$0xff]   ;;  %v987_v63 = vld [vmem:[#allocation2 + $0x10] sm:$0xff] }
  0x7d   : > { %3440 = vmatprep.mubr.bf16.mxu0 %v18227_v25  ;;  %3526 = vmatprep.mubr.bf16.mxu1 %v18227_v25 }
  0x7f   : > { %3411 = vmatpush1.bf16.msra.mxu0 %v16278_v0  ;;  %3497 = vmatpush1.bf16.msra.mxu1 %v16281_v1  ;;  %v991_v0 = vld [vmem:[#allocation2 + $0x30] sm:$0xff] }
  0x80   : > { %3412 = vmatprep.subr.bf16.mxu0 %v16286_v2  ;;  %3498 = vmatprep.subr.bf16.mxu1 %v16289_v3  ;;  %v16370_v1 = vld [vmem:[%s18035_s3 + $0x14] ss:$48 sps:$4 sm:$0xff]   ;;  %v16373_v2 = vld [vmem:[%s18035_s3 + $0x1c] ss:$48 sps:$4 sm:$0xff]   ;;  %v18268_v3 = vpack.c.bf16 %v991_v0, %v987_v63  ;;  %v16452_v63 = vld [vmem:[%s18035_s3 + $0x550] ss:$48 sps:$4 sm:$0xff]  }
  0x81   : > { %v16455_v0 = vld [vmem:[%s18035_s3 + $0x558] ss:$48 sps:$4 sm:$0xff]  }
  0x83   : > { %3413 = vmatpush1.bf16.msra.mxu0 %v16284_v4  ;;  %3499 = vmatpush1.bf16.msra.mxu1 %v16287_v5  ;;  %v16368_v4 = vld [vmem:[%s18035_s3 + $0x10] ss:$48 sps:$4 sm:$0xff]   ;;  %v16371_v5 = vld [vmem:[%s18035_s3 + $0x18] ss:$48 sps:$4 sm:$0xff]  }
  0x84   : > { %3414 = vmatprep.subr.bf16.mxu0 %v16292_v6  ;;  %3500 = vmatprep.subr.bf16.mxu1 %v16295_v7  ;;  %v16376_v6 = vld [vmem:[%s18035_s3 + $0x74] ss:$48 sps:$4 sm:$0xff]   ;;  %v16379_v7 = vld [vmem:[%s18035_s3 + $0x7c] ss:$48 sps:$4 sm:$0xff]  }
  0x87   : > { %3415 = vmatpush1.bf16.msra.mxu0 %v16290_v8  ;;  %3501 = vmatpush1.bf16.msra.mxu1 %v16293_v9  ;;  %v16374_v8 = vld [vmem:[%s18035_s3 + $0x70] ss:$48 sps:$4 sm:$0xff]   ;;  %v16377_v9 = vld [vmem:[%s18035_s3 + $0x78] ss:$48 sps:$4 sm:$0xff]  }
  0x88   : > { %3416 = vmatprep.subr.bf16.mxu0 %v16298_v10  ;;  %3502 = vmatprep.subr.bf16.mxu1 %v16301_v11  ;;  %v16382_v10 = vld [vmem:[%s18035_s3 + $0xd4] ss:$48 sps:$4 sm:$0xff]   ;;  %v16385_v11 = vld [vmem:[%s18035_s3 + $0xdc] ss:$48 sps:$4 sm:$0xff]  }
  0x8b   : > { %3417 = vmatpush1.bf16.msra.mxu0 %v16296_v12  ;;  %3503 = vmatpush1.bf16.msra.mxu1 %v16299_v13  ;;  %v16380_v12 = vld [vmem:[%s18035_s3 + $0xd0] ss:$48 sps:$4 sm:$0xff]   ;;  %v16383_v13 = vld [vmem:[%s18035_s3 + $0xd8] ss:$48 sps:$4 sm:$0xff]  }
  0x8c   : > { %3418 = vmatprep.subr.bf16.mxu0 %v16304_v14  ;;  %3504 = vmatprep.subr.bf16.mxu1 %v16307_v15  ;;  %v16388_v14 = vld [vmem:[%s18035_s3 + $0x134] ss:$48 sps:$4 sm:$0xff]   ;;  %v16391_v15 = vld [vmem:[%s18035_s3 + $0x13c] ss:$48 sps:$4 sm:$0xff]  }
  0x8f   : > { %3419 = vmatpush1.bf16.msra.mxu0 %v16302_v16  ;;  %3505 = vmatpush1.bf16.msra.mxu1 %v16305_v17  ;;  %v16386_v16 = vld [vmem:[%s18035_s3 + $0x130] ss:$48 sps:$4 sm:$0xff]   ;;  %v16389_v17 = vld [vmem:[%s18035_s3 + $0x138] ss:$48 sps:$4 sm:$0xff]  }
  0x90   : > { %3420 = vmatprep.subr.bf16.mxu0 %v16310_v18  ;;  %3506 = vmatprep.subr.bf16.mxu1 %v16313_v19  ;;  %v16394_v18 = vld [vmem:[%s18035_s3 + $0x194] ss:$48 sps:$4 sm:$0xff]   ;;  %v16397_v19 = vld [vmem:[%s18035_s3 + $0x19c] ss:$48 sps:$4 sm:$0xff]  }
  0x93   : > { %3421 = vmatpush1.bf16.msra.mxu0 %v16308_v21  ;;  %3507 = vmatpush1.bf16.msra.mxu1 %v16311_v22  ;;  %v16395_v21 = vld [vmem:[%s18035_s3 + $0x198] ss:$48 sps:$4 sm:$0xff]   ;;  %v16400_v22 = vld [vmem:[%s18035_s3 + $0x1f4] ss:$48 sps:$4 sm:$0xff]  }
  0x94   : > { %3422 = vmatprep.subr.bf16.mxu0 %v16316_v24  ;;  %3508 = vmatprep.subr.bf16.mxu1 %v16319_v26  ;;  %v16398_v24 = vld [vmem:[%s18035_s3 + $0x1f0] ss:$48 sps:$4 sm:$0xff]   ;;  %v16401_v26 = vld [vmem:[%s18035_s3 + $0x1f8] ss:$48 sps:$4 sm:$0xff]  }
  0x97   : > { %3423 = vmatpush1.bf16.msra.mxu0 %v16314_v27  ;;  %3509 = vmatpush1.bf16.msra.mxu1 %v16317_v28  ;;  %v16406_v27 = vld [vmem:[%s18035_s3 + $0x254] ss:$48 sps:$4 sm:$0xff]   ;;  %v16409_v28 = vld [vmem:[%s18035_s3 + $0x25c] ss:$48 sps:$4 sm:$0xff]  }
  0x98   : > { %3424 = vmatprep.subr.bf16.mxu0 %v16322_v29  ;;  %3510 = vmatprep.subr.bf16.mxu1 %v16325_v30  ;;  %v16404_v29 = vld [vmem:[%s18035_s3 + $0x250] ss:$48 sps:$4 sm:$0xff]   ;;  %v16407_v30 = vld [vmem:[%s18035_s3 + $0x258] ss:$48 sps:$4 sm:$0xff]  }
  0x9b   : > { %3425 = vmatpush1.bf16.msra.mxu0 %v16320_v31  ;;  %3511 = vmatpush1.bf16.msra.mxu1 %v16323_v32  ;;  %v16412_v31 = vld [vmem:[%s18035_s3 + $0x2b4] ss:$48 sps:$4 sm:$0xff]   ;;  %v16415_v32 = vld [vmem:[%s18035_s3 + $0x2bc] ss:$48 sps:$4 sm:$0xff]  }
  0x9c   : > { %3426 = vmatprep.subr.bf16.mxu0 %v16328_v33  ;;  %3512 = vmatprep.subr.bf16.mxu1 %v16331_v34  ;;  %v16410_v33 = vld [vmem:[%s18035_s3 + $0x2b0] ss:$48 sps:$4 sm:$0xff]   ;;  %v16413_v34 = vld [vmem:[%s18035_s3 + $0x2b8] ss:$48 sps:$4 sm:$0xff]  }
  0x9f   : > { %3427 = vmatpush1.bf16.msra.mxu0 %v16326_v35  ;;  %3513 = vmatpush1.bf16.msra.mxu1 %v16329_v36  ;;  %v16418_v35 = vld [vmem:[%s18035_s3 + $0x314] ss:$48 sps:$4 sm:$0xff]   ;;  %v16421_v36 = vld [vmem:[%s18035_s3 + $0x31c] ss:$48 sps:$4 sm:$0xff]  }
  0xa0   : > { %3428 = vmatprep.subr.bf16.mxu0 %v16334_v37  ;;  %3514 = vmatprep.subr.bf16.mxu1 %v16337_v39  ;;  %v16416_v37 = vld [vmem:[%s18035_s3 + $0x310] ss:$48 sps:$4 sm:$0xff]   ;;  %v16419_v39 = vld [vmem:[%s18035_s3 + $0x318] ss:$48 sps:$4 sm:$0xff]  }
  0xa3   : > { %3429 = vmatpush1.bf16.msra.mxu0 %v16332_v40  ;;  %3515 = vmatpush1.bf16.msra.mxu1 %v16335_v41  ;;  %v16424_v40 = vld [vmem:[%s18035_s3 + $0x374] ss:$48 sps:$4 sm:$0xff]   ;;  %v16427_v41 = vld [vmem:[%s18035_s3 + $0x37c] ss:$48 sps:$4 sm:$0xff]  }
  0xa4   : > { %3430 = vmatprep.subr.bf16.mxu0 %v16340_v42  ;;  %3516 = vmatprep.subr.bf16.mxu1 %v16343_v43  ;;  %v16422_v42 = vld [vmem:[%s18035_s3 + $0x370] ss:$48 sps:$4 sm:$0xff]   ;;  %v16425_v43 = vld [vmem:[%s18035_s3 + $0x378] ss:$48 sps:$4 sm:$0xff]  }
  0xa7   : > { %3431 = vmatpush1.bf16.msra.mxu0 %v16338_v44  ;;  %3517 = vmatpush1.bf16.msra.mxu1 %v16341_v45  ;;  %v16430_v44 = vld [vmem:[%s18035_s3 + $0x3d4] ss:$48 sps:$4 sm:$0xff]   ;;  %v16433_v45 = vld [vmem:[%s18035_s3 + $0x3dc] ss:$48 sps:$4 sm:$0xff]  }
  0xa8   : > { %3432 = vmatprep.subr.bf16.mxu0 %v16346_v46  ;;  %3518 = vmatprep.subr.bf16.mxu1 %v16349_v47  ;;  %v16428_v46 = vld [vmem:[%s18035_s3 + $0x3d0] ss:$48 sps:$4 sm:$0xff]   ;;  %v16431_v47 = vld [vmem:[%s18035_s3 + $0x3d8] ss:$48 sps:$4 sm:$0xff]  }
  0xab   : > { %3433 = vmatpush1.bf16.msra.mxu0 %v16344_v48  ;;  %3519 = vmatpush1.bf16.msra.mxu1 %v16347_v49  ;;  %v16436_v48 = vld [vmem:[%s18035_s3 + $0x434] ss:$48 sps:$4 sm:$0xff]   ;;  %v16439_v49 = vld [vmem:[%s18035_s3 + $0x43c] ss:$48 sps:$4 sm:$0xff]  }
  0xac   : > { %3434 = vmatprep.subr.bf16.mxu0 %v16352_v50  ;;  %3520 = vmatprep.subr.bf16.mxu1 %v16355_v51  ;;  %v16434_v50 = vld [vmem:[%s18035_s3 + $0x430] ss:$48 sps:$4 sm:$0xff]   ;;  %v16437_v51 = vld [vmem:[%s18035_s3 + $0x438] ss:$48 sps:$4 sm:$0xff]  }
  0xaf   : > { %3435 = vmatpush1.bf16.msra.mxu0 %v16350_v52  ;;  %3521 = vmatpush1.bf16.msra.mxu1 %v16353_v53  ;;  %v16442_v52 = vld [vmem:[%s18035_s3 + $0x494] ss:$48 sps:$4 sm:$0xff]   ;;  %v16445_v53 = vld [vmem:[%s18035_s3 + $0x49c] ss:$48 sps:$4 sm:$0xff]  }
  0xb0   : > { %3436 = vmatprep.subr.bf16.mxu0 %v16358_v54  ;;  %3522 = vmatprep.subr.bf16.mxu1 %v16361_v55  ;;  %v16440_v54 = vld [vmem:[%s18035_s3 + $0x490] ss:$48 sps:$4 sm:$0xff]   ;;  %v16443_v55 = vld [vmem:[%s18035_s3 + $0x498] ss:$48 sps:$4 sm:$0xff]  }
  0xb3   : > { %3437 = vmatpush1.bf16.msra.mxu0 %v16356_v56  ;;  %3523 = vmatpush1.bf16.msra.mxu1 %v16359_v57  ;;  %v16448_v56 = vld [vmem:[%s18035_s3 + $0x4f4] ss:$48 sps:$4 sm:$0xff]   ;;  %v16451_v57 = vld [vmem:[%s18035_s3 + $0x4fc] ss:$48 sps:$4 sm:$0xff]  }
  0xb4   : > { %3438 = vmatprep.subr.bf16.mxu0 %v16364_v58  ;;  %3524 = vmatprep.subr.bf16.mxu1 %v16367_v59  ;;  %v16446_v58 = vld [vmem:[%s18035_s3 + $0x4f0] ss:$48 sps:$4 sm:$0xff]   ;;  %v16449_v59 = vld [vmem:[%s18035_s3 + $0x4f8] ss:$48 sps:$4 sm:$0xff]  }
  0xb7   : > { %3439 = vmatpush1.bf16.msra.mxu0 %v16362_v60  ;;  %3525 = vmatpush1.bf16.msra.mxu1 %v16365_v62  ;;  %v16454_v60 = vld [vmem:[%s18035_s3 + $0x554] ss:$48 sps:$4 sm:$0xff]   ;;  %v16457_v62 = vld [vmem:[%s18035_s3 + $0x55c] ss:$48 sps:$4 sm:$0xff]  }
  0xb8   : > { %3537 = vmatprep.subr.bf16.mxu0 %v16370_v1  ;;  %3623 = vmatprep.subr.bf16.mxu1 %v16373_v2  ;;  %v16460_v1 = vld [vmem:[%s18035_s3 + $0x5b4] ss:$48 sps:$4 sm:$0xff]   ;;  %v16463_v2 = vld [vmem:[%s18035_s3 + $0x5bc] ss:$48 sps:$4 sm:$0xff]  }
  0xba   : > { %3441 = vmatmul.mubr.bf16.vlgmr.msra.gmra.mrb[0].mxu0 %v18268_v3  ;;  %3527 = vmatmul.mubr.bf16.vlgmr.msra.gmra.mrb[0].mxu1 %v18268_v3 }
  0xbb   : > { %3538 = vmatpush1.bf16.msra.mxu0 %v16368_v4  ;;  %3624 = vmatpush1.bf16.msra.mxu1 %v16371_v5  ;;  %v16458_v4 = vld [vmem:[%s18035_s3 + $0x5b0] ss:$48 sps:$4 sm:$0xff]   ;;  %v16461_v5 = vld [vmem:[%s18035_s3 + $0x5b8] ss:$48 sps:$4 sm:$0xff]  }
  0xbc   : > { %3539 = vmatprep.subr.bf16.mxu0 %v16376_v6  ;;  %3625 = vmatprep.subr.bf16.mxu1 %v16379_v7  ;;  %v16466_v6 = vld [vmem:[%s18035_s3 + $0x614] ss:$48 sps:$4 sm:$0xff]   ;;  %v16469_v7 = vld [vmem:[%s18035_s3 + $0x61c] ss:$48 sps:$4 sm:$0xff]  }
  0xbd   : > { %3569 = vmatprep.mubr.bf16.mxu0 %v18174_v38  ;;  %3655 = vmatprep.mubr.bf16.mxu1 %v18174_v38 }
  0xbf   : > { %3540 = vmatpush1.bf16.msra.mxu0 %v16374_v8  ;;  %3626 = vmatpush1.bf16.msra.mxu1 %v16377_v9  ;;  %v16464_v8 = vld [vmem:[%s18035_s3 + $0x610] ss:$48 sps:$4 sm:$0xff]   ;;  %v16467_v9 = vld [vmem:[%s18035_s3 + $0x618] ss:$48 sps:$4 sm:$0xff]  }
  0xc0   : > { %3541 = vmatprep.subr.bf16.mxu0 %v16382_v10  ;;  %3627 = vmatprep.subr.bf16.mxu1 %v16385_v11  ;;  %v16472_v10 = vld [vmem:[%s18035_s3 + $0x674] ss:$48 sps:$4 sm:$0xff]   ;;  %v16475_v11 = vld [vmem:[%s18035_s3 + $0x67c] ss:$48 sps:$4 sm:$0xff]  }
  0xc3   : > { %3542 = vmatpush1.bf16.msra.mxu0 %v16380_v12  ;;  %3628 = vmatpush1.bf16.msra.mxu1 %v16383_v13  ;;  %v16470_v12 = vld [vmem:[%s18035_s3 + $0x670] ss:$48 sps:$4 sm:$0xff]   ;;  %v16473_v13 = vld [vmem:[%s18035_s3 + $0x678] ss:$48 sps:$4 sm:$0xff]  }
  0xc4   : > { %3543 = vmatprep.subr.bf16.mxu0 %v16388_v14  ;;  %3629 = vmatprep.subr.bf16.mxu1 %v16391_v15  ;;  %v16478_v14 = vld [vmem:[%s18035_s3 + $0x6d4] ss:$48 sps:$4 sm:$0xff]   ;;  %v16481_v15 = vld [vmem:[%s18035_s3 + $0x6dc] ss:$48 sps:$4 sm:$0xff]  }
  0xc7   : > { %3544 = vmatpush1.bf16.msra.mxu0 %v16386_v16  ;;  %3630 = vmatpush1.bf16.msra.mxu1 %v16389_v17  ;;  %v16476_v16 = vld [vmem:[%s18035_s3 + $0x6d0] ss:$48 sps:$4 sm:$0xff]   ;;  %v16479_v17 = vld [vmem:[%s18035_s3 + $0x6d8] ss:$48 sps:$4 sm:$0xff]  }
  0xc8   : > { %3545 = vmatprep.subr.bf16.mxu0 %v16394_v18  ;;  %3631 = vmatprep.subr.bf16.mxu1 %v16397_v19  ;;  %v16484_v18 = vld [vmem:[%s18035_s3 + $0x734] ss:$48 sps:$4 sm:$0xff]   ;;  %v16487_v19 = vld [vmem:[%s18035_s3 + $0x73c] ss:$48 sps:$4 sm:$0xff]  }
  0xcb   : > { %3546 = vmatpush1.bf16.msra.mxu0 %v16392_v20  ;;  %3632 = vmatpush1.bf16.msra.mxu1 %v16395_v21  ;;  %v16482_v20 = vld [vmem:[%s18035_s3 + $0x730] ss:$48 sps:$4 sm:$0xff]   ;;  %v16485_v21 = vld [vmem:[%s18035_s3 + $0x738] ss:$48 sps:$4 sm:$0xff]  }
  0xcc   : > { %3547 = vmatprep.subr.bf16.mxu0 %v16400_v22  ;;  %3633 = vmatprep.subr.bf16.mxu1 %v16403_v23  ;;  %v16490_v22 = vld [vmem:[%s18035_s3 + $0x794] ss:$48 sps:$4 sm:$0xff]   ;;  %v16493_v23 = vld [vmem:[%s18035_s3 + $0x79c] ss:$48 sps:$4 sm:$0xff]  }
  0xcf   : > { %3548 = vmatpush1.bf16.msra.mxu0 %v16398_v24  ;;  %3634 = vmatpush1.bf16.msra.mxu1 %v16401_v26  ;;  %v16488_v24 = vld [vmem:[%s18035_s3 + $0x790] ss:$48 sps:$4 sm:$0xff]   ;;  %v16491_v26 = vld [vmem:[%s18035_s3 + $0x798] ss:$48 sps:$4 sm:$0xff]  }
  0xd0   : > { %3549 = vmatprep.subr.bf16.mxu0 %v16406_v27  ;;  %3635 = vmatprep.subr.bf16.mxu1 %v16409_v28  ;;  %v16496_v27 = vld [vmem:[%s18035_s3 + $0x7f4] ss:$48 sps:$4 sm:$0xff]   ;;  %v16499_v28 = vld [vmem:[%s18035_s3 + $0x7fc] ss:$48 sps:$4 sm:$0xff]  }
  0xd3   : > { %3550 = vmatpush1.bf16.msra.mxu0 %v16404_v29  ;;  %3636 = vmatpush1.bf16.msra.mxu1 %v16407_v30  ;;  %v16494_v29 = vld [vmem:[%s18035_s3 + $0x7f0] ss:$48 sps:$4 sm:$0xff]   ;;  %v16497_v30 = vld [vmem:[%s18035_s3 + $0x7f8] ss:$48 sps:$4 sm:$0xff]  }
  0xd4   : > { %3551 = vmatprep.subr.bf16.mxu0 %v16412_v31  ;;  %3637 = vmatprep.subr.bf16.mxu1 %v16415_v32  ;;  %v16502_v31 = vld [vmem:[%s18035_s3 + $0x854] ss:$48 sps:$4 sm:$0xff]   ;;  %v16505_v32 = vld [vmem:[%s18035_s3 + $0x85c] ss:$48 sps:$4 sm:$0xff]  }
  0xd7   : > { %3552 = vmatpush1.bf16.msra.mxu0 %v16410_v33  ;;  %3638 = vmatpush1.bf16.msra.mxu1 %v16413_v34  ;;  %v16500_v33 = vld [vmem:[%s18035_s3 + $0x850] ss:$48 sps:$4 sm:$0xff]   ;;  %v16503_v34 = vld [vmem:[%s18035_s3 + $0x858] ss:$48 sps:$4 sm:$0xff]  }
  0xd8   : > { %3553 = vmatprep.subr.bf16.mxu0 %v16418_v35  ;;  %3639 = vmatprep.subr.bf16.mxu1 %v16421_v36  ;;  %v16508_v35 = vld [vmem:[%s18035_s3 + $0x8b4] ss:$48 sps:$4 sm:$0xff]   ;;  %v16511_v36 = vld [vmem:[%s18035_s3 + $0x8bc] ss:$48 sps:$4 sm:$0xff]  }
  0xdb   : > { %3554 = vmatpush1.bf16.msra.mxu0 %v16416_v37  ;;  %3640 = vmatpush1.bf16.msra.mxu1 %v16419_v39  ;;  %v16506_v37 = vld [vmem:[%s18035_s3 + $0x8b0] ss:$48 sps:$4 sm:$0xff]   ;;  %v16509_v39 = vld [vmem:[%s18035_s3 + $0x8b8] ss:$48 sps:$4 sm:$0xff]  }
  0xdc   : > { %3555 = vmatprep.subr.bf16.mxu0 %v16424_v40  ;;  %3641 = vmatprep.subr.bf16.mxu1 %v16427_v41  ;;  %v16514_v40 = vld [vmem:[%s18035_s3 + $0x914] ss:$48 sps:$4 sm:$0xff]   ;;  %v16517_v41 = vld [vmem:[%s18035_s3 + $0x91c] ss:$48 sps:$4 sm:$0xff]  }
  0xdf   : > { %3556 = vmatpush1.bf16.msra.mxu0 %v16422_v42  ;;  %3642 = vmatpush1.bf16.msra.mxu1 %v16425_v43  ;;  %v16512_v42 = vld [vmem:[%s18035_s3 + $0x910] ss:$48 sps:$4 sm:$0xff]   ;;  %v16515_v43 = vld [vmem:[%s18035_s3 + $0x918] ss:$48 sps:$4 sm:$0xff]  }
  0xe0   : > { %3557 = vmatprep.subr.bf16.mxu0 %v16430_v44  ;;  %3643 = vmatprep.subr.bf16.mxu1 %v16433_v45  ;;  %v16520_v44 = vld [vmem:[%s18035_s3 + $0x974] ss:$48 sps:$4 sm:$0xff]   ;;  %v16523_v45 = vld [vmem:[%s18035_s3 + $0x97c] ss:$48 sps:$4 sm:$0xff]  }
  0xe3   : > { %3558 = vmatpush1.bf16.msra.mxu0 %v16428_v46  ;;  %3644 = vmatpush1.bf16.msra.mxu1 %v16431_v47  ;;  %v16518_v46 = vld [vmem:[%s18035_s3 + $0x970] ss:$48 sps:$4 sm:$0xff]   ;;  %v16521_v47 = vld [vmem:[%s18035_s3 + $0x978] ss:$48 sps:$4 sm:$0xff]  }
  0xe4   : > { %3559 = vmatprep.subr.bf16.mxu0 %v16436_v48  ;;  %3645 = vmatprep.subr.bf16.mxu1 %v16439_v49  ;;  %v16526_v48 = vld [vmem:[%s18035_s3 + $0x9d4] ss:$48 sps:$4 sm:$0xff]   ;;  %v16529_v49 = vld [vmem:[%s18035_s3 + $0x9dc] ss:$48 sps:$4 sm:$0xff]  }
  0xe7   : > { %3560 = vmatpush1.bf16.msra.mxu0 %v16434_v50  ;;  %3646 = vmatpush1.bf16.msra.mxu1 %v16437_v51  ;;  %v16524_v50 = vld [vmem:[%s18035_s3 + $0x9d0] ss:$48 sps:$4 sm:$0xff]   ;;  %v16527_v51 = vld [vmem:[%s18035_s3 + $0x9d8] ss:$48 sps:$4 sm:$0xff]  }
  0xe8   : > { %3561 = vmatprep.subr.bf16.mxu0 %v16442_v52  ;;  %3647 = vmatprep.subr.bf16.mxu1 %v16445_v53  ;;  %v16532_v52 = vld [vmem:[%s18035_s3 + $0xa34] ss:$48 sps:$4 sm:$0xff]   ;;  %v16535_v53 = vld [vmem:[%s18035_s3 + $0xa3c] ss:$48 sps:$4 sm:$0xff]  }
  0xeb   : > { %3562 = vmatpush1.bf16.msra.mxu0 %v16440_v54  ;;  %3648 = vmatpush1.bf16.msra.mxu1 %v16443_v55  ;;  %v16530_v54 = vld [vmem:[%s18035_s3 + $0xa30] ss:$48 sps:$4 sm:$0xff]   ;;  %v16533_v55 = vld [vmem:[%s18035_s3 + $0xa38] ss:$48 sps:$4 sm:$0xff]  }
  0xec   : > { %3563 = vmatprep.subr.bf16.mxu0 %v16448_v56  ;;  %3649 = vmatprep.subr.bf16.mxu1 %v16451_v57  ;;  %v16538_v56 = vld [vmem:[%s18035_s3 + $0xa94] ss:$48 sps:$4 sm:$0xff]   ;;  %v16541_v57 = vld [vmem:[%s18035_s3 + $0xa9c] ss:$48 sps:$4 sm:$0xff]  }
  0xef   : > { %3564 = vmatpush1.bf16.msra.mxu0 %v16446_v58  ;;  %3650 = vmatpush1.bf16.msra.mxu1 %v16449_v59  ;;  %v16536_v58 = vld [vmem:[%s18035_s3 + $0xa90] ss:$48 sps:$4 sm:$0xff]   ;;  %v16539_v59 = vld [vmem:[%s18035_s3 + $0xa98] ss:$48 sps:$4 sm:$0xff]  }
  0xf0   : > { %3565 = vmatprep.subr.bf16.mxu0 %v16454_v60  ;;  %3651 = vmatprep.subr.bf16.mxu1 %v16457_v62  ;;  %v16544_v60 = vld [vmem:[%s18035_s3 + $0xaf4] ss:$48 sps:$4 sm:$0xff]   ;;  %v16547_v62 = vld [vmem:[%s18035_s3 + $0xafc] ss:$48 sps:$4 sm:$0xff]  }
  0xf3   : > { %3566 = vmatpush1.bf16.msra.mxu0 %v16452_v63  ;;  %3652 = vmatpush1.bf16.msra.mxu1 %v16455_v0  ;;  %v16542_v63 = vld [vmem:[%s18035_s3 + $0xaf0] ss:$48 sps:$4 sm:$0xff]   ;;  %v16545_v0 = vld [vmem:[%s18035_s3 + $0xaf8] ss:$48 sps:$4 sm:$0xff]  }
  0xf4   : > { %3567 = vmatprep.subr.bf16.mxu0 %v16460_v1  ;;  %3653 = vmatprep.subr.bf16.mxu1 %v16463_v2  ;;  %v16550_v1 = vld [vmem:[%s18035_s3 + $0xb54] ss:$48 sps:$4 sm:$0xff]   ;;  %v16553_v2 = vld [vmem:[%s18035_s3 + $0xb5c] ss:$48 sps:$4 sm:$0xff]  }
  0xf7   : > { %3568 = vmatpush1.bf16.msra.mxu0 %v16458_v4  ;;  %3654 = vmatpush1.bf16.msra.mxu1 %v16461_v5  ;;  %v16548_v4 = vld [vmem:[%s18035_s3 + $0xb50] ss:$48 sps:$4 sm:$0xff]   ;;  %v16551_v5 = vld [vmem:[%s18035_s3 + $0xb58] ss:$48 sps:$4 sm:$0xff]  }
  0xf8   : > { %3580 = vmatprep.subr.bf16.mxu0 %v16466_v6  ;;  %3666 = vmatprep.subr.bf16.mxu1 %v16469_v7  ;;  %v16556_v6 = vld [vmem:[%s18035_s3 + $0xbb4] ss:$48 sps:$4 sm:$0xff]   ;;  %v16559_v7 = vld [vmem:[%s18035_s3 + $0xbbc] ss:$48 sps:$4 sm:$0xff]  }
  0xfa   : > { %3570 = vmatmul.mubr.bf16.vlgmr.msra.gmra.mrb[4].mxu0 %v18198_v61  ;;  %3656 = vmatmul.mubr.bf16.vlgmr.msra.gmra.mrb[4].mxu1 %v18198_v61 }
  0xfb   : > { %3581 = vmatpush1.bf16.msra.mxu0 %v16464_v8  ;;  %3667 = vmatpush1.bf16.msra.mxu1 %v16467_v9  ;;  %v16554_v8 = vld [vmem:[%s18035_s3 + $0xbb0] ss:$48 sps:$4 sm:$0xff]   ;;  %v16557_v9 = vld [vmem:[%s18035_s3 + $0xbb8] ss:$48 sps:$4 sm:$0xff]  }
  0xfc   : > { %3582 = vmatprep.subr.bf16.mxu0 %v16472_v10  ;;  %3668 = vmatprep.subr.bf16.mxu1 %v16475_v11  ;;  %v16562_v10 = vld [vmem:[%s18035_s3 + $0x24] ss:$48 sps:$4 sm:$0xff]   ;;  %v16574_v11 = vld [vmem:[%s18035_s3 + $0x2c] ss:$48 sps:$4 sm:$0xff]  }
  0xfd   : > { %3612 = vmatprep.mubr.bf16.mxu0 %v18227_v25  ;;  %3698 = vmatprep.mubr.bf16.mxu1 %v18227_v25 }
  0xff   : > { %3583 = vmatpush1.bf16.msra.mxu0 %v16470_v12  ;;  %3669 = vmatpush1.bf16.msra.mxu1 %v16473_v13  ;;  %v16560_v12 = vld [vmem:[%s18035_s3 + $0x20] ss:$48 sps:$4 sm:$0xff]   ;;  %v16565_v13 = vld [vmem:[%s18035_s3 + $0x84] ss:$48 sps:$4 sm:$0xff]  }
 0x100   : > { %3584 = vmatprep.subr.bf16.mxu0 %v16478_v14  ;;  %3670 = vmatprep.subr.bf16.mxu1 %v16481_v15  ;;  %v16572_v14 = vld [vmem:[%s18035_s3 + $0x28] ss:$48 sps:$4 sm:$0xff]   ;;  %v16580_v15 = vld [vmem:[%s18035_s3 + $0x8c] ss:$48 sps:$4 sm:$0xff]  }
 0x103   : > { %3585 = vmatpush1.bf16.msra.mxu0 %v16476_v16  ;;  %3671 = vmatpush1.bf16.msra.mxu1 %v16479_v17  ;;  %v16563_v16 = vld [vmem:[%s18035_s3 + $0x80] ss:$48 sps:$4 sm:$0xff]   ;;  %v16578_v17 = vld [vmem:[%s18035_s3 + $0x88] ss:$48 sps:$4 sm:$0xff]  }
 0x104   : > { %3586 = vmatprep.subr.bf16.mxu0 %v16484_v18  ;;  %3672 = vmatprep.subr.bf16.mxu1 %v16487_v19  ;;  %v16568_v18 = vld [vmem:[%s18035_s3 + $0xe4] ss:$48 sps:$4 sm:$0xff]   ;;  %v16586_v19 = vld [vmem:[%s18035_s3 + $0xec] ss:$48 sps:$4 sm:$0xff]  }
 0x107   : > { %3587 = vmatpush1.bf16.msra.mxu0 %v16482_v20  ;;  %3673 = vmatpush1.bf16.msra.mxu1 %v16485_v21  ;;  %v16566_v20 = vld [vmem:[%s18035_s3 + $0xe0] ss:$48 sps:$4 sm:$0xff]   ;;  %v16584_v21 = vld [vmem:[%s18035_s3 + $0xe8] ss:$48 sps:$4 sm:$0xff]  }
 0x108   : > { %3588 = vmatprep.subr.bf16.mxu0 %v16490_v22  ;;  %3674 = vmatprep.subr.bf16.mxu1 %v16493_v23  ;;  %v16571_v22 = vld [vmem:[%s18035_s3 + $0x144] ss:$48 sps:$4 sm:$0xff]   ;;  %v16592_v23 = vld [vmem:[%s18035_s3 + $0x14c] ss:$48 sps:$4 sm:$0xff]  }
 0x10b   : > { %3589 = vmatpush1.bf16.msra.mxu0 %v16488_v24  ;;  %3675 = vmatpush1.bf16.msra.mxu1 %v16491_v26  ;;  %v16569_v24 = vld [vmem:[%s18035_s3 + $0x140] ss:$48 sps:$4 sm:$0xff]   ;;  %v16590_v26 = vld [vmem:[%s18035_s3 + $0x148] ss:$48 sps:$4 sm:$0xff]  }
 0x10c   : > { %3590 = vmatprep.subr.bf16.mxu0 %v16496_v27  ;;  %3676 = vmatprep.subr.bf16.mxu1 %v16499_v28  ;;  %v16577_v27 = vld [vmem:[%s18035_s3 + $0x1a4] ss:$48 sps:$4 sm:$0xff]   ;;  %v16598_v28 = vld [vmem:[%s18035_s3 + $0x1ac] ss:$48 sps:$4 sm:$0xff]  }
 0x10f   : > { %3591 = vmatpush1.bf16.msra.mxu0 %v16494_v29  ;;  %3677 = vmatpush1.bf16.msra.mxu1 %v16497_v30  ;;  %v16596_v29 = vld [vmem:[%s18035_s3 + $0x1a8] ss:$48 sps:$4 sm:$0xff]   ;;  %v16583_v30 = vld [vmem:[%s18035_s3 + $0x204] ss:$48 sps:$4 sm:$0xff]  }
 0x110   : > { %3592 = vmatprep.subr.bf16.mxu0 %v16502_v31  ;;  %3678 = vmatprep.subr.bf16.mxu1 %v16505_v32  ;;  %v16604_v31 = vld [vmem:[%s18035_s3 + $0x20c] ss:$48 sps:$4 sm:$0xff]   ;;  %v16581_v32 = vld [vmem:[%s18035_s3 + $0x200] ss:$48 sps:$4 sm:$0xff]  }
 0x113   : > { %3593 = vmatpush1.bf16.msra.mxu0 %v16500_v33  ;;  %3679 = vmatpush1.bf16.msra.mxu1 %v16503_v34  ;;  %v16602_v33 = vld [vmem:[%s18035_s3 + $0x208] ss:$48 sps:$4 sm:$0xff]   ;;  %v16589_v34 = vld [vmem:[%s18035_s3 + $0x264] ss:$48 sps:$4 sm:$0xff]  }
 0x114   : > { %3594 = vmatprep.subr.bf16.mxu0 %v16508_v35  ;;  %3680 = vmatprep.subr.bf16.mxu1 %v16511_v36  ;;  %v16610_v35 = vld [vmem:[%s18035_s3 + $0x26c] ss:$48 sps:$4 sm:$0xff]   ;;  %v16587_v36 = vld [vmem:[%s18035_s3 + $0x260] ss:$48 sps:$4 sm:$0xff]  }
 0x117   : > { %3595 = vmatpush1.bf16.msra.mxu0 %v16506_v37  ;;  %3681 = vmatpush1.bf16.msra.mxu1 %v16509_v39  ;;  %v16608_v37 = vld [vmem:[%s18035_s3 + $0x268] ss:$48 sps:$4 sm:$0xff]   ;;  %v16595_v39 = vld [vmem:[%s18035_s3 + $0x2c4] ss:$48 sps:$4 sm:$0xff]  }
 0x118   : > { %3596 = vmatprep.subr.bf16.mxu0 %v16514_v40  ;;  %3682 = vmatprep.subr.bf16.mxu1 %v16517_v41  ;;  %v16616_v40 = vld [vmem:[%s18035_s3 + $0x2cc] ss:$48 sps:$4 sm:$0xff]   ;;  %v16593_v41 = vld [vmem:[%s18035_s3 + $0x2c0] ss:$48 sps:$4 sm:$0xff]  }
 0x11b   : > { %3597 = vmatpush1.bf16.msra.mxu0 %v16512_v42  ;;  %3683 = vmatpush1.bf16.msra.mxu1 %v16515_v43  ;;  %v16614_v42 = vld [vmem:[%s18035_s3 + $0x2c8] ss:$48 sps:$4 sm:$0xff]   ;;  %v16601_v43 = vld [vmem:[%s18035_s3 + $0x324] ss:$48 sps:$4 sm:$0xff]  }
 0x11c   : > { %3598 = vmatprep.subr.bf16.mxu0 %v16520_v44  ;;  %3684 = vmatprep.subr.bf16.mxu1 %v16523_v45  ;;  %v16622_v44 = vld [vmem:[%s18035_s3 + $0x32c] ss:$48 sps:$4 sm:$0xff]   ;;  %v16599_v45 = vld [vmem:[%s18035_s3 + $0x320] ss:$48 sps:$4 sm:$0xff]  }
 0x11f   : > { %3599 = vmatpush1.bf16.msra.mxu0 %v16518_v46  ;;  %3685 = vmatpush1.bf16.msra.mxu1 %v16521_v47  ;;  %v16620_v46 = vld [vmem:[%s18035_s3 + $0x328] ss:$48 sps:$4 sm:$0xff]   ;;  %v16607_v47 = vld [vmem:[%s18035_s3 + $0x384] ss:$48 sps:$4 sm:$0xff]  }
 0x120   : > { %3600 = vmatprep.subr.bf16.mxu0 %v16526_v48  ;;  %3686 = vmatprep.subr.bf16.mxu1 %v16529_v49  ;;  %v16628_v48 = vld [vmem:[%s18035_s3 + $0x38c] ss:$48 sps:$4 sm:$0xff]   ;;  %v16605_v49 = vld [vmem:[%s18035_s3 + $0x380] ss:$48 sps:$4 sm:$0xff]  }
 0x123   : > { %3601 = vmatpush1.bf16.msra.mxu0 %v16524_v50  ;;  %3687 = vmatpush1.bf16.msra.mxu1 %v16527_v51  ;;  %v16626_v50 = vld [vmem:[%s18035_s3 + $0x388] ss:$48 sps:$4 sm:$0xff]   ;;  %v16613_v51 = vld [vmem:[%s18035_s3 + $0x3e4] ss:$48 sps:$4 sm:$0xff]  }
 0x124   : > { %3602 = vmatprep.subr.bf16.mxu0 %v16532_v52  ;;  %3688 = vmatprep.subr.bf16.mxu1 %v16535_v53  ;;  %v16634_v52 = vld [vmem:[%s18035_s3 + $0x3ec] ss:$48 sps:$4 sm:$0xff]   ;;  %v16611_v53 = vld [vmem:[%s18035_s3 + $0x3e0] ss:$48 sps:$4 sm:$0xff]  }
 0x127   : > { %3603 = vmatpush1.bf16.msra.mxu0 %v16530_v54  ;;  %3689 = vmatpush1.bf16.msra.mxu1 %v16533_v55  ;;  %v16632_v54 = vld [vmem:[%s18035_s3 + $0x3e8] ss:$48 sps:$4 sm:$0xff]   ;;  %v16619_v55 = vld [vmem:[%s18035_s3 + $0x444] ss:$48 sps:$4 sm:$0xff]  }
 0x128   : > { %3604 = vmatprep.subr.bf16.mxu0 %v16538_v56  ;;  %3690 = vmatprep.subr.bf16.mxu1 %v16541_v57  ;;  %v16640_v56 = vld [vmem:[%s18035_s3 + $0x44c] ss:$48 sps:$4 sm:$0xff]   ;;  %v16617_v57 = vld [vmem:[%s18035_s3 + $0x440] ss:$48 sps:$4 sm:$0xff]  }
 0x12b   : > { %3605 = vmatpush1.bf16.msra.mxu0 %v16536_v58  ;;  %3691 = vmatpush1.bf16.msra.mxu1 %v16539_v59  ;;  %v16638_v58 = vld [vmem:[%s18035_s3 + $0x448] ss:$48 sps:$4 sm:$0xff]   ;;  %v16625_v59 = vld [vmem:[%s18035_s3 + $0x4a4] ss:$48 sps:$4 sm:$0xff]  }
 0x12c   : > { %3606 = vmatprep.subr.bf16.mxu0 %v16544_v60  ;;  %3692 = vmatprep.subr.bf16.mxu1 %v16547_v62  ;;  %v16646_v60 = vld [vmem:[%s18035_s3 + $0x4ac] ss:$48 sps:$4 sm:$0xff]   ;;  %v16623_v62 = vld [vmem:[%s18035_s3 + $0x4a0] ss:$48 sps:$4 sm:$0xff]  }
 0x12f   : > { %3607 = vmatpush1.bf16.msra.mxu0 %v16542_v63  ;;  %3693 = vmatpush1.bf16.msra.mxu1 %v16545_v0  ;;  %v16644_v63 = vld [vmem:[%s18035_s3 + $0x4a8] ss:$48 sps:$4 sm:$0xff]   ;;  %v16631_v0 = vld [vmem:[%s18035_s3 + $0x504] ss:$48 sps:$4 sm:$0xff]  }
 0x130   : > { %3608 = vmatprep.subr.bf16.mxu0 %v16550_v1  ;;  %3694 = vmatprep.subr.bf16.mxu1 %v16553_v2  ;;  %v16652_v1 = vld [vmem:[%s18035_s3 + $0x50c] ss:$48 sps:$4 sm:$0xff]   ;;  %v16629_v2 = vld [vmem:[%s18035_s3 + $0x500] ss:$48 sps:$4 sm:$0xff]  }
 0x133   : > { %3609 = vmatpush1.bf16.msra.mxu0 %v16548_v4  ;;  %3695 = vmatpush1.bf16.msra.mxu1 %v16551_v5  ;;  %v16650_v4 = vld [vmem:[%s18035_s3 + $0x508] ss:$48 sps:$4 sm:$0xff]   ;;  %v16637_v5 = vld [vmem:[%s18035_s3 + $0x564] ss:$48 sps:$4 sm:$0xff]  }
 0x134   : > { %3610 = vmatprep.subr.bf16.mxu0 %v16556_v6  ;;  %3696 = vmatprep.subr.bf16.mxu1 %v16559_v7  ;;  %v16658_v6 = vld [vmem:[%s18035_s3 + $0x56c] ss:$48 sps:$4 sm:$0xff]   ;;  %v16635_v7 = vld [vmem:[%s18035_s3 + $0x560] ss:$48 sps:$4 sm:$0xff]  }
 0x137   : > { %3611 = vmatpush1.bf16.msra.mxu0 %v16554_v8  ;;  %3697 = vmatpush1.bf16.msra.mxu1 %v16557_v9  ;;  %v16656_v8 = vld [vmem:[%s18035_s3 + $0x568] ss:$48 sps:$4 sm:$0xff]   ;;  %v16643_v9 = vld [vmem:[%s18035_s3 + $0x5c4] ss:$48 sps:$4 sm:$0xff]  }
 0x138   : > { %3709 = vmatprep.subr.bf16.mxu0 %v16562_v10  ;;  %3795 = vmatprep.subr.bf16.mxu1 %v16574_v11  ;;  %v16664_v10 = vld [vmem:[%s18035_s3 + $0x5cc] ss:$48 sps:$4 sm:$0xff]   ;;  %v16641_v11 = vld [vmem:[%s18035_s3 + $0x5c0] ss:$48 sps:$4 sm:$0xff]  }
 0x13a   : > { %3613 = vmatmul.mubr.bf16.vlgmr.msra.gmra.mrb[4].mxu0 %v18268_v3  ;;  %3699 = vmatmul.mubr.bf16.vlgmr.msra.gmra.mrb[4].mxu1 %v18268_v3 }
 0x13b   : > { %3710 = vmatpush1.bf16.msra.mxu0 %v16560_v12  ;;  %3796 = vmatpush1.bf16.msra.mxu1 %v16572_v14  ;;  %v16662_v12 = vld [vmem:[%s18035_s3 + $0x5c8] ss:$48 sps:$4 sm:$0xff]   ;;  %v16670_v14 = vld [vmem:[%s18035_s3 + $0x62c] ss:$48 sps:$4 sm:$0xff]  }
 0x13c   : > { %3711 = vmatprep.subr.bf16.mxu0 %v16565_v13  ;;  %3797 = vmatprep.subr.bf16.mxu1 %v16580_v15  ;;  %v16649_v13 = vld [vmem:[%s18035_s3 + $0x624] ss:$48 sps:$4 sm:$0xff]   ;;  %v16647_v15 = vld [vmem:[%s18035_s3 + $0x620] ss:$48 sps:$4 sm:$0xff]  }
 0x13d   : > { %3741 = vmatprep.mubr.bf16.mxu0 %v18174_v38  ;;  %3827 = vmatprep.mubr.bf16.mxu1 %v18174_v38  ;;  %v16575_v38 = vld [vmem:[%s18035_s3 + $0x1a0] ss:$48 sps:$4 sm:$0xff]  }
 0x13f   : > { %3712 = vmatpush1.bf16.msra.mxu0 %v16563_v16  ;;  %3798 = vmatpush1.bf16.msra.mxu1 %v16578_v17  ;;  %v16668_v16 = vld [vmem:[%s18035_s3 + $0x628] ss:$48 sps:$4 sm:$0xff]   ;;  %v16655_v17 = vld [vmem:[%s18035_s3 + $0x684] ss:$48 sps:$4 sm:$0xff]  }
 0x140   : > { %3713 = vmatprep.subr.bf16.mxu0 %v16568_v18  ;;  %3799 = vmatprep.subr.bf16.mxu1 %v16586_v19  ;;  %v16676_v18 = vld [vmem:[%s18035_s3 + $0x68c] ss:$48 sps:$4 sm:$0xff]   ;;  %v16653_v19 = vld [vmem:[%s18035_s3 + $0x680] ss:$48 sps:$4 sm:$0xff]  }
 0x143   : > { %3714 = vmatpush1.bf16.msra.mxu0 %v16566_v20  ;;  %3800 = vmatpush1.bf16.msra.mxu1 %v16584_v21  ;;  %v16674_v20 = vld [vmem:[%s18035_s3 + $0x688] ss:$48 sps:$4 sm:$0xff]   ;;  %v16661_v21 = vld [vmem:[%s18035_s3 + $0x6e4] ss:$48 sps:$4 sm:$0xff]  }
 0x144   : > { %3715 = vmatprep.subr.bf16.mxu0 %v16571_v22  ;;  %3801 = vmatprep.subr.bf16.mxu1 %v16592_v23  ;;  %v16682_v22 = vld [vmem:[%s18035_s3 + $0x6ec] ss:$48 sps:$4 sm:$0xff]   ;;  %v16659_v23 = vld [vmem:[%s18035_s3 + $0x6e0] ss:$48 sps:$4 sm:$0xff]  }
 0x147   : > { %3716 = vmatpush1.bf16.msra.mxu0 %v16569_v24  ;;  %3802 = vmatpush1.bf16.msra.mxu1 %v16590_v26  ;;  %v16680_v24 = vld [vmem:[%s18035_s3 + $0x6e8] ss:$48 sps:$4 sm:$0xff]   ;;  %v16667_v26 = vld [vmem:[%s18035_s3 + $0x744] ss:$48 sps:$4 sm:$0xff]  }
 0x148   : > { %3717 = vmatprep.subr.bf16.mxu0 %v16577_v27  ;;  %3803 = vmatprep.subr.bf16.mxu1 %v16598_v28  ;;  %v16688_v27 = vld [vmem:[%s18035_s3 + $0x74c] ss:$48 sps:$4 sm:$0xff]   ;;  %v16686_v28 = vld [vmem:[%s18035_s3 + $0x748] ss:$48 sps:$4 sm:$0xff]  }
 0x14b   : > { %3718 = vmatpush1.bf16.msra.mxu0 %v16575_v38  ;;  %3804 = vmatpush1.bf16.msra.mxu1 %v16596_v29  ;;  %v16673_v38 = vld [vmem:[%s18035_s3 + $0x7a4] ss:$48 sps:$4 sm:$0xff]   ;;  %v1385_v29 = vlaneseq }
 0x14c   : > { %3719 = vmatprep.subr.bf16.mxu0 %v16583_v30  ;;  %3805 = vmatprep.subr.bf16.mxu1 %v16604_v31  ;;  %v16694_v30 = vld [vmem:[%s18035_s3 + $0x7ac] ss:$48 sps:$4 sm:$0xff]   ;;  %v16692_v31 = vld [vmem:[%s18035_s3 + $0x7a8] ss:$48 sps:$4 sm:$0xff]  }
 0x14f   : > { %3720 = vmatpush1.bf16.msra.mxu0 %v16581_v32  ;;  %3806 = vmatpush1.bf16.msra.mxu1 %v16602_v33  ;;  %v18496_v32 = vshrl.u32 %v1385_v29, 7  ;;  %v16679_v33 = vld [vmem:[%s18035_s3 + $0x804] ss:$48 sps:$4 sm:$0xff]  }
 0x150   : > { %3721 = vmatprep.subr.bf16.mxu0 %v16589_v34  ;;  %3807 = vmatprep.subr.bf16.mxu1 %v16610_v35  ;;  %v16700_v34 = vld [vmem:[%s18035_s3 + $0x80c] ss:$48 sps:$4 sm:$0xff]   ;;  %v18501_v35 = vld [vmem:[%s18042_s20] sm:$0xff] }
 0x151   : > { %v18577_v29 = vsub.s32 6, %v18496_v32 }
 0x153   : > { %3722 = vmatpush1.bf16.msra.mxu0 %v16587_v36  ;;  %3808 = vmatpush1.bf16.msra.mxu1 %v16608_v37  ;;  %v16677_v36 = vld [vmem:[%s18035_s3 + $0x800] ss:$48 sps:$4 sm:$0xff]   ;;  %v16698_v37 = vld [vmem:[%s18035_s3 + $0x808] ss:$48 sps:$4 sm:$0xff]  }
 0x154   : > { %3723 = vmatprep.subr.bf16.mxu0 %v16595_v39  ;;  %3809 = vmatprep.subr.bf16.mxu1 %v16616_v40  ;;  %v18506_v39 = vsub.s32 0, %v18496_v32  ;;  %v16685_v40 = vld [vmem:[%s18035_s3 + $0x864] ss:$48 sps:$4 sm:$0xff]  }
 0x157   : > { %3724 = vmatpush1.bf16.msra.mxu0 %v16593_v41  ;;  %3810 = vmatpush1.bf16.msra.mxu1 %v16614_v42  ;;  %v16706_v41 = vld [vmem:[%s18035_s3 + $0x86c] ss:$48 sps:$4 sm:$0xff]  }
 0x158   : > { %3725 = vmatprep.subr.bf16.mxu0 %v16601_v43  ;;  %3811 = vmatprep.subr.bf16.mxu1 %v16622_v44  ;;  %v16683_v44 = vld [vmem:[%s18035_s3 + $0x860] ss:$48 sps:$4 sm:$0xff]  }
 0x15b   : > { %3726 = vmatpush1.bf16.msra.mxu0 %v16599_v45  ;;  %3812 = vmatpush1.bf16.msra.mxu1 %v16620_v46  ;;  %v16704_v45 = vld [vmem:[%s18035_s3 + $0x868] ss:$48 sps:$4 sm:$0xff]   ;;  %v18518_v46 = vrot.slane %v18501_v35, %v18506_v39 }
 0x15c   : > { %3727 = vmatprep.subr.bf16.mxu0 %v16607_v47  ;;  %3813 = vmatprep.subr.bf16.mxu1 %v16628_v48 }
 0x15f   : > { %3728 = vmatpush1.bf16.msra.mxu0 %v16605_v49  ;;  %3814 = vmatpush1.bf16.msra.mxu1 %v16626_v50  ;;  %v16691_v49 = vld [vmem:[%s18035_s3 + $0x8c4] ss:$48 sps:$4 sm:$0xff]   ;;  %v16712_v50 = vld [vmem:[%s18035_s3 + $0x8cc] ss:$48 sps:$4 sm:$0xff]  }
 0x160   : > { %3729 = vmatprep.subr.bf16.mxu0 %v16613_v51  ;;  %3815 = vmatprep.subr.bf16.mxu1 %v16634_v52 }
 0x163   : > { %3730 = vmatpush1.bf16.msra.mxu0 %v16611_v53  ;;  %3816 = vmatpush1.bf16.msra.mxu1 %v16632_v54 }
 0x164   : > { %3731 = vmatprep.subr.bf16.mxu0 %v16619_v55  ;;  %3817 = vmatprep.subr.bf16.mxu1 %v16640_v56  ;;  %v16689_v56 = vld [vmem:[%s18035_s3 + $0x8c0] ss:$48 sps:$4 sm:$0xff]  }
 0x167   : > { %3732 = vmatpush1.bf16.msra.mxu0 %v16617_v57  ;;  %3818 = vmatpush1.bf16.msra.mxu1 %v16638_v58  ;;  %v16710_v57 = vld [vmem:[%s18035_s3 + $0x8c8] ss:$48 sps:$4 sm:$0xff]   ;;  %v16697_v58 = vld [vmem:[%s18035_s3 + $0x924] ss:$48 sps:$4 sm:$0xff]  }
 0x168   : > { %3733 = vmatprep.subr.bf16.mxu0 %v16625_v59  ;;  %3819 = vmatprep.subr.bf16.mxu1 %v16646_v60  ;;  %v16718_v59 = vld [vmem:[%s18035_s3 + $0x92c] ss:$48 sps:$4 sm:$0xff]   ;;  %v16695_v60 = vld [vmem:[%s18035_s3 + $0x920] ss:$48 sps:$4 sm:$0xff]  }
 0x16b   : > { %3734 = vmatpush1.bf16.msra.mxu0 %v16623_v62  ;;  %3820 = vmatpush1.bf16.msra.mxu1 %v16644_v63  ;;  %v16716_v62 = vld [vmem:[%s18035_s3 + $0x928] ss:$48 sps:$4 sm:$0xff]   ;;  %v16703_v63 = vld [vmem:[%s18035_s3 + $0x984] ss:$48 sps:$4 sm:$0xff]  }
 0x16c   : > { %3735 = vmatprep.subr.bf16.mxu0 %v16631_v0  ;;  %3821 = vmatprep.subr.bf16.mxu1 %v16652_v1  ;;  %v16724_v0 = vld [vmem:[%s18035_s3 + $0x98c] ss:$48 sps:$4 sm:$0xff]   ;;  %v16701_v1 = vld [vmem:[%s18035_s3 + $0x980] ss:$48 sps:$4 sm:$0xff]  }
 0x16f   : > { %3736 = vmatpush1.bf16.msra.mxu0 %v16629_v2  ;;  %3822 = vmatpush1.bf16.msra.mxu1 %v16650_v4  ;;  %v16722_v2 = vld [vmem:[%s18035_s3 + $0x988] ss:$48 sps:$4 sm:$0xff]   ;;  %v16709_v4 = vld [vmem:[%s18035_s3 + $0x9e4] ss:$48 sps:$4 sm:$0xff]  }
 0x170   : > { %3737 = vmatprep.subr.bf16.mxu0 %v16637_v5  ;;  %3823 = vmatprep.subr.bf16.mxu1 %v16658_v6  ;;  %v16730_v5 = vld [vmem:[%s18035_s3 + $0x9ec] ss:$48 sps:$4 sm:$0xff]   ;;  %v16707_v6 = vld [vmem:[%s18035_s3 + $0x9e0] ss:$48 sps:$4 sm:$0xff]  }
 0x173   : > { %3738 = vmatpush1.bf16.msra.mxu0 %v16635_v7  ;;  %3824 = vmatpush1.bf16.msra.mxu1 %v16656_v8  ;;  %v16728_v7 = vld [vmem:[%s18035_s3 + $0x9e8] ss:$48 sps:$4 sm:$0xff]   ;;  %v16715_v8 = vld [vmem:[%s18035_s3 + $0xa44] ss:$48 sps:$4 sm:$0xff]  }
 0x174   : > { %3739 = vmatprep.subr.bf16.mxu0 %v16643_v9  ;;  %3825 = vmatprep.subr.bf16.mxu1 %v16664_v10  ;;  %v16736_v9 = vld [vmem:[%s18035_s3 + $0xa4c] ss:$48 sps:$4 sm:$0xff]   ;;  %v16713_v10 = vld [vmem:[%s18035_s3 + $0xa40] ss:$48 sps:$4 sm:$0xff]  }
 0x177   : > { %3740 = vmatpush1.bf16.msra.mxu0 %v16641_v11  ;;  %3826 = vmatpush1.bf16.msra.mxu1 %v16662_v12  ;;  %v16734_v11 = vld [vmem:[%s18035_s3 + $0xa48] ss:$48 sps:$4 sm:$0xff]   ;;  %v16721_v12 = vld [vmem:[%s18035_s3 + $0xaa4] ss:$48 sps:$4 sm:$0xff]  }
 0x178   : > { %3752 = vmatprep.subr.bf16.mxu0 %v16649_v13  ;;  %3838 = vmatprep.subr.bf16.mxu1 %v16670_v14  ;;  %v16742_v13 = vld [vmem:[%s18035_s3 + $0xaac] ss:$48 sps:$4 sm:$0xff]   ;;  %v16719_v14 = vld [vmem:[%s18035_s3 + $0xaa0] ss:$48 sps:$4 sm:$0xff]  }
 0x17a   : > { %3742 = vmatmul.mubr.bf16.vlgmr.msra.gmra.mrb[8].mxu0 %v18198_v61  ;;  %3828 = vmatmul.mubr.bf16.vlgmr.msra.gmra.mrb[8].mxu1 %v18198_v61  ;;  %v16665_v61 = vld [vmem:[%s18035_s3 + $0x740] ss:$48 sps:$4 sm:$0xff]  }
 0x17b   : > { %3753 = vmatpush1.bf16.msra.mxu0 %v16647_v15  ;;  %3839 = vmatpush1.bf16.msra.mxu1 %v16668_v16  ;;  %v16740_v15 = vld [vmem:[%s18035_s3 + $0xaa8] ss:$48 sps:$4 sm:$0xff]   ;;  %v16727_v16 = vld [vmem:[%s18035_s3 + $0xb04] ss:$48 sps:$4 sm:$0xff]  }
 0x17c   : > { %3754 = vmatprep.subr.bf16.mxu0 %v16655_v17  ;;  %3840 = vmatprep.subr.bf16.mxu1 %v16676_v18  ;;  %v16745_v17 = vld [vmem:[%s18035_s3 + $0xb0c] ss:$48 sps:$4 sm:$0xff]   ;;  %v16725_v18 = vld [vmem:[%s18035_s3 + $0xb00] ss:$48 sps:$4 sm:$0xff]  }
 0x17d   : > { %3784 = vmatprep.mubr.bf16.mxu0 %v18227_v25  ;;  %3870 = vmatprep.mubr.bf16.mxu1 %v18227_v25  ;;  %v16671_v25 = vld [vmem:[%s18035_s3 + $0x7a0] ss:$48 sps:$4 sm:$0xff]  }
 0x17f   : > { %3755 = vmatpush1.bf16.msra.mxu0 %v16653_v19  ;;  %3841 = vmatpush1.bf16.msra.mxu1 %v16674_v20  ;;  %v16743_v19 = vld [vmem:[%s18035_s3 + $0xb08] ss:$48 sps:$4 sm:$0xff]   ;;  %v16733_v20 = vld [vmem:[%s18035_s3 + $0xb64] ss:$48 sps:$4 sm:$0xff]  }
 0x180   : > { %3756 = vmatprep.subr.bf16.mxu0 %v16661_v21  ;;  %3842 = vmatprep.subr.bf16.mxu1 %v16682_v22  ;;  %v16748_v21 = vld [vmem:[%s18035_s3 + $0xb6c] ss:$48 sps:$4 sm:$0xff]   ;;  %v16731_v22 = vld [vmem:[%s18035_s3 + $0xb60] ss:$48 sps:$4 sm:$0xff]  }
 0x183   : > { %3757 = vmatpush1.bf16.msra.mxu0 %v16659_v23  ;;  %3843 = vmatpush1.bf16.msra.mxu1 %v16680_v24  ;;  %v16746_v23 = vld [vmem:[%s18035_s3 + $0xb68] ss:$48 sps:$4 sm:$0xff]   ;;  %v16739_v24 = vld [vmem:[%s18035_s3 + $0xbc4] ss:$48 sps:$4 sm:$0xff]  }
 0x184   : > { %3758 = vmatprep.subr.bf16.mxu0 %v16667_v26  ;;  %3844 = vmatprep.subr.bf16.mxu1 %v16688_v27  ;;  %v16751_v26 = vld [vmem:[%s18035_s3 + $0xbcc] ss:$48 sps:$4 sm:$0xff]   ;;  %v16737_v27 = vld [vmem:[%s18035_s3 + $0xbc0] ss:$48 sps:$4 sm:$0xff]  }
 0x187   : > { %3759 = vmatpush1.bf16.msra.mxu0 %v16665_v61  ;;  %3845 = vmatpush1.bf16.msra.mxu1 %v16686_v28  ;;  %v16749_v61 = vld [vmem:[%s18035_s3 + $0xbc8] ss:$48 sps:$4 sm:$0xff]  }
 0x188   : > { %3760 = vmatprep.subr.bf16.mxu0 %v16673_v38  ;;  %3846 = vmatprep.subr.bf16.mxu1 %v16694_v30  ;;  %v18574_v38 = vsub.s32 4, %v18496_v32  ;;  %v18580_v30 = vsub.s32 5, %v18496_v32 }
 0x18b   : > { %3761 = vmatpush1.bf16.msra.mxu0 %v16671_v25  ;;  %3847 = vmatpush1.bf16.msra.mxu1 %v16692_v31  ;;  %v18583_v25 = vsub.s32 7, %v18496_v32  ;;  %v1404_v31 = vrot.slane %v18501_v35, %v18574_v38 }
 0x18c   : > { %3762 = vmatprep.subr.bf16.mxu0 %v16679_v33  ;;  %3848 = vmatprep.subr.bf16.mxu1 %v16700_v34  ;;  %v1412_v33 = vrot.slane %v18501_v35, %v18577_v29 }
 0x18d   : > { %v18510_v42 = vpop.f32.mrb[0].mxu0  ;;  %v18512_v43 = vpop.f32.mrb[0].mxu1  ;;  %v1416_v34 = vrot.slane %v18501_v35, %v18583_v25 }
 0x18e   : > { %v18520_v47 = vpop.f32.mrb[1].mxu0  ;;  %v18522_v48 = vpop.f32.mrb[1].mxu1  ;;  %v15964_v28 = vadd.f32 %v18510_v42, %v18518_v46 }
 0x18f   : > { %v3446_v51 = vpop.f32.mrb[2].mxu0  ;;  %v18526_v52 = vpop.f32.mrb[2].mxu1  ;;  %3763 = vmatpush1.bf16.msra.mxu0 %v16677_v36  ;;  %3849 = vmatpush1.bf16.msra.mxu1 %v16698_v37 }
 0x190   : > { %v18529_v53 = vadd.f32 %v3446_v51, %v18518_v46  ;;  %v18531_v54 = vpop.f32.mrb[3].mxu0  ;;  %v18533_v55 = vpop.f32.mrb[3].mxu1  ;;  %3764 = vmatprep.subr.bf16.mxu0 %v16685_v40  ;;  %3850 = vmatprep.subr.bf16.mxu1 %v16706_v41 }
 0x193   : > { %3765 = vmatpush1.bf16.msra.mxu0 %v16683_v44  ;;  %3851 = vmatpush1.bf16.msra.mxu1 %v16704_v45 }
 0x194   : > { %3766 = vmatprep.subr.bf16.mxu0 %v16691_v49  ;;  %3852 = vmatprep.subr.bf16.mxu1 %v16712_v50 }
 0x197   : > { %3767 = vmatpush1.bf16.msra.mxu0 %v16689_v56  ;;  %3853 = vmatpush1.bf16.msra.mxu1 %v16710_v57 }
 0x198   : > { %3768 = vmatprep.subr.bf16.mxu0 %v16697_v58  ;;  %3854 = vmatprep.subr.bf16.mxu1 %v16718_v59 }
 0x19b   : > { %3769 = vmatpush1.bf16.msra.mxu0 %v16695_v60  ;;  %3855 = vmatpush1.bf16.msra.mxu1 %v16716_v62 }
 0x19c   : > { %3770 = vmatprep.subr.bf16.mxu0 %v16703_v63  ;;  %3856 = vmatprep.subr.bf16.mxu1 %v16724_v0 }
 0x19f   : > { %3771 = vmatpush1.bf16.msra.mxu0 %v16701_v1  ;;  %3857 = vmatpush1.bf16.msra.mxu1 %v16722_v2  ;;  %v18594_v1 = vsub.s32 1, %v18496_v32  ;;  %v18597_v2 = vsub.s32 2, %v18496_v32 }
 0x1a0   : > { %3772 = vmatprep.subr.bf16.mxu0 %v16709_v4  ;;  %3858 = vmatprep.subr.bf16.mxu1 %v16730_v5  ;;  %v17752_v4 = vld [vmem:[%s18042_s20] sm:$0xff] }
 0x1a1   : > { %v1392_v5 = vrot.slane %v17752_v4, %v18594_v1 }
 0x1a3   : > { %3773 = vmatpush1.bf16.msra.mxu0 %v16707_v6  ;;  %3859 = vmatpush1.bf16.msra.mxu1 %v16728_v7  ;;  %v18602_v6 = vsub.s32 3, %v18496_v32  ;;  %v1396_v7 = vrot.slane %v17752_v4, %v18597_v2 }
 0x1a4   : > { %3774 = vmatprep.subr.bf16.mxu0 %v16715_v8  ;;  %3860 = vmatprep.subr.bf16.mxu1 %v16736_v9  ;;  %v15965_v8 = vadd.f32 %v18520_v47, %v1392_v5  ;;  %v1382_v47 = vld [vmem:[%s18042_s20 + $0x8] sm:$0xf]  ;;  %s20622_s20 = sld [smem:[#allocation14_spill]] (!%p15697_p5) }
 0x1a5   : > { %v1400_v9 = vrot.slane %v17752_v4, %v18602_v6  ;;  %v15970_v32 = vadd.f32 %v18526_v52, %v1396_v7 }
 0x1a7   : > { %3775 = vmatpush1.bf16.msra.mxu0 %v16713_v10  ;;  %3861 = vmatpush1.bf16.msra.mxu1 %v16734_v11  ;;  %v15968_v10 = vadd.f32 %v18512_v43, %v1396_v7  ;;  %v15969_v11 = vadd.f32 %v18522_v48, %v1400_v9  ;;  %v18616_v43 = vrot.slane %v1382_v47, %v18597_v2 }
 0x1a8   : > { %3776 = vmatprep.subr.bf16.mxu0 %v16721_v12  ;;  %3862 = vmatprep.subr.bf16.mxu1 %v16742_v13  ;;  %v15967_v12 = vadd.f32 %v18531_v54, %v1392_v5  ;;  %v15971_v13 = vadd.f32 %v18533_v55, %v1400_v9  ;;  %v1424_v48 = vrot.slane %v1382_v47, %v18594_v1 }
 0x1ab   : > { %3777 = vmatpush1.bf16.msra.mxu0 %v16719_v14  ;;  %3863 = vmatpush1.bf16.msra.mxu1 %v16740_v15  ;;  %v1420_v14 = vrot.slane %v1382_v47, %v18506_v39  ;;  %v18620_v15 = vrot.slane %v1382_v47, %v18602_v6 }
 0x1ac   : > { %3778 = vmatprep.subr.bf16.mxu0 %v16727_v16  ;;  %3864 = vmatprep.subr.bf16.mxu1 %v16745_v17 }
 0x1af   : > { %3779 = vmatpush1.bf16.msra.mxu0 %v16725_v18  ;;  %3865 = vmatpush1.bf16.msra.mxu1 %v16743_v19 }
 0x1b0   : > { %3780 = vmatprep.subr.bf16.mxu0 %v16733_v20  ;;  %3866 = vmatprep.subr.bf16.mxu1 %v16748_v21 }
 0x1b3   : > { %3781 = vmatpush1.bf16.msra.mxu0 %v16731_v22  ;;  %3867 = vmatpush1.bf16.msra.mxu1 %v16746_v23 }
 0x1b4   : > { %3782 = vmatprep.subr.bf16.mxu0 %v16739_v24  ;;  %3868 = vmatprep.subr.bf16.mxu1 %v16751_v26 }
 0x1b7   : > { %3783 = vmatpush1.bf16.msra.mxu0 %v16737_v27  ;;  %3869 = vmatpush1.bf16.msra.mxu1 %v16749_v61 }
 0x1ba   : > { %3785 = vmatmul.mubr.bf16.vlgmr.msra.gmra.mrb[8].mxu0 %v18268_v3  ;;  %3871 = vmatmul.mubr.bf16.vlgmr.msra.gmra.mrb[8].mxu1 %v18268_v3  ;;  %v1408_v3 = vrot.slane %v18501_v35, %v18580_v30 }
 0x1bb   : > { %15872 = vmatprep.mubr.f32.mxu0 %v15964_v28 }
 0x20d   : > { %v3614_v36 = vpop.f32.mrb[4].mxu0  ;;  %v3700_v37 = vpop.f32.mrb[4].mxu1 }
 0x20e   : > { %v15972_v40 = vadd.f32 %v3614_v36, %v1404_v31  ;;  %v15976_v41 = vadd.f32 %v3700_v37, %v1412_v33  ;;  %v3616_v42 = vpop.f32.mrb[5].mxu0  ;;  %v3702_v44 = vpop.f32.mrb[5].mxu1 }
 0x20f   : > { %v15973_v45 = vadd.f32 %v3616_v42, %v1408_v3  ;;  %v15977_v46 = vadd.f32 %v3702_v44, %v1416_v34  ;;  %v3618_v49 = vpop.f32.mrb[6].mxu0  ;;  %v3704_v50 = vpop.f32.mrb[6].mxu1  ;;  %v3996_v42 = vld [vmem:[%s20615_s23 + $0x10] sm:$0xff] }
 0x210   : > { %v15974_v51 = vadd.f32 %v3618_v49, %v1404_v31  ;;  %v15978_v56 = vadd.f32 %v3704_v50, %v1412_v33  ;;  %v3620_v57 = vpop.f32.mrb[7].mxu0  ;;  %v3706_v58 = vpop.f32.mrb[7].mxu1  ;;  %v3994_v31 = vld [vmem:[%s20615_s23] sm:$0xff]  ;;  %v3997_v49 = vld [vmem:[%s20615_s23 + $0x18] sm:$0xff] }
 0x211   : > { %v15932_v59 = vpack.c.bf16 %v15973_v45, %v15972_v40  ;;  %v15936_v60 = vpack.c.bf16 %v15977_v46, %v15976_v41  ;;  %v15975_v62 = vadd.f32 %v3620_v57, %v1408_v3  ;;  %v15979_v63 = vadd.f32 %v3706_v58, %v1416_v34  ;;  %v3995_v34 = vld [vmem:[%s20615_s23 + $0x8] sm:$0xff]  ;;  %v3998_v58 = vld [vmem:[%s20615_s23 + $0x20] sm:$0xff] }
 0x213   : > { %v15940_v35 = vpack.c.bf16 %v15975_v62, %v15974_v51  ;;  %v15944_v0 = vpack.c.bf16 %v15979_v63, %v15978_v56  ;;  %15933 = vmatprep.subr.bf16.mxu0 %v15932_v59 }
 0x214   : > { %15935 = vmatpush3.bf16.xpose.msra.mxu0 %v15932_v59 }
 0x215   : > { %15937 = vmatprep.subr.bf16.mxu0 %v15936_v60 }
 0x21c   : > { %15939 = vmatpush3.bf16.xpose.msra.mxu0 %v15936_v60 }
 0x21d   : > { %15941 = vmatprep.subr.bf16.mxu0 %v15940_v35 }
 0x224   : > { %15943 = vmatpush3.bf16.xpose.msra.mxu0 %v15940_v35  ;;  %v3999_v35 = vld [vmem:[%s20615_s23 + $0x28] sm:$0xff] }
 0x225   : > { %15945 = vmatprep.subr.bf16.mxu0 %v15944_v0 }
 0x22c   : > { %15947 = vmatpush3.bf16.xpose.msra.mxu0 %v15944_v0 }
 0x233   : > { %15873 = vmatmul.mubr.f32.vlgmr.msra.gmra.mrb[12].mxu0 %v15965_v8  ;;  %v4000_v8 = vld [vmem:[%s20615_s23 + $0x30] sm:$0xff] }
 0x234   : > { %15875 = vmatprep.mubr.f32.mxu0 %v15968_v10 }
 0x237   : > { %15876 = vmatmul.mubr.f32.gmra.mrb[14].mxu0 %v15969_v11 }
 0x238   : > { %15878 = vmatprep.mubr.f32.mxu0 %v18529_v53 }
 0x23b   : > { %15879 = vmatmul.mubr.f32.gmra.mrb[16].mxu0 %v15967_v12 }
 0x23c   : > { %15881 = vmatprep.mubr.f32.mxu0 %v15970_v32  ;;  %v4001_v32 = vld [vmem:[%s20615_s23 + $0x38] sm:$0xff] }
 0x23f   : > { %15882 = vmatmul.mubr.f32.gmra.mrb[18].mxu0 %v15971_v13 }
 0x28d   : > { %v3786_v53 = vpop.f32.mrb[8].mxu0  ;;  %v3872_v54 = vpop.f32.mrb[8].mxu1 }
 0x28e   : > { %v15980_v16 = vadd.f32 %v3786_v53, %v1420_v14  ;;  %v3788_v52 = vpop.f32.mrb[9].mxu0  ;;  %v15984_v17 = vadd.f32 %v3872_v54, %v18616_v43  ;;  %v3874_v18 = vpop.f32.mrb[9].mxu1 }
 0x28f   : > { %v15981_v55 = vadd.f32 %v3788_v52, %v1424_v48  ;;  %v15985_v19 = vadd.f32 %v3874_v18, %v18620_v15  ;;  %v3790_v20 = vpop.f32.mrb[10].mxu0  ;;  %v3876_v54 = vpop.f32.mrb[10].mxu1 }
 0x290   : > { %v15982_v21 = vadd.f32 %v3790_v20, %v1420_v14  ;;  %v3792_v22 = vpop.f32.mrb[11].mxu0  ;;  %v3878_v52 = vpop.f32.mrb[11].mxu1 }
 0x291   : > { %v15948_v23 = vpack.c.bf16 %v15981_v55, %v15980_v16  ;;  %v15952_v24 = vpack.c.bf16 %v15985_v19, %v15984_v17  ;;  %v15983_v26 = vadd.f32 %v3792_v22, %v1424_v48  ;;  %v15986_v16 = vadd.f32 %v3876_v54, %v18616_v43  ;;  %v16787_v54 = vld [vmem:[%s18030_s27 + $0xac] ss:$16 sps:$4 sm:$0xff]  }
 0x292   : > { %v15987_v17 = vadd.f32 %v3878_v52, %v18620_v15  ;;  %v16793_v52 = vld [vmem:[%s18030_s27 + $0xcc] ss:$16 sps:$4 sm:$0xff]  }
 0x293   : > { %15949 = vmatprep.subr.bf16.mxu1 %v15948_v23  ;;  %v15956_v27 = vpack.c.bf16 %v15983_v26, %v15982_v21 }
 0x294   : > { %15951 = vmatpush3.bf16.msra.mxu1 %v15948_v23  ;;  %v15960_v18 = vpack.c.bf16 %v15987_v17, %v15986_v16  ;;  %v16785_v16 = vld [vmem:[%s18030_s27 + $0xa8] ss:$16 sps:$4 sm:$0xff]  }
 0x295   : > { %15953 = vmatprep.subr.bf16.mxu1 %v15952_v24  ;;  %v16791_v17 = vld [vmem:[%s18030_s27 + $0xc8] ss:$16 sps:$4 sm:$0xff]  }
 0x298   : > { %15955 = vmatpush3.bf16.msra.mxu1 %v15952_v24 }
 0x299   : > { %15957 = vmatprep.subr.bf16.mxu1 %v15956_v27 }
 0x29c   : > { %15959 = vmatpush3.bf16.msra.mxu1 %v15956_v27 }
 0x29d   : > { %15961 = vmatprep.subr.bf16.mxu1 %v15960_v18 }
 0x2a0   : > { %15963 = vmatpush3.bf16.msra.mxu1 %v15960_v18  ;;  %v16799_v18 = vld [vmem:[%s18030_s27 + $0xec] ss:$16 sps:$4 sm:$0xff]  }
 0x306   : > { %v15874_v61 = vpop.f32.mrb[12].mxu0 }
 0x307   : > { %v3947_v28 = vpop.f32.mrb[13].mxu0  ;;  %v3987_v33 = vmul.f32 0.088388346, %v15874_v61 }
 0x308   : > { %v3986_v3 = vmul.f32 0.088388346, %v3947_v28 }
 0x309   : > { %v4003_v46 = vadd.f32 %v3995_v34, %v3987_v33 }
 0x30a   : > { %v15877_v36 = vpop.f32.mrb[14].mxu0  ;;  %v4002_v37 = vadd.f32 %v3994_v31, %v3986_v3 }
 0x30b   : > { %v3989_v40 = vmul.f32 0.088388346, %v15877_v36  ;;  %v3957_v41 = vpop.f32.mrb[15].mxu0  ;;  %v4014_v62 = vsel %vm4010_vm0, %v4003_v46, -inf }
 0x30c   : > { %v3988_v44 = vmul.f32 0.088388346, %v3957_v41  ;;  %v4011_v45 = vsel %vm4010_vm0, %v4002_v37, -inf }
 0x30d   : > { %4012 = vmax.xlane.f32.xlu0 %v4011_v45  ;;  %v4005_v57 = vadd.f32 %v3997_v49, %v3989_v40 }
 0x30e   : > { %v15880_v50 = vpop.f32.mrb[16].mxu0  ;;  %v4004_v51 = vadd.f32 %v3996_v42, %v3988_v44 }
 0x30f   : > { %v3967_v56 = vpop.f32.mrb[17].mxu0  ;;  %v3991_v59 = vmul.f32 0.088388346, %v15880_v50  ;;  %v4020_v7 = vsel %vm4010_vm0, %v4005_v57, -inf }
 0x310   : > { %v3990_v60 = vmul.f32 0.088388346, %v3967_v56  ;;  %v4017_v63 = vsel %vm4010_vm0, %v4004_v51, -inf }
 0x311   : > { %4015 = vmax.xlane.f32.xlu0 %v4014_v62  ;;  %4018 = vmax.xlane.f32.xlu1 %v4017_v63  ;;  %v4007_v12 = vadd.f32 %v3999_v35, %v3991_v59 }
 0x312   : > { %v15883_v0 = vpop.f32.mrb[18].mxu0  ;;  %v4006_v4 = vadd.f32 %v3998_v58, %v3990_v60 }
 0x313   : > { %v3977_v5 = vpop.f32.mrb[19].mxu0  ;;  %v3993_v9 = vmul.f32 0.088388346, %v15883_v0  ;;  %v4026_v47 = vsel %vm4010_vm0, %v4007_v12, -inf }
 0x314   : > { %v3992_v10 = vmul.f32 0.088388346, %v3977_v5  ;;  %v4023_v11 = vsel %vm4010_vm0, %v4006_v4, -inf }
 0x315   : > { %4021 = vmax.xlane.f32.xlu1 %v4020_v7  ;;  %4024 = vmax.xlane.f32.xlu0 %v4023_v11  ;;  %v4009_v48 = vadd.f32 %v4001_v32, %v3993_v9  ;;  %v16755_v9 = vld [vmem:[%s18030_s27 + $0x8] ss:$16 sps:$4 sm:$0xff]   ;;  %v16763_v11 = vld [vmem:[%s18030_s27 + $0x2c] ss:$16 sps:$4 sm:$0xff]  }
 0x316   : > { %v4008_v13 = vadd.f32 %v4000_v8, %v3992_v10  ;;  %v16754_v8 = vld [vmem:[%s18030_s27 + $0x4] ss:$16 sps:$4 sm:$0xff]   ;;  %v16757_v10 = vld [vmem:[%s18030_s27 + $0xc] ss:$16 sps:$4 sm:$0xff]  }
 0x317   : > { %v4032_v53 = vsel %vm4010_vm0, %v4009_v48, -inf  ;;  %5022 = vmatprep.subr.bf16.mxu1 %v16754_v8  ;;  %5108 = vmatprep.subr.bf16.mxu0 %v16757_v10  ;;  %v16769_v32 = vld [vmem:[%s18030_s27 + $0x4c] ss:$16 sps:$4 sm:$0xff]   ;;  %v16766_v8 = vld [vmem:[%s18030_s27 + $0x44] ss:$16 sps:$4 sm:$0xff]  }
 0x318   : > { %v4029_v14 = vsel %vm4010_vm0, %v4008_v13, -inf  ;;  %5109 = vmatpush1.bf16.msra.mxu0 %v16755_v9 }
 0x319   : > { %4027 = vmax.xlane.f32.xlu1 %v4026_v47  ;;  %4030 = vmax.xlane.f32.xlu0 %v4029_v14  ;;  %v16775_v47 = vld [vmem:[%s18030_s27 + $0x6c] ss:$16 sps:$4 sm:$0xff]   ;;  %v16773_v14 = vld [vmem:[%s18030_s27 + $0x68] ss:$16 sps:$4 sm:$0xff]  }
 0x31a   : > { %5110 = vmatprep.subr.bf16.mxu0 %v16763_v11 }
 0x31d   : > { %4033 = vmax.xlane.f32.xlu1 %v4032_v53  ;;  %v16779_v53 = vld [vmem:[%s18030_s27 + $0x88] ss:$16 sps:$4 sm:$0xff]  }
 0x39a   : > { %v4013_v55 = vpop.xlane.xlu0 %4012 }
 0x39b   : > { %v4035_v19 = vsub.f32 %v4002_v37, %v4013_v55  ;;  %v16797_v55 = vld [vmem:[%s18030_s27 + $0xe8] ss:$16 sps:$4 sm:$0xff]  }
 0x39d   : > { %v4043_v20 = vmul.f32 1.442695, %v4035_v19  ;;  %v16805_v19 = vld [vmem:[%s18030_s27 + $0x10c] ss:$16 sps:$4 sm:$0xff]  }
 0x39e   : > { %v4016_v21 = vpop.xlane.xlu0 %4015  ;;  %v4019_v22 = vpop.xlane.xlu1 %4018 }
 0x39f   : > { %17712 = vpow2.f32 %v4043_v20  ;;  %v4036_v23 = vsub.f32 %v4003_v46, %v4016_v21  ;;  %v4037_v24 = vsub.f32 %v4004_v51, %v4019_v22  ;;  %v16803_v20 = vld [vmem:[%s18030_s27 + $0x108] ss:$16 sps:$4 sm:$0xff]   ;;  %v16811_v21 = vld [vmem:[%s18030_s27 + $0x12c] ss:$16 sps:$4 sm:$0xff]  }
 0x3a0   : > { %v16809_v22 = vld [vmem:[%s18030_s27 + $0x128] ss:$16 sps:$4 sm:$0xff]  }
 0x3a1   : > { %v4045_v26 = vmul.f32 1.442695, %v4036_v23  ;;  %v4047_v27 = vmul.f32 1.442695, %v4037_v24  ;;  %v16817_v23 = vld [vmem:[%s18030_s27 + $0x14c] ss:$16 sps:$4 sm:$0xff]  }
 0x3a2   : > { %v4022_v61 = vpop.xlane.xlu1 %4021  ;;  %v4025_v28 = vpop.xlane.xlu0 %4024  ;;  %v16815_v24 = vld [vmem:[%s18030_s27 + $0x148] ss:$16 sps:$4 sm:$0xff]  }
 0x3a3   : > { %17714 = vpow2.f32 %v4045_v26  ;;  %v4038_v43 = vsub.f32 %v4005_v57, %v4022_v61  ;;  %v4039_v31 = vsub.f32 %v4006_v4, %v4025_v28  ;;  %v16823_v26 = vld [vmem:[%s18030_s27 + $0x16c] ss:$16 sps:$4 sm:$0xff]   ;;  %v16827_v28 = vld [vmem:[%s18030_s27 + $0x188] ss:$16 sps:$4 sm:$0xff]  }
 0x3a4   : > { %17716 = vpow2.f32 %v4047_v27  ;;  %v16821_v27 = vld [vmem:[%s18030_s27 + $0x168] ss:$16 sps:$4 sm:$0xff]   ;;  %v16829_v61 = vld [vmem:[%s18030_s27 + $0x18c] ss:$16 sps:$4 sm:$0xff]  }
 0x3a5   : > { %v4049_v15 = vmul.f32 1.442695, %v4038_v43  ;;  %v4051_v33 = vmul.f32 1.442695, %v4039_v31  ;;  %v16835_v43 = vld [vmem:[%s18030_s27 + $0x1ac] ss:$16 sps:$4 sm:$0xff]  }
 0x3a6   : > { %v4028_v3 = vpop.xlane.xlu1 %4027  ;;  %v4031_v34 = vpop.xlane.xlu0 %4030  ;;  %v16833_v31 = vld [vmem:[%s18030_s27 + $0x1a8] ss:$16 sps:$4 sm:$0xff]  }
 0x3a7   : > { %17718 = vpow2.f32 %v4049_v15  ;;  %v4040_v36 = vsub.f32 %v4007_v12, %v4028_v3  ;;  %v4041_v37 = vsub.f32 %v4008_v13, %v4031_v34  ;;  %v16761_v12 = vld [vmem:[%s18030_s27 + $0x28] ss:$16 sps:$4 sm:$0xff]  }
 0x3a8   : > { %17720 = vpow2.f32 %v4051_v33  ;;  %5111 = vmatpush1.bf16.msra.mxu0 %v16761_v12  ;;  %v16767_v13 = vld [vmem:[%s18030_s27 + $0x48] ss:$16 sps:$4 sm:$0xff]  }
 0x3a9   : > { %v18658_v40 = vpop.eup %17712  ;;  %v4053_v41 = vmul.f32 1.442695, %v4040_v36  ;;  %v4055_v42 = vmul.f32 1.442695, %v4041_v37  ;;  %5112 = vmatprep.subr.bf16.mxu0 %v16769_v32  ;;  %v16770_v32 = vld [vmem:[%s18030_s27 + $0x60] ss:$16 sps:$4 sm:$0xff]  }
 0x3aa   : > { %v4034_v44 = vpop.xlane.xlu1 %4033  ;;  %v4059_v45 = vsel %vm4010_vm0, %v18658_v40, 0.0 }
 0x3ab   : > { %17722 = vpow2.f32 %v4053_v41  ;;  %v4042_v46 = vsub.f32 %v4009_v48, %v4034_v44  ;;  %4060 = vadd.xlane.f32.xlu0 %v4059_v45  ;;  %v16781_v48 = vld [vmem:[%s18030_s27 + $0x8c] ss:$16 sps:$4 sm:$0xff]  }
 0x3ac   : > { %17724 = vpow2.f32 %v4055_v42  ;;  %5113 = vmatpush1.bf16.msra.mxu0 %v16767_v13 }
 0x3ad   : > { %v18662_v49 = vpop.eup %17714  ;;  %v4057_v50 = vmul.f32 1.442695, %v4042_v46  ;;  %5114 = vmatprep.subr.bf16.mxu0 %v16775_v47  ;;  %v16752_v46 = vld [vmem:[%s18030_s27] ss:$16 sps:$4 sm:$0xff]   ;;  %v16784_v47 = vld [vmem:[%s18030_s27 + $0xa4] ss:$16 sps:$4 sm:$0xff]  }
 0x3ae   : > { %v18664_v51 = vpop.eup %17716  ;;  %v4062_v56 = vsel %vm4010_vm0, %v18662_v49, 0.0 }
 0x3af   : > { %17726 = vpow2.f32 %v4057_v50  ;;  %4063 = vadd.xlane.f32.xlu1 %v4062_v56  ;;  %v4065_v57 = vsel %vm4010_vm0, %v18664_v51, 0.0 }
 0x3b0   : > { %4066 = vadd.xlane.f32.xlu0 %v4065_v57  ;;  %5115 = vmatpush1.bf16.msra.mxu0 %v16773_v14  ;;  %v16782_v14 = vld [vmem:[%s18030_s27 + $0xa0] ss:$16 sps:$4 sm:$0xff]  }
 0x3b1   : > { %v18670_v58 = vpop.eup %17718  ;;  %5116 = vmatprep.subr.bf16.mxu0 %v16781_v48  ;;  %v16790_v48 = vld [vmem:[%s18030_s27 + $0xc4] ss:$16 sps:$4 sm:$0xff]  }
 0x3b2   : > { %v18672_v59 = vpop.eup %17720  ;;  %v4068_v60 = vsel %vm4010_vm0, %v18670_v58, 0.0 }
 0x3b3   : > { %4069 = vadd.xlane.f32.xlu1 %v4068_v60  ;;  %v4071_v62 = vsel %vm4010_vm0, %v18672_v59, 0.0  ;;  %v16760_v60 = vld [vmem:[%s18030_s27 + $0x24] ss:$16 sps:$4 sm:$0xff]  }
 0x3b4   : > { %4072 = vadd.xlane.f32.xlu0 %v4071_v62  ;;  %5117 = vmatpush1.bf16.msra.mxu0 %v16779_v53  ;;  %v16796_v53 = vld [vmem:[%s18030_s27 + $0xe4] ss:$16 sps:$4 sm:$0xff]  }
 0x3b5   : > { %v18678_v63 = vpop.eup %17722  ;;  %5118 = vmatprep.subr.bf16.mxu0 %v16787_v54  ;;  %v16794_v54 = vld [vmem:[%s18030_s27 + $0xe0] ss:$16 sps:$4 sm:$0xff]  }
 0x3b6   : > { %v18680_v35 = vpop.eup %17724  ;;  %v4074_v0 = vsel %vm4010_vm0, %v18678_v63, 0.0 }
 0x3b7   : > { %4075 = vadd.xlane.f32.xlu1 %v4074_v0  ;;  %v4077_v4 = vsel %vm4010_vm0, %v18680_v35, 0.0  ;;  %v16758_v0 = vld [vmem:[%s18030_s27 + $0x20] ss:$16 sps:$4 sm:$0xff]  }
 0x3b8   : > { %4078 = vadd.xlane.f32.xlu0 %v4077_v4  ;;  %5119 = vmatpush1.bf16.msra.mxu0 %v16785_v16  ;;  %v16802_v16 = vld [vmem:[%s18030_s27 + $0x104] ss:$16 sps:$4 sm:$0xff]  }
 0x3b9   : > { %v18686_v5 = vpop.eup %17726  ;;  %5120 = vmatprep.subr.bf16.mxu0 %v16793_v52  ;;  %v16800_v52 = vld [vmem:[%s18030_s27 + $0x100] ss:$16 sps:$4 sm:$0xff]  }
 0x3ba   : > { %v4080_v7 = vsel %vm4010_vm0, %v18686_v5, 0.0 }
 0x3bb   : > { %4081 = vadd.xlane.f32.xlu1 %v4080_v7 }
 0x3bc   : > { %5121 = vmatpush1.bf16.msra.mxu0 %v16791_v17  ;;  %v16808_v17 = vld [vmem:[%s18030_s27 + $0x124] ss:$16 sps:$4 sm:$0xff]  }
 0x3bd   : > { %5122 = vmatprep.subr.bf16.mxu0 %v16799_v18  ;;  %v16806_v18 = vld [vmem:[%s18030_s27 + $0x120] ss:$16 sps:$4 sm:$0xff]  }
 0x3c0   : > { %5123 = vmatpush1.bf16.msra.mxu0 %v16797_v55  ;;  %v16814_v55 = vld [vmem:[%s18030_s27 + $0x144] ss:$16 sps:$4 sm:$0xff]  }
 0x3c1   : > { %5124 = vmatprep.subr.bf16.mxu0 %v16805_v19  ;;  %v16812_v19 = vld [vmem:[%s18030_s27 + $0x140] ss:$16 sps:$4 sm:$0xff]  }
 0x3c4   : > { %5125 = vmatpush1.bf16.msra.mxu0 %v16803_v20  ;;  %v16820_v20 = vld [vmem:[%s18030_s27 + $0x164] ss:$16 sps:$4 sm:$0xff]  }
 0x3c5   : > { %5126 = vmatprep.subr.bf16.mxu0 %v16811_v21  ;;  %v16818_v21 = vld [vmem:[%s18030_s27 + $0x160] ss:$16 sps:$4 sm:$0xff]  }
 0x3c8   : > { %5127 = vmatpush1.bf16.msra.mxu0 %v16809_v22  ;;  %v16826_v22 = vld [vmem:[%s18030_s27 + $0x184] ss:$16 sps:$4 sm:$0xff]  }
 0x3c9   : > { %5128 = vmatprep.subr.bf16.mxu0 %v16817_v23  ;;  %v16824_v23 = vld [vmem:[%s18030_s27 + $0x180] ss:$16 sps:$4 sm:$0xff]  }
 0x3cc   : > { %5129 = vmatpush1.bf16.msra.mxu0 %v16815_v24  ;;  %v16832_v24 = vld [vmem:[%s18030_s27 + $0x1a4] ss:$16 sps:$4 sm:$0xff]  }
 0x3cd   : > { %5130 = vmatprep.subr.bf16.mxu0 %v16823_v26  ;;  %v16830_v26 = vld [vmem:[%s18030_s27 + $0x1a0] ss:$16 sps:$4 sm:$0xff]  }
 0x3d0   : > { %5131 = vmatpush1.bf16.msra.mxu0 %v16821_v27  ;;  %v16836_v27 = vld [vmem:[%s18030_s27 + $0x1c0] ss:$16 sps:$4 sm:$0xff]  }
 0x3d1   : > { %5132 = vmatprep.subr.bf16.mxu0 %v16829_v61  ;;  %v16838_v61 = vld [vmem:[%s18030_s27 + $0x1c4] ss:$16 sps:$4 sm:$0xff]  }
 0x3d4   : > { %5133 = vmatpush1.bf16.msra.mxu0 %v16827_v28  ;;  %v16839_v28 = vld [vmem:[%s18030_s27 + $0x1c8] ss:$16 sps:$4 sm:$0xff]  }
 0x3d5   : > { %5134 = vmatprep.subr.bf16.mxu0 %v16835_v43  ;;  %v16841_v43 = vld [vmem:[%s18030_s27 + $0x1cc] ss:$16 sps:$4 sm:$0xff]  }
 0x3d8   : > { %5135 = vmatpush1.bf16.msra.mxu0 %v16833_v31  ;;  %v16842_v31 = vld [vmem:[%s18030_s27 + $0x1e0] ss:$16 sps:$4 sm:$0xff]  }
 0x3d9   : > { %5136 = vmatprep.subr.bf16.mxu0 %v16841_v43  ;;  %v16905_v43 = vld [vmem:[%s18030_s27 + $0x328] ss:$16 sps:$4 sm:$0xff]  }
 0x3dc   : > { %5137 = vmatpush1.bf16.msra.mxu0 %v16839_v28  ;;  %v16902_v28 = vld [vmem:[%s18030_s27 + $0x320] ss:$16 sps:$4 sm:$0xff]  }
 0x438   : > { %v4061_v15 = vpop.xlane.xlu0 %4060 }
 0x439   : > { %17728 = vrcp.f32 %v4061_v15  ;;  %v16844_v15 = vld [vmem:[%s18030_s27 + $0x1e4] ss:$16 sps:$4 sm:$0xff]  }
 0x43c   : > { %v4064_v33 = vpop.xlane.xlu1 %4063 }
 0x43d   : > { %17730 = vrcp.f32 %v4064_v33  ;;  %v4067_v3 = vpop.xlane.xlu0 %4066  ;;  %v16845_v33 = vld [vmem:[%s18030_s27 + $0x1e8] ss:$16 sps:$4 sm:$0xff]  }
 0x43e   : > { %17732 = vrcp.f32 %v4067_v3  ;;  %v16847_v3 = vld [vmem:[%s18030_s27 + $0x1ec] ss:$16 sps:$4 sm:$0xff]  }
 0x43f   : > { %5138 = vmatprep.subr.bf16.mxu0 %v16847_v3  ;;  %v16911_v3 = vld [vmem:[%s18030_s27 + $0x348] ss:$16 sps:$4 sm:$0xff]  }
 0x440   : > { %v4070_v34 = vpop.xlane.xlu1 %4069  ;;  %5139 = vmatpush1.bf16.msra.mxu0 %v16845_v33  ;;  %v16908_v33 = vld [vmem:[%s18030_s27 + $0x340] ss:$16 sps:$4 sm:$0xff]  }
 0x441   : > { %17734 = vrcp.f32 %v4070_v34  ;;  %v4073_v36 = vpop.xlane.xlu0 %4072  ;;  %v16850_v34 = vld [vmem:[%s18030_s27 + $0x204] ss:$16 sps:$4 sm:$0xff]  }
 0x442   : > { %17736 = vrcp.f32 %v4073_v36  ;;  %v16853_v36 = vld [vmem:[%s18030_s27 + $0x20c] ss:$16 sps:$4 sm:$0xff]  }
 0x443   : > { %v17729_v37 = vpop.eup %17728  ;;  %5151 = vmatprep.subr.bf16.mxu0 %v16853_v36  ;;  %v16919_v36 = vld [vmem:[%s18030_s27 + $0x36c] ss:$16 sps:$4 sm:$0xff]  }
 0x444   : > { %v4076_v41 = vpop.xlane.xlu1 %4075  ;;  %v4091_v42 = vmul.f32 %v17729_v37, %v18658_v40 }
 0x445   : > { %17738 = vrcp.f32 %v4076_v41  ;;  %v4079_v44 = vpop.xlane.xlu0 %4078 }
 0x446   : > { %17740 = vrcp.f32 %v4079_v44  ;;  %15900 = vmatprep.mubr.msk.f32.mxu1 %vm4010_vm0, %v4091_v42 }
 0x447   : > { %v17731_v45 = vpop.eup %17730 }
 0x448   : > { %v17733_v50 = vpop.eup %17732  ;;  %v4092_v56 = vmul.f32 %v17731_v45, %v18662_v49  ;;  %v4082_v57 = vpop.xlane.xlu1 %4081 }
 0x449   : > { %17742 = vrcp.f32 %v4082_v57  ;;  %v4093_v62 = vmul.f32 %v17733_v50, %v18664_v51  ;;  %v16764_v51 = vld [vmem:[%s18030_s27 + $0x40] ss:$16 sps:$4 sm:$0xff]   ;;  %v16851_v57 = vld [vmem:[%s18030_s27 + $0x208] ss:$16 sps:$4 sm:$0xff]  }
 0x44a   : > { %15901 = vmatmul.mubr.msk.f32.vlgmr.msra.gmra.mrb[12].mxu1 %vm4010_vm0, %v4092_v56  ;;  %v16848_v56 = vld [vmem:[%s18030_s27 + $0x200] ss:$16 sps:$4 sm:$0xff]  }
 0x44b   : > { %v17735_v40 = vpop.eup %17734  ;;  %15903 = vmatprep.mubr.msk.f32.mxu1 %vm4010_vm0, %v4093_v62  ;;  %5023 = vmatpush1.bf16.msra.mxu1 %v16752_v46  ;;  %v16856_v62 = vld [vmem:[%s18030_s27 + $0x224] ss:$16 sps:$4 sm:$0xff]  }
 0x44c   : > { %v17737_v4 = vpop.eup %17736  ;;  %v4094_v7 = vmul.f32 %v17735_v40, %v18670_v58  ;;  %5024 = vmatprep.subr.bf16.mxu1 %v16760_v60  ;;  %v16772_v58 = vld [vmem:[%s18030_s27 + $0x64] ss:$16 sps:$4 sm:$0xff]   ;;  %v16859_v40 = vld [vmem:[%s18030_s27 + $0x22c] ss:$16 sps:$4 sm:$0xff]  }
 0x44d   : > { %v4095_v49 = vmul.f32 %v17737_v4, %v18672_v59 }
 0x44e   : > { %15904 = vmatmul.mubr.msk.f32.gmra.mrb[14].mxu1 %vm4010_vm0, %v4094_v7 }
 0x44f   : > { %v17739_v9 = vpop.eup %17738  ;;  %15906 = vmatprep.mubr.msk.f32.mxu1 %vm4010_vm0, %v4095_v49  ;;  %5025 = vmatpush1.bf16.msra.mxu1 %v16758_v0  ;;  %v16857_v49 = vld [vmem:[%s18030_s27 + $0x228] ss:$16 sps:$4 sm:$0xff]  }
 0x450   : > { %v17741_v10 = vpop.eup %17740  ;;  %v4096_v11 = vmul.f32 %v17739_v9, %v18678_v63  ;;  %5026 = vmatprep.subr.bf16.mxu1 %v16766_v8  ;;  %v16778_v63 = vld [vmem:[%s18030_s27 + $0x84] ss:$16 sps:$4 sm:$0xff]   ;;  %v16854_v8 = vld [vmem:[%s18030_s27 + $0x220] ss:$16 sps:$4 sm:$0xff]  }
 0x451   : > { %v4097_v12 = vmul.f32 %v17741_v10, %v18680_v35  ;;  %v16776_v35 = vld [vmem:[%s18030_s27 + $0x80] ss:$16 sps:$4 sm:$0xff]   ;;  %v16865_v10 = vld [vmem:[%s18030_s27 + $0x24c] ss:$16 sps:$4 sm:$0xff]  }
 0x452   : > { %15907 = vmatmul.mubr.msk.f32.gmra.mrb[16].mxu1 %vm4010_vm0, %v4096_v11  ;;  %v16860_v11 = vld [vmem:[%s18030_s27 + $0x240] ss:$16 sps:$4 sm:$0xff]  }
 0x453   : > { %v17743_v59 = vpop.eup %17742  ;;  %15909 = vmatprep.mubr.msk.f32.mxu1 %vm4010_vm0, %v4097_v12  ;;  %5027 = vmatpush1.bf16.msra.mxu1 %v16764_v51  ;;  %v16862_v51 = vld [vmem:[%s18030_s27 + $0x244] ss:$16 sps:$4 sm:$0xff]  }
 0x454   : > { %v4098_v13 = vmul.f32 %v17743_v59, %v18686_v5  ;;  %5028 = vmatprep.subr.bf16.mxu1 %v16772_v58  ;;  %v16788_v5 = vld [vmem:[%s18030_s27 + $0xc0] ss:$16 sps:$4 sm:$0xff]   ;;  %v16863_v58 = vld [vmem:[%s18030_s27 + $0x248] ss:$16 sps:$4 sm:$0xff]   ;;  %v16868_v12 = vld [vmem:[%s18030_s27 + $0x264] ss:$16 sps:$4 sm:$0xff]  }
 0x455   : > { %v16871_v59 = vld [vmem:[%s18030_s27 + $0x26c] ss:$16 sps:$4 sm:$0xff]  }
 0x456   : > { %15910 = vmatmul.mubr.msk.f32.gmra.mrb[18].mxu1 %vm4010_vm0, %v4098_v13  ;;  %v16869_v13 = vld [vmem:[%s18030_s27 + $0x268] ss:$16 sps:$4 sm:$0xff]  }
 0x457   : > { %5029 = vmatpush1.bf16.msra.mxu1 %v16770_v32  ;;  %v16866_v32 = vld [vmem:[%s18030_s27 + $0x260] ss:$16 sps:$4 sm:$0xff]  }
 0x458   : > { %5030 = vmatprep.subr.bf16.mxu1 %v16778_v63  ;;  %v16874_v63 = vld [vmem:[%s18030_s27 + $0x284] ss:$16 sps:$4 sm:$0xff]  }
 0x45b   : > { %5031 = vmatpush1.bf16.msra.mxu1 %v16776_v35  ;;  %v16877_v35 = vld [vmem:[%s18030_s27 + $0x28c] ss:$16 sps:$4 sm:$0xff]  }
 0x45c   : > { %5032 = vmatprep.subr.bf16.mxu1 %v16784_v47  ;;  %v16872_v47 = vld [vmem:[%s18030_s27 + $0x280] ss:$16 sps:$4 sm:$0xff]  }
 0x45f   : > { %5033 = vmatpush1.bf16.msra.mxu1 %v16782_v14  ;;  %v16875_v14 = vld [vmem:[%s18030_s27 + $0x288] ss:$16 sps:$4 sm:$0xff]  }
 0x460   : > { %5034 = vmatprep.subr.bf16.mxu1 %v16790_v48  ;;  %v16880_v48 = vld [vmem:[%s18030_s27 + $0x2a4] ss:$16 sps:$4 sm:$0xff]  }
 0x463   : > { %5035 = vmatpush1.bf16.msra.mxu1 %v16788_v5  ;;  %v16883_v5 = vld [vmem:[%s18030_s27 + $0x2ac] ss:$16 sps:$4 sm:$0xff]  }
 0x464   : > { %5036 = vmatprep.subr.bf16.mxu1 %v16796_v53  ;;  %v16878_v53 = vld [vmem:[%s18030_s27 + $0x2a0] ss:$16 sps:$4 sm:$0xff]  }
 0x467   : > { %5037 = vmatpush1.bf16.msra.mxu1 %v16794_v54  ;;  %v16881_v54 = vld [vmem:[%s18030_s27 + $0x2a8] ss:$16 sps:$4 sm:$0xff]  }
 0x468   : > { %5038 = vmatprep.subr.bf16.mxu1 %v16802_v16  ;;  %v16886_v16 = vld [vmem:[%s18030_s27 + $0x2c4] ss:$16 sps:$4 sm:$0xff]  }
 0x46b   : > { %5039 = vmatpush1.bf16.msra.mxu1 %v16800_v52  ;;  %v16889_v52 = vld [vmem:[%s18030_s27 + $0x2cc] ss:$16 sps:$4 sm:$0xff]  }
 0x46c   : > { %5040 = vmatprep.subr.bf16.mxu1 %v16808_v17  ;;  %v16884_v17 = vld [vmem:[%s18030_s27 + $0x2c0] ss:$16 sps:$4 sm:$0xff]  }
 0x46f   : > { %5041 = vmatpush1.bf16.msra.mxu1 %v16806_v18  ;;  %v16887_v18 = vld [vmem:[%s18030_s27 + $0x2c8] ss:$16 sps:$4 sm:$0xff]  }
 0x470   : > { %5042 = vmatprep.subr.bf16.mxu1 %v16814_v55  ;;  %v16892_v55 = vld [vmem:[%s18030_s27 + $0x2e4] ss:$16 sps:$4 sm:$0xff]  }
 0x473   : > { %5043 = vmatpush1.bf16.msra.mxu1 %v16812_v19  ;;  %v16895_v19 = vld [vmem:[%s18030_s27 + $0x2ec] ss:$16 sps:$4 sm:$0xff]  }
 0x474   : > { %5044 = vmatprep.subr.bf16.mxu1 %v16820_v20  ;;  %v16890_v20 = vld [vmem:[%s18030_s27 + $0x2e0] ss:$16 sps:$4 sm:$0xff]  }
 0x477   : > { %5045 = vmatpush1.bf16.msra.mxu1 %v16818_v21  ;;  %v16893_v21 = vld [vmem:[%s18030_s27 + $0x2e8] ss:$16 sps:$4 sm:$0xff]  }
 0x478   : > { %5046 = vmatprep.subr.bf16.mxu1 %v16826_v22  ;;  %v16898_v22 = vld [vmem:[%s18030_s27 + $0x304] ss:$16 sps:$4 sm:$0xff]  }
 0x47b   : > { %5047 = vmatpush1.bf16.msra.mxu1 %v16824_v23  ;;  %v16901_v23 = vld [vmem:[%s18030_s27 + $0x30c] ss:$16 sps:$4 sm:$0xff]  }
 0x47c   : > { %5048 = vmatprep.subr.bf16.mxu1 %v16832_v24  ;;  %v16896_v24 = vld [vmem:[%s18030_s27 + $0x300] ss:$16 sps:$4 sm:$0xff]  }
 0x47f   : > { %5049 = vmatpush1.bf16.msra.mxu1 %v16830_v26  ;;  %v16899_v26 = vld [vmem:[%s18030_s27 + $0x308] ss:$16 sps:$4 sm:$0xff]  }
 0x480   : > { %5050 = vmatprep.subr.bf16.mxu1 %v16838_v61  ;;  %v16907_v61 = vld [vmem:[%s18030_s27 + $0x32c] ss:$16 sps:$4 sm:$0xff]  }
 0x483   : > { %5051 = vmatpush1.bf16.msra.mxu1 %v16836_v27  ;;  %v16904_v27 = vld [vmem:[%s18030_s27 + $0x324] ss:$16 sps:$4 sm:$0xff]  }
 0x484   : > { %5052 = vmatprep.subr.bf16.mxu1 %v16844_v15  ;;  %v16913_v15 = vld [vmem:[%s18030_s27 + $0x34c] ss:$16 sps:$4 sm:$0xff]  }
 0x487   : > { %5053 = vmatpush1.bf16.msra.mxu1 %v16842_v31  ;;  %v16910_v31 = vld [vmem:[%s18030_s27 + $0x344] ss:$16 sps:$4 sm:$0xff]  }
 0x488   : > { %5065 = vmatprep.subr.bf16.mxu1 %v16850_v34  ;;  %v16916_v34 = vld [vmem:[%s18030_s27 + $0x364] ss:$16 sps:$4 sm:$0xff]  }
 0x51d   : > { %v15902_v37 = vpop.f32.mrb[12].mxu1 }
 0x51e   : > { %v4189_v41 = vpop.f32.mrb[13].mxu1 }
 0x521   : > { %v15905_v42 = vpop.f32.mrb[14].mxu1 }
 0x522   : > { %v4199_v44 = vpop.f32.mrb[15].mxu1 }
 0x525   : > { %v15908_v45 = vpop.f32.mrb[16].mxu1 }
 0x526   : > { %v4229_v46 = vpack.c.bf16 %v15908_v45, %v15902_v37  ;;  %v4209_v50 = vpop.f32.mrb[17].mxu1  ;;  %v16914_v37 = vld [vmem:[%s18030_s27 + $0x360] ss:$16 sps:$4 sm:$0xff]  }
 0x527   : > { %v4228_v60 = vpack.c.bf16 %v4209_v50, %v4189_v41  ;;  %v16917_v41 = vld [vmem:[%s18030_s27 + $0x368] ss:$16 sps:$4 sm:$0xff]   ;;  %v16920_v45 = vld [vmem:[%s18030_s27 + $0x380] ss:$16 sps:$4 sm:$0xff]   ;;  %v16928_v50 = vld [vmem:[%s18030_s27 + $0x3a4] ss:$16 sps:$4 sm:$0xff]  }
 0x528   : > { %5054 = vmatprep.mubr.bf16.mxu1 %v4229_v46  ;;  %5140 = vmatprep.mubr.bf16.mxu0 %v4229_v46  ;;  %v16923_v46 = vld [vmem:[%s18030_s27 + $0x388] ss:$16 sps:$4 sm:$0xff]  }
 0x529   : > { %v15911_v0 = vpop.f32.mrb[18].mxu1  ;;  %5055 = vmatmul.mubr.bf16.vlgmr.msra.gmra.mrb[20].mxu1 %v4228_v60  ;;  %5141 = vmatmul.mubr.bf16.vlgmr.msra.gmra.mrb[20].mxu0 %v4228_v60  ;;  %v16929_v60 = vld [vmem:[%s18030_s27 + $0x3a8] ss:$16 sps:$4 sm:$0xff]  }
 0x52a   : > { %v4231_v4 = vpack.c.bf16 %v15911_v0, %v15905_v42  ;;  %5066 = vmatpush1.bf16.msra.mxu1 %v16848_v56  ;;  %5152 = vmatpush1.bf16.msra.mxu0 %v16851_v57  ;;  %v4219_v7 = vpop.f32.mrb[19].mxu1  ;;  %v16922_v42 = vld [vmem:[%s18030_s27 + $0x384] ss:$16 sps:$4 sm:$0xff]   ;;  %v16931_v56 = vld [vmem:[%s18030_s27 + $0x3ac] ss:$16 sps:$4 sm:$0xff]  }
 0x52b   : > { %v18778_v9 = vpack.c.bf16 %v4219_v7, %v4199_v44  ;;  %5067 = vmatprep.subr.bf16.mxu1 %v16856_v62  ;;  %5153 = vmatprep.subr.bf16.mxu0 %v16859_v40  ;;  %v16925_v44 = vld [vmem:[%s18030_s27 + $0x38c] ss:$16 sps:$4 sm:$0xff]   ;;  %v16926_v57 = vld [vmem:[%s18030_s27 + $0x3a0] ss:$16 sps:$4 sm:$0xff]   ;;  %v16934_v62 = vld [vmem:[%s18030_s27 + $0x3c4] ss:$16 sps:$4 sm:$0xff]  }
 0x52c   : > { %5097 = vmatprep.mubr.bf16.mxu1 %v4231_v4  ;;  %5183 = vmatprep.mubr.bf16.mxu0 %v4231_v4  ;;  %v16937_v40 = vld [vmem:[%s18030_s27 + $0x3cc] ss:$16 sps:$4 sm:$0xff]   ;;  %v16932_v0 = vld [vmem:[%s18030_s27 + $0x3c0] ss:$16 sps:$4 sm:$0xff]   ;;  %v16935_v4 = vld [vmem:[%s18030_s27 + $0x3c8] ss:$16 sps:$4 sm:$0xff]  }
 0x52d   : > { %v16940_v7 = vld [vmem:[%s18030_s27 + $0x3e4] ss:$16 sps:$4 sm:$0xff]  }
 0x52e   : > { %5068 = vmatpush1.bf16.msra.mxu1 %v16854_v8  ;;  %5154 = vmatpush1.bf16.msra.mxu0 %v16857_v49  ;;  %v16943_v8 = vld [vmem:[%s18030_s27 + $0x3ec] ss:$16 sps:$4 sm:$0xff]   ;;  %v16938_v49 = vld [vmem:[%s18030_s27 + $0x3e0] ss:$16 sps:$4 sm:$0xff]  }
 0x52f   : > { %5069 = vmatprep.subr.bf16.mxu1 %v16862_v51  ;;  %5155 = vmatprep.subr.bf16.mxu0 %v16865_v10  ;;  %v16941_v51 = vld [vmem:[%s18030_s27 + $0x3e8] ss:$16 sps:$4 sm:$0xff]   ;;  %v4360_v10 = vld [vmem:[%s20616_s2] sm:$0xf]  ;;  %s20626_s27 = sld [smem:[#allocation19_spill]] (!%p15697_p5) }
 0x532   : > { %5070 = vmatpush1.bf16.msra.mxu1 %v16860_v11  ;;  %5156 = vmatpush1.bf16.msra.mxu0 %v16863_v58  ;;  %v4365_v11 = vrot.slane %v4360_v10, %v18506_v39  ;;  %v4373_v58 = vrot.slane %v4360_v10, %v18597_v2 }
 0x533   : > { %5071 = vmatprep.subr.bf16.mxu1 %v16868_v12  ;;  %5157 = vmatprep.subr.bf16.mxu0 %v16871_v59  ;;  %v4369_v12 = vrot.slane %v4360_v10, %v18594_v1 }
 0x536   : > { %5072 = vmatpush1.bf16.msra.mxu1 %v16866_v32  ;;  %5158 = vmatpush1.bf16.msra.mxu0 %v16869_v13  ;;  %v4377_v13 = vrot.slane %v4360_v10, %v18602_v6  ;;  %v5351_v10 = vld [vmem:[%s18059_s17 + $0x100] sm:$0xff] }
 0x537   : > { %5073 = vmatprep.subr.bf16.mxu1 %v16874_v63  ;;  %5159 = vmatprep.subr.bf16.mxu0 %v16877_v35 }
 0x53a   : > { %5074 = vmatpush1.bf16.msra.mxu1 %v16872_v47  ;;  %5160 = vmatpush1.bf16.msra.mxu0 %v16875_v14 }
 0x53b   : > { %5075 = vmatprep.subr.bf16.mxu1 %v16880_v48  ;;  %5161 = vmatprep.subr.bf16.mxu0 %v16883_v5 }
 0x53e   : > { %5076 = vmatpush1.bf16.msra.mxu1 %v16878_v53  ;;  %5162 = vmatpush1.bf16.msra.mxu0 %v16881_v54  ;;  %v17753_v53 = vld [vmem:[#allocation2] sm:$0xff] }
 0x53f   : > { %5077 = vmatprep.subr.bf16.mxu1 %v16886_v16  ;;  %5163 = vmatprep.subr.bf16.mxu0 %v16889_v52 }
 0x542   : > { %5078 = vmatpush1.bf16.msra.mxu1 %v16884_v17  ;;  %5164 = vmatpush1.bf16.msra.mxu0 %v16887_v18  ;;  %v17754_v18 = vld [vmem:[#allocation2 + $0x8] sm:$0xff] }
 0x543   : > { %5079 = vmatprep.subr.bf16.mxu1 %v16892_v55  ;;  %5165 = vmatprep.subr.bf16.mxu0 %v16895_v19 }
 0x546   : > { %5080 = vmatpush1.bf16.msra.mxu1 %v16890_v20  ;;  %5166 = vmatpush1.bf16.msra.mxu0 %v16893_v21 }
 0x547   : > { %5081 = vmatprep.subr.bf16.mxu1 %v16898_v22  ;;  %5167 = vmatprep.subr.bf16.mxu0 %v16901_v23  ;;  %v17755_v22 = vld [vmem:[#allocation2 + $0x20] sm:$0xff] }
 0x54a   : > { %5082 = vmatpush1.bf16.msra.mxu1 %v16896_v24  ;;  %5168 = vmatpush1.bf16.msra.mxu0 %v16899_v26  ;;  %v17756_v24 = vld [vmem:[#allocation2 + $0x10] sm:$0xff] }
 0x54b   : > { %5083 = vmatprep.subr.bf16.mxu1 %v16904_v27  ;;  %5169 = vmatprep.subr.bf16.mxu0 %v16907_v61  ;;  %v17757_v61 = vld [vmem:[#allocation2 + $0x28] sm:$0xff] }
 0x54e   : > { %5084 = vmatpush1.bf16.msra.mxu1 %v16902_v28  ;;  %5170 = vmatpush1.bf16.msra.mxu0 %v16905_v43 }
 0x54f   : > { %5085 = vmatprep.subr.bf16.mxu1 %v16910_v31  ;;  %5171 = vmatprep.subr.bf16.mxu0 %v16913_v15  ;;  %v17758_v31 = vld [vmem:[#allocation2 + $0x18] sm:$0xff] }
 0x552   : > { %5086 = vmatpush1.bf16.msra.mxu1 %v16908_v33  ;;  %5172 = vmatpush1.bf16.msra.mxu0 %v16911_v3  ;;  %v17759_v33 = vld [vmem:[#allocation2 + $0x30] sm:$0xff] }
 0x553   : > { %5087 = vmatprep.subr.bf16.mxu1 %v16916_v34  ;;  %5173 = vmatprep.subr.bf16.mxu0 %v16919_v36 }
 0x556   : > { %5088 = vmatpush1.bf16.msra.mxu1 %v16914_v37  ;;  %5174 = vmatpush1.bf16.msra.mxu0 %v16917_v41  ;;  %v17760_v37 = vld [vmem:[#allocation2 + $0x38] sm:$0xff] }
 0x557   : > { %5089 = vmatprep.subr.bf16.mxu1 %v16922_v42  ;;  %5175 = vmatprep.subr.bf16.mxu0 %v16925_v44 }
 0x55a   : > { %5090 = vmatpush1.bf16.msra.mxu1 %v16920_v45  ;;  %5176 = vmatpush1.bf16.msra.mxu0 %v16923_v46  ;;  %v5319_v46 = vld [vmem:[%s18059_s17] sm:$0xff] }
 0x55b   : > { %5091 = vmatprep.subr.bf16.mxu1 %v16928_v50  ;;  %5177 = vmatprep.subr.bf16.mxu0 %v16931_v56  ;;  %v5327_v50 = vld [vmem:[%s18059_s17 + $0x40] sm:$0xff]  ;;  %v5320_v56 = vld [vmem:[%s18059_s17 + $0x8] sm:$0xff] }
 0x55e   : > { %5092 = vmatpush1.bf16.msra.mxu1 %v16926_v57  ;;  %5178 = vmatpush1.bf16.msra.mxu0 %v16929_v60  ;;  %v14673_v57 = vcombine.low %v5319_v46, %v5327_v50  ;;  %v14674_v60 = vcombine.high %v5319_v46, %v5327_v50  ;;  %v5416_v46 = vld [vmem:[%s18059_s17 + $0x308] sm:$0xff] }
 0x55f   : > { %5093 = vmatprep.subr.bf16.mxu1 %v16934_v62  ;;  %5179 = vmatprep.subr.bf16.mxu0 %v16937_v40  ;;  %v5328_v62 = vld [vmem:[%s18059_s17 + $0x48] sm:$0xff]  ;;  %v5335_v40 = vld [vmem:[%s18059_s17 + $0x80] sm:$0xff] }
 0x560   : > { %v5424_v50 = vld [vmem:[%s18059_s17 + $0x348] sm:$0xff] }
 0x562   : > { %5094 = vmatpush1.bf16.msra.mxu1 %v16932_v0  ;;  %5180 = vmatpush1.bf16.msra.mxu0 %v16935_v4  ;;  %v5343_v0 = vld [vmem:[%s18059_s17 + $0xc0] sm:$0xff]  ;;  %v14675_v4 = vcombine.low %v5320_v56, %v5328_v62 }
 0x563   : > { %5095 = vmatprep.subr.bf16.mxu1 %v16940_v7  ;;  %5181 = vmatprep.subr.bf16.mxu0 %v16943_v8  ;;  %v14676_v7 = vcombine.high %v5320_v56, %v5328_v62  ;;  %v14690_v8 = vcombine.high %v5335_v40, %v5343_v0  ;;  %v14772_v62 = vcombine.high %v5416_v46, %v5424_v50 }
 0x566   : > { %5096 = vmatpush1.bf16.msra.mxu1 %v16938_v49  ;;  %5182 = vmatpush1.bf16.msra.mxu0 %v16941_v51  ;;  %v5336_v49 = vld [vmem:[%s18059_s17 + $0x88] sm:$0xff] }
 0x567   : > { %v5344_v51 = vld [vmem:[%s18059_s17 + $0xc8] sm:$0xff]  ;;  %8475 = vmatprep.subr.bf16.mxu1 %v14674_v60  ;;  %8561 = vmatprep.subr.bf16.mxu0 %v14676_v7 }
 0x568   : > { %v5440_v7 = vld [vmem:[%s18059_s17 + $0x3c8] sm:$0xff] }
 0x569   : > { %5098 = vmatmul.mubr.bf16.vlgmr.msra.gmra.mrb[20].mxu1 %v18778_v9  ;;  %5184 = vmatmul.mubr.bf16.vlgmr.msra.gmra.mrb[20].mxu0 %v18778_v9 }
 0x56a   : > { %8476 = vmatpush1.bf16.msra.mxu1 %v14673_v57  ;;  %8562 = vmatpush1.bf16.msra.mxu0 %v14675_v4  ;;  %v5432_v4 = vld [vmem:[%s18059_s17 + $0x388] sm:$0xff] }
 0x56b   : > { %8477 = vmatprep.subr.bf16.mxu1 %v14690_v8 }
 0x63c   : > { %v5099_v59 = vpop.f32.mrb[20].mxu1  ;;  %v5185_v32 = vpop.f32.mrb[20].mxu0 }
 0x63d   : > { %v15988_v63 = vadd.f32 %v5099_v59, %v4365_v11  ;;  %v5101_v35 = vpop.f32.mrb[21].mxu1  ;;  %v5187_v47 = vpop.f32.mrb[21].mxu0  ;;  %v15992_v14 = vadd.f32 %v5185_v32, %v4373_v58  ;;  %v5360_v59 = vld [vmem:[%s18059_s17 + $0x148] sm:$0xff]  ;;  %v14689_v32 = vcombine.low %v5335_v40, %v5343_v0  ;;  %v5431_v40 = vld [vmem:[%s18059_s17 + $0x380] sm:$0xff] }
 0x63e   : > { %v15989_v9 = vadd.f32 %v5101_v35, %v4369_v12  ;;  %v5103_v48 = vpop.f32.mrb[22].mxu1  ;;  %v5189_v5 = vpop.f32.mrb[22].mxu0  ;;  %v15993_v19 = vadd.f32 %v5187_v47, %v4377_v13  ;;  %v5367_v47 = vld [vmem:[%s18059_s17 + $0x180] sm:$0xff] }
 0x63f   : > { %v18847_v54 = vadd.f32 %v17753_v53, %v15988_v63  ;;  %v15990_v16 = vadd.f32 %v5103_v48, %v4365_v11  ;;  %v5105_v52 = vpop.f32.mrb[23].mxu1  ;;  %v5191_v17 = vpop.f32.mrb[23].mxu0  ;;  %v15994_v20 = vadd.f32 %v5189_v5, %v4373_v58  ;;  %v18853_v26 = vadd.f32 %v17756_v24, %v15992_v14  ;;  %v5359_v58 = vld [vmem:[%s18059_s17 + $0x140] sm:$0xff]  ;;  %v5376_v48 = vld [vmem:[%s18059_s17 + $0x1c8] sm:$0xff]  ;;  %8478 = vmatpush1.bf16.msra.mxu1 %v14689_v32 }
 0x640   : > { %v18849_v55 = vadd.f32 %v17754_v18, %v15989_v9  ;;  %v15991_v21 = vadd.f32 %v5105_v52, %v4369_v12  ;;  %v15995_v43 = vadd.f32 %v5191_v17, %v4377_v13  ;;  %v18859_v15 = vadd.f32 %v17758_v31, %v15993_v19  ;;  %v5352_v12 = vld [vmem:[%s18059_s17 + $0x108] sm:$0xff]  ;;  %v5375_v14 = vld [vmem:[%s18059_s17 + $0x1c0] sm:$0xff] }
 0x641   : > { %v18851_v23 = vadd.f32 %v17755_v22, %v15990_v16  ;;  %v18861_v3 = vadd.f32 %v17759_v33, %v15994_v20  ;;  %v14692_v11 = vcombine.high %v5336_v49, %v5344_v51  ;;  %v14691_v13 = vcombine.low %v5336_v49, %v5344_v51  ;;  %v5368_v9 = vld [vmem:[%s18059_s17 + $0x188] sm:$0xff]  ;;  %v5383_v17 = vld [vmem:[%s18059_s17 + $0x200] sm:$0xff] }
 0x642   : > { %v5204_v27 = vadd.f32 %v18849_v55, %v18847_v54  ;;  %v18857_v28 = vadd.f32 %v17757_v61, %v15991_v21  ;;  %v18866_v41 = vadd.f32 %v17760_v37, %v15995_v43  ;;  %v14706_v63 = vcombine.high %v5351_v10, %v5359_v58  ;;  %v5391_v18 = vld [vmem:[%s18059_s17 + $0x240] sm:$0xff]  ;;  %v5384_v19 = vld [vmem:[%s18059_s17 + $0x208] sm:$0xff] }
 0x643   : > { %8563 = vmatprep.subr.bf16.mxu0 %v14692_v11  ;;  %v14708_v35 = vcombine.high %v5352_v12, %v5360_v59  ;;  %v14705_v5 = vcombine.low %v5351_v10, %v5359_v58  ;;  %v14707_v53 = vcombine.low %v5352_v12, %v5360_v59  ;;  %v14722_v16 = vcombine.high %v5367_v47, %v5375_v14  ;;  %v5392_v20 = vld [vmem:[%s18059_s17 + $0x248] sm:$0xff]  ;;  %v5399_v61 = vld [vmem:[%s18059_s17 + $0x280] sm:$0xff] }
 0x644   : > { %v5209_v34 = vadd.f32 %v18857_v28, %v18851_v23  ;;  %v5205_v36 = vadd.f32 %v5204_v27, %v18853_v26  ;;  %8564 = vmatpush1.bf16.msra.mxu0 %v14691_v13  ;;  %8479 = vmatprep.subr.bf16.mxu1 %v14706_v63  ;;  %v14724_v52 = vcombine.high %v5368_v9, %v5376_v48  ;;  %v5407_v43 = vld [vmem:[%s18059_s17 + $0x2c0] sm:$0xff]  ;;  %v5400_v31 = vld [vmem:[%s18059_s17 + $0x288] sm:$0xff] }
 0x645   : > { %8565 = vmatprep.subr.bf16.mxu0 %v14708_v35  ;;  %8480 = vmatpush1.bf16.msra.mxu1 %v14705_v5  ;;  %v14721_v21 = vcombine.low %v5367_v47, %v5375_v14  ;;  %v14723_v22 = vcombine.low %v5368_v9, %v5376_v48  ;;  %v14738_v24 = vcombine.high %v5383_v17, %v5391_v18  ;;  %v5408_v33 = vld [vmem:[%s18059_s17 + $0x2c8] sm:$0xff]  ;;  %v5439_v0 = vld [vmem:[%s18059_s17 + $0x3c0] sm:$0xff] }
 0x646   : > { %v5206_v42 = vadd.f32 %v5205_v36, %v18859_v15  ;;  %v5210_v44 = vadd.f32 %v5209_v34, %v18861_v3  ;;  %8481 = vmatprep.subr.bf16.mxu1 %v14722_v16  ;;  %v14740_v27 = vcombine.high %v5384_v19, %v5392_v20  ;;  %v14737_v34 = vcombine.low %v5383_v17, %v5391_v18  ;;  %v5447_v11 = vld [vmem:[%s18059_s17 + $0x400] sm:$0xff]  ;;  %v5448_v12 = vld [vmem:[%s18059_s17 + $0x408] sm:$0xff] }
 0x647   : > { %v14739_v36 = vcombine.low %v5384_v19, %v5392_v20  ;;  %v14754_v37 = vcombine.high %v5399_v61, %v5407_v43  ;;  %v14753_v56 = vcombine.low %v5399_v61, %v5407_v43  ;;  %v14755_v57 = vcombine.low %v5400_v31, %v5408_v33  ;;  %v5455_v58 = vld [vmem:[%s18059_s17 + $0x440] sm:$0xff]  ;;  %v5456_v59 = vld [vmem:[%s18059_s17 + $0x448] sm:$0xff] }
 0x648   : > { %5207 = vadd.xlane.f32.xlu0 %v5206_v42  ;;  %v5211_v45 = vadd.f32 %v5210_v44, %v18866_v41  ;;  %8566 = vmatpush1.bf16.msra.mxu0 %v14707_v53  ;;  %v14756_v42 = vcombine.high %v5400_v31, %v5408_v33  ;;  %v5415_v44 = vld [vmem:[%s18059_s17 + $0x300] sm:$0xff]  ;;  %v14771_v49 = vcombine.low %v5416_v46, %v5424_v50  ;;  %v5464_v9 = vld [vmem:[%s18059_s17 + $0x488] sm:$0xff] }
 0x649   : > { %8567 = vmatprep.subr.bf16.mxu0 %v14724_v52  ;;  %8482 = vmatpush1.bf16.msra.mxu1 %v14721_v21  ;;  %v14786_v51 = vcombine.high %v5431_v40, %v5439_v0  ;;  %v14788_v10 = vcombine.high %v5432_v4, %v5440_v7  ;;  %v14785_v32 = vcombine.low %v5431_v40, %v5439_v0  ;;  %v5463_v47 = vld [vmem:[%s18059_s17 + $0x480] sm:$0xff]  ;;  %v5472_v48 = vld [vmem:[%s18059_s17 + $0x4c8] sm:$0xff] }
 0x64a   : > { %5212 = vadd.xlane.f32.xlu1 %v5211_v45  ;;  %8483 = vmatprep.subr.bf16.mxu1 %v14738_v24  ;;  %v5423_v45 = vld [vmem:[%s18059_s17 + $0x340] sm:$0xff]  ;;  %v14787_v13 = vcombine.low %v5432_v4, %v5440_v7  ;;  %v14802_v63 = vcombine.high %v5447_v11, %v5455_v58  ;;  %v14804_v35 = vcombine.high %v5448_v12, %v5456_v59  ;;  %v5488_v40 = vld [vmem:[%s18059_s17 + $0x548] sm:$0xff] }
 0x64b   : > { %v14770_v60 = vcombine.high %v5415_v44, %v5423_v45  ;;  %v14769_v8 = vcombine.low %v5415_v44, %v5423_v45  ;;  %v5471_v14 = vld [vmem:[%s18059_s17 + $0x4c0] sm:$0xff]  ;;  %v14801_v5 = vcombine.low %v5447_v11, %v5455_v58  ;;  %v14803_v53 = vcombine.low %v5448_v12, %v5456_v59  ;;  %v5504_v11 = vld [vmem:[%s18059_s17 + $0x5c8] sm:$0xff] }
 0x64c   : > { %8568 = vmatpush1.bf16.msra.mxu0 %v14723_v22  ;;  %v14818_v16 = vcombine.high %v5463_v47, %v5471_v14  ;;  %v14820_v52 = vcombine.high %v5464_v9, %v5472_v48  ;;  %v14817_v17 = vcombine.low %v5463_v47, %v5471_v14  ;;  %v14819_v18 = vcombine.low %v5464_v9, %v5472_v48  ;;  %v5520_v14 = vld [vmem:[%s18059_s17 + $0x648] sm:$0xff]  ;;  %v5527_v9 = vld [vmem:[%s18059_s17 + $0x680] sm:$0xff] }
 0x64d   : > { %8569 = vmatprep.subr.bf16.mxu0 %v14740_v27  ;;  %8484 = vmatpush1.bf16.msra.mxu1 %v14737_v34  ;;  %v5535_v48 = vld [vmem:[%s18059_s17 + $0x6c0] sm:$0xff] }
 0x64e   : > { %8485 = vmatprep.subr.bf16.mxu1 %v14754_v37 }
 0x650   : > { %8570 = vmatpush1.bf16.msra.mxu0 %v14739_v36 }
 0x651   : > { %8571 = vmatprep.subr.bf16.mxu0 %v14756_v42  ;;  %8486 = vmatpush1.bf16.msra.mxu1 %v14753_v56  ;;  %v5479_v56 = vld [vmem:[%s18059_s17 + $0x500] sm:$0xff] }
 0x652   : > { %8487 = vmatprep.subr.bf16.mxu1 %v14770_v60  ;;  %v5480_v60 = vld [vmem:[%s18059_s17 + $0x508] sm:$0xff] }
 0x653   : > { %v14835_v4 = vcombine.low %v5480_v60, %v5488_v40  ;;  %v14836_v7 = vcombine.high %v5480_v60, %v5488_v40  ;;  %v18982_v60 = vld [vmem:[%s18059_s17 + $0x808] sm:$0xff] }
 0x654   : > { %8572 = vmatpush1.bf16.msra.mxu0 %v14755_v57  ;;  %v5487_v57 = vld [vmem:[%s18059_s17 + $0x540] sm:$0xff]  ;;  %v18987_v40 = vld [vmem:[%s18059_s17 + $0x848] sm:$0xff] }
 0x655   : > { %8573 = vmatprep.subr.bf16.mxu0 %v14772_v62  ;;  %8488 = vmatpush1.bf16.msra.mxu1 %v14769_v8  ;;  %v14834_v62 = vcombine.high %v5479_v56, %v5487_v57  ;;  %v14833_v0 = vcombine.low %v5479_v56, %v5487_v57  ;;  %v5495_v8 = vld [vmem:[%s18059_s17 + $0x580] sm:$0xff] }
 0x656   : > { %8489 = vmatprep.subr.bf16.mxu1 %v14786_v51  ;;  %v5496_v51 = vld [vmem:[%s18059_s17 + $0x588] sm:$0xff]  ;;  %v18976_v56 = vld [vmem:[%s18059_s17 + $0x800] sm:$0xff] }
 0x657   : > { %v14851_v12 = vcombine.low %v5496_v51, %v5504_v11  ;;  %v14852_v59 = vcombine.high %v5496_v51, %v5504_v11  ;;  %v18979_v57 = vld [vmem:[%s18059_s17 + $0x840] sm:$0xff] }
 0x658   : > { %8574 = vmatpush1.bf16.msra.mxu0 %v14771_v49  ;;  %v5503_v49 = vld [vmem:[%s18059_s17 + $0x5c0] sm:$0xff] }
 0x659   : > { %8575 = vmatprep.subr.bf16.mxu0 %v14788_v10  ;;  %8490 = vmatpush1.bf16.msra.mxu1 %v14785_v32  ;;  %v14850_v10 = vcombine.high %v5495_v8, %v5503_v49  ;;  %v14849_v58 = vcombine.low %v5495_v8, %v5503_v49  ;;  %v5511_v32 = vld [vmem:[%s18059_s17 + $0x600] sm:$0xff] }
 0x65a   : > { %8491 = vmatprep.subr.bf16.mxu1 %v14802_v63  ;;  %v5512_v63 = vld [vmem:[%s18059_s17 + $0x608] sm:$0xff] }
 0x65c   : > { %8576 = vmatpush1.bf16.msra.mxu0 %v14787_v13  ;;  %v5519_v13 = vld [vmem:[%s18059_s17 + $0x640] sm:$0xff] }
 0x65d   : > { %8577 = vmatprep.subr.bf16.mxu0 %v14804_v35  ;;  %8492 = vmatpush1.bf16.msra.mxu1 %v14801_v5  ;;  %v14865_v35 = vcombine.low %v5511_v32, %v5519_v13  ;;  %v14866_v47 = vcombine.high %v5511_v32, %v5519_v13  ;;  %v14867_v5 = vcombine.low %v5512_v63, %v5520_v14 }
 0x65e   : > { %8493 = vmatprep.subr.bf16.mxu1 %v14818_v16  ;;  %v14882_v16 = vcombine.high %v5527_v9, %v5535_v48 }
 0x660   : > { %8578 = vmatpush1.bf16.msra.mxu0 %v14803_v53  ;;  %v14868_v53 = vcombine.high %v5512_v63, %v5520_v14 }
 0x661   : > { %8579 = vmatprep.subr.bf16.mxu0 %v14820_v52  ;;  %8494 = vmatpush1.bf16.msra.mxu1 %v14817_v17  ;;  %v5528_v52 = vld [vmem:[%s18059_s17 + $0x688] sm:$0xff] }
 0x662   : > { %8495 = vmatprep.subr.bf16.mxu1 %v14834_v62  ;;  %v5536_v17 = vld [vmem:[%s18059_s17 + $0x6c8] sm:$0xff]  ;;  %v14930_v62 = vcombine.high %v18976_v56, %v18979_v57 }
 0x664   : > { %8580 = vmatpush1.bf16.msra.mxu0 %v14819_v18  ;;  %v14884_v18 = vcombine.high %v5528_v52, %v5536_v17 }
 0x665   : > { %8581 = vmatprep.subr.bf16.mxu0 %v14836_v7  ;;  %8496 = vmatpush1.bf16.msra.mxu1 %v14833_v0  ;;  %v14929_v0 = vcombine.low %v18976_v56, %v18979_v57  ;;  %v14932_v7 = vcombine.high %v18982_v60, %v18987_v40  ;;  %v5631_v56 = vld [vmem:[%s18059_s17 + $0x9c0] sm:$0xff]  ;;  %v5624_v57 = vld [vmem:[%s18059_s17 + $0x988] sm:$0xff] }
 0x666   : > { %8497 = vmatprep.subr.bf16.mxu1 %v14850_v10 }
 0x668   : > { %8582 = vmatpush1.bf16.msra.mxu0 %v14835_v4  ;;  %v14931_v4 = vcombine.low %v18982_v60, %v18987_v40 }
 0x669   : > { %8583 = vmatprep.subr.bf16.mxu0 %v14852_v59  ;;  %8498 = vmatpush1.bf16.msra.mxu1 %v14849_v58  ;;  %v5203_v59 = vld [vmem:[%s20618_s25] sm:$0xf]  ;;  %s20621_s25 = sld [smem:[#allocation15_spill]] (!%p15697_p5) }
 0x66a   : > { %8499 = vmatprep.subr.bf16.mxu1 %v14866_v47 }
 0x66c   : > { %8584 = vmatpush1.bf16.msra.mxu0 %v14851_v12  ;;  %v5202_v12 = vld [vmem:[%s20617_s22] sm:$0xf] }
 0x66d   : > { %8585 = vmatprep.subr.bf16.mxu0 %v14868_v53  ;;  %8500 = vmatpush1.bf16.msra.mxu1 %v14865_v35  ;;  %v5265_v32 = vrot.slane %v5202_v12, %v18594_v1  ;;  %v5261_v13 = vrot.slane %v5202_v12, %v18506_v39  ;;  %v5269_v35 = vrot.slane %v5202_v12, %v18597_v2 }
 0x66e   : > { %8501 = vmatprep.subr.bf16.mxu1 %v14882_v16  ;;  %v5294_v53 = vrot.slane %v5203_v59, %v18594_v1  ;;  %v5290_v16 = vrot.slane %v5203_v59, %v18506_v39 }
 0x670   : > { %8586 = vmatpush1.bf16.msra.mxu0 %v14867_v5 }
 0x671   : > { %8587 = vmatprep.subr.bf16.mxu0 %v14884_v18 }
 0x6d5   : > { %v5208_v19 = vpop.xlane.xlu0 %5207 }
 0x6d6   : > { %v5215_v20 = vmul.f32 0.001953125, %v5208_v19  ;;  %v5543_v19 = vld [vmem:[%s18059_s17 + $0x700] sm:$0xff] }
 0x6d7   : > { %v5213_v21 = vpop.xlane.xlu1 %5212 }
 0x6d8   : > { %v18912_v22 = vsub.f32 %v18847_v54, %v5215_v20  ;;  %v18915_v24 = vsub.f32 %v18849_v55, %v5215_v20  ;;  %v5216_v27 = vmul.f32 0.001953125, %v5213_v21  ;;  %v18918_v61 = vsub.f32 %v18853_v26, %v5215_v20  ;;  %v5544_v21 = vld [vmem:[%s18059_s17 + $0x708] sm:$0xff] }
 0x6d9   : > { %v18921_v43 = vsub.f32 %v18859_v15, %v5215_v20  ;;  %v5551_v20 = vld [vmem:[%s18059_s17 + $0x740] sm:$0xff] }
 0x6da   : > { %v18924_v31 = vsub.f32 %v18851_v23, %v5216_v27  ;;  %v18927_v33 = vsub.f32 %v18857_v28, %v5216_v27  ;;  %v5225_v54 = vmul.f32 %v18912_v22, %v18912_v22  ;;  %v5226_v55 = vmul.f32 %v18915_v24, %v18915_v24 }
 0x6db   : > { %v5227_v34 = vmul.f32 %v18918_v61, %v18918_v61  ;;  %v18936_v26 = vsub.f32 %v18861_v3, %v5216_v27  ;;  %v18939_v23 = vsub.f32 %v18866_v41, %v5216_v27  ;;  %v5228_v37 = vmul.f32 %v18921_v43, %v18921_v43  ;;  %v5552_v27 = vld [vmem:[%s18059_s17 + $0x748] sm:$0xff] }
 0x6dc   : > { %v5233_v15 = vadd.f32 %v5226_v55, %v5225_v54  ;;  %v5229_v28 = vmul.f32 %v18924_v31, %v18924_v31  ;;  %v5230_v36 = vmul.f32 %v18927_v33, %v18927_v33  ;;  %v14881_v54 = vcombine.low %v5527_v9, %v5535_v48 }
 0x6dd   : > { %v5231_v3 = vmul.f32 %v18936_v26, %v18936_v26  ;;  %v5232_v41 = vmul.f32 %v18939_v23, %v18939_v23  ;;  %v14883_v55 = vcombine.low %v5528_v52, %v5536_v17  ;;  %v5273_v9 = vrot.slane %v5202_v12, %v18602_v6 }
 0x6de   : > { %v5234_v42 = vadd.f32 %v5233_v15, %v5227_v34  ;;  %v5238_v44 = vadd.f32 %v5230_v36, %v5229_v28  ;;  %v14898_v34 = vcombine.high %v5543_v19, %v5551_v20  ;;  %v14900_v15 = vcombine.high %v5544_v21, %v5552_v27  ;;  %v5559_v28 = vld [vmem:[%s18059_s17 + $0x780] sm:$0xff]  ;;  %8502 = vmatpush1.bf16.msra.mxu1 %v14881_v54 }
 0x6df   : > { %v5567_v36 = vld [vmem:[%s18059_s17 + $0x7c0] sm:$0xff]  ;;  %8588 = vmatpush1.bf16.msra.mxu0 %v14883_v55  ;;  %v5298_v17 = vrot.slane %v5203_v59, %v18597_v2 }
 0x6e0   : > { %v5235_v45 = vadd.f32 %v5234_v42, %v5228_v37  ;;  %v5239_v46 = vadd.f32 %v5238_v44, %v5231_v3  ;;  %v5560_v37 = vld [vmem:[%s18059_s17 + $0x788] sm:$0xff]  ;;  %v14897_v3 = vcombine.low %v5543_v19, %v5551_v20  ;;  %8503 = vmatprep.subr.bf16.mxu1 %v14898_v34  ;;  %v14899_v44 = vcombine.low %v5544_v21, %v5552_v27 }
 0x6e1   : > { %v5568_v42 = vld [vmem:[%s18059_s17 + $0x7c8] sm:$0xff]  ;;  %8589 = vmatprep.subr.bf16.mxu0 %v14900_v15 }
 0x6e2   : > { %5236 = vadd.xlane.f32.xlu0 %v5235_v45  ;;  %v5240_v50 = vadd.f32 %v5239_v46, %v5232_v41  ;;  %v14914_v45 = vcombine.high %v5559_v28, %v5567_v36  ;;  %v14916_v41 = vcombine.high %v5560_v37, %v5568_v42  ;;  %8504 = vmatpush1.bf16.msra.mxu1 %v14897_v3  ;;  %v5592_v3 = vld [vmem:[%s18059_s17 + $0x888] sm:$0xff] }
 0x6e3   : > { %v14913_v46 = vcombine.low %v5559_v28, %v5567_v36  ;;  %8590 = vmatpush1.bf16.msra.mxu0 %v14899_v44  ;;  %v5591_v36 = vld [vmem:[%s18059_s17 + $0x880] sm:$0xff]  ;;  %v5600_v44 = vld [vmem:[%s18059_s17 + $0x8c8] sm:$0xff] }
 0x6e4   : > { %5241 = vadd.xlane.f32.xlu1 %v5240_v50  ;;  %8505 = vmatprep.subr.bf16.mxu1 %v14914_v45  ;;  %v14915_v50 = vcombine.low %v5560_v37, %v5568_v42  ;;  %v5599_v42 = vld [vmem:[%s18059_s17 + $0x8c0] sm:$0xff]  ;;  %v14947_v12 = vcombine.low %v5592_v3, %v5600_v44 }
 0x6e5   : > { %8591 = vmatprep.subr.bf16.mxu0 %v14916_v41 }
 0x6e6   : > { %8506 = vmatpush1.bf16.msra.mxu1 %v14913_v46 }
 0x6e7   : > { %8592 = vmatpush1.bf16.msra.mxu0 %v14915_v50  ;;  %8518 = vmatprep.subr.bf16.mxu1 %v14930_v62  ;;  %v5607_v62 = vld [vmem:[%s18059_s17 + $0x900] sm:$0xff] }
 0x6e8   : > { %8604 = vmatprep.subr.bf16.mxu0 %v14932_v7  ;;  %v14946_v7 = vcombine.high %v5591_v36, %v5599_v42 }
 0x76f   : > { %v5237_v8 = vpop.xlane.xlu0 %5236 }
 0x770   : > { %v5243_v49 = vmul.f32 0.001953125, %v5237_v8  ;;  %v14948_v8 = vcombine.high %v5592_v3, %v5600_v44  ;;  %v5695_v3 = vld [vmem:[%s18059_s17 + $0xbc0] sm:$0xff]  ;;  %v5688_v44 = vld [vmem:[%s18059_s17 + $0xb88] sm:$0xff] }
 0x771   : > { %v5242_v51 = vpop.xlane.xlu1 %5241 }
 0x772   : > { %v5245_v10 = vadd.f32 1e-05, %v5243_v49  ;;  %v5244_v11 = vmul.f32 0.001953125, %v5242_v51  ;;  %v5615_v49 = vld [vmem:[%s18059_s17 + $0x940] sm:$0xff]  ;;  %v5608_v51 = vld [vmem:[%s18059_s17 + $0x908] sm:$0xff] }
 0x773   : > { %v14961_v60 = vcombine.low %v5607_v62, %v5615_v49 }
 0x774   : > { %17744 = vrsqrt.f32 %v5245_v10  ;;  %v5246_v58 = vadd.f32 1e-05, %v5244_v11  ;;  %v5616_v10 = vld [vmem:[%s18059_s17 + $0x948] sm:$0xff] }
 0x775   : > { %v14963_v40 = vcombine.low %v5608_v51, %v5616_v10 }
 0x776   : > { %17746 = vrsqrt.f32 %v5246_v58  ;;  %v14945_v58 = vcombine.low %v5591_v36, %v5599_v42  ;;  %v5687_v42 = vld [vmem:[%s18059_s17 + $0xb80] sm:$0xff] }
 0x77e   : > { %v17745_v63 = vpop.eup %17744 }
 0x77f   : > { %v5250_v47 = vmul.f32 %v17745_v63, %v18915_v24  ;;  %v5249_v14 = vmul.f32 %v17745_v63, %v18912_v22  ;;  %v5251_v48 = vmul.f32 %v17745_v63, %v18918_v61  ;;  %v5252_v52 = vmul.f32 %v17745_v63, %v18921_v43 }
 0x780   : > { %v17747_v5 = vpop.eup %17746  ;;  %v5302_v43 = vrot.slane %v5203_v59, %v18602_v6  ;;  %v14962_v59 = vcombine.high %v5607_v62, %v5615_v49  ;;  %v5696_v62 = vld [vmem:[%s18059_s17 + $0xbc8] sm:$0xff]  ;;  %v15042_v49 = vcombine.high %v5687_v42, %v5695_v3 }
 0x781   : > { %v5254_v18 = vmul.f32 %v17747_v5, %v18927_v33  ;;  %v5279_v19 = vmul.f32 %v5265_v32, %v5250_v47  ;;  %v5253_v24 = vmul.f32 %v17747_v5, %v18924_v31  ;;  %v5278_v22 = vmul.f32 %v5261_v13, %v5249_v14  ;;  %v5647_v47 = vld [vmem:[%s18059_s17 + $0xa40] sm:$0xff]  ;;  %v5640_v14 = vld [vmem:[%s18059_s17 + $0xa08] sm:$0xff] }
 0x782   : > { %v5256_v20 = vmul.f32 %v17747_v5, %v18939_v23  ;;  %v5255_v61 = vmul.f32 %v17747_v5, %v18936_v26  ;;  %v5280_v21 = vmul.f32 %v5269_v35, %v5251_v48  ;;  %v5281_v55 = vmul.f32 %v5273_v9, %v5252_v52  ;;  %v5655_v52 = vld [vmem:[%s18059_s17 + $0xa80] sm:$0xff] }
 0x783   : > { %v5283_v27 = vmul.f32 %v5265_v32, %v5254_v18  ;;  %v5282_v54 = vmul.f32 %v5261_v13, %v5253_v24  ;;  %v19023_v31 = vadd.f32 %v5294_v53, %v5279_v19  ;;  %v19027_v23 = vadd.f32 %v5290_v16, %v5278_v22  ;;  %v5623_v13 = vld [vmem:[%s18059_s17 + $0x980] sm:$0xff]  ;;  %v5656_v18 = vld [vmem:[%s18059_s17 + $0xa88] sm:$0xff] }
 0x784   : > { %v5285_v34 = vmul.f32 %v5273_v9, %v5256_v20  ;;  %v5284_v33 = vmul.f32 %v5269_v35, %v5255_v61  ;;  %v19021_v15 = vadd.f32 %v5298_v17, %v5280_v21  ;;  %v19047_v50 = vadd.f32 %v5302_v43, %v5281_v55  ;;  %v5639_v35 = vld [vmem:[%s18059_s17 + $0xa00] sm:$0xff]  ;;  %v5648_v9 = vld [vmem:[%s18059_s17 + $0xa48] sm:$0xff] }
 0x785   : > { %v19025_v28 = vadd.f32 %v5294_v53, %v5283_v27  ;;  %v19029_v26 = vadd.f32 %v5290_v16, %v5282_v54  ;;  %v14964_v32 = vcombine.high %v5608_v51, %v5616_v10  ;;  %v14977_v48 = vcombine.low %v5623_v13, %v5631_v56  ;;  %v5664_v19 = vld [vmem:[%s18059_s17 + $0xac8] sm:$0xff]  ;;  %v5671_v21 = vld [vmem:[%s18059_s17 + $0xb00] sm:$0xff] }
 0x786   : > { %v19032_v37 = vadd.f32 %v5302_v43, %v5285_v34  ;;  %v19037_v45 = vadd.f32 %v5298_v17, %v5284_v33  ;;  %v14994_v53 = vcombine.high %v5639_v35, %v5647_v47  ;;  %v14996_v16 = vcombine.high %v5640_v14, %v5648_v9  ;;  %v5663_v17 = vld [vmem:[%s18059_s17 + $0xac0] sm:$0xff]  ;;  %v5672_v54 = vld [vmem:[%s18059_s17 + $0xb08] sm:$0xff] }
 0x787   : > { %v19041_v41 = vpack.c.bf16 %v19025_v28, %v19023_v31  ;;  %v19045_v46 = vpack.c.bf16 %v19029_v26, %v19027_v23  ;;  %v14993_v24 = vcombine.low %v5639_v35, %v5647_v47  ;;  %v14995_v22 = vcombine.low %v5640_v14, %v5648_v9  ;;  %v5679_v27 = vld [vmem:[%s18059_s17 + $0xb40] sm:$0xff]  ;;  %v5680_v43 = vld [vmem:[%s18059_s17 + $0xb48] sm:$0xff] }
 0x788   : > { %v19059_v11 = vpack.c.bf16 %v19032_v37, %v19047_v50  ;;  %v15010_v20 = vcombine.high %v5655_v52, %v5663_v17  ;;  %v15012_v61 = vcombine.high %v5656_v18, %v5664_v19  ;;  %v15009_v55 = vcombine.low %v5655_v52, %v5663_v17  ;;  %v5703_v10 = vld [vmem:[%s18059_s17 + $0xc00] sm:$0xff] }
 0x789   : > { %8507 = vmatprep.mubr.bf16.mxu1 %v19041_v41  ;;  %8593 = vmatprep.mubr.bf16.mxu0 %v19041_v41  ;;  %v15011_v34 = vcombine.low %v5656_v18, %v5664_v19  ;;  %v15026_v33 = vcombine.high %v5671_v21, %v5679_v27  ;;  %v15028_v36 = vcombine.high %v5672_v54, %v5680_v43  ;;  %v5735_v9 = vld [vmem:[%s18059_s17 + $0xd00] sm:$0xff] }
 0x78a   : > { %8508 = vmatmul.mubr.bf16.vlgmr.msra.gmra.mrb[24].mxu1 %v19045_v46  ;;  %8594 = vmatmul.mubr.bf16.vlgmr.msra.gmra.mrb[24].mxu0 %v19045_v46  ;;  %v15044_v51 = vcombine.high %v5688_v44, %v5696_v62  ;;  %v5751_v19 = vld [vmem:[%s18059_s17 + $0xd80] sm:$0xff] }
 0x78b   : > { %8519 = vmatpush1.bf16.msra.mxu1 %v14929_v0  ;;  %8605 = vmatpush1.bf16.msra.mxu0 %v14931_v4  ;;  %v5632_v0 = vld [vmem:[%s18059_s17 + $0x9c8] sm:$0xff]  ;;  %v14978_v4 = vcombine.high %v5623_v13, %v5631_v56  ;;  %v15043_v13 = vcombine.low %v5688_v44, %v5696_v62  ;;  %v5783_v62 = vld [vmem:[%s18059_s17 + $0xe80] sm:$0xff] }
 0x78c   : > { %8550 = vmatprep.mubr.bf16.mxu1 %v19059_v11  ;;  %8636 = vmatprep.mubr.bf16.mxu0 %v19059_v11  ;;  %v14980_v63 = vcombine.high %v5624_v57, %v5632_v0  ;;  %v14979_v5 = vcombine.low %v5624_v57, %v5632_v0  ;;  %v5719_v0 = vld [vmem:[%s18059_s17 + $0xc80] sm:$0xff] }
 0x78d   : > { %8520 = vmatprep.subr.bf16.mxu1 %v14946_v7  ;;  %8606 = vmatprep.subr.bf16.mxu0 %v14948_v8  ;;  %v15025_v7 = vcombine.low %v5671_v21, %v5679_v27  ;;  %v15027_v8 = vcombine.low %v5672_v54, %v5680_v43  ;;  %v5767_v43 = vld [vmem:[%s18059_s17 + $0xe00] sm:$0xff] }
 0x78f   : > { %8521 = vmatpush1.bf16.msra.mxu1 %v14945_v58  ;;  %8607 = vmatpush1.bf16.msra.mxu0 %v14947_v12  ;;  %v5711_v58 = vld [vmem:[%s18059_s17 + $0xc40] sm:$0xff]  ;;  %v5704_v12 = vld [vmem:[%s18059_s17 + $0xc08] sm:$0xff] }
 0x790   : > { %8522 = vmatprep.subr.bf16.mxu1 %v14962_v59  ;;  %8608 = vmatprep.subr.bf16.mxu0 %v14964_v32  ;;  %v5712_v59 = vld [vmem:[%s18059_s17 + $0xc48] sm:$0xff]  ;;  %v15041_v32 = vcombine.low %v5687_v42, %v5695_v3  ;;  %v15058_v56 = vcombine.high %v5703_v10, %v5711_v58 }
 0x791   : > { %v15060_v57 = vcombine.high %v5704_v12, %v5712_v59  ;;  %v15059_v35 = vcombine.low %v5704_v12, %v5712_v59  ;;  %v5799_v59 = vld [vmem:[%s18059_s17 + $0xf00] sm:$0xff] }
 0x793   : > { %8523 = vmatpush1.bf16.msra.mxu1 %v14961_v60  ;;  %8609 = vmatpush1.bf16.msra.mxu0 %v14963_v40  ;;  %v5727_v60 = vld [vmem:[%s18059_s17 + $0xcc0] sm:$0xff]  ;;  %v5720_v40 = vld [vmem:[%s18059_s17 + $0xc88] sm:$0xff] }
 0x794   : > { %8524 = vmatprep.subr.bf16.mxu1 %v14978_v4  ;;  %8610 = vmatprep.subr.bf16.mxu0 %v14980_v63  ;;  %v5728_v4 = vld [vmem:[%s18059_s17 + $0xcc8] sm:$0xff]  ;;  %v15057_v63 = vcombine.low %v5703_v10, %v5711_v58  ;;  %v15074_v47 = vcombine.high %v5719_v0, %v5727_v60 }
 0x795   : > { %v15076_v14 = vcombine.high %v5720_v40, %v5728_v4  ;;  %v15075_v52 = vcombine.low %v5720_v40, %v5728_v4  ;;  %v5815_v4 = vld [vmem:[%s18059_s17 + $0xf80] sm:$0xff] }
 0x797   : > { %8525 = vmatpush1.bf16.msra.mxu1 %v14977_v48  ;;  %8611 = vmatpush1.bf16.msra.mxu0 %v14979_v5  ;;  %v5743_v48 = vld [vmem:[%s18059_s17 + $0xd40] sm:$0xff]  ;;  %v5736_v5 = vld [vmem:[%s18059_s17 + $0xd08] sm:$0xff] }
 0x798   : > { %8526 = vmatprep.subr.bf16.mxu1 %v14994_v53  ;;  %8612 = vmatprep.subr.bf16.mxu0 %v14996_v16  ;;  %v5744_v53 = vld [vmem:[%s18059_s17 + $0xd48] sm:$0xff]  ;;  %v15073_v16 = vcombine.low %v5719_v0, %v5727_v60  ;;  %v15090_v17 = vcombine.high %v5735_v9, %v5743_v48 }
 0x799   : > { %v15092_v18 = vcombine.high %v5736_v5, %v5744_v53  ;;  %v15091_v21 = vcombine.low %v5736_v5, %v5744_v53  ;;  %v5321_v53 = vld [vmem:[%s18059_s17 + $0x10] sm:$0xff] }
 0x79b   : > { %8527 = vmatpush1.bf16.msra.mxu1 %v14993_v24  ;;  %8613 = vmatpush1.bf16.msra.mxu0 %v14995_v22  ;;  %v5759_v24 = vld [vmem:[%s18059_s17 + $0xdc0] sm:$0xff]  ;;  %v5752_v22 = vld [vmem:[%s18059_s17 + $0xd88] sm:$0xff] }
 0x79c   : > { %8528 = vmatprep.subr.bf16.mxu1 %v15010_v20  ;;  %8614 = vmatprep.subr.bf16.mxu0 %v15012_v61  ;;  %v5760_v20 = vld [vmem:[%s18059_s17 + $0xdc8] sm:$0xff]  ;;  %v15089_v61 = vcombine.low %v5735_v9, %v5743_v48  ;;  %v15106_v27 = vcombine.high %v5751_v19, %v5759_v24 }
 0x79d   : > { %v15108_v54 = vcombine.high %v5752_v22, %v5760_v20  ;;  %v15107_v42 = vcombine.low %v5752_v22, %v5760_v20  ;;  %v5337_v20 = vld [vmem:[%s18059_s17 + $0x90] sm:$0xff] }
 0x79f   : > { %8529 = vmatpush1.bf16.msra.mxu1 %v15009_v55  ;;  %8615 = vmatpush1.bf16.msra.mxu0 %v15011_v34  ;;  %v5775_v55 = vld [vmem:[%s18059_s17 + $0xe40] sm:$0xff]  ;;  %v5768_v34 = vld [vmem:[%s18059_s17 + $0xe08] sm:$0xff] }
 0x7a0   : > { %8530 = vmatprep.subr.bf16.mxu1 %v15026_v33  ;;  %8616 = vmatprep.subr.bf16.mxu0 %v15028_v36  ;;  %v5776_v33 = vld [vmem:[%s18059_s17 + $0xe48] sm:$0xff]  ;;  %v15105_v36 = vcombine.low %v5751_v19, %v5759_v24  ;;  %v15122_v3 = vcombine.high %v5767_v43, %v5775_v55 }
 0x7a1   : > { %v15124_v44 = vcombine.high %v5768_v34, %v5776_v33  ;;  %v15123_v10 = vcombine.low %v5768_v34, %v5776_v33 }
 0x7a3   : > { %8531 = vmatpush1.bf16.msra.mxu1 %v15025_v7  ;;  %8617 = vmatpush1.bf16.msra.mxu0 %v15027_v8  ;;  %v5791_v7 = vld [vmem:[%s18059_s17 + $0xec0] sm:$0xff]  ;;  %v5784_v8 = vld [vmem:[%s18059_s17 + $0xe88] sm:$0xff] }
 0x7a4   : > { %8532 = vmatprep.subr.bf16.mxu1 %v15042_v49  ;;  %8618 = vmatprep.subr.bf16.mxu0 %v15044_v51  ;;  %v5792_v49 = vld [vmem:[%s18059_s17 + $0xec8] sm:$0xff]  ;;  %v15121_v51 = vcombine.low %v5767_v43, %v5775_v55  ;;  %v15138_v58 = vcombine.high %v5783_v62, %v5791_v7  ;;  %v19131_v43 = vpack.c.bf16 %v19037_v45, %v19021_v15 }
 0x7a5   : > { %v15140_v12 = vcombine.high %v5784_v8, %v5792_v49  ;;  %v15139_v0 = vcombine.low %v5784_v8, %v5792_v49 }
 0x7a7   : > { %8533 = vmatpush1.bf16.msra.mxu1 %v15041_v32  ;;  %8619 = vmatpush1.bf16.msra.mxu0 %v15043_v13  ;;  %v5807_v32 = vld [vmem:[%s18059_s17 + $0xf40] sm:$0xff]  ;;  %v5800_v13 = vld [vmem:[%s18059_s17 + $0xf08] sm:$0xff] }
 0x7a8   : > { %8534 = vmatprep.subr.bf16.mxu1 %v15058_v56  ;;  %8620 = vmatprep.subr.bf16.mxu0 %v15060_v57  ;;  %v5808_v56 = vld [vmem:[%s18059_s17 + $0xf48] sm:$0xff]  ;;  %v15137_v57 = vcombine.low %v5783_v62, %v5791_v7  ;;  %v15154_v60 = vcombine.high %v5799_v59, %v5807_v32 }
 0x7a9   : > { %v15156_v40 = vcombine.high %v5800_v13, %v5808_v56  ;;  %v15155_v9 = vcombine.low %v5800_v13, %v5808_v56 }
 0x7ab   : > { %8535 = vmatpush1.bf16.msra.mxu1 %v15057_v63  ;;  %8621 = vmatpush1.bf16.msra.mxu0 %v15059_v35  ;;  %v5823_v63 = vld [vmem:[%s18059_s17 + $0xfc0] sm:$0xff]  ;;  %v5816_v35 = vld [vmem:[%s18059_s17 + $0xf88] sm:$0xff] }
 0x7ac   : > { %8536 = vmatprep.subr.bf16.mxu1 %v15074_v47  ;;  %8622 = vmatprep.subr.bf16.mxu0 %v15076_v14  ;;  %v5824_v47 = vld [vmem:[%s18059_s17 + $0xfc8] sm:$0xff]  ;;  %v15153_v14 = vcombine.low %v5799_v59, %v5807_v32  ;;  %v15170_v48 = vcombine.high %v5815_v4, %v5823_v63 }
 0x7ad   : > { %v15172_v5 = vcombine.high %v5816_v35, %v5824_v47  ;;  %v15171_v19 = vcombine.low %v5816_v35, %v5824_v47 }
 0x7af   : > { %8537 = vmatpush1.bf16.msra.mxu1 %v15073_v16  ;;  %8623 = vmatpush1.bf16.msra.mxu0 %v15075_v52  ;;  %v5329_v16 = vld [vmem:[%s18059_s17 + $0x50] sm:$0xff]  ;;  %v5322_v52 = vld [vmem:[%s18059_s17 + $0x18] sm:$0xff] }
 0x7b0   : > { %8538 = vmatprep.subr.bf16.mxu1 %v15090_v17  ;;  %8624 = vmatprep.subr.bf16.mxu0 %v15092_v18  ;;  %v5330_v17 = vld [vmem:[%s18059_s17 + $0x58] sm:$0xff]  ;;  %v15169_v18 = vcombine.low %v5815_v4, %v5823_v63  ;;  %v14678_v24 = vcombine.high %v5321_v53, %v5329_v16 }
 0x7b1   : > { %v14680_v22 = vcombine.high %v5322_v52, %v5330_v17  ;;  %v14679_v55 = vcombine.low %v5322_v52, %v5330_v17 }
 0x7b3   : > { %8539 = vmatpush1.bf16.msra.mxu1 %v15089_v61  ;;  %8625 = vmatpush1.bf16.msra.mxu0 %v15091_v21  ;;  %v5345_v61 = vld [vmem:[%s18059_s17 + $0xd0] sm:$0xff]  ;;  %v5338_v21 = vld [vmem:[%s18059_s17 + $0x98] sm:$0xff] }
 0x7b4   : > { %8540 = vmatprep.subr.bf16.mxu1 %v15106_v27  ;;  %8626 = vmatprep.subr.bf16.mxu0 %v15108_v54  ;;  %v5346_v27 = vld [vmem:[%s18059_s17 + $0xd8] sm:$0xff]  ;;  %v14677_v54 = vcombine.low %v5321_v53, %v5329_v16  ;;  %v14694_v34 = vcombine.high %v5337_v20, %v5345_v61  ;;  %v14693_v62 = vcombine.low %v5337_v20, %v5345_v61 }
 0x7b5   : > { %v14696_v33 = vcombine.high %v5338_v21, %v5346_v27  ;;  %v14695_v7 = vcombine.low %v5338_v21, %v5346_v27 }
 0x7b7   : > { %8541 = vmatpush1.bf16.msra.mxu1 %v15105_v36  ;;  %8627 = vmatpush1.bf16.msra.mxu0 %v15107_v42  ;;  %v5353_v36 = vld [vmem:[%s18059_s17 + $0x110] sm:$0xff] }
 0x7b8   : > { %8542 = vmatprep.subr.bf16.mxu1 %v15122_v3  ;;  %8628 = vmatprep.subr.bf16.mxu0 %v15124_v44  ;;  %v5361_v42 = vld [vmem:[%s18059_s17 + $0x150] sm:$0xff]  ;;  %v5354_v3 = vld [vmem:[%s18059_s17 + $0x118] sm:$0xff] }
 0x7b9   : > { %v5362_v44 = vld [vmem:[%s18059_s17 + $0x158] sm:$0xff]  ;;  %v14710_v8 = vcombine.high %v5353_v36, %v5361_v42  ;;  %v14709_v59 = vcombine.low %v5353_v36, %v5361_v42 }
 0x7ba   : > { %v14712_v49 = vcombine.high %v5354_v3, %v5362_v44  ;;  %v14711_v32 = vcombine.low %v5354_v3, %v5362_v44 }
 0x7bb   : > { %8543 = vmatpush1.bf16.msra.mxu1 %v15121_v51  ;;  %8629 = vmatpush1.bf16.msra.mxu0 %v15123_v10  ;;  %v5369_v51 = vld [vmem:[%s18059_s17 + $0x190] sm:$0xff] }
 0x7bc   : > { %8544 = vmatprep.subr.bf16.mxu1 %v15138_v58  ;;  %8630 = vmatprep.subr.bf16.mxu0 %v15140_v12  ;;  %v5377_v10 = vld [vmem:[%s18059_s17 + $0x1d0] sm:$0xff]  ;;  %v5370_v58 = vld [vmem:[%s18059_s17 + $0x198] sm:$0xff] }
 0x7bd   : > { %v5378_v12 = vld [vmem:[%s18059_s17 + $0x1d8] sm:$0xff]  ;;  %v14726_v13 = vcombine.high %v5369_v51, %v5377_v10  ;;  %v14725_v4 = vcombine.low %v5369_v51, %v5377_v10 }
 0x7be   : > { %v14728_v56 = vcombine.high %v5370_v58, %v5378_v12  ;;  %v14727_v63 = vcombine.low %v5370_v58, %v5378_v12 }
 0x7bf   : > { %8545 = vmatpush1.bf16.msra.mxu1 %v15137_v57  ;;  %8631 = vmatpush1.bf16.msra.mxu0 %v15139_v0  ;;  %v5385_v57 = vld [vmem:[%s18059_s17 + $0x210] sm:$0xff] }
 0x7c0   : > { %8546 = vmatprep.subr.bf16.mxu1 %v15154_v60  ;;  %8632 = vmatprep.subr.bf16.mxu0 %v15156_v40  ;;  %v5393_v0 = vld [vmem:[%s18059_s17 + $0x250] sm:$0xff]  ;;  %v5386_v60 = vld [vmem:[%s18059_s17 + $0x218] sm:$0xff] }
 0x7c1   : > { %v5394_v40 = vld [vmem:[%s18059_s17 + $0x258] sm:$0xff]  ;;  %v14742_v35 = vcombine.high %v5385_v57, %v5393_v0  ;;  %v14741_v53 = vcombine.low %v5385_v57, %v5393_v0 }
 0x7c2   : > { %v14744_v47 = vcombine.high %v5386_v60, %v5394_v40  ;;  %v14743_v16 = vcombine.low %v5386_v60, %v5394_v40 }
 0x7c3   : > { %8547 = vmatpush1.bf16.msra.mxu1 %v15153_v14  ;;  %8633 = vmatpush1.bf16.msra.mxu0 %v15155_v9  ;;  %v5401_v14 = vld [vmem:[%s18059_s17 + $0x290] sm:$0xff] }
 0x7c4   : > { %8548 = vmatprep.subr.bf16.mxu1 %v15170_v48  ;;  %8634 = vmatprep.subr.bf16.mxu0 %v15172_v5  ;;  %v5409_v9 = vld [vmem:[%s18059_s17 + $0x2d0] sm:$0xff]  ;;  %v5402_v48 = vld [vmem:[%s18059_s17 + $0x298] sm:$0xff] }
 0x7c5   : > { %v5410_v5 = vld [vmem:[%s18059_s17 + $0x2d8] sm:$0xff]  ;;  %v14758_v52 = vcombine.high %v5401_v14, %v5409_v9  ;;  %v14757_v20 = vcombine.low %v5401_v14, %v5409_v9 }
 0x7c6   : > { %v14760_v17 = vcombine.high %v5402_v48, %v5410_v5  ;;  %v14759_v61 = vcombine.low %v5402_v48, %v5410_v5 }
 0x7c7   : > { %8549 = vmatpush1.bf16.msra.mxu1 %v15169_v18  ;;  %8635 = vmatpush1.bf16.msra.mxu0 %v15171_v19  ;;  %v5417_v18 = vld [vmem:[%s18059_s17 + $0x310] sm:$0xff] }
 0x7c8   : > { %8647 = vmatprep.subr.bf16.mxu1 %v14678_v24  ;;  %8733 = vmatprep.subr.bf16.mxu0 %v14680_v22  ;;  %v5425_v19 = vld [vmem:[%s18059_s17 + $0x350] sm:$0xff]  ;;  %v5418_v24 = vld [vmem:[%s18059_s17 + $0x318] sm:$0xff] }
 0x7c9   : > { %v5426_v22 = vld [vmem:[%s18059_s17 + $0x358] sm:$0xff]  ;;  %v14774_v21 = vcombine.high %v5417_v18, %v5425_v19  ;;  %v14773_v36 = vcombine.low %v5417_v18, %v5425_v19 }
 0x7ca   : > { %8551 = vmatmul.mubr.bf16.vlgmr.msra.gmra.mrb[24].mxu1 %v19131_v43  ;;  %8637 = vmatmul.mubr.bf16.vlgmr.msra.gmra.mrb[24].mxu0 %v19131_v43  ;;  %v14776_v27 = vcombine.high %v5418_v24, %v5426_v22  ;;  %v14775_v42 = vcombine.low %v5418_v24, %v5426_v22 }
 0x7cb   : > { %8648 = vmatpush1.bf16.msra.mxu1 %v14677_v54  ;;  %8679 = vmatprep.mubr.bf16.mxu1 %v19041_v41  ;;  %v5433_v54 = vld [vmem:[%s18059_s17 + $0x390] sm:$0xff] }
 0x7cc   : > { %8734 = vmatpush1.bf16.msra.mxu0 %v14679_v55  ;;  %8765 = vmatprep.mubr.bf16.mxu0 %v19041_v41  ;;  %v5441_v55 = vld [vmem:[%s18059_s17 + $0x3d0] sm:$0xff] }
 0x7cd   : > { %8649 = vmatprep.subr.bf16.mxu1 %v14694_v34  ;;  %8735 = vmatprep.subr.bf16.mxu0 %v14696_v33  ;;  %v5434_v34 = vld [vmem:[%s18059_s17 + $0x398] sm:$0xff]  ;;  %v14790_v3 = vcombine.high %v5433_v54, %v5441_v55  ;;  %v14789_v51 = vcombine.low %v5433_v54, %v5441_v55 }
 0x7ce   : > { %v5442_v33 = vld [vmem:[%s18059_s17 + $0x3d8] sm:$0xff] }
 0x7cf   : > { %8650 = vmatpush1.bf16.msra.mxu1 %v14693_v62  ;;  %v14792_v44 = vcombine.high %v5434_v34, %v5442_v33  ;;  %v5449_v62 = vld [vmem:[%s18059_s17 + $0x410] sm:$0xff]  ;;  %v14791_v10 = vcombine.low %v5434_v34, %v5442_v33 }
 0x7d0   : > { %8736 = vmatpush1.bf16.msra.mxu0 %v14695_v7  ;;  %8651 = vmatprep.subr.bf16.mxu1 %v14710_v8  ;;  %v5457_v7 = vld [vmem:[%s18059_s17 + $0x450] sm:$0xff]  ;;  %v5450_v8 = vld [vmem:[%s18059_s17 + $0x418] sm:$0xff] }
 0x7d1   : > { %8737 = vmatprep.subr.bf16.mxu0 %v14712_v49  ;;  %v5458_v49 = vld [vmem:[%s18059_s17 + $0x458] sm:$0xff]  ;;  %v14806_v58 = vcombine.high %v5449_v62, %v5457_v7  ;;  %v14805_v57 = vcombine.low %v5449_v62, %v5457_v7 }
 0x7d2   : > { %v14808_v12 = vcombine.high %v5450_v8, %v5458_v49  ;;  %v14807_v0 = vcombine.low %v5450_v8, %v5458_v49 }
 0x7d3   : > { %8652 = vmatpush1.bf16.msra.mxu1 %v14709_v59  ;;  %v5465_v59 = vld [vmem:[%s18059_s17 + $0x490] sm:$0xff] }
 0x7d4   : > { %8738 = vmatpush1.bf16.msra.mxu0 %v14711_v32  ;;  %8653 = vmatprep.subr.bf16.mxu1 %v14726_v13  ;;  %v5473_v32 = vld [vmem:[%s18059_s17 + $0x4d0] sm:$0xff]  ;;  %v5466_v13 = vld [vmem:[%s18059_s17 + $0x498] sm:$0xff] }
 0x7d5   : > { %8739 = vmatprep.subr.bf16.mxu0 %v14728_v56  ;;  %v5474_v56 = vld [vmem:[%s18059_s17 + $0x4d8] sm:$0xff]  ;;  %v14822_v60 = vcombine.high %v5465_v59, %v5473_v32  ;;  %v14821_v14 = vcombine.low %v5465_v59, %v5473_v32 }
 0x7d6   : > { %v14824_v40 = vcombine.high %v5466_v13, %v5474_v56  ;;  %v14823_v9 = vcombine.low %v5466_v13, %v5474_v56 }
 0x7d7   : > { %8654 = vmatpush1.bf16.msra.mxu1 %v14725_v4  ;;  %v5481_v4 = vld [vmem:[%s18059_s17 + $0x510] sm:$0xff] }
 0x7d8   : > { %8740 = vmatpush1.bf16.msra.mxu0 %v14727_v63  ;;  %8655 = vmatprep.subr.bf16.mxu1 %v14742_v35  ;;  %v5489_v63 = vld [vmem:[%s18059_s17 + $0x550] sm:$0xff]  ;;  %v5482_v35 = vld [vmem:[%s18059_s17 + $0x518] sm:$0xff] }
 0x7d9   : > { %8741 = vmatprep.subr.bf16.mxu0 %v14744_v47  ;;  %v5490_v47 = vld [vmem:[%s18059_s17 + $0x558] sm:$0xff]  ;;  %v14838_v48 = vcombine.high %v5481_v4, %v5489_v63  ;;  %v14837_v18 = vcombine.low %v5481_v4, %v5489_v63 }
 0x7da   : > { %v14840_v5 = vcombine.high %v5482_v35, %v5490_v47  ;;  %v14839_v19 = vcombine.low %v5482_v35, %v5490_v47 }
 0x7db   : > { %8656 = vmatpush1.bf16.msra.mxu1 %v14741_v53  ;;  %v5497_v53 = vld [vmem:[%s18059_s17 + $0x590] sm:$0xff] }
 0x7dc   : > { %8742 = vmatpush1.bf16.msra.mxu0 %v14743_v16  ;;  %8657 = vmatprep.subr.bf16.mxu1 %v14758_v52  ;;  %v5505_v16 = vld [vmem:[%s18059_s17 + $0x5d0] sm:$0xff]  ;;  %v5498_v52 = vld [vmem:[%s18059_s17 + $0x598] sm:$0xff] }
 0x7dd   : > { %8743 = vmatprep.subr.bf16.mxu0 %v14760_v17  ;;  %v5506_v17 = vld [vmem:[%s18059_s17 + $0x5d8] sm:$0xff]  ;;  %v14854_v24 = vcombine.high %v5497_v53, %v5505_v16  ;;  %v14853_v54 = vcombine.low %v5497_v53, %v5505_v16 }
 0x7de   : > { %v14856_v22 = vcombine.high %v5498_v52, %v5506_v17  ;;  %v14855_v55 = vcombine.low %v5498_v52, %v5506_v17 }
 0x7df   : > { %8658 = vmatpush1.bf16.msra.mxu1 %v14757_v20  ;;  %v5513_v20 = vld [vmem:[%s18059_s17 + $0x610] sm:$0xff] }
 0x7e0   : > { %8744 = vmatpush1.bf16.msra.mxu0 %v14759_v61  ;;  %8659 = vmatprep.subr.bf16.mxu1 %v14774_v21  ;;  %v5521_v61 = vld [vmem:[%s18059_s17 + $0x650] sm:$0xff]  ;;  %v5514_v21 = vld [vmem:[%s18059_s17 + $0x618] sm:$0xff] }
 0x7e1   : > { %8745 = vmatprep.subr.bf16.mxu0 %v14776_v27  ;;  %v5522_v27 = vld [vmem:[%s18059_s17 + $0x658] sm:$0xff]  ;;  %v14870_v34 = vcombine.high %v5513_v20, %v5521_v61  ;;  %v14869_v62 = vcombine.low %v5513_v20, %v5521_v61 }
 0x7e2   : > { %v14872_v33 = vcombine.high %v5514_v21, %v5522_v27  ;;  %v14871_v7 = vcombine.low %v5514_v21, %v5522_v27  ;;  %v5602_v20 = vld [vmem:[%s18059_s17 + $0x8d8] sm:$0xff]  ;;  %v5609_v27 = vld [vmem:[%s18059_s17 + $0x910] sm:$0xff] }
 0x7e3   : > { %8660 = vmatpush1.bf16.msra.mxu1 %v14773_v36  ;;  %v5529_v36 = vld [vmem:[%s18059_s17 + $0x690] sm:$0xff] }
 0x7e4   : > { %8746 = vmatpush1.bf16.msra.mxu0 %v14775_v42  ;;  %8661 = vmatprep.subr.bf16.mxu1 %v14790_v3  ;;  %v5537_v42 = vld [vmem:[%s18059_s17 + $0x6d0] sm:$0xff]  ;;  %v5530_v3 = vld [vmem:[%s18059_s17 + $0x698] sm:$0xff] }
 0x7e5   : > { %8747 = vmatprep.subr.bf16.mxu0 %v14792_v44  ;;  %v5538_v44 = vld [vmem:[%s18059_s17 + $0x6d8] sm:$0xff]  ;;  %v14886_v8 = vcombine.high %v5529_v36, %v5537_v42  ;;  %v14885_v59 = vcombine.low %v5529_v36, %v5537_v42 }
 0x7e6   : > { %v14888_v49 = vcombine.high %v5530_v3, %v5538_v44  ;;  %v14887_v32 = vcombine.low %v5530_v3, %v5538_v44 }
 0x7e7   : > { %8662 = vmatpush1.bf16.msra.mxu1 %v14789_v51  ;;  %v5545_v51 = vld [vmem:[%s18059_s17 + $0x710] sm:$0xff] }
 0x7e8   : > { %8748 = vmatpush1.bf16.msra.mxu0 %v14791_v10  ;;  %8663 = vmatprep.subr.bf16.mxu1 %v14806_v58  ;;  %v5553_v10 = vld [vmem:[%s18059_s17 + $0x750] sm:$0xff]  ;;  %v5546_v58 = vld [vmem:[%s18059_s17 + $0x718] sm:$0xff] }
 0x7e9   : > { %8749 = vmatprep.subr.bf16.mxu0 %v14808_v12  ;;  %v5554_v12 = vld [vmem:[%s18059_s17 + $0x758] sm:$0xff]  ;;  %v14902_v13 = vcombine.high %v5545_v51, %v5553_v10  ;;  %v14901_v4 = vcombine.low %v5545_v51, %v5553_v10 }
 0x7ea   : > { %v14904_v56 = vcombine.high %v5546_v58, %v5554_v12  ;;  %v14903_v63 = vcombine.low %v5546_v58, %v5554_v12 }
 0x7eb   : > { %8664 = vmatpush1.bf16.msra.mxu1 %v14805_v57  ;;  %v5561_v57 = vld [vmem:[%s18059_s17 + $0x790] sm:$0xff] }
 0x7ec   : > { %8750 = vmatpush1.bf16.msra.mxu0 %v14807_v0  ;;  %8665 = vmatprep.subr.bf16.mxu1 %v14822_v60  ;;  %v5569_v0 = vld [vmem:[%s18059_s17 + $0x7d0] sm:$0xff]  ;;  %v5562_v60 = vld [vmem:[%s18059_s17 + $0x798] sm:$0xff] }
 0x7ed   : > { %8751 = vmatprep.subr.bf16.mxu0 %v14824_v40  ;;  %v5570_v40 = vld [vmem:[%s18059_s17 + $0x7d8] sm:$0xff]  ;;  %v14918_v35 = vcombine.high %v5561_v57, %v5569_v0  ;;  %v14917_v53 = vcombine.low %v5561_v57, %v5569_v0 }
 0x7ee   : > { %v14920_v47 = vcombine.high %v5562_v60, %v5570_v40  ;;  %v14919_v16 = vcombine.low %v5562_v60, %v5570_v40 }
 0x7ef   : > { %8666 = vmatpush1.bf16.msra.mxu1 %v14821_v14  ;;  %v5577_v14 = vld [vmem:[%s18059_s17 + $0x810] sm:$0xff] }
 0x7f0   : > { %8752 = vmatpush1.bf16.msra.mxu0 %v14823_v9  ;;  %8667 = vmatprep.subr.bf16.mxu1 %v14838_v48  ;;  %v5585_v9 = vld [vmem:[%s18059_s17 + $0x850] sm:$0xff]  ;;  %v5578_v48 = vld [vmem:[%s18059_s17 + $0x818] sm:$0xff] }
 0x7f1   : > { %8753 = vmatprep.subr.bf16.mxu0 %v14840_v5  ;;  %v5586_v5 = vld [vmem:[%s18059_s17 + $0x858] sm:$0xff]  ;;  %v14934_v52 = vcombine.high %v5577_v14, %v5585_v9 }
 0x7f2   : > { %v14936_v17 = vcombine.high %v5578_v48, %v5586_v5  ;;  %v14935_v61 = vcombine.low %v5578_v48, %v5586_v5 }
 0x7f3   : > { %8668 = vmatpush1.bf16.msra.mxu1 %v14837_v18  ;;  %v5593_v18 = vld [vmem:[%s18059_s17 + $0x890] sm:$0xff] }
 0x7f4   : > { %8754 = vmatpush1.bf16.msra.mxu0 %v14839_v19  ;;  %8669 = vmatprep.subr.bf16.mxu1 %v14854_v24  ;;  %v5601_v19 = vld [vmem:[%s18059_s17 + $0x8d0] sm:$0xff]  ;;  %v14933_v24 = vcombine.low %v5577_v14, %v5585_v9 }
 0x7f5   : > { %8755 = vmatprep.subr.bf16.mxu0 %v14856_v22  ;;  %v5594_v22 = vld [vmem:[%s18059_s17 + $0x898] sm:$0xff]  ;;  %v14950_v21 = vcombine.high %v5593_v18, %v5601_v19  ;;  %v14949_v36 = vcombine.low %v5593_v18, %v5601_v19 }
 0x7f6   : > { %v14951_v42 = vcombine.low %v5594_v22, %v5602_v20 }
 0x7f7   : > { %8670 = vmatpush1.bf16.msra.mxu1 %v14853_v54  ;;  %v5617_v54 = vld [vmem:[%s18059_s17 + $0x950] sm:$0xff] }
 0x7f8   : > { %8756 = vmatpush1.bf16.msra.mxu0 %v14855_v55  ;;  %8671 = vmatprep.subr.bf16.mxu1 %v14870_v34  ;;  %v14952_v55 = vcombine.high %v5594_v22, %v5602_v20  ;;  %v5610_v34 = vld [vmem:[%s18059_s17 + $0x918] sm:$0xff]  ;;  %v14966_v3 = vcombine.high %v5609_v27, %v5617_v54  ;;  %v14965_v51 = vcombine.low %v5609_v27, %v5617_v54  ;;  %v5689_v20 = vld [vmem:[%s18059_s17 + $0xb90] sm:$0xff] }
 0x7f9   : > { %8757 = vmatprep.subr.bf16.mxu0 %v14872_v33  ;;  %v5618_v33 = vld [vmem:[%s18059_s17 + $0x958] sm:$0xff] }
 0x7fa   : > { %v14968_v44 = vcombine.high %v5610_v34, %v5618_v33  ;;  %v14967_v10 = vcombine.low %v5610_v34, %v5618_v33  ;;  %v5698_v27 = vld [vmem:[%s18059_s17 + $0xbd8] sm:$0xff] }
 0x7fb   : > { %8672 = vmatpush1.bf16.msra.mxu1 %v14869_v62  ;;  %v5625_v62 = vld [vmem:[%s18059_s17 + $0x990] sm:$0xff] }
 0x7fc   : > { %8758 = vmatpush1.bf16.msra.mxu0 %v14871_v7  ;;  %8673 = vmatprep.subr.bf16.mxu1 %v14886_v8  ;;  %v5633_v7 = vld [vmem:[%s18059_s17 + $0x9d0] sm:$0xff]  ;;  %v5626_v8 = vld [vmem:[%s18059_s17 + $0x998] sm:$0xff] }
 0x7fd   : > { %8759 = vmatprep.subr.bf16.mxu0 %v14888_v49  ;;  %v5634_v49 = vld [vmem:[%s18059_s17 + $0x9d8] sm:$0xff]  ;;  %v14982_v58 = vcombine.high %v5625_v62, %v5633_v7  ;;  %v14981_v57 = vcombine.low %v5625_v62, %v5633_v7 }
 0x7fe   : > { %v14984_v12 = vcombine.high %v5626_v8, %v5634_v49  ;;  %v14983_v0 = vcombine.low %v5626_v8, %v5634_v49 }
 0x7ff   : > { %8674 = vmatpush1.bf16.msra.mxu1 %v14885_v59  ;;  %v5641_v59 = vld [vmem:[%s18059_s17 + $0xa10] sm:$0xff] }
 0x800   : > { %8760 = vmatpush1.bf16.msra.mxu0 %v14887_v32  ;;  %8675 = vmatprep.subr.bf16.mxu1 %v14902_v13  ;;  %v5649_v32 = vld [vmem:[%s18059_s17 + $0xa50] sm:$0xff]  ;;  %v5642_v13 = vld [vmem:[%s18059_s17 + $0xa18] sm:$0xff] }
 0x801   : > { %8761 = vmatprep.subr.bf16.mxu0 %v14904_v56  ;;  %v5650_v56 = vld [vmem:[%s18059_s17 + $0xa58] sm:$0xff]  ;;  %v14998_v60 = vcombine.high %v5641_v59, %v5649_v32  ;;  %v14997_v14 = vcombine.low %v5641_v59, %v5649_v32 }
 0x802   : > { %v15000_v40 = vcombine.high %v5642_v13, %v5650_v56  ;;  %v14999_v9 = vcombine.low %v5642_v13, %v5650_v56 }
 0x803   : > { %8676 = vmatpush1.bf16.msra.mxu1 %v14901_v4  ;;  %v5657_v4 = vld [vmem:[%s18059_s17 + $0xa90] sm:$0xff] }
 0x804   : > { %8762 = vmatpush1.bf16.msra.mxu0 %v14903_v63  ;;  %8677 = vmatprep.subr.bf16.mxu1 %v14918_v35  ;;  %v5665_v63 = vld [vmem:[%s18059_s17 + $0xad0] sm:$0xff]  ;;  %v5658_v35 = vld [vmem:[%s18059_s17 + $0xa98] sm:$0xff] }
 0x805   : > { %8763 = vmatprep.subr.bf16.mxu0 %v14920_v47  ;;  %v5666_v47 = vld [vmem:[%s18059_s17 + $0xad8] sm:$0xff]  ;;  %v15014_v48 = vcombine.high %v5657_v4, %v5665_v63  ;;  %v15013_v18 = vcombine.low %v5657_v4, %v5665_v63 }
 0x806   : > { %v15016_v5 = vcombine.high %v5658_v35, %v5666_v47  ;;  %v15015_v19 = vcombine.low %v5658_v35, %v5666_v47 }
 0x807   : > { %8678 = vmatpush1.bf16.msra.mxu1 %v14917_v53  ;;  %v5673_v53 = vld [vmem:[%s18059_s17 + $0xb10] sm:$0xff] }
 0x808   : > { %8764 = vmatpush1.bf16.msra.mxu0 %v14919_v16  ;;  %8690 = vmatprep.subr.bf16.mxu1 %v14934_v52  ;;  %v5681_v16 = vld [vmem:[%s18059_s17 + $0xb50] sm:$0xff]  ;;  %v5674_v52 = vld [vmem:[%s18059_s17 + $0xb18] sm:$0xff] }
 0x809   : > { %8776 = vmatprep.subr.bf16.mxu0 %v14936_v17  ;;  %v5682_v17 = vld [vmem:[%s18059_s17 + $0xb58] sm:$0xff]  ;;  %v15029_v54 = vcombine.low %v5673_v53, %v5681_v16 }
 0x80a   : > { %8680 = vmatmul.mubr.bf16.vlgmr.msra.gmra.mrb[28].mxu1 %v19045_v46  ;;  %v15032_v22 = vcombine.high %v5674_v52, %v5682_v17 }
 0x80b   : > { %8766 = vmatmul.mubr.bf16.vlgmr.msra.gmra.mrb[28].mxu0 %v19045_v46  ;;  %8691 = vmatpush1.bf16.msra.mxu1 %v14933_v24  ;;  %v15030_v24 = vcombine.high %v5673_v53, %v5681_v16 }
 0x80c   : > { %8722 = vmatprep.mubr.bf16.mxu1 %v19059_v11  ;;  %8777 = vmatpush1.bf16.msra.mxu0 %v14935_v61  ;;  %v5697_v61 = vld [vmem:[%s18059_s17 + $0xbd0] sm:$0xff] }
 0x80d   : > { %8808 = vmatprep.mubr.bf16.mxu0 %v19059_v11  ;;  %8692 = vmatprep.subr.bf16.mxu1 %v14950_v21  ;;  %v5690_v21 = vld [vmem:[%s18059_s17 + $0xb98] sm:$0xff]  ;;  %v15046_v34 = vcombine.high %v5689_v20, %v5697_v61  ;;  %v15045_v62 = vcombine.low %v5689_v20, %v5697_v61 }
 0x80e   : > { %8778 = vmatprep.subr.bf16.mxu0 %v14952_v55  ;;  %v15031_v55 = vcombine.low %v5674_v52, %v5682_v17  ;;  %v15048_v33 = vcombine.high %v5690_v21, %v5698_v27  ;;  %v15047_v7 = vcombine.low %v5690_v21, %v5698_v27 }
 0x80f   : > { %8693 = vmatpush1.bf16.msra.mxu1 %v14949_v36  ;;  %v5705_v36 = vld [vmem:[%s18059_s17 + $0xc10] sm:$0xff] }
 0x810   : > { %8779 = vmatpush1.bf16.msra.mxu0 %v14951_v42  ;;  %8694 = vmatprep.subr.bf16.mxu1 %v14966_v3  ;;  %v5713_v42 = vld [vmem:[%s18059_s17 + $0xc50] sm:$0xff]  ;;  %v5706_v3 = vld [vmem:[%s18059_s17 + $0xc18] sm:$0xff] }
 0x811   : > { %8780 = vmatprep.subr.bf16.mxu0 %v14968_v44  ;;  %v5714_v44 = vld [vmem:[%s18059_s17 + $0xc58] sm:$0xff]  ;;  %v15062_v8 = vcombine.high %v5705_v36, %v5713_v42  ;;  %v15061_v59 = vcombine.low %v5705_v36, %v5713_v42 }
 0x812   : > { %v15064_v49 = vcombine.high %v5706_v3, %v5714_v44  ;;  %v15063_v32 = vcombine.low %v5706_v3, %v5714_v44 }
 0x813   : > { %8695 = vmatpush1.bf16.msra.mxu1 %v14965_v51  ;;  %v5721_v51 = vld [vmem:[%s18059_s17 + $0xc90] sm:$0xff] }
 0x814   : > { %8781 = vmatpush1.bf16.msra.mxu0 %v14967_v10  ;;  %8696 = vmatprep.subr.bf16.mxu1 %v14982_v58  ;;  %v5729_v10 = vld [vmem:[%s18059_s17 + $0xcd0] sm:$0xff]  ;;  %v5722_v58 = vld [vmem:[%s18059_s17 + $0xc98] sm:$0xff] }
 0x815   : > { %8782 = vmatprep.subr.bf16.mxu0 %v14984_v12  ;;  %v5730_v12 = vld [vmem:[%s18059_s17 + $0xcd8] sm:$0xff]  ;;  %v15078_v13 = vcombine.high %v5721_v51, %v5729_v10  ;;  %v15077_v4 = vcombine.low %v5721_v51, %v5729_v10 }
 0x816   : > { %v15080_v56 = vcombine.high %v5722_v58, %v5730_v12  ;;  %v15079_v63 = vcombine.low %v5722_v58, %v5730_v12 }
 0x817   : > { %8697 = vmatpush1.bf16.msra.mxu1 %v14981_v57  ;;  %v5737_v57 = vld [vmem:[%s18059_s17 + $0xd10] sm:$0xff] }
 0x818   : > { %8783 = vmatpush1.bf16.msra.mxu0 %v14983_v0  ;;  %8698 = vmatprep.subr.bf16.mxu1 %v14998_v60  ;;  %v5745_v0 = vld [vmem:[%s18059_s17 + $0xd50] sm:$0xff]  ;;  %v5738_v60 = vld [vmem:[%s18059_s17 + $0xd18] sm:$0xff] }
 0x819   : > { %8784 = vmatprep.subr.bf16.mxu0 %v15000_v40  ;;  %v5746_v40 = vld [vmem:[%s18059_s17 + $0xd58] sm:$0xff]  ;;  %v15094_v35 = vcombine.high %v5737_v57, %v5745_v0  ;;  %v15093_v53 = vcombine.low %v5737_v57, %v5745_v0 }
 0x81a   : > { %v15096_v47 = vcombine.high %v5738_v60, %v5746_v40  ;;  %v15095_v16 = vcombine.low %v5738_v60, %v5746_v40 }
 0x81b   : > { %8699 = vmatpush1.bf16.msra.mxu1 %v14997_v14  ;;  %v5753_v14 = vld [vmem:[%s18059_s17 + $0xd90] sm:$0xff] }
 0x81c   : > { %8785 = vmatpush1.bf16.msra.mxu0 %v14999_v9  ;;  %8700 = vmatprep.subr.bf16.mxu1 %v15014_v48  ;;  %v5761_v9 = vld [vmem:[%s18059_s17 + $0xdd0] sm:$0xff]  ;;  %v5754_v48 = vld [vmem:[%s18059_s17 + $0xd98] sm:$0xff] }
 0x81d   : > { %8786 = vmatprep.subr.bf16.mxu0 %v15016_v5  ;;  %v5762_v5 = vld [vmem:[%s18059_s17 + $0xdd8] sm:$0xff]  ;;  %v15110_v52 = vcombine.high %v5753_v14, %v5761_v9  ;;  %v15109_v20 = vcombine.low %v5753_v14, %v5761_v9 }
 0x81e   : > { %v15112_v17 = vcombine.high %v5754_v48, %v5762_v5  ;;  %v15111_v61 = vcombine.low %v5754_v48, %v5762_v5 }
 0x81f   : > { %8701 = vmatpush1.bf16.msra.mxu1 %v15013_v18  ;;  %v5769_v18 = vld [vmem:[%s18059_s17 + $0xe10] sm:$0xff] }
 0x820   : > { %8787 = vmatpush1.bf16.msra.mxu0 %v15015_v19  ;;  %8702 = vmatprep.subr.bf16.mxu1 %v15030_v24  ;;  %v5777_v19 = vld [vmem:[%s18059_s17 + $0xe50] sm:$0xff]  ;;  %v5770_v24 = vld [vmem:[%s18059_s17 + $0xe18] sm:$0xff] }
 0x821   : > { %8788 = vmatprep.subr.bf16.mxu0 %v15032_v22  ;;  %v5778_v22 = vld [vmem:[%s18059_s17 + $0xe58] sm:$0xff]  ;;  %v15126_v21 = vcombine.high %v5769_v18, %v5777_v19  ;;  %v15125_v36 = vcombine.low %v5769_v18, %v5777_v19  ;;  %v5348_v18 = vld [vmem:[%s18059_s17 + $0xe8] sm:$0xff] }
 0x822   : > { %v15128_v27 = vcombine.high %v5770_v24, %v5778_v22  ;;  %v15127_v42 = vcombine.low %v5770_v24, %v5778_v22  ;;  %v5355_v22 = vld [vmem:[%s18059_s17 + $0x120] sm:$0xff] }
 0x823   : > { %8703 = vmatpush1.bf16.msra.mxu1 %v15029_v54  ;;  %v5785_v54 = vld [vmem:[%s18059_s17 + $0xe90] sm:$0xff] }
 0x824   : > { %8789 = vmatpush1.bf16.msra.mxu0 %v15031_v55  ;;  %8704 = vmatprep.subr.bf16.mxu1 %v15046_v34  ;;  %v5793_v55 = vld [vmem:[%s18059_s17 + $0xed0] sm:$0xff]  ;;  %v5786_v34 = vld [vmem:[%s18059_s17 + $0xe98] sm:$0xff] }
 0x825   : > { %8790 = vmatprep.subr.bf16.mxu0 %v15048_v33  ;;  %v5794_v33 = vld [vmem:[%s18059_s17 + $0xed8] sm:$0xff]  ;;  %v15142_v3 = vcombine.high %v5785_v54, %v5793_v55  ;;  %v15141_v51 = vcombine.low %v5785_v54, %v5793_v55 }
 0x826   : > { %v15144_v44 = vcombine.high %v5786_v34, %v5794_v33  ;;  %v15143_v10 = vcombine.low %v5786_v34, %v5794_v33 }
 0x827   : > { %8705 = vmatpush1.bf16.msra.mxu1 %v15045_v62  ;;  %v5801_v62 = vld [vmem:[%s18059_s17 + $0xf10] sm:$0xff] }
 0x828   : > { %8791 = vmatpush1.bf16.msra.mxu0 %v15047_v7  ;;  %8706 = vmatprep.subr.bf16.mxu1 %v15062_v8  ;;  %v5809_v7 = vld [vmem:[%s18059_s17 + $0xf50] sm:$0xff]  ;;  %v5802_v8 = vld [vmem:[%s18059_s17 + $0xf18] sm:$0xff] }
 0x829   : > { %8792 = vmatprep.subr.bf16.mxu0 %v15064_v49  ;;  %v5810_v49 = vld [vmem:[%s18059_s17 + $0xf58] sm:$0xff]  ;;  %v15158_v58 = vcombine.high %v5801_v62, %v5809_v7  ;;  %v15157_v57 = vcombine.low %v5801_v62, %v5809_v7 }
 0x82a   : > { %v15160_v12 = vcombine.high %v5802_v8, %v5810_v49  ;;  %v15159_v0 = vcombine.low %v5802_v8, %v5810_v49 }
 0x82b   : > { %8707 = vmatpush1.bf16.msra.mxu1 %v15061_v59  ;;  %v5817_v59 = vld [vmem:[%s18059_s17 + $0xf90] sm:$0xff] }
 0x82c   : > { %8793 = vmatpush1.bf16.msra.mxu0 %v15063_v32  ;;  %8708 = vmatprep.subr.bf16.mxu1 %v15078_v13  ;;  %v5825_v32 = vld [vmem:[%s18059_s17 + $0xfd0] sm:$0xff]  ;;  %v5818_v13 = vld [vmem:[%s18059_s17 + $0xf98] sm:$0xff] }
 0x82d   : > { %8794 = vmatprep.subr.bf16.mxu0 %v15080_v56  ;;  %v5826_v56 = vld [vmem:[%s18059_s17 + $0xfd8] sm:$0xff]  ;;  %v15174_v60 = vcombine.high %v5817_v59, %v5825_v32  ;;  %v15173_v14 = vcombine.low %v5817_v59, %v5825_v32 }
 0x82e   : > { %v15176_v40 = vcombine.high %v5818_v13, %v5826_v56  ;;  %v15175_v9 = vcombine.low %v5818_v13, %v5826_v56 }
 0x82f   : > { %8709 = vmatpush1.bf16.msra.mxu1 %v15077_v4  ;;  %v5323_v4 = vld [vmem:[%s18059_s17 + $0x20] sm:$0xff] }
 0x830   : > { %8795 = vmatpush1.bf16.msra.mxu0 %v15079_v63  ;;  %8710 = vmatprep.subr.bf16.mxu1 %v15094_v35  ;;  %v5331_v63 = vld [vmem:[%s18059_s17 + $0x60] sm:$0xff]  ;;  %v5324_v35 = vld [vmem:[%s18059_s17 + $0x28] sm:$0xff] }
 0x831   : > { %8796 = vmatprep.subr.bf16.mxu0 %v15096_v47  ;;  %v5332_v47 = vld [vmem:[%s18059_s17 + $0x68] sm:$0xff]  ;;  %v14682_v48 = vcombine.high %v5323_v4, %v5331_v63 }
 0x832   : > { %v14684_v5 = vcombine.high %v5324_v35, %v5332_v47  ;;  %v14683_v19 = vcombine.low %v5324_v35, %v5332_v47 }
 0x833   : > { %8711 = vmatpush1.bf16.msra.mxu1 %v15093_v53  ;;  %v5339_v53 = vld [vmem:[%s18059_s17 + $0xa0] sm:$0xff] }
 0x834   : > { %8797 = vmatpush1.bf16.msra.mxu0 %v15095_v16  ;;  %8712 = vmatprep.subr.bf16.mxu1 %v15110_v52  ;;  %v5347_v16 = vld [vmem:[%s18059_s17 + $0xe0] sm:$0xff]  ;;  %v14681_v52 = vcombine.low %v5323_v4, %v5331_v63 }
 0x835   : > { %8798 = vmatprep.subr.bf16.mxu0 %v15112_v17  ;;  %v5340_v17 = vld [vmem:[%s18059_s17 + $0xa8] sm:$0xff]  ;;  %v14698_v24 = vcombine.high %v5339_v53, %v5347_v16  ;;  %v14697_v54 = vcombine.low %v5339_v53, %v5347_v16 }
 0x836   : > { %v14699_v55 = vcombine.low %v5340_v17, %v5348_v18 }
 0x837   : > { %8713 = vmatpush1.bf16.msra.mxu1 %v15109_v20  ;;  %v5363_v20 = vld [vmem:[%s18059_s17 + $0x160] sm:$0xff] }
 0x838   : > { %8799 = vmatpush1.bf16.msra.mxu0 %v15111_v61  ;;  %8714 = vmatprep.subr.bf16.mxu1 %v15126_v21  ;;  %v14700_v61 = vcombine.high %v5340_v17, %v5348_v18  ;;  %v5356_v21 = vld [vmem:[%s18059_s17 + $0x128] sm:$0xff]  ;;  %v14714_v34 = vcombine.high %v5355_v22, %v5363_v20  ;;  %v14713_v62 = vcombine.low %v5355_v22, %v5363_v20  ;;  %v5435_v18 = vld [vmem:[%s18059_s17 + $0x3a0] sm:$0xff] }
 0x839   : > { %8800 = vmatprep.subr.bf16.mxu0 %v15128_v27  ;;  %v5364_v27 = vld [vmem:[%s18059_s17 + $0x168] sm:$0xff] }
 0x83a   : > { %v14716_v33 = vcombine.high %v5356_v21, %v5364_v27  ;;  %v14715_v7 = vcombine.low %v5356_v21, %v5364_v27  ;;  %v5444_v22 = vld [vmem:[%s18059_s17 + $0x3e8] sm:$0xff] }
 0x83b   : > { %8715 = vmatpush1.bf16.msra.mxu1 %v15125_v36  ;;  %v5371_v36 = vld [vmem:[%s18059_s17 + $0x1a0] sm:$0xff] }
 0x83c   : > { %8801 = vmatpush1.bf16.msra.mxu0 %v15127_v42  ;;  %8716 = vmatprep.subr.bf16.mxu1 %v15142_v3  ;;  %v5379_v42 = vld [vmem:[%s18059_s17 + $0x1e0] sm:$0xff]  ;;  %v5372_v3 = vld [vmem:[%s18059_s17 + $0x1a8] sm:$0xff] }
 0x83d   : > { %8802 = vmatprep.subr.bf16.mxu0 %v15144_v44  ;;  %v5380_v44 = vld [vmem:[%s18059_s17 + $0x1e8] sm:$0xff]  ;;  %v14730_v8 = vcombine.high %v5371_v36, %v5379_v42  ;;  %v14729_v59 = vcombine.low %v5371_v36, %v5379_v42 }
 0x83e   : > { %v14732_v49 = vcombine.high %v5372_v3, %v5380_v44  ;;  %v14731_v32 = vcombine.low %v5372_v3, %v5380_v44 }
 0x83f   : > { %8717 = vmatpush1.bf16.msra.mxu1 %v15141_v51  ;;  %v5387_v51 = vld [vmem:[%s18059_s17 + $0x220] sm:$0xff] }
 0x840   : > { %8803 = vmatpush1.bf16.msra.mxu0 %v15143_v10  ;;  %8718 = vmatprep.subr.bf16.mxu1 %v15158_v58  ;;  %v5395_v10 = vld [vmem:[%s18059_s17 + $0x260] sm:$0xff]  ;;  %v5388_v58 = vld [vmem:[%s18059_s17 + $0x228] sm:$0xff] }
 0x841   : > { %8804 = vmatprep.subr.bf16.mxu0 %v15160_v12  ;;  %v5396_v12 = vld [vmem:[%s18059_s17 + $0x268] sm:$0xff]  ;;  %v14746_v13 = vcombine.high %v5387_v51, %v5395_v10  ;;  %v14745_v4 = vcombine.low %v5387_v51, %v5395_v10 }
 0x842   : > { %v14748_v56 = vcombine.high %v5388_v58, %v5396_v12  ;;  %v14747_v63 = vcombine.low %v5388_v58, %v5396_v12 }
 0x843   : > { %8719 = vmatpush1.bf16.msra.mxu1 %v15157_v57  ;;  %v5403_v57 = vld [vmem:[%s18059_s17 + $0x2a0] sm:$0xff] }
 0x844   : > { %8805 = vmatpush1.bf16.msra.mxu0 %v15159_v0  ;;  %8720 = vmatprep.subr.bf16.mxu1 %v15174_v60  ;;  %v5411_v0 = vld [vmem:[%s18059_s17 + $0x2e0] sm:$0xff]  ;;  %v5404_v60 = vld [vmem:[%s18059_s17 + $0x2a8] sm:$0xff] }
 0x845   : > { %8806 = vmatprep.subr.bf16.mxu0 %v15176_v40  ;;  %v5412_v40 = vld [vmem:[%s18059_s17 + $0x2e8] sm:$0xff]  ;;  %v14762_v35 = vcombine.high %v5403_v57, %v5411_v0  ;;  %v14761_v53 = vcombine.low %v5403_v57, %v5411_v0 }
 0x846   : > { %v14764_v47 = vcombine.high %v5404_v60, %v5412_v40  ;;  %v14763_v16 = vcombine.low %v5404_v60, %v5412_v40 }
 0x847   : > { %8721 = vmatpush1.bf16.msra.mxu1 %v15173_v14  ;;  %v5419_v14 = vld [vmem:[%s18059_s17 + $0x320] sm:$0xff] }
 0x848   : > { %8807 = vmatpush1.bf16.msra.mxu0 %v15175_v9  ;;  %8819 = vmatprep.subr.bf16.mxu1 %v14682_v48  ;;  %v5427_v9 = vld [vmem:[%s18059_s17 + $0x360] sm:$0xff]  ;;  %v5420_v48 = vld [vmem:[%s18059_s17 + $0x328] sm:$0xff] }
 0x849   : > { %8905 = vmatprep.subr.bf16.mxu0 %v14684_v5  ;;  %v5428_v5 = vld [vmem:[%s18059_s17 + $0x368] sm:$0xff]  ;;  %v14777_v20 = vcombine.low %v5419_v14, %v5427_v9 }
 0x84a   : > { %8723 = vmatmul.mubr.bf16.vlgmr.msra.gmra.mrb[28].mxu1 %v19131_v43  ;;  %v14780_v17 = vcombine.high %v5420_v48, %v5428_v5 }
 0x84b   : > { %8809 = vmatmul.mubr.bf16.vlgmr.msra.gmra.mrb[28].mxu0 %v19131_v43  ;;  %8820 = vmatpush1.bf16.msra.mxu1 %v14681_v52  ;;  %v14778_v52 = vcombine.high %v5419_v14, %v5427_v9 }
 0x84c   : > { %8851 = vmatprep.mubr.bf16.mxu1 %v19041_v41  ;;  %8906 = vmatpush1.bf16.msra.mxu0 %v14683_v19  ;;  %v5443_v19 = vld [vmem:[%s18059_s17 + $0x3e0] sm:$0xff] }
 0x84d   : > { %8937 = vmatprep.mubr.bf16.mxu0 %v19041_v41  ;;  %8821 = vmatprep.subr.bf16.mxu1 %v14698_v24  ;;  %v5436_v24 = vld [vmem:[%s18059_s17 + $0x3a8] sm:$0xff]  ;;  %v14794_v21 = vcombine.high %v5435_v18, %v5443_v19  ;;  %v14793_v36 = vcombine.low %v5435_v18, %v5443_v19 }
 0x84e   : > { %8907 = vmatprep.subr.bf16.mxu0 %v14700_v61  ;;  %v14779_v61 = vcombine.low %v5420_v48, %v5428_v5  ;;  %v14796_v27 = vcombine.high %v5436_v24, %v5444_v22  ;;  %v14795_v42 = vcombine.low %v5436_v24, %v5444_v22 }
 0x84f   : > { %8822 = vmatpush1.bf16.msra.mxu1 %v14697_v54  ;;  %v5451_v54 = vld [vmem:[%s18059_s17 + $0x420] sm:$0xff] }
 0x850   : > { %8908 = vmatpush1.bf16.msra.mxu0 %v14699_v55  ;;  %8823 = vmatprep.subr.bf16.mxu1 %v14714_v34  ;;  %v5459_v55 = vld [vmem:[%s18059_s17 + $0x460] sm:$0xff]  ;;  %v5452_v34 = vld [vmem:[%s18059_s17 + $0x428] sm:$0xff] }
 0x851   : > { %8909 = vmatprep.subr.bf16.mxu0 %v14716_v33  ;;  %v5460_v33 = vld [vmem:[%s18059_s17 + $0x468] sm:$0xff]  ;;  %v14810_v3 = vcombine.high %v5451_v54, %v5459_v55  ;;  %v14809_v51 = vcombine.low %v5451_v54, %v5459_v55 }
 0x852   : > { %v14812_v44 = vcombine.high %v5452_v34, %v5460_v33  ;;  %v14811_v10 = vcombine.low %v5452_v34, %v5460_v33 }
 0x853   : > { %8824 = vmatpush1.bf16.msra.mxu1 %v14713_v62  ;;  %v5467_v62 = vld [vmem:[%s18059_s17 + $0x4a0] sm:$0xff] }
 0x854   : > { %8910 = vmatpush1.bf16.msra.mxu0 %v14715_v7  ;;  %8825 = vmatprep.subr.bf16.mxu1 %v14730_v8  ;;  %v5475_v7 = vld [vmem:[%s18059_s17 + $0x4e0] sm:$0xff]  ;;  %v5468_v8 = vld [vmem:[%s18059_s17 + $0x4a8] sm:$0xff] }
 0x855   : > { %8911 = vmatprep.subr.bf16.mxu0 %v14732_v49  ;;  %v5476_v49 = vld [vmem:[%s18059_s17 + $0x4e8] sm:$0xff]  ;;  %v14826_v58 = vcombine.high %v5467_v62, %v5475_v7  ;;  %v14825_v57 = vcombine.low %v5467_v62, %v5475_v7 }
 0x856   : > { %v14828_v12 = vcombine.high %v5468_v8, %v5476_v49  ;;  %v14827_v0 = vcombine.low %v5468_v8, %v5476_v49 }
 0x857   : > { %8826 = vmatpush1.bf16.msra.mxu1 %v14729_v59  ;;  %v5483_v59 = vld [vmem:[%s18059_s17 + $0x520] sm:$0xff] }
 0x858   : > { %8912 = vmatpush1.bf16.msra.mxu0 %v14731_v32  ;;  %8827 = vmatprep.subr.bf16.mxu1 %v14746_v13  ;;  %v5491_v32 = vld [vmem:[%s18059_s17 + $0x560] sm:$0xff]  ;;  %v5484_v13 = vld [vmem:[%s18059_s17 + $0x528] sm:$0xff] }
 0x859   : > { %8913 = vmatprep.subr.bf16.mxu0 %v14748_v56  ;;  %v5492_v56 = vld [vmem:[%s18059_s17 + $0x568] sm:$0xff]  ;;  %v14842_v60 = vcombine.high %v5483_v59, %v5491_v32  ;;  %v14841_v14 = vcombine.low %v5483_v59, %v5491_v32 }
 0x85a   : > { %v14844_v40 = vcombine.high %v5484_v13, %v5492_v56  ;;  %v14843_v9 = vcombine.low %v5484_v13, %v5492_v56 }
 0x85b   : > { %8828 = vmatpush1.bf16.msra.mxu1 %v14745_v4  ;;  %v5499_v4 = vld [vmem:[%s18059_s17 + $0x5a0] sm:$0xff] }
 0x85c   : > { %8914 = vmatpush1.bf16.msra.mxu0 %v14747_v63  ;;  %8829 = vmatprep.subr.bf16.mxu1 %v14762_v35  ;;  %v5507_v63 = vld [vmem:[%s18059_s17 + $0x5e0] sm:$0xff]  ;;  %v5500_v35 = vld [vmem:[%s18059_s17 + $0x5a8] sm:$0xff] }
 0x85d   : > { %8915 = vmatprep.subr.bf16.mxu0 %v14764_v47  ;;  %v5508_v47 = vld [vmem:[%s18059_s17 + $0x5e8] sm:$0xff]  ;;  %v14858_v48 = vcombine.high %v5499_v4, %v5507_v63  ;;  %v14857_v18 = vcombine.low %v5499_v4, %v5507_v63 }
 0x85e   : > { %v14860_v5 = vcombine.high %v5500_v35, %v5508_v47  ;;  %v14859_v19 = vcombine.low %v5500_v35, %v5508_v47 }
 0x85f   : > { %8830 = vmatpush1.bf16.msra.mxu1 %v14761_v53  ;;  %v5515_v53 = vld [vmem:[%s18059_s17 + $0x620] sm:$0xff] }
 0x860   : > { %8916 = vmatpush1.bf16.msra.mxu0 %v14763_v16  ;;  %8831 = vmatprep.subr.bf16.mxu1 %v14778_v52  ;;  %v5523_v16 = vld [vmem:[%s18059_s17 + $0x660] sm:$0xff]  ;;  %v5516_v52 = vld [vmem:[%s18059_s17 + $0x628] sm:$0xff] }
 0x861   : > { %8917 = vmatprep.subr.bf16.mxu0 %v14780_v17  ;;  %v5524_v17 = vld [vmem:[%s18059_s17 + $0x668] sm:$0xff]  ;;  %v14874_v24 = vcombine.high %v5515_v53, %v5523_v16  ;;  %v14873_v54 = vcombine.low %v5515_v53, %v5523_v16 }
 0x862   : > { %v14876_v22 = vcombine.high %v5516_v52, %v5524_v17  ;;  %v14875_v55 = vcombine.low %v5516_v52, %v5524_v17  ;;  %v5604_v53 = vld [vmem:[%s18059_s17 + $0x8e8] sm:$0xff]  ;;  %v5611_v17 = vld [vmem:[%s18059_s17 + $0x920] sm:$0xff] }
 0x863   : > { %8832 = vmatpush1.bf16.msra.mxu1 %v14777_v20  ;;  %v5531_v20 = vld [vmem:[%s18059_s17 + $0x6a0] sm:$0xff] }
 0x864   : > { %8918 = vmatpush1.bf16.msra.mxu0 %v14779_v61  ;;  %8833 = vmatprep.subr.bf16.mxu1 %v14794_v21  ;;  %v5539_v61 = vld [vmem:[%s18059_s17 + $0x6e0] sm:$0xff]  ;;  %v5532_v21 = vld [vmem:[%s18059_s17 + $0x6a8] sm:$0xff] }
 0x865   : > { %8919 = vmatprep.subr.bf16.mxu0 %v14796_v27  ;;  %v5540_v27 = vld [vmem:[%s18059_s17 + $0x6e8] sm:$0xff]  ;;  %v14890_v34 = vcombine.high %v5531_v20, %v5539_v61  ;;  %v14889_v62 = vcombine.low %v5531_v20, %v5539_v61 }
 0x866   : > { %v14892_v33 = vcombine.high %v5532_v21, %v5540_v27  ;;  %v14891_v7 = vcombine.low %v5532_v21, %v5540_v27 }
 0x867   : > { %8834 = vmatpush1.bf16.msra.mxu1 %v14793_v36  ;;  %v5547_v36 = vld [vmem:[%s18059_s17 + $0x720] sm:$0xff] }
 0x868   : > { %8920 = vmatpush1.bf16.msra.mxu0 %v14795_v42  ;;  %8835 = vmatprep.subr.bf16.mxu1 %v14810_v3  ;;  %v5555_v42 = vld [vmem:[%s18059_s17 + $0x760] sm:$0xff]  ;;  %v5548_v3 = vld [vmem:[%s18059_s17 + $0x728] sm:$0xff] }
 0x869   : > { %8921 = vmatprep.subr.bf16.mxu0 %v14812_v44  ;;  %v5556_v44 = vld [vmem:[%s18059_s17 + $0x768] sm:$0xff]  ;;  %v14906_v8 = vcombine.high %v5547_v36, %v5555_v42  ;;  %v14905_v59 = vcombine.low %v5547_v36, %v5555_v42 }
 0x86a   : > { %v14908_v49 = vcombine.high %v5548_v3, %v5556_v44  ;;  %v14907_v32 = vcombine.low %v5548_v3, %v5556_v44 }
 0x86b   : > { %8836 = vmatpush1.bf16.msra.mxu1 %v14809_v51  ;;  %v5563_v51 = vld [vmem:[%s18059_s17 + $0x7a0] sm:$0xff] }
 0x86c   : > { %8922 = vmatpush1.bf16.msra.mxu0 %v14811_v10  ;;  %8837 = vmatprep.subr.bf16.mxu1 %v14826_v58  ;;  %v5571_v10 = vld [vmem:[%s18059_s17 + $0x7e0] sm:$0xff]  ;;  %v5564_v58 = vld [vmem:[%s18059_s17 + $0x7a8] sm:$0xff] }
 0x86d   : > { %8923 = vmatprep.subr.bf16.mxu0 %v14828_v12  ;;  %v5572_v12 = vld [vmem:[%s18059_s17 + $0x7e8] sm:$0xff]  ;;  %v14922_v13 = vcombine.high %v5563_v51, %v5571_v10  ;;  %v14921_v4 = vcombine.low %v5563_v51, %v5571_v10 }
 0x86e   : > { %v14924_v56 = vcombine.high %v5564_v58, %v5572_v12  ;;  %v14923_v63 = vcombine.low %v5564_v58, %v5572_v12 }
 0x86f   : > { %8838 = vmatpush1.bf16.msra.mxu1 %v14825_v57  ;;  %v5579_v57 = vld [vmem:[%s18059_s17 + $0x820] sm:$0xff] }
 0x870   : > { %8924 = vmatpush1.bf16.msra.mxu0 %v14827_v0  ;;  %8839 = vmatprep.subr.bf16.mxu1 %v14842_v60  ;;  %v5587_v0 = vld [vmem:[%s18059_s17 + $0x860] sm:$0xff]  ;;  %v5580_v60 = vld [vmem:[%s18059_s17 + $0x828] sm:$0xff] }
 0x871   : > { %8925 = vmatprep.subr.bf16.mxu0 %v14844_v40  ;;  %v5588_v40 = vld [vmem:[%s18059_s17 + $0x868] sm:$0xff]  ;;  %v14938_v35 = vcombine.high %v5579_v57, %v5587_v0 }
 0x872   : > { %v14940_v47 = vcombine.high %v5580_v60, %v5588_v40  ;;  %v14939_v16 = vcombine.low %v5580_v60, %v5588_v40 }
 0x873   : > { %8840 = vmatpush1.bf16.msra.mxu1 %v14841_v14  ;;  %v5595_v14 = vld [vmem:[%s18059_s17 + $0x8a0] sm:$0xff] }
 0x874   : > { %8926 = vmatpush1.bf16.msra.mxu0 %v14843_v9  ;;  %8841 = vmatprep.subr.bf16.mxu1 %v14858_v48  ;;  %v5603_v9 = vld [vmem:[%s18059_s17 + $0x8e0] sm:$0xff]  ;;  %v14937_v48 = vcombine.low %v5579_v57, %v5587_v0 }
 0x875   : > { %8927 = vmatprep.subr.bf16.mxu0 %v14860_v5  ;;  %v5596_v5 = vld [vmem:[%s18059_s17 + $0x8a8] sm:$0xff]  ;;  %v14954_v52 = vcombine.high %v5595_v14, %v5603_v9  ;;  %v14953_v20 = vcombine.low %v5595_v14, %v5603_v9  ;;  %v19358_v0 = vld [vmem:[%s18064_s5] sm:$0xff] }
 0x876   : > { %v14955_v61 = vcombine.low %v5596_v5, %v5604_v53  ;;  %v5846_v14 = vrot.slane %v19358_v0, %v18597_v2  ;;  %v5676_v9 = vld [vmem:[%s18059_s17 + $0xb28] sm:$0xff] }
 0x877   : > { %8842 = vmatpush1.bf16.msra.mxu1 %v14857_v18  ;;  %v5619_v18 = vld [vmem:[%s18059_s17 + $0x960] sm:$0xff] }
 0x878   : > { %8928 = vmatpush1.bf16.msra.mxu0 %v14859_v19  ;;  %8843 = vmatprep.subr.bf16.mxu1 %v14874_v24  ;;  %v14956_v19 = vcombine.high %v5596_v5, %v5604_v53  ;;  %v5612_v24 = vld [vmem:[%s18059_s17 + $0x928] sm:$0xff]  ;;  %v14970_v21 = vcombine.high %v5611_v17, %v5619_v18  ;;  %v14969_v36 = vcombine.low %v5611_v17, %v5619_v18  ;;  %v5691_v18 = vld [vmem:[%s18059_s17 + $0xba0] sm:$0xff] }
 0x879   : > { %8929 = vmatprep.subr.bf16.mxu0 %v14876_v22  ;;  %v5620_v22 = vld [vmem:[%s18059_s17 + $0x968] sm:$0xff]  ;;  %v5842_v5 = vrot.slane %v19358_v0, %v18594_v1  ;;  %v5850_v53 = vrot.slane %v19358_v0, %v18602_v6 }
 0x87a   : > { %v14972_v27 = vcombine.high %v5612_v24, %v5620_v22  ;;  %v14971_v42 = vcombine.low %v5612_v24, %v5620_v22 }
 0x87b   : > { %8844 = vmatpush1.bf16.msra.mxu1 %v14873_v54  ;;  %v5627_v54 = vld [vmem:[%s18059_s17 + $0x9a0] sm:$0xff] }
 0x87c   : > { %8930 = vmatpush1.bf16.msra.mxu0 %v14875_v55  ;;  %8845 = vmatprep.subr.bf16.mxu1 %v14890_v34  ;;  %v5635_v55 = vld [vmem:[%s18059_s17 + $0x9e0] sm:$0xff]  ;;  %v5628_v34 = vld [vmem:[%s18059_s17 + $0x9a8] sm:$0xff] }
 0x87d   : > { %8931 = vmatprep.subr.bf16.mxu0 %v14892_v33  ;;  %v5636_v33 = vld [vmem:[%s18059_s17 + $0x9e8] sm:$0xff]  ;;  %v14986_v3 = vcombine.high %v5627_v54, %v5635_v55  ;;  %v14985_v51 = vcombine.low %v5627_v54, %v5635_v55 }
 0x87e   : > { %v14988_v44 = vcombine.high %v5628_v34, %v5636_v33  ;;  %v14987_v10 = vcombine.low %v5628_v34, %v5636_v33  ;;  %v5692_v34 = vld [vmem:[%s18059_s17 + $0xba8] sm:$0xff] }
 0x87f   : > { %8846 = vmatpush1.bf16.msra.mxu1 %v14889_v62  ;;  %v5643_v62 = vld [vmem:[%s18059_s17 + $0xa20] sm:$0xff]  ;;  %v5700_v33 = vld [vmem:[%s18059_s17 + $0xbe8] sm:$0xff] }
 0x880   : > { %8932 = vmatpush1.bf16.msra.mxu0 %v14891_v7  ;;  %8847 = vmatprep.subr.bf16.mxu1 %v14906_v8  ;;  %v5651_v7 = vld [vmem:[%s18059_s17 + $0xa60] sm:$0xff]  ;;  %v5644_v8 = vld [vmem:[%s18059_s17 + $0xa28] sm:$0xff] }
 0x881   : > { %8933 = vmatprep.subr.bf16.mxu0 %v14908_v49  ;;  %v5652_v49 = vld [vmem:[%s18059_s17 + $0xa68] sm:$0xff]  ;;  %v15002_v58 = vcombine.high %v5643_v62, %v5651_v7  ;;  %v15001_v57 = vcombine.low %v5643_v62, %v5651_v7 }
 0x882   : > { %v15004_v12 = vcombine.high %v5644_v8, %v5652_v49  ;;  %v15003_v60 = vcombine.low %v5644_v8, %v5652_v49 }
 0x883   : > { %8848 = vmatpush1.bf16.msra.mxu1 %v14905_v59  ;;  %v5659_v59 = vld [vmem:[%s18059_s17 + $0xaa0] sm:$0xff] }
 0x884   : > { %8934 = vmatpush1.bf16.msra.mxu0 %v14907_v32  ;;  %8849 = vmatprep.subr.bf16.mxu1 %v14922_v13  ;;  %v5667_v32 = vld [vmem:[%s18059_s17 + $0xae0] sm:$0xff]  ;;  %v5660_v13 = vld [vmem:[%s18059_s17 + $0xaa8] sm:$0xff] }
 0x885   : > { %8935 = vmatprep.subr.bf16.mxu0 %v14924_v56  ;;  %v5668_v56 = vld [vmem:[%s18059_s17 + $0xae8] sm:$0xff]  ;;  %v15018_v40 = vcombine.high %v5659_v59, %v5667_v32 }
 0x887   : > { %8850 = vmatpush1.bf16.msra.mxu1 %v14921_v4  ;;  %v15020_v4 = vcombine.high %v5660_v13, %v5668_v56 }
 0x888   : > { %8936 = vmatpush1.bf16.msra.mxu0 %v14923_v63  ;;  %8862 = vmatprep.subr.bf16.mxu1 %v14938_v35  ;;  %v5675_v63 = vld [vmem:[%s18059_s17 + $0xb20] sm:$0xff] }
 0x889   : > { %8948 = vmatprep.subr.bf16.mxu0 %v14940_v47  ;;  %v5683_v35 = vld [vmem:[%s18059_s17 + $0xb60] sm:$0xff]  ;;  %v5838_v47 = vrot.slane %v19358_v0, %v18506_v39 }
 0x88a   : > { %8852 = vmatmul.mubr.bf16.vlgmr.msra.gmra.mrb[32].mxu1 %v19045_v46  ;;  %v15034_v17 = vcombine.high %v5675_v63, %v5683_v35  ;;  %v15033_v55 = vcombine.low %v5675_v63, %v5683_v35  ;;  %v5708_v35 = vld [vmem:[%s18059_s17 + $0xc28] sm:$0xff] }
 0x88b   : > { %8938 = vmatmul.mubr.bf16.vlgmr.msra.gmra.mrb[32].mxu0 %v19045_v46  ;;  %8863 = vmatpush1.bf16.msra.mxu1 %v14937_v48  ;;  %v5684_v48 = vld [vmem:[%s18059_s17 + $0xb68] sm:$0xff] }
 0x88c   : > { %8894 = vmatprep.mubr.bf16.mxu1 %v19059_v11  ;;  %8949 = vmatpush1.bf16.msra.mxu0 %v14939_v16  ;;  %v15017_v16 = vcombine.low %v5659_v59, %v5667_v32  ;;  %v15035_v62 = vcombine.low %v5676_v9, %v5684_v48  ;;  %v15051_v32 = vcombine.low %v5692_v34, %v5700_v33 }
 0x88d   : > { %8980 = vmatprep.mubr.bf16.mxu0 %v19059_v11  ;;  %8864 = vmatprep.subr.bf16.mxu1 %v14954_v52  ;;  %v15019_v52 = vcombine.low %v5660_v13, %v5668_v56  ;;  %v15052_v13 = vcombine.high %v5692_v34, %v5700_v33  ;;  %v5707_v56 = vld [vmem:[%s18059_s17 + $0xc20] sm:$0xff] }
 0x88e   : > { %8950 = vmatprep.subr.bf16.mxu0 %v14956_v19  ;;  %v5699_v19 = vld [vmem:[%s18059_s17 + $0xbe0] sm:$0xff] }
 0x88f   : > { %8865 = vmatpush1.bf16.msra.mxu1 %v14953_v20  ;;  %v15036_v20 = vcombine.high %v5676_v9, %v5684_v48  ;;  %v15049_v7 = vcombine.low %v5691_v18, %v5699_v19  ;;  %v5739_v34 = vld [vmem:[%s18059_s17 + $0xd20] sm:$0xff] }
 0x890   : > { %8951 = vmatpush1.bf16.msra.mxu0 %v14955_v61  ;;  %8866 = vmatprep.subr.bf16.mxu1 %v14970_v21  ;;  %v5747_v33 = vld [vmem:[%s18059_s17 + $0xd60] sm:$0xff] }
 0x891   : > { %8952 = vmatprep.subr.bf16.mxu0 %v14972_v27 }
 0x893   : > { %8867 = vmatpush1.bf16.msra.mxu1 %v14969_v36 }
 0x894   : > { %8953 = vmatpush1.bf16.msra.mxu0 %v14971_v42  ;;  %8868 = vmatprep.subr.bf16.mxu1 %v14986_v3 }
 0x895   : > { %8954 = vmatprep.subr.bf16.mxu0 %v14988_v44 }
 0x897   : > { %8869 = vmatpush1.bf16.msra.mxu1 %v14985_v51 }
 0x898   : > { %8955 = vmatpush1.bf16.msra.mxu0 %v14987_v10  ;;  %8870 = vmatprep.subr.bf16.mxu1 %v15002_v58  ;;  %v15050_v58 = vcombine.high %v5691_v18, %v5699_v19 }
 0x899   : > { %8956 = vmatprep.subr.bf16.mxu0 %v15004_v12 }
 0x89b   : > { %8871 = vmatpush1.bf16.msra.mxu1 %v15001_v57  ;;  %v5715_v57 = vld [vmem:[%s18059_s17 + $0xc60] sm:$0xff] }
 0x89c   : > { %8957 = vmatpush1.bf16.msra.mxu0 %v15003_v60  ;;  %8872 = vmatprep.subr.bf16.mxu1 %v15018_v40 }
 0x89d   : > { %v8552_v24 = vpop.f32.mrb[24].mxu1  ;;  %v8638_v22 = vpop.f32.mrb[24].mxu0  ;;  %8958 = vmatprep.subr.bf16.mxu0 %v15020_v4 }
 0x89e   : > { %v15996_v61 = vadd.f32 %v8552_v24, %v5838_v47  ;;  %v16000_v21 = vadd.f32 %v8638_v22, %v5846_v14  ;;  %v8554_v27 = vpop.f32.mrb[25].mxu1  ;;  %v8640_v54 = vpop.f32.mrb[25].mxu0  ;;  %v5723_v24 = vld [vmem:[%s18059_s17 + $0xca0] sm:$0xff] }
 0x89f   : > { %v15997_v36 = vadd.f32 %v8554_v27, %v5842_v5  ;;  %v16001_v42 = vadd.f32 %v8640_v54, %v5850_v53  ;;  %v8556_v3 = vpop.f32.mrb[26].mxu1  ;;  %v8642_v44 = vpop.f32.mrb[26].mxu0  ;;  %8873 = vmatpush1.bf16.msra.mxu1 %v15017_v16  ;;  %v5731_v22 = vld [vmem:[%s18059_s17 + $0xce0] sm:$0xff] }
 0x8a0   : > { %v15998_v8 = vadd.f32 %v8556_v3, %v5838_v47  ;;  %v16002_v49 = vadd.f32 %v8642_v44, %v5846_v14  ;;  %8959 = vmatpush1.bf16.msra.mxu0 %v15019_v52  ;;  %v8558_v51 = vpop.f32.mrb[27].mxu1  ;;  %v8644_v10 = vpop.f32.mrb[27].mxu0  ;;  %8874 = vmatprep.subr.bf16.mxu1 %v15034_v17  ;;  %v9163_v60 = vmax.f32 %v15996_v61, 0.0  ;;  %v9165_v40 = vmax.f32 %v16000_v21, 0.0  ;;  %v5716_v47 = vld [vmem:[%s18059_s17 + $0xc68] sm:$0xff] }
 0x8a1   : > { %v15999_v12 = vadd.f32 %v8558_v51, %v5842_v5  ;;  %v16003_v59 = vadd.f32 %v8644_v10, %v5850_v53  ;;  %8960 = vmatprep.subr.bf16.mxu0 %v15036_v20  ;;  %v9164_v14 = vmax.f32 %v15997_v36, 0.0  ;;  %v9166_v9 = vmax.f32 %v16001_v42, 0.0  ;;  %v5724_v20 = vld [vmem:[%s18059_s17 + $0xca8] sm:$0xff] }
 0x8a2   : > { %v9179_v4 = vmax.f32 %v15998_v8, 0.0  ;;  %v9181_v63 = vmax.f32 %v16002_v49, 0.0  ;;  %v15066_v52 = vcombine.high %v5707_v56, %v5715_v57  ;;  %v15068_v19 = vcombine.high %v5708_v35, %v5716_v47  ;;  %v5732_v61 = vld [vmem:[%s18059_s17 + $0xce8] sm:$0xff]  ;;  %v5755_v8 = vld [vmem:[%s18059_s17 + $0xda0] sm:$0xff] }
 0x8a3   : > { %v9180_v48 = vmax.f32 %v15999_v12, 0.0  ;;  %v9182_v5 = vmax.f32 %v16003_v59, 0.0  ;;  %8875 = vmatpush1.bf16.msra.mxu1 %v15033_v55  ;;  %v15065_v21 = vcombine.low %v5707_v56, %v5715_v57  ;;  %v15067_v27 = vcombine.low %v5708_v35, %v5716_v47  ;;  %v5740_v36 = vld [vmem:[%s18059_s17 + $0xd28] sm:$0xff]  ;;  %v5763_v49 = vld [vmem:[%s18059_s17 + $0xde0] sm:$0xff] }
 0x8a4   : > { %v19380_v53 = vpack.c.bf16 %v9179_v4, %v9163_v60  ;;  %v19382_v16 = vpack.c.bf16 %v9181_v63, %v9165_v40  ;;  %8961 = vmatpush1.bf16.msra.mxu0 %v15035_v62  ;;  %8876 = vmatprep.subr.bf16.mxu1 %v15050_v58  ;;  %v15082_v54 = vcombine.high %v5723_v24, %v5731_v22  ;;  %v5748_v42 = vld [vmem:[%s18059_s17 + $0xd68] sm:$0xff]  ;;  %v5779_v56 = vld [vmem:[%s18059_s17 + $0xe60] sm:$0xff] }
 0x8a5   : > { %v19384_v17 = vpack.c.bf16 %v9180_v48, %v9164_v14  ;;  %v19386_v18 = vpack.c.bf16 %v9182_v5, %v9166_v9  ;;  %8962 = vmatprep.subr.bf16.mxu0 %v15052_v13  ;;  %v15084_v55 = vcombine.high %v5724_v20, %v5732_v61  ;;  %v15081_v3 = vcombine.low %v5723_v24, %v5731_v22  ;;  %v5756_v51 = vld [vmem:[%s18059_s17 + $0xda8] sm:$0xff]  ;;  %v5771_v13 = vld [vmem:[%s18059_s17 + $0xe20] sm:$0xff] }
 0x8a6   : > { %v15083_v44 = vcombine.low %v5724_v20, %v5732_v61  ;;  %v15098_v62 = vcombine.high %v5739_v34, %v5747_v33  ;;  %v5764_v10 = vld [vmem:[%s18059_s17 + $0xde8] sm:$0xff]  ;;  %v15097_v58 = vcombine.low %v5739_v34, %v5747_v33  ;;  %v15099_v12 = vcombine.low %v5740_v36, %v5748_v42  ;;  %v5787_v47 = vld [vmem:[%s18059_s17 + $0xea0] sm:$0xff] }
 0x8a7   : > { %8877 = vmatpush1.bf16.msra.mxu1 %v15049_v7  ;;  %v15100_v7 = vcombine.high %v5740_v36, %v5748_v42  ;;  %v15114_v59 = vcombine.high %v5755_v8, %v5763_v49  ;;  %v5772_v57 = vld [vmem:[%s18059_s17 + $0xe28] sm:$0xff]  ;;  %v15113_v40 = vcombine.low %v5755_v8, %v5763_v49  ;;  %v15115_v4 = vcombine.low %v5756_v51, %v5764_v10  ;;  %v5795_v14 = vld [vmem:[%s18059_s17 + $0xee0] sm:$0xff]  ;;  %v5325_v49 = vld [vmem:[%s18059_s17 + $0x30] sm:$0xff] }
 0x8a8   : > { %8963 = vmatpush1.bf16.msra.mxu0 %v15051_v32  ;;  %8878 = vmatprep.subr.bf16.mxu1 %v15066_v52  ;;  %v15116_v32 = vcombine.high %v5756_v51, %v5764_v10  ;;  %v5780_v60 = vld [vmem:[%s18059_s17 + $0xe68] sm:$0xff]  ;;  %v15130_v63 = vcombine.high %v5771_v13, %v5779_v56  ;;  %v15129_v5 = vcombine.low %v5771_v13, %v5779_v56  ;;  %v5803_v22 = vld [vmem:[%s18059_s17 + $0xf20] sm:$0xff]  ;;  %v5333_v51 = vld [vmem:[%s18059_s17 + $0x70] sm:$0xff] }
 0x8a9   : > { %8964 = vmatprep.subr.bf16.mxu0 %v15068_v19  ;;  %v15132_v35 = vcombine.high %v5772_v57, %v5780_v60  ;;  %v5788_v9 = vld [vmem:[%s18059_s17 + $0xea8] sm:$0xff]  ;;  %v15131_v52 = vcombine.low %v5772_v57, %v5780_v60  ;;  %v15146_v19 = vcombine.high %v5787_v47, %v5795_v14  ;;  %v5811_v20 = vld [vmem:[%s18059_s17 + $0xf60] sm:$0xff]  ;;  %v5326_v10 = vld [vmem:[%s18059_s17 + $0x38] sm:$0xff]  ;;  %v14685_v60 = vcombine.low %v5325_v49, %v5333_v51 }
 0x8aa   : > { %v5796_v48 = vld [vmem:[%s18059_s17 + $0xee8] sm:$0xff]  ;;  %v5819_v33 = vld [vmem:[%s18059_s17 + $0xfa0] sm:$0xff]  ;;  %v5341_v56 = vld [vmem:[%s18059_s17 + $0xb0] sm:$0xff] }
 0x8ab   : > { %8879 = vmatpush1.bf16.msra.mxu1 %v15065_v21  ;;  %v15148_v24 = vcombine.high %v5788_v9, %v5796_v48  ;;  %v5804_v61 = vld [vmem:[%s18059_s17 + $0xf28] sm:$0xff]  ;;  %v5827_v36 = vld [vmem:[%s18059_s17 + $0xfe0] sm:$0xff]  ;;  %v5349_v57 = vld [vmem:[%s18059_s17 + $0xf0] sm:$0xff] }
 0x8ac   : > { %8965 = vmatpush1.bf16.msra.mxu0 %v15067_v27  ;;  %8880 = vmatprep.subr.bf16.mxu1 %v15082_v54  ;;  %v5812_v21 = vld [vmem:[%s18059_s17 + $0xf68] sm:$0xff]  ;;  %v15145_v27 = vcombine.low %v5787_v47, %v5795_v14  ;;  %v15147_v54 = vcombine.low %v5788_v9, %v5796_v48  ;;  %v5357_v47 = vld [vmem:[%s18059_s17 + $0x130] sm:$0xff]  ;;  %v5358_v48 = vld [vmem:[%s18059_s17 + $0x138] sm:$0xff] }
 0x8ad   : > { %8966 = vmatprep.subr.bf16.mxu0 %v15084_v55  ;;  %v15162_v55 = vcombine.high %v5803_v22, %v5811_v20  ;;  %v15164_v34 = vcombine.high %v5804_v61, %v5812_v21  ;;  %v5820_v42 = vld [vmem:[%s18059_s17 + $0xfa8] sm:$0xff]  ;;  %v5365_v14 = vld [vmem:[%s18059_s17 + $0x170] sm:$0xff] }
 0x8af   : > { %8881 = vmatpush1.bf16.msra.mxu1 %v15081_v3  ;;  %v5828_v3 = vld [vmem:[%s18059_s17 + $0xfe8] sm:$0xff] }
 0x8b0   : > { %8967 = vmatpush1.bf16.msra.mxu0 %v15083_v44  ;;  %8882 = vmatprep.subr.bf16.mxu1 %v15098_v62  ;;  %v15161_v44 = vcombine.low %v5803_v22, %v5811_v20  ;;  %v15163_v62 = vcombine.low %v5804_v61, %v5812_v21  ;;  %v15180_v8 = vcombine.high %v5820_v42, %v5828_v3  ;;  %v5373_v20 = vld [vmem:[%s18059_s17 + $0x1b0] sm:$0xff]  ;;  %v5374_v21 = vld [vmem:[%s18059_s17 + $0x1b8] sm:$0xff] }
 0x8b1   : > { %8968 = vmatprep.subr.bf16.mxu0 %v15100_v7  ;;  %v15178_v7 = vcombine.high %v5819_v33, %v5827_v36  ;;  %v5381_v61 = vld [vmem:[%s18059_s17 + $0x1f0] sm:$0xff] }
 0x8b3   : > { %8883 = vmatpush1.bf16.msra.mxu1 %v15097_v58  ;;  %v5334_v58 = vld [vmem:[%s18059_s17 + $0x78] sm:$0xff] }
 0x8b4   : > { %8969 = vmatpush1.bf16.msra.mxu0 %v15099_v12  ;;  %8884 = vmatprep.subr.bf16.mxu1 %v15114_v59  ;;  %v15177_v12 = vcombine.low %v5819_v33, %v5827_v36  ;;  %v15179_v59 = vcombine.low %v5820_v42, %v5828_v3  ;;  %v14688_v13 = vcombine.high %v5326_v10, %v5334_v58  ;;  %v5389_v33 = vld [vmem:[%s18059_s17 + $0x230] sm:$0xff]  ;;  %v5390_v42 = vld [vmem:[%s18059_s17 + $0x238] sm:$0xff] }
 0x8b5   : > { %8970 = vmatprep.subr.bf16.mxu0 %v15116_v32  ;;  %v14686_v32 = vcombine.high %v5325_v49, %v5333_v51  ;;  %v5397_v36 = vld [vmem:[%s18059_s17 + $0x270] sm:$0xff]  ;;  %v5398_v3 = vld [vmem:[%s18059_s17 + $0x278] sm:$0xff] }
 0x8b6   : > { %v5405_v49 = vld [vmem:[%s18059_s17 + $0x2b0] sm:$0xff] }
 0x8b7   : > { %8885 = vmatpush1.bf16.msra.mxu1 %v15113_v40  ;;  %v5342_v40 = vld [vmem:[%s18059_s17 + $0xb8] sm:$0xff]  ;;  %v5413_v51 = vld [vmem:[%s18059_s17 + $0x2f0] sm:$0xff] }
 0x8b8   : > { %8971 = vmatpush1.bf16.msra.mxu0 %v15115_v4  ;;  %8886 = vmatprep.subr.bf16.mxu1 %v15130_v63  ;;  %v5350_v4 = vld [vmem:[%s18059_s17 + $0xf8] sm:$0xff]  ;;  %v14687_v63 = vcombine.low %v5326_v10, %v5334_v58 }
 0x8b9   : > { %8972 = vmatprep.subr.bf16.mxu0 %v15132_v35  ;;  %v14702_v35 = vcombine.high %v5341_v56, %v5349_v57  ;;  %v14704_v9 = vcombine.high %v5342_v40, %v5350_v4  ;;  %v5406_v10 = vld [vmem:[%s18059_s17 + $0x2b8] sm:$0xff] }
 0x8ba   : > { %v5414_v58 = vld [vmem:[%s18059_s17 + $0x2f8] sm:$0xff] }
 0x8bb   : > { %8887 = vmatpush1.bf16.msra.mxu1 %v15129_v5  ;;  %v5366_v5 = vld [vmem:[%s18059_s17 + $0x178] sm:$0xff] }
 0x8bc   : > { %8973 = vmatpush1.bf16.msra.mxu0 %v15131_v52  ;;  %8888 = vmatprep.subr.bf16.mxu1 %v15146_v19  ;;  %v14701_v52 = vcombine.low %v5341_v56, %v5349_v57  ;;  %v14703_v19 = vcombine.low %v5342_v40, %v5350_v4  ;;  %v14720_v22 = vcombine.high %v5358_v48, %v5366_v5  ;;  %v5421_v56 = vld [vmem:[%s18059_s17 + $0x330] sm:$0xff]  ;;  %v5430_v40 = vld [vmem:[%s18059_s17 + $0x378] sm:$0xff] }
 0x8bd   : > { %8974 = vmatprep.subr.bf16.mxu0 %v15148_v24  ;;  %v14718_v24 = vcombine.high %v5357_v47, %v5365_v14  ;;  %v5429_v57 = vld [vmem:[%s18059_s17 + $0x370] sm:$0xff]  ;;  %v14765_v4 = vcombine.low %v5405_v49, %v5413_v51 }
 0x8bf   : > { %8889 = vmatpush1.bf16.msra.mxu1 %v15145_v27  ;;  %v5382_v27 = vld [vmem:[%s18059_s17 + $0x1f8] sm:$0xff] }
 0x8c0   : > { %8975 = vmatpush1.bf16.msra.mxu0 %v15147_v54  ;;  %8890 = vmatprep.subr.bf16.mxu1 %v15162_v55  ;;  %v14717_v54 = vcombine.low %v5357_v47, %v5365_v14  ;;  %v14719_v55 = vcombine.low %v5358_v48, %v5366_v5  ;;  %v5437_v14 = vld [vmem:[%s18059_s17 + $0x3b0] sm:$0xff]  ;;  %v5438_v48 = vld [vmem:[%s18059_s17 + $0x3b8] sm:$0xff] }
 0x8c1   : > { %8976 = vmatprep.subr.bf16.mxu0 %v15164_v34  ;;  %v14734_v34 = vcombine.high %v5373_v20, %v5381_v61  ;;  %v5446_v5 = vld [vmem:[%s18059_s17 + $0x3f8] sm:$0xff] }
 0x8c3   : > { %8891 = vmatpush1.bf16.msra.mxu1 %v15161_v44  ;;  %v14733_v44 = vcombine.low %v5373_v20, %v5381_v61  ;;  %v5453_v20 = vld [vmem:[%s18059_s17 + $0x430] sm:$0xff] }
 0x8c4   : > { %8977 = vmatpush1.bf16.msra.mxu0 %v15163_v62  ;;  %8892 = vmatprep.subr.bf16.mxu1 %v15178_v7  ;;  %v14735_v62 = vcombine.low %v5374_v21, %v5382_v27  ;;  %v14750_v7 = vcombine.high %v5389_v33, %v5397_v36  ;;  %v5461_v61 = vld [vmem:[%s18059_s17 + $0x470] sm:$0xff] }
 0x8c5   : > { %8978 = vmatprep.subr.bf16.mxu0 %v15180_v8  ;;  %v14752_v8 = vcombine.high %v5390_v42, %v5398_v3 }
 0x8c7   : > { %8893 = vmatpush1.bf16.msra.mxu1 %v15177_v12  ;;  %v14749_v12 = vcombine.low %v5389_v33, %v5397_v36  ;;  %v5469_v33 = vld [vmem:[%s18059_s17 + $0x4b0] sm:$0xff] }
 0x8c8   : > { %8979 = vmatpush1.bf16.msra.mxu0 %v15179_v59  ;;  %8991 = vmatprep.subr.bf16.mxu1 %v14686_v32  ;;  %v14751_v59 = vcombine.low %v5390_v42, %v5398_v3  ;;  %v14766_v32 = vcombine.high %v5405_v49, %v5413_v51  ;;  %v5477_v36 = vld [vmem:[%s18059_s17 + $0x4f0] sm:$0xff]  ;;  %v5470_v42 = vld [vmem:[%s18059_s17 + $0x4b8] sm:$0xff] }
 0x8c9   : > { %9077 = vmatprep.subr.bf16.mxu0 %v14688_v13  ;;  %v14768_v13 = vcombine.high %v5406_v10, %v5414_v58  ;;  %v5478_v3 = vld [vmem:[%s18059_s17 + $0x4f8] sm:$0xff]  ;;  %v5485_v49 = vld [vmem:[%s18059_s17 + $0x530] sm:$0xff] }
 0x8ca   : > { %8895 = vmatmul.mubr.bf16.vlgmr.msra.gmra.mrb[32].mxu1 %v19131_v43  ;;  %v5493_v51 = vld [vmem:[%s18059_s17 + $0x570] sm:$0xff] }
 0x8cb   : > { %8981 = vmatmul.mubr.bf16.vlgmr.msra.gmra.mrb[32].mxu0 %v19131_v43  ;;  %8992 = vmatpush1.bf16.msra.mxu1 %v14685_v60  ;;  %v5422_v60 = vld [vmem:[%s18059_s17 + $0x338] sm:$0xff] }
 0x8cc   : > { %9023 = vmatprep.mubr.bf16.mxu1 %v19041_v41  ;;  %9078 = vmatpush1.bf16.msra.mxu0 %v14687_v63  ;;  %v14767_v63 = vcombine.low %v5406_v10, %v5414_v58  ;;  %v14784_v47 = vcombine.high %v5422_v60, %v5430_v40  ;;  %v5486_v10 = vld [vmem:[%s18059_s17 + $0x538] sm:$0xff] }
 0x8cd   : > { %9109 = vmatprep.mubr.bf16.mxu0 %v19041_v41  ;;  %8993 = vmatprep.subr.bf16.mxu1 %v14702_v35  ;;  %v14736_v41 = vcombine.high %v5374_v21, %v5382_v27  ;;  %v14782_v35 = vcombine.high %v5421_v56, %v5429_v57  ;;  %v5454_v21 = vld [vmem:[%s18059_s17 + $0x438] sm:$0xff] }
 0x8ce   : > { %9079 = vmatprep.subr.bf16.mxu0 %v14704_v9  ;;  %v5445_v9 = vld [vmem:[%s18059_s17 + $0x3f0] sm:$0xff]  ;;  %v5462_v27 = vld [vmem:[%s18059_s17 + $0x478] sm:$0xff] }
 0x8cf   : > { %8994 = vmatpush1.bf16.msra.mxu1 %v14701_v52  ;;  %v14781_v52 = vcombine.low %v5421_v56, %v5429_v57  ;;  %v5494_v58 = vld [vmem:[%s18059_s17 + $0x578] sm:$0xff]  ;;  %v5501_v56 = vld [vmem:[%s18059_s17 + $0x5b0] sm:$0xff] }
 0x8d0   : > { %9080 = vmatpush1.bf16.msra.mxu0 %v14703_v19  ;;  %8995 = vmatprep.subr.bf16.mxu1 %v14718_v24  ;;  %v14783_v19 = vcombine.low %v5422_v60, %v5430_v40  ;;  %v14798_v24 = vcombine.high %v5437_v14, %v5445_v9  ;;  %v5509_v57 = vld [vmem:[%s18059_s17 + $0x5f0] sm:$0xff]  ;;  %v5502_v60 = vld [vmem:[%s18059_s17 + $0x5b8] sm:$0xff] }
 0x8d1   : > { %9081 = vmatprep.subr.bf16.mxu0 %v14720_v22  ;;  %v14800_v22 = vcombine.high %v5438_v48, %v5446_v5  ;;  %v5510_v40 = vld [vmem:[%s18059_s17 + $0x5f8] sm:$0xff] }
 0x8d3   : > { %8996 = vmatpush1.bf16.msra.mxu1 %v14717_v54  ;;  %v14797_v54 = vcombine.low %v5437_v14, %v5445_v9  ;;  %v5517_v14 = vld [vmem:[%s18059_s17 + $0x630] sm:$0xff] }
 0x8d4   : > { %9082 = vmatpush1.bf16.msra.mxu0 %v14719_v55  ;;  %8997 = vmatprep.subr.bf16.mxu1 %v14734_v34  ;;  %v14799_v55 = vcombine.low %v5438_v48, %v5446_v5  ;;  %v14814_v34 = vcombine.high %v5453_v20, %v5461_v61  ;;  %v5525_v9 = vld [vmem:[%s18059_s17 + $0x670] sm:$0xff]  ;;  %v5518_v48 = vld [vmem:[%s18059_s17 + $0x638] sm:$0xff] }
 0x8d5   : > { %9083 = vmatprep.subr.bf16.mxu0 %v14736_v41  ;;  %v14816_v41 = vcombine.high %v5454_v21, %v5462_v27  ;;  %v5526_v5 = vld [vmem:[%s18059_s17 + $0x678] sm:$0xff] }
 0x8d7   : > { %8998 = vmatpush1.bf16.msra.mxu1 %v14733_v44  ;;  %v14813_v44 = vcombine.low %v5453_v20, %v5461_v61  ;;  %v5533_v20 = vld [vmem:[%s18059_s17 + $0x6b0] sm:$0xff] }
 0x8d8   : > { %9084 = vmatpush1.bf16.msra.mxu0 %v14735_v62  ;;  %8999 = vmatprep.subr.bf16.mxu1 %v14750_v7  ;;  %v14815_v62 = vcombine.low %v5454_v21, %v5462_v27  ;;  %v14830_v7 = vcombine.high %v5469_v33, %v5477_v36  ;;  %v5541_v61 = vld [vmem:[%s18059_s17 + $0x6f0] sm:$0xff]  ;;  %v5534_v21 = vld [vmem:[%s18059_s17 + $0x6b8] sm:$0xff] }
 0x8d9   : > { %9085 = vmatprep.subr.bf16.mxu0 %v14752_v8  ;;  %v14832_v8 = vcombine.high %v5470_v42, %v5478_v3  ;;  %v5542_v27 = vld [vmem:[%s18059_s17 + $0x6f8] sm:$0xff] }
 0x8db   : > { %9000 = vmatpush1.bf16.msra.mxu1 %v14749_v12  ;;  %v14829_v12 = vcombine.low %v5469_v33, %v5477_v36  ;;  %v5549_v33 = vld [vmem:[%s18059_s17 + $0x730] sm:$0xff] }
 0x8dc   : > { %9086 = vmatpush1.bf16.msra.mxu0 %v14751_v59  ;;  %9001 = vmatprep.subr.bf16.mxu1 %v14766_v32  ;;  %v14831_v59 = vcombine.low %v5470_v42, %v5478_v3  ;;  %v14846_v32 = vcombine.high %v5485_v49, %v5493_v51  ;;  %v5557_v36 = vld [vmem:[%s18059_s17 + $0x770] sm:$0xff]  ;;  %v5550_v42 = vld [vmem:[%s18059_s17 + $0x738] sm:$0xff] }
 0x8dd   : > { %9087 = vmatprep.subr.bf16.mxu0 %v14768_v13  ;;  %v14848_v13 = vcombine.high %v5486_v10, %v5494_v58  ;;  %v5558_v3 = vld [vmem:[%s18059_s17 + $0x778] sm:$0xff] }
 0x8df   : > { %9002 = vmatpush1.bf16.msra.mxu1 %v14765_v4  ;;  %v14845_v4 = vcombine.low %v5485_v49, %v5493_v51  ;;  %v5565_v49 = vld [vmem:[%s18059_s17 + $0x7b0] sm:$0xff] }
 0x8e0   : > { %9088 = vmatpush1.bf16.msra.mxu0 %v14767_v63  ;;  %9003 = vmatprep.subr.bf16.mxu1 %v14782_v35  ;;  %v14847_v63 = vcombine.low %v5486_v10, %v5494_v58  ;;  %v14862_v35 = vcombine.high %v5501_v56, %v5509_v57  ;;  %v5573_v51 = vld [vmem:[%s18059_s17 + $0x7f0] sm:$0xff]  ;;  %v5566_v10 = vld [vmem:[%s18059_s17 + $0x7b8] sm:$0xff] }
 0x8e1   : > { %9089 = vmatprep.subr.bf16.mxu0 %v14784_v47  ;;  %v14864_v47 = vcombine.high %v5502_v60, %v5510_v40  ;;  %v5574_v58 = vld [vmem:[%s18059_s17 + $0x7f8] sm:$0xff] }
 0x8e3   : > { %9004 = vmatpush1.bf16.msra.mxu1 %v14781_v52  ;;  %v14861_v52 = vcombine.low %v5501_v56, %v5509_v57  ;;  %v5581_v56 = vld [vmem:[%s18059_s17 + $0x830] sm:$0xff] }
 0x8e4   : > { %9090 = vmatpush1.bf16.msra.mxu0 %v14783_v19  ;;  %9005 = vmatprep.subr.bf16.mxu1 %v14798_v24  ;;  %v14863_v19 = vcombine.low %v5502_v60, %v5510_v40  ;;  %v14878_v24 = vcombine.high %v5517_v14, %v5525_v9  ;;  %v5589_v57 = vld [vmem:[%s18059_s17 + $0x870] sm:$0xff]  ;;  %v5582_v60 = vld [vmem:[%s18059_s17 + $0x838] sm:$0xff] }
 0x8e5   : > { %9091 = vmatprep.subr.bf16.mxu0 %v14800_v22  ;;  %v14880_v22 = vcombine.high %v5518_v48, %v5526_v5  ;;  %v5590_v40 = vld [vmem:[%s18059_s17 + $0x878] sm:$0xff] }
 0x8e7   : > { %9006 = vmatpush1.bf16.msra.mxu1 %v14797_v54  ;;  %v14877_v54 = vcombine.low %v5517_v14, %v5525_v9  ;;  %v5597_v14 = vld [vmem:[%s18059_s17 + $0x8b0] sm:$0xff] }
 0x8e8   : > { %9092 = vmatpush1.bf16.msra.mxu0 %v14799_v55  ;;  %9007 = vmatprep.subr.bf16.mxu1 %v14814_v34  ;;  %v14879_v55 = vcombine.low %v5518_v48, %v5526_v5  ;;  %v14894_v34 = vcombine.high %v5533_v20, %v5541_v61  ;;  %v5605_v9 = vld [vmem:[%s18059_s17 + $0x8f0] sm:$0xff]  ;;  %v14941_v48 = vcombine.low %v5581_v56, %v5589_v57  ;;  %v5598_v5 = vld [vmem:[%s18059_s17 + $0x8b8] sm:$0xff] }
 0x8e9   : > { %9093 = vmatprep.subr.bf16.mxu0 %v14816_v41  ;;  %v14896_v41 = vcombine.high %v5534_v21, %v5542_v27 }
 0x8eb   : > { %9008 = vmatpush1.bf16.msra.mxu1 %v14813_v44  ;;  %v14893_v44 = vcombine.low %v5533_v20, %v5541_v61  ;;  %v5621_v20 = vld [vmem:[%s18059_s17 + $0x970] sm:$0xff] }
 0x8ec   : > { %9094 = vmatpush1.bf16.msra.mxu0 %v14815_v62  ;;  %9009 = vmatprep.subr.bf16.mxu1 %v14830_v7  ;;  %v14895_v62 = vcombine.low %v5534_v21, %v5542_v27  ;;  %v14910_v7 = vcombine.high %v5549_v33, %v5557_v36  ;;  %v5614_v21 = vld [vmem:[%s18059_s17 + $0x938] sm:$0xff] }
 0x8ed   : > { %9095 = vmatprep.subr.bf16.mxu0 %v14832_v8  ;;  %v14912_v8 = vcombine.high %v5550_v42, %v5558_v3  ;;  %v5622_v27 = vld [vmem:[%s18059_s17 + $0x978] sm:$0xff] }
 0x8ef   : > { %9010 = vmatpush1.bf16.msra.mxu1 %v14829_v12  ;;  %v14909_v12 = vcombine.low %v5549_v33, %v5557_v36  ;;  %v5629_v33 = vld [vmem:[%s18059_s17 + $0x9b0] sm:$0xff] }
 0x8f0   : > { %9096 = vmatpush1.bf16.msra.mxu0 %v14831_v59  ;;  %9011 = vmatprep.subr.bf16.mxu1 %v14846_v32  ;;  %v14911_v59 = vcombine.low %v5550_v42, %v5558_v3  ;;  %v14926_v32 = vcombine.high %v5565_v49, %v5573_v51  ;;  %v5637_v36 = vld [vmem:[%s18059_s17 + $0x9f0] sm:$0xff]  ;;  %v5630_v42 = vld [vmem:[%s18059_s17 + $0x9b8] sm:$0xff] }
 0x8f1   : > { %9097 = vmatprep.subr.bf16.mxu0 %v14848_v13  ;;  %v14928_v13 = vcombine.high %v5566_v10, %v5574_v58 }
 0x8f3   : > { %9012 = vmatpush1.bf16.msra.mxu1 %v14845_v4  ;;  %v14925_v4 = vcombine.low %v5565_v49, %v5573_v51  ;;  %v5646_v49 = vld [vmem:[%s18059_s17 + $0xa38] sm:$0xff] }
 0x8f4   : > { %9098 = vmatpush1.bf16.msra.mxu0 %v14847_v63  ;;  %9013 = vmatprep.subr.bf16.mxu1 %v14862_v35  ;;  %v14927_v63 = vcombine.low %v5566_v10, %v5574_v58  ;;  %v14942_v35 = vcombine.high %v5581_v56, %v5589_v57  ;;  %v5654_v51 = vld [vmem:[%s18059_s17 + $0xa78] sm:$0xff]  ;;  %v14989_v10 = vcombine.low %v5629_v33, %v5637_v36 }
 0x8f5   : > { %9099 = vmatprep.subr.bf16.mxu0 %v14864_v47  ;;  %v14944_v47 = vcombine.high %v5582_v60, %v5590_v40  ;;  %v5662_v56 = vld [vmem:[%s18059_s17 + $0xab8] sm:$0xff] }
 0x8f6   : > { %v5670_v57 = vld [vmem:[%s18059_s17 + $0xaf8] sm:$0xff] }
 0x8f7   : > { %9014 = vmatpush1.bf16.msra.mxu1 %v14861_v52  ;;  %v5606_v52 = vld [vmem:[%s18059_s17 + $0x8f8] sm:$0xff] }
 0x8f8   : > { %9100 = vmatpush1.bf16.msra.mxu0 %v14863_v19  ;;  %9015 = vmatprep.subr.bf16.mxu1 %v14878_v24  ;;  %v14943_v19 = vcombine.low %v5582_v60, %v5590_v40  ;;  %v14958_v24 = vcombine.high %v5597_v14, %v5605_v9  ;;  %v14960_v61 = vcombine.high %v5598_v5, %v5606_v52 }
 0x8f9   : > { %9101 = vmatprep.subr.bf16.mxu0 %v14880_v22  ;;  %v5613_v22 = vld [vmem:[%s18059_s17 + $0x930] sm:$0xff]  ;;  %v15007_v40 = vcombine.low %v5646_v49, %v5654_v51 }
 0x8fa   : > { %v14973_v3 = vcombine.low %v5613_v22, %v5621_v20 }
 0x8fb   : > { %9016 = vmatpush1.bf16.msra.mxu1 %v14877_v54  ;;  %v14957_v54 = vcombine.low %v5597_v14, %v5605_v9  ;;  %v5854_v14 = vrot.slane %v19358_v0, %v18574_v38  ;;  %v5678_v9 = vld [vmem:[%s18059_s17 + $0xb38] sm:$0xff] }
 0x8fc   : > { %9102 = vmatpush1.bf16.msra.mxu0 %v14879_v55  ;;  %9017 = vmatprep.subr.bf16.mxu1 %v14894_v34  ;;  %v14959_v55 = vcombine.low %v5598_v5, %v5606_v52  ;;  %v14974_v34 = vcombine.high %v5613_v22, %v5621_v20  ;;  %v5862_v5 = vrot.slane %v19358_v0, %v18577_v29 }
 0x8fd   : > { %9103 = vmatprep.subr.bf16.mxu0 %v14896_v41  ;;  %v14976_v41 = vcombine.high %v5614_v21, %v5622_v27  ;;  %v5858_v52 = vrot.slane %v19358_v0, %v18580_v30  ;;  %v15023_v22 = vcombine.low %v5662_v56, %v5670_v57 }
 0x8ff   : > { %9018 = vmatpush1.bf16.msra.mxu1 %v14893_v44  ;;  %v14975_v44 = vcombine.low %v5614_v21, %v5622_v27  ;;  %v5693_v27 = vld [vmem:[%s18059_s17 + $0xbb0] sm:$0xff] }
 0x900   : > { %9104 = vmatpush1.bf16.msra.mxu0 %v14895_v62  ;;  %9019 = vmatprep.subr.bf16.mxu1 %v14910_v7  ;;  %v14990_v62 = vcombine.high %v5629_v33, %v5637_v36  ;;  %v5645_v7 = vld [vmem:[%s18059_s17 + $0xa30] sm:$0xff]  ;;  %v5694_v33 = vld [vmem:[%s18059_s17 + $0xbb8] sm:$0xff] }
 0x901   : > { %9105 = vmatprep.subr.bf16.mxu0 %v14912_v8  ;;  %v5653_v8 = vld [vmem:[%s18059_s17 + $0xa70] sm:$0xff]  ;;  %v5702_v36 = vld [vmem:[%s18059_s17 + $0xbf8] sm:$0xff] }
 0x902   : > { %v15005_v60 = vcombine.low %v5645_v7, %v5653_v8 }
 0x903   : > { %9020 = vmatpush1.bf16.msra.mxu1 %v14909_v12  ;;  %v15006_v12 = vcombine.high %v5645_v7, %v5653_v8 }
 0x904   : > { %9106 = vmatpush1.bf16.msra.mxu0 %v14911_v59  ;;  %9021 = vmatprep.subr.bf16.mxu1 %v14926_v32  ;;  %v15008_v59 = vcombine.high %v5646_v49, %v5654_v51  ;;  %v5661_v32 = vld [vmem:[%s18059_s17 + $0xab0] sm:$0xff] }
 0x905   : > { %9107 = vmatprep.subr.bf16.mxu0 %v14928_v13  ;;  %v5669_v13 = vld [vmem:[%s18059_s17 + $0xaf0] sm:$0xff] }
 0x907   : > { %9022 = vmatpush1.bf16.msra.mxu1 %v14925_v4  ;;  %v15022_v4 = vcombine.high %v5661_v32, %v5669_v13 }
 0x908   : > { %9108 = vmatpush1.bf16.msra.mxu0 %v14927_v63  ;;  %9034 = vmatprep.subr.bf16.mxu1 %v14942_v35  ;;  %v15024_v63 = vcombine.high %v5662_v56, %v5670_v57  ;;  %v5677_v35 = vld [vmem:[%s18059_s17 + $0xb30] sm:$0xff] }
 0x909   : > { %9120 = vmatprep.subr.bf16.mxu0 %v14944_v47  ;;  %v5685_v47 = vld [vmem:[%s18059_s17 + $0xb70] sm:$0xff] }
 0x90a   : > { %9024 = vmatmul.mubr.bf16.vlgmr.msra.gmra.mrb[36].mxu1 %v19045_v46  ;;  %v15038_v20 = vcombine.high %v5677_v35, %v5685_v47  ;;  %v5717_v56 = vld [vmem:[%s18059_s17 + $0xc70] sm:$0xff] }
 0x90b   : > { %9110 = vmatmul.mubr.bf16.vlgmr.msra.gmra.mrb[36].mxu0 %v19045_v46  ;;  %9035 = vmatpush1.bf16.msra.mxu1 %v14941_v48  ;;  %v5638_v46 = vld [vmem:[%s18059_s17 + $0x9f8] sm:$0xff] }
 0x90c   : > { %9066 = vmatprep.mubr.bf16.mxu1 %v19059_v11  ;;  %9121 = vmatpush1.bf16.msra.mxu0 %v14943_v19  ;;  %v14991_v58 = vcombine.low %v5630_v42, %v5638_v46  ;;  %v5686_v48 = vld [vmem:[%s18059_s17 + $0xb78] sm:$0xff]  ;;  %v15021_v19 = vcombine.low %v5661_v32, %v5669_v13  ;;  %v15056_v32 = vcombine.high %v5694_v33, %v5702_v36  ;;  %v5709_v13 = vld [vmem:[%s18059_s17 + $0xc30] sm:$0xff] }
 0x90d   : > { %9152 = vmatprep.mubr.bf16.mxu0 %v19059_v11  ;;  %9036 = vmatprep.subr.bf16.mxu1 %v14958_v24  ;;  %v14992_v11 = vcombine.high %v5630_v42, %v5638_v46  ;;  %v5866_v24 = vrot.slane %v19358_v0, %v18583_v25  ;;  %v15040_v21 = vcombine.high %v5678_v9, %v5686_v48 }
 0x90e   : > { %9122 = vmatprep.subr.bf16.mxu0 %v14960_v61  ;;  %v15037_v0 = vcombine.low %v5677_v35, %v5685_v47  ;;  %v5718_v35 = vld [vmem:[%s18059_s17 + $0xc78] sm:$0xff] }
 0x90f   : > { %9037 = vmatpush1.bf16.msra.mxu1 %v14957_v54  ;;  %v5701_v54 = vld [vmem:[%s18059_s17 + $0xbf0] sm:$0xff] }
 0x910   : > { %9123 = vmatpush1.bf16.msra.mxu0 %v14959_v55  ;;  %9038 = vmatprep.subr.bf16.mxu1 %v14974_v34  ;;  %v15054_v51 = vcombine.high %v5693_v27, %v5701_v54 }
 0x911   : > { %9124 = vmatprep.subr.bf16.mxu0 %v14976_v41 }
 0x913   : > { %9039 = vmatpush1.bf16.msra.mxu1 %v14973_v3 }
 0x914   : > { %9125 = vmatpush1.bf16.msra.mxu0 %v14975_v44  ;;  %9040 = vmatprep.subr.bf16.mxu1 %v14990_v62  ;;  %v15039_v62 = vcombine.low %v5678_v9, %v5686_v48 }
 0x915   : > { %9126 = vmatprep.subr.bf16.mxu0 %v14992_v11 }
 0x917   : > { %9041 = vmatpush1.bf16.msra.mxu1 %v14989_v10 }
 0x918   : > { %9127 = vmatpush1.bf16.msra.mxu0 %v14991_v58  ;;  %9042 = vmatprep.subr.bf16.mxu1 %v15006_v12 }
 0x919   : > { %9128 = vmatprep.subr.bf16.mxu0 %v15008_v59  ;;  %v15053_v59 = vcombine.low %v5693_v27, %v5701_v54  ;;  %v5733_v27 = vld [vmem:[%s18059_s17 + $0xcf0] sm:$0xff] }
 0x91b   : > { %9043 = vmatpush1.bf16.msra.mxu1 %v15005_v60 }
 0x91c   : > { %9129 = vmatpush1.bf16.msra.mxu0 %v15007_v40  ;;  %9044 = vmatprep.subr.bf16.mxu1 %v15022_v4  ;;  %v15055_v4 = vcombine.low %v5694_v33, %v5702_v36 }
 0x91d   : > { %v8724_v61 = vpop.f32.mrb[28].mxu1  ;;  %9130 = vmatprep.subr.bf16.mxu0 %v15024_v63  ;;  %v5710_v63 = vld [vmem:[%s18059_s17 + $0xc38] sm:$0xff] }
 0x91e   : > { %v16004_v55 = vadd.f32 %v8724_v61, %v5854_v14  ;;  %v8810_v34 = vpop.f32.mrb[28].mxu0  ;;  %v8726_v41 = vpop.f32.mrb[29].mxu1  ;;  %v15072_v61 = vcombine.high %v5710_v63, %v5718_v35  ;;  %v15071_v33 = vcombine.low %v5710_v63, %v5718_v35 }
 0x91f   : > { %v16008_v42 = vadd.f32 %v8810_v34, %v5862_v5  ;;  %v16005_v46 = vadd.f32 %v8726_v41, %v5858_v52  ;;  %v8812_v3 = vpop.f32.mrb[29].mxu0  ;;  %v8728_v44 = vpop.f32.mrb[30].mxu1  ;;  %9045 = vmatpush1.bf16.msra.mxu1 %v15021_v19  ;;  %v5734_v34 = vld [vmem:[%s18059_s17 + $0xcf8] sm:$0xff]  ;;  %v15069_v41 = vcombine.low %v5709_v13, %v5717_v56 }
 0x920   : > { %v16009_v11 = vadd.f32 %v8812_v3, %v5866_v24  ;;  %v16006_v7 = vadd.f32 %v8728_v44, %v5854_v14  ;;  %v8814_v8 = vpop.f32.mrb[30].mxu0  ;;  %9131 = vmatpush1.bf16.msra.mxu0 %v15023_v22  ;;  %v8730_v49 = vpop.f32.mrb[31].mxu1  ;;  %9046 = vmatprep.subr.bf16.mxu1 %v15038_v20  ;;  %v9167_v57 = vmax.f32 %v16004_v55, 0.0  ;;  %v15070_v22 = vcombine.high %v5709_v13, %v5717_v56  ;;  %v5726_v55 = vld [vmem:[%s18059_s17 + $0xcb8] sm:$0xff]  ;;  %v5749_v3 = vld [vmem:[%s18059_s17 + $0xd70] sm:$0xff] }
 0x921   : > { %v16010_v10 = vadd.f32 %v8814_v8, %v5862_v5  ;;  %v16007_v58 = vadd.f32 %v8730_v49, %v5858_v52  ;;  %v8816_v12 = vpop.f32.mrb[31].mxu0  ;;  %9132 = vmatprep.subr.bf16.mxu0 %v15040_v21  ;;  %v9169_v47 = vmax.f32 %v16008_v42, 0.0  ;;  %v9168_v14 = vmax.f32 %v16005_v46, 0.0  ;;  %v5725_v21 = vld [vmem:[%s18059_s17 + $0xcb0] sm:$0xff]  ;;  %v5742_v44 = vld [vmem:[%s18059_s17 + $0xd38] sm:$0xff] }
 0x922   : > { %v9183_v60 = vmax.f32 %v16006_v7, 0.0  ;;  %v16011_v40 = vadd.f32 %v8816_v12, %v5866_v24  ;;  %v9170_v5 = vmax.f32 %v16009_v11, 0.0  ;;  %v15086_v36 = vcombine.high %v5725_v21, %v5733_v27  ;;  %v5741_v46 = vld [vmem:[%s18059_s17 + $0xd30] sm:$0xff] }
 0x923   : > { %v9185_v9 = vmax.f32 %v16010_v10, 0.0  ;;  %v9184_v48 = vmax.f32 %v16007_v58, 0.0  ;;  %9047 = vmatpush1.bf16.msra.mxu1 %v15037_v0  ;;  %v15088_v42 = vcombine.high %v5726_v55, %v5734_v34  ;;  %v5750_v0 = vld [vmem:[%s18059_s17 + $0xd78] sm:$0xff]  ;;  %v15087_v11 = vcombine.low %v5726_v55, %v5734_v34  ;;  %v5757_v49 = vld [vmem:[%s18059_s17 + $0xdb0] sm:$0xff] }
 0x924   : > { %v19532_v52 = vpack.c.bf16 %v9183_v60, %v9167_v57  ;;  %v9186_v19 = vmax.f32 %v16011_v40, 0.0  ;;  %9133 = vmatpush1.bf16.msra.mxu0 %v15039_v62  ;;  %9048 = vmatprep.subr.bf16.mxu1 %v15054_v51  ;;  %v15085_v62 = vcombine.low %v5725_v21, %v5733_v27  ;;  %v15102_v7 = vcombine.high %v5741_v46, %v5749_v3  ;;  %v5765_v51 = vld [vmem:[%s18059_s17 + $0xdf0] sm:$0xff]  ;;  %v5758_v10 = vld [vmem:[%s18059_s17 + $0xdb8] sm:$0xff] }
 0x925   : > { %v19534_v24 = vpack.c.bf16 %v9185_v9, %v9169_v47  ;;  %v19536_v20 = vpack.c.bf16 %v9184_v48, %v9168_v14  ;;  %9134 = vmatprep.subr.bf16.mxu0 %v15056_v32  ;;  %v15104_v8 = vcombine.high %v5742_v44, %v5750_v0  ;;  %v5766_v58 = vld [vmem:[%s18059_s17 + $0xdf8] sm:$0xff]  ;;  %v15101_v12 = vcombine.low %v5741_v46, %v5749_v3  ;;  %v5773_v56 = vld [vmem:[%s18059_s17 + $0xe30] sm:$0xff] }
 0x926   : > { %v19540_v54 = vpack.c.bf16 %v9186_v19, %v9170_v5  ;;  %v15118_v32 = vcombine.high %v5757_v49, %v5765_v51  ;;  %v15120_v13 = vcombine.high %v5758_v10, %v5766_v58  ;;  %v5781_v57 = vld [vmem:[%s18059_s17 + $0xe70] sm:$0xff]  ;;  %v5774_v60 = vld [vmem:[%s18059_s17 + $0xe38] sm:$0xff]  ;;  %v15119_v63 = vcombine.low %v5758_v10, %v5766_v58 }
 0x927   : > { %9049 = vmatpush1.bf16.msra.mxu1 %v15053_v59  ;;  %v15103_v59 = vcombine.low %v5742_v44, %v5750_v0  ;;  %v5782_v40 = vld [vmem:[%s18059_s17 + $0xe78] sm:$0xff]  ;;  %v15134_v35 = vcombine.high %v5773_v56, %v5781_v57  ;;  %v5789_v14 = vld [vmem:[%s18059_s17 + $0xeb0] sm:$0xff]  ;;  %v15133_v19 = vcombine.low %v5773_v56, %v5781_v57 }
 0x928   : > { %9135 = vmatpush1.bf16.msra.mxu0 %v15055_v4  ;;  %9050 = vmatprep.subr.bf16.mxu1 %v15070_v22  ;;  %v15117_v4 = vcombine.low %v5757_v49, %v5765_v51  ;;  %v15136_v47 = vcombine.high %v5774_v60, %v5782_v40  ;;  %v5797_v9 = vld [vmem:[%s18059_s17 + $0xef0] sm:$0xff]  ;;  %v5790_v48 = vld [vmem:[%s18059_s17 + $0xeb8] sm:$0xff]  ;;  %v15135_v22 = vcombine.low %v5774_v60, %v5782_v40 }
 0x929   : > { %9136 = vmatprep.subr.bf16.mxu0 %v15072_v61  ;;  %v5798_v5 = vld [vmem:[%s18059_s17 + $0xef8] sm:$0xff]  ;;  %v15150_v61 = vcombine.high %v5789_v14, %v5797_v9  ;;  %v5805_v27 = vld [vmem:[%s18059_s17 + $0xf30] sm:$0xff] }
 0x92a   : > { %v15152_v21 = vcombine.high %v5790_v48, %v5798_v5  ;;  %v5813_v55 = vld [vmem:[%s18059_s17 + $0xf70] sm:$0xff]  ;;  %v5806_v34 = vld [vmem:[%s18059_s17 + $0xf38] sm:$0xff] }
 0x92b   : > { %9051 = vmatpush1.bf16.msra.mxu1 %v15069_v41  ;;  %v5814_v41 = vld [vmem:[%s18059_s17 + $0xf78] sm:$0xff]  ;;  %v5821_v3 = vld [vmem:[%s18059_s17 + $0xfb0] sm:$0xff] }
 0x92c   : > { %9137 = vmatpush1.bf16.msra.mxu0 %v15071_v33  ;;  %9052 = vmatprep.subr.bf16.mxu1 %v15086_v36  ;;  %v15149_v33 = vcombine.low %v5789_v14, %v5797_v9  ;;  %v15151_v36 = vcombine.low %v5790_v48, %v5798_v5  ;;  %v15168_v46 = vcombine.high %v5806_v34, %v5814_v41  ;;  %v5829_v44 = vld [vmem:[%s18059_s17 + $0xff0] sm:$0xff]  ;;  %v5822_v0 = vld [vmem:[%s18059_s17 + $0xfb8] sm:$0xff] }
 0x92d   : > { %9138 = vmatprep.subr.bf16.mxu0 %v15088_v42  ;;  %v15166_v42 = vcombine.high %v5805_v27, %v5813_v55  ;;  %v15181_v51 = vcombine.low %v5821_v3, %v5829_v44  ;;  %v16946_v58 = vld [vmem:[%s18069_s6 + $0x4] ss:$16 sps:$4 sm:$0xff]   ;;  %v16955_v56 = vld [vmem:[%s18069_s6 + $0x2c] ss:$16 sps:$4 sm:$0xff]   ;;  %v16950_v57 = vld [vmem:[%s18069_s6 + $0x20] ss:$16 sps:$4 sm:$0xff]  }
 0x92e   : > { %v16953_v60 = vld [vmem:[%s18069_s6 + $0x28] ss:$16 sps:$4 sm:$0xff]   ;;  %v16958_v40 = vld [vmem:[%s18069_s6 + $0x44] ss:$16 sps:$4 sm:$0xff]   ;;  %v16973_v48 = vld [vmem:[%s18069_s6 + $0x8c] ss:$16 sps:$4 sm:$0xff]  }
 0x92f   : > { %9053 = vmatpush1.bf16.msra.mxu1 %v15085_v62  ;;  %v5830_v62 = vld [vmem:[%s18059_s17 + $0xff8] sm:$0xff]  ;;  %v16970_v9 = vld [vmem:[%s18069_s6 + $0x84] ss:$16 sps:$4 sm:$0xff]   ;;  %v16968_v5 = vld [vmem:[%s18069_s6 + $0x80] ss:$16 sps:$4 sm:$0xff]  }
 0x930   : > { %9139 = vmatpush1.bf16.msra.mxu0 %v15087_v11  ;;  %9054 = vmatprep.subr.bf16.mxu1 %v15102_v7  ;;  %v15165_v11 = vcombine.low %v5805_v27, %v5813_v55  ;;  %v15167_v7 = vcombine.low %v5806_v34, %v5814_v41  ;;  %v15184_v49 = vcombine.high %v5822_v0, %v5830_v62  ;;  %v16965_v14 = vld [vmem:[%s18069_s6 + $0x68] ss:$16 sps:$4 sm:$0xff]   ;;  %v16982_v55 = vld [vmem:[%s18069_s6 + $0xc4] ss:$16 sps:$4 sm:$0xff]   ;;  %v16985_v34 = vld [vmem:[%s18069_s6 + $0xcc] ss:$16 sps:$4 sm:$0xff]  }
 0x931   : > { %9140 = vmatprep.subr.bf16.mxu0 %v15104_v8  ;;  %v15182_v8 = vcombine.high %v5821_v3, %v5829_v44  ;;  %v15183_v10 = vcombine.low %v5822_v0, %v5830_v62  ;;  %v16977_v27 = vld [vmem:[%s18069_s6 + $0xa8] ss:$16 sps:$4 sm:$0xff]   ;;  %v16980_v41 = vld [vmem:[%s18069_s6 + $0xc0] ss:$16 sps:$4 sm:$0xff]   ;;  %v16994_v44 = vld [vmem:[%s18069_s6 + $0x104] ss:$16 sps:$4 sm:$0xff]  }
 0x932   : > { %v16989_v3 = vld [vmem:[%s18069_s6 + $0xe8] ss:$16 sps:$4 sm:$0xff]   ;;  %v16997_v0 = vld [vmem:[%s18069_s6 + $0x10c] ss:$16 sps:$4 sm:$0xff]   ;;  %v16992_v62 = vld [vmem:[%s18069_s6 + $0x100] ss:$16 sps:$4 sm:$0xff]  }
 0x933   : > { %9055 = vmatpush1.bf16.msra.mxu1 %v15101_v12  ;;  %v16949_v12 = vld [vmem:[%s18069_s6 + $0xc] ss:$16 sps:$4 sm:$0xff]  }
 0x934   : > { %9141 = vmatpush1.bf16.msra.mxu0 %v15103_v59  ;;  %9056 = vmatprep.subr.bf16.mxu1 %v15118_v32  ;;  %v16944_v59 = vld [vmem:[%s18069_s6] ss:$16 sps:$4 sm:$0xff]   ;;  %v16947_v32 = vld [vmem:[%s18069_s6 + $0x8] ss:$16 sps:$4 sm:$0xff]  }
 0x935   : > { %9142 = vmatprep.subr.bf16.mxu0 %v15120_v13  ;;  %v16952_v13 = vld [vmem:[%s18069_s6 + $0x24] ss:$16 sps:$4 sm:$0xff]  }
 0x937   : > { %9057 = vmatpush1.bf16.msra.mxu1 %v15117_v4  ;;  %v16961_v4 = vld [vmem:[%s18069_s6 + $0x4c] ss:$16 sps:$4 sm:$0xff]  }
 0x938   : > { %9143 = vmatpush1.bf16.msra.mxu0 %v15119_v63  ;;  %9058 = vmatprep.subr.bf16.mxu1 %v15134_v35  ;;  %v16959_v63 = vld [vmem:[%s18069_s6 + $0x48] ss:$16 sps:$4 sm:$0xff]   ;;  %v16964_v35 = vld [vmem:[%s18069_s6 + $0x64] ss:$16 sps:$4 sm:$0xff]  }
 0x939   : > { %9144 = vmatprep.subr.bf16.mxu0 %v15136_v47  ;;  %v16967_v47 = vld [vmem:[%s18069_s6 + $0x6c] ss:$16 sps:$4 sm:$0xff]  }
 0x93b   : > { %9059 = vmatpush1.bf16.msra.mxu1 %v15133_v19  ;;  %v16971_v19 = vld [vmem:[%s18069_s6 + $0x88] ss:$16 sps:$4 sm:$0xff]  }
 0x93c   : > { %9145 = vmatpush1.bf16.msra.mxu0 %v15135_v22  ;;  %9060 = vmatprep.subr.bf16.mxu1 %v15150_v61  ;;  %v16976_v22 = vld [vmem:[%s18069_s6 + $0xa4] ss:$16 sps:$4 sm:$0xff]   ;;  %v16979_v61 = vld [vmem:[%s18069_s6 + $0xac] ss:$16 sps:$4 sm:$0xff]  }
 0x93d   : > { %9146 = vmatprep.subr.bf16.mxu0 %v15152_v21  ;;  %v16974_v21 = vld [vmem:[%s18069_s6 + $0xa0] ss:$16 sps:$4 sm:$0xff]  }
 0x93f   : > { %9061 = vmatpush1.bf16.msra.mxu1 %v15149_v33  ;;  %v16983_v33 = vld [vmem:[%s18069_s6 + $0xc8] ss:$16 sps:$4 sm:$0xff]  }
 0x940   : > { %9147 = vmatpush1.bf16.msra.mxu0 %v15151_v36  ;;  %9062 = vmatprep.subr.bf16.mxu1 %v15166_v42  ;;  %v16988_v36 = vld [vmem:[%s18069_s6 + $0xe4] ss:$16 sps:$4 sm:$0xff]   ;;  %v16991_v42 = vld [vmem:[%s18069_s6 + $0xec] ss:$16 sps:$4 sm:$0xff]  }
 0x941   : > { %9148 = vmatprep.subr.bf16.mxu0 %v15168_v46  ;;  %v16986_v46 = vld [vmem:[%s18069_s6 + $0xe0] ss:$16 sps:$4 sm:$0xff]  }
 0x943   : > { %9063 = vmatpush1.bf16.msra.mxu1 %v15165_v11  ;;  %v16995_v11 = vld [vmem:[%s18069_s6 + $0x108] ss:$16 sps:$4 sm:$0xff]  }
 0x944   : > { %9149 = vmatpush1.bf16.msra.mxu0 %v15167_v7  ;;  %9064 = vmatprep.subr.bf16.mxu1 %v15182_v8  ;;  %v17000_v7 = vld [vmem:[%s18069_s6 + $0x124] ss:$16 sps:$4 sm:$0xff]   ;;  %v17003_v8 = vld [vmem:[%s18069_s6 + $0x12c] ss:$16 sps:$4 sm:$0xff]  }
 0x945   : > { %9150 = vmatprep.subr.bf16.mxu0 %v15184_v49  ;;  %v16998_v49 = vld [vmem:[%s18069_s6 + $0x120] ss:$16 sps:$4 sm:$0xff]  }
 0x947   : > { %9065 = vmatpush1.bf16.msra.mxu1 %v15181_v51  ;;  %v17001_v51 = vld [vmem:[%s18069_s6 + $0x128] ss:$16 sps:$4 sm:$0xff]  }
 0x948   : > { %9151 = vmatpush1.bf16.msra.mxu0 %v15183_v10  ;;  %12305 = vmatprep.subr.bf16.mxu1 %v16946_v58  ;;  %v17006_v10 = vld [vmem:[%s18069_s6 + $0x144] ss:$16 sps:$4 sm:$0xff]   ;;  %v17009_v58 = vld [vmem:[%s18069_s6 + $0x14c] ss:$16 sps:$4 sm:$0xff]  }
 0x949   : > { %12649 = vmatprep.subr.bf16.mxu0 %v16949_v12  ;;  %v17004_v12 = vld [vmem:[%s18069_s6 + $0x140] ss:$16 sps:$4 sm:$0xff]  }
 0x94a   : > { %9067 = vmatmul.mubr.bf16.vlgmr.msra.gmra.mrb[36].mxu1 %v19131_v43 }
 0x94b   : > { %9153 = vmatmul.mubr.bf16.vlgmr.msra.gmra.mrb[36].mxu0 %v19131_v43  ;;  %12306 = vmatpush1.bf16.msra.mxu1 %v16944_v59  ;;  %v16956_v43 = vld [vmem:[%s18069_s6 + $0x40] ss:$16 sps:$4 sm:$0xff]   ;;  %v17007_v59 = vld [vmem:[%s18069_s6 + $0x148] ss:$16 sps:$4 sm:$0xff]  }
 0x94c   : > { %12337 = vmatprep.mubr.bf16.mxu1 %v19384_v17  ;;  %12650 = vmatpush1.bf16.msra.mxu0 %v16947_v32  ;;  %v17012_v32 = vld [vmem:[%s18069_s6 + $0x164] ss:$16 sps:$4 sm:$0xff]  }
 0x94d   : > { %12681 = vmatprep.mubr.bf16.mxu0 %v19384_v17  ;;  %12307 = vmatprep.subr.bf16.mxu1 %v16952_v13  ;;  %v16962_v17 = vld [vmem:[%s18069_s6 + $0x60] ss:$16 sps:$4 sm:$0xff]   ;;  %v17015_v13 = vld [vmem:[%s18069_s6 + $0x16c] ss:$16 sps:$4 sm:$0xff]  }
 0x94e   : > { %12651 = vmatprep.subr.bf16.mxu0 %v16955_v56  ;;  %v17010_v56 = vld [vmem:[%s18069_s6 + $0x160] ss:$16 sps:$4 sm:$0xff]  }
 0x94f   : > { %12308 = vmatpush1.bf16.msra.mxu1 %v16950_v57  ;;  %v17013_v57 = vld [vmem:[%s18069_s6 + $0x168] ss:$16 sps:$4 sm:$0xff]  }
 0x950   : > { %12652 = vmatpush1.bf16.msra.mxu0 %v16953_v60  ;;  %12309 = vmatprep.subr.bf16.mxu1 %v16958_v40  ;;  %v17018_v60 = vld [vmem:[%s18069_s6 + $0x184] ss:$16 sps:$4 sm:$0xff]   ;;  %v17021_v40 = vld [vmem:[%s18069_s6 + $0x18c] ss:$16 sps:$4 sm:$0xff]  }
 0x951   : > { %12653 = vmatprep.subr.bf16.mxu0 %v16961_v4  ;;  %v17016_v4 = vld [vmem:[%s18069_s6 + $0x180] ss:$16 sps:$4 sm:$0xff]  }
 0x953   : > { %12310 = vmatpush1.bf16.msra.mxu1 %v16956_v43  ;;  %v17019_v43 = vld [vmem:[%s18069_s6 + $0x188] ss:$16 sps:$4 sm:$0xff]  }
 0x954   : > { %12654 = vmatpush1.bf16.msra.mxu0 %v16959_v63  ;;  %12311 = vmatprep.subr.bf16.mxu1 %v16964_v35  ;;  %v17024_v63 = vld [vmem:[%s18069_s6 + $0x1a4] ss:$16 sps:$4 sm:$0xff]   ;;  %v17027_v35 = vld [vmem:[%s18069_s6 + $0x1ac] ss:$16 sps:$4 sm:$0xff]  }
 0x955   : > { %12655 = vmatprep.subr.bf16.mxu0 %v16967_v47  ;;  %v17022_v47 = vld [vmem:[%s18069_s6 + $0x1a0] ss:$16 sps:$4 sm:$0xff]  }
 0x957   : > { %12312 = vmatpush1.bf16.msra.mxu1 %v16962_v17  ;;  %v17025_v17 = vld [vmem:[%s18069_s6 + $0x1a8] ss:$16 sps:$4 sm:$0xff]  }
 0x958   : > { %12656 = vmatpush1.bf16.msra.mxu0 %v16965_v14  ;;  %12313 = vmatprep.subr.bf16.mxu1 %v16970_v9  ;;  %v17030_v14 = vld [vmem:[%s18069_s6 + $0x1c4] ss:$16 sps:$4 sm:$0xff]   ;;  %v17033_v9 = vld [vmem:[%s18069_s6 + $0x1cc] ss:$16 sps:$4 sm:$0xff]  }
 0x959   : > { %12657 = vmatprep.subr.bf16.mxu0 %v16973_v48  ;;  %v17028_v48 = vld [vmem:[%s18069_s6 + $0x1c0] ss:$16 sps:$4 sm:$0xff]  }
 0x95b   : > { %12314 = vmatpush1.bf16.msra.mxu1 %v16968_v5  ;;  %v17031_v5 = vld [vmem:[%s18069_s6 + $0x1c8] ss:$16 sps:$4 sm:$0xff]  }
 0x95c   : > { %12658 = vmatpush1.bf16.msra.mxu0 %v16971_v19  ;;  %12315 = vmatprep.subr.bf16.mxu1 %v16976_v22  ;;  %v17036_v19 = vld [vmem:[%s18069_s6 + $0x1e4] ss:$16 sps:$4 sm:$0xff]   ;;  %v17039_v22 = vld [vmem:[%s18069_s6 + $0x1ec] ss:$16 sps:$4 sm:$0xff]  }
 0x95d   : > { %12659 = vmatprep.subr.bf16.mxu0 %v16979_v61  ;;  %v17034_v61 = vld [vmem:[%s18069_s6 + $0x1e0] ss:$16 sps:$4 sm:$0xff]  }
 0x95f   : > { %12316 = vmatpush1.bf16.msra.mxu1 %v16974_v21  ;;  %v17037_v21 = vld [vmem:[%s18069_s6 + $0x1e8] ss:$16 sps:$4 sm:$0xff]  }
 0x960   : > { %12660 = vmatpush1.bf16.msra.mxu0 %v16977_v27  ;;  %12317 = vmatprep.subr.bf16.mxu1 %v16982_v55  ;;  %v17042_v27 = vld [vmem:[%s18069_s6 + $0x204] ss:$16 sps:$4 sm:$0xff]   ;;  %v17045_v55 = vld [vmem:[%s18069_s6 + $0x20c] ss:$16 sps:$4 sm:$0xff]  }
 0x961   : > { %12661 = vmatprep.subr.bf16.mxu0 %v16985_v34  ;;  %v17040_v34 = vld [vmem:[%s18069_s6 + $0x200] ss:$16 sps:$4 sm:$0xff]  }
 0x963   : > { %12318 = vmatpush1.bf16.msra.mxu1 %v16980_v41  ;;  %v17043_v41 = vld [vmem:[%s18069_s6 + $0x208] ss:$16 sps:$4 sm:$0xff]  }
 0x964   : > { %12662 = vmatpush1.bf16.msra.mxu0 %v16983_v33  ;;  %12319 = vmatprep.subr.bf16.mxu1 %v16988_v36  ;;  %v17048_v33 = vld [vmem:[%s18069_s6 + $0x224] ss:$16 sps:$4 sm:$0xff]   ;;  %v17051_v36 = vld [vmem:[%s18069_s6 + $0x22c] ss:$16 sps:$4 sm:$0xff]  }
 0x965   : > { %12663 = vmatprep.subr.bf16.mxu0 %v16991_v42  ;;  %v17046_v42 = vld [vmem:[%s18069_s6 + $0x220] ss:$16 sps:$4 sm:$0xff]  }
 0x967   : > { %12320 = vmatpush1.bf16.msra.mxu1 %v16986_v46  ;;  %v17049_v46 = vld [vmem:[%s18069_s6 + $0x228] ss:$16 sps:$4 sm:$0xff]  }
 0x968   : > { %12664 = vmatpush1.bf16.msra.mxu0 %v16989_v3  ;;  %12321 = vmatprep.subr.bf16.mxu1 %v16994_v44  ;;  %v17054_v3 = vld [vmem:[%s18069_s6 + $0x244] ss:$16 sps:$4 sm:$0xff]   ;;  %v17057_v44 = vld [vmem:[%s18069_s6 + $0x24c] ss:$16 sps:$4 sm:$0xff]  }
 0x969   : > { %12665 = vmatprep.subr.bf16.mxu0 %v16997_v0  ;;  %v17055_v0 = vld [vmem:[%s18069_s6 + $0x248] ss:$16 sps:$4 sm:$0xff]  }
 0x96b   : > { %12322 = vmatpush1.bf16.msra.mxu1 %v16992_v62  ;;  %v17060_v62 = vld [vmem:[%s18069_s6 + $0x264] ss:$16 sps:$4 sm:$0xff]  }
 0x96c   : > { %12666 = vmatpush1.bf16.msra.mxu0 %v16995_v11  ;;  %12323 = vmatprep.subr.bf16.mxu1 %v17000_v7  ;;  %v17063_v11 = vld [vmem:[%s18069_s6 + $0x26c] ss:$16 sps:$4 sm:$0xff]   ;;  %v17061_v7 = vld [vmem:[%s18069_s6 + $0x268] ss:$16 sps:$4 sm:$0xff]  }
 0x96d   : > { %12667 = vmatprep.subr.bf16.mxu0 %v17003_v8  ;;  %v17066_v8 = vld [vmem:[%s18069_s6 + $0x284] ss:$16 sps:$4 sm:$0xff]  }
 0x96f   : > { %12324 = vmatpush1.bf16.msra.mxu1 %v16998_v49  ;;  %v17069_v49 = vld [vmem:[%s18069_s6 + $0x28c] ss:$16 sps:$4 sm:$0xff]  }
 0x970   : > { %12668 = vmatpush1.bf16.msra.mxu0 %v17001_v51  ;;  %12325 = vmatprep.subr.bf16.mxu1 %v17006_v10  ;;  %v17064_v51 = vld [vmem:[%s18069_s6 + $0x280] ss:$16 sps:$4 sm:$0xff]   ;;  %v19660_v10 = vld [vmem:[%s18064_s5 + $0x8] sm:$0xff] }
 0x971   : > { %12669 = vmatprep.subr.bf16.mxu0 %v17009_v58  ;;  %v17067_v58 = vld [vmem:[%s18069_s6 + $0x288] ss:$16 sps:$4 sm:$0xff]  }
 0x973   : > { %12326 = vmatpush1.bf16.msra.mxu1 %v17004_v12  ;;  %v17072_v12 = vld [vmem:[%s18069_s6 + $0x2a4] ss:$16 sps:$4 sm:$0xff]  }
 0x974   : > { %12670 = vmatpush1.bf16.msra.mxu0 %v17007_v59  ;;  %12327 = vmatprep.subr.bf16.mxu1 %v17012_v32  ;;  %v17075_v59 = vld [vmem:[%s18069_s6 + $0x2ac] ss:$16 sps:$4 sm:$0xff]   ;;  %v5870_v32 = vrot.slane %v19660_v10, %v18506_v39 }
 0x975   : > { %12671 = vmatprep.subr.bf16.mxu0 %v17015_v13  ;;  %v5878_v13 = vrot.slane %v19660_v10, %v18597_v2 }
 0x977   : > { %12328 = vmatpush1.bf16.msra.mxu1 %v17010_v56  ;;  %v5874_v56 = vrot.slane %v19660_v10, %v18594_v1 }
 0x978   : > { %12672 = vmatpush1.bf16.msra.mxu0 %v17013_v57  ;;  %12329 = vmatprep.subr.bf16.mxu1 %v17018_v60  ;;  %v17070_v57 = vld [vmem:[%s18069_s6 + $0x2a0] ss:$16 sps:$4 sm:$0xff]   ;;  %v5882_v60 = vrot.slane %v19660_v10, %v18602_v6 }
 0x979   : > { %12673 = vmatprep.subr.bf16.mxu0 %v17021_v40  ;;  %v17073_v40 = vld [vmem:[%s18069_s6 + $0x2a8] ss:$16 sps:$4 sm:$0xff]  }
 0x97b   : > { %12330 = vmatpush1.bf16.msra.mxu1 %v17016_v4  ;;  %v17078_v4 = vld [vmem:[%s18069_s6 + $0x2c4] ss:$16 sps:$4 sm:$0xff]  }
 0x97c   : > { %12674 = vmatpush1.bf16.msra.mxu0 %v17019_v43  ;;  %12331 = vmatprep.subr.bf16.mxu1 %v17024_v63  ;;  %v17081_v63 = vld [vmem:[%s18069_s6 + $0x2cc] ss:$16 sps:$4 sm:$0xff]  }
 0x97d   : > { %12675 = vmatprep.subr.bf16.mxu0 %v17027_v35 }
 0x97f   : > { %12332 = vmatpush1.bf16.msra.mxu1 %v17022_v47 }
 0x980   : > { %12676 = vmatpush1.bf16.msra.mxu0 %v17025_v17  ;;  %12333 = vmatprep.subr.bf16.mxu1 %v17030_v14 }
 0x981   : > { %12677 = vmatprep.subr.bf16.mxu0 %v17033_v9 }
 0x983   : > { %12334 = vmatpush1.bf16.msra.mxu1 %v17028_v48 }
 0x984   : > { %12678 = vmatpush1.bf16.msra.mxu0 %v17031_v5  ;;  %12335 = vmatprep.subr.bf16.mxu1 %v17036_v19  ;;  %v17076_v19 = vld [vmem:[%s18069_s6 + $0x2c0] ss:$16 sps:$4 sm:$0xff]  }
 0x985   : > { %12679 = vmatprep.subr.bf16.mxu0 %v17039_v22 }
 0x987   : > { %12336 = vmatpush1.bf16.msra.mxu1 %v17034_v61 }
 0x988   : > { %12680 = vmatpush1.bf16.msra.mxu0 %v17037_v21  ;;  %12348 = vmatprep.subr.bf16.mxu1 %v17042_v27 }
 0x989   : > { %12692 = vmatprep.subr.bf16.mxu0 %v17045_v55  ;;  %v17079_v55 = vld [vmem:[%s18069_s6 + $0x2c8] ss:$16 sps:$4 sm:$0xff]  }
 0x98a   : > { %12338 = vmatmul.mubr.bf16.vlgmr.msra.gmra.mrb[40].mxu1 %v19380_v53 }
 0x98b   : > { %12682 = vmatmul.mubr.bf16.vlgmr.msra.gmra.mrb[40].mxu0 %v19380_v53  ;;  %12349 = vmatpush1.bf16.msra.mxu1 %v17040_v34  ;;  %v17052_v53 = vld [vmem:[%s18069_s6 + $0x240] ss:$16 sps:$4 sm:$0xff]   ;;  %v17084_v34 = vld [vmem:[%s18069_s6 + $0x2e4] ss:$16 sps:$4 sm:$0xff]  }
 0x98c   : > { %12380 = vmatprep.mubr.bf16.mxu1 %v19386_v18  ;;  %12693 = vmatpush1.bf16.msra.mxu0 %v17043_v41 }
 0x98d   : > { %12724 = vmatprep.mubr.bf16.mxu0 %v19386_v18  ;;  %12350 = vmatprep.subr.bf16.mxu1 %v17048_v33  ;;  %v17058_v18 = vld [vmem:[%s18069_s6 + $0x260] ss:$16 sps:$4 sm:$0xff]  }
 0x98e   : > { %12694 = vmatprep.subr.bf16.mxu0 %v17051_v36 }
 0x98f   : > { %12351 = vmatpush1.bf16.msra.mxu1 %v17046_v42  ;;  %v17087_v42 = vld [vmem:[%s18069_s6 + $0x2ec] ss:$16 sps:$4 sm:$0xff]  }
 0x990   : > { %12695 = vmatpush1.bf16.msra.mxu0 %v17049_v46  ;;  %12352 = vmatprep.subr.bf16.mxu1 %v17054_v3 }
 0x991   : > { %12696 = vmatprep.subr.bf16.mxu0 %v17057_v44 }
 0x993   : > { %12353 = vmatpush1.bf16.msra.mxu1 %v17052_v53 }
 0x994   : > { %12697 = vmatpush1.bf16.msra.mxu0 %v17055_v0  ;;  %12354 = vmatprep.subr.bf16.mxu1 %v17060_v62 }
 0x995   : > { %12698 = vmatprep.subr.bf16.mxu0 %v17063_v11 }
 0x997   : > { %12355 = vmatpush1.bf16.msra.mxu1 %v17058_v18  ;;  %v17082_v18 = vld [vmem:[%s18069_s6 + $0x2e0] ss:$16 sps:$4 sm:$0xff]  }
 0x998   : > { %12699 = vmatpush1.bf16.msra.mxu0 %v17061_v7  ;;  %12356 = vmatprep.subr.bf16.mxu1 %v17066_v8 }
 0x999   : > { %12700 = vmatprep.subr.bf16.mxu0 %v17069_v49 }
 0x99b   : > { %12357 = vmatpush1.bf16.msra.mxu1 %v17064_v51  ;;  %v17085_v51 = vld [vmem:[%s18069_s6 + $0x2e8] ss:$16 sps:$4 sm:$0xff]  }
 0x99c   : > { %12701 = vmatpush1.bf16.msra.mxu0 %v17067_v58  ;;  %12358 = vmatprep.subr.bf16.mxu1 %v17072_v12  ;;  %v17090_v58 = vld [vmem:[%s18069_s6 + $0x304] ss:$16 sps:$4 sm:$0xff]  }
 0x99d   : > { %v8896_v43 = vpop.f32.mrb[32].mxu1  ;;  %12702 = vmatprep.subr.bf16.mxu0 %v17075_v59 }
 0x99e   : > { %v16012_v35 = vadd.f32 %v8896_v43, %v5870_v32  ;;  %v8982_v47 = vpop.f32.mrb[32].mxu0  ;;  %v8898_v17 = vpop.f32.mrb[33].mxu1  ;;  %v17097_v43 = vld [vmem:[%s18069_s6 + $0x328] ss:$16 sps:$4 sm:$0xff]  }
 0x99f   : > { %v16016_v14 = vadd.f32 %v8982_v47, %v5878_v13  ;;  %v16013_v9 = vadd.f32 %v8898_v17, %v5874_v56  ;;  %v8984_v48 = vpop.f32.mrb[33].mxu0  ;;  %v8900_v5 = vpop.f32.mrb[34].mxu1  ;;  %12359 = vmatpush1.bf16.msra.mxu1 %v17070_v57  ;;  %v17091_v57 = vld [vmem:[%s18069_s6 + $0x308] ss:$16 sps:$4 sm:$0xff]   ;;  %v17100_v47 = vld [vmem:[%s18069_s6 + $0x340] ss:$16 sps:$4 sm:$0xff]  }
 0x9a0   : > { %v16017_v22 = vadd.f32 %v8984_v48, %v5882_v60  ;;  %v16014_v61 = vadd.f32 %v8900_v5, %v5870_v32  ;;  %v8986_v21 = vpop.f32.mrb[34].mxu0  ;;  %12703 = vmatpush1.bf16.msra.mxu0 %v17073_v40  ;;  %v8902_v27 = vpop.f32.mrb[35].mxu1  ;;  %12360 = vmatprep.subr.bf16.mxu1 %v17078_v4  ;;  %v9171_v46 = vmax.f32 %v16012_v35, 0.0  ;;  %v17093_v32 = vld [vmem:[%s18069_s6 + $0x30c] ss:$16 sps:$4 sm:$0xff]  }
 0x9a1   : > { %v16018_v41 = vadd.f32 %v8986_v21, %v5878_v13  ;;  %v16015_v33 = vadd.f32 %v8902_v27, %v5874_v56  ;;  %v8988_v36 = vpop.f32.mrb[35].mxu0  ;;  %12704 = vmatprep.subr.bf16.mxu0 %v17081_v63  ;;  %v9173_v53 = vmax.f32 %v16016_v14, 0.0  ;;  %v9172_v0 = vmax.f32 %v16013_v9, 0.0  ;;  %v17088_v56 = vld [vmem:[%s18069_s6 + $0x300] ss:$16 sps:$4 sm:$0xff]  }
 0x9a2   : > { %v9187_v3 = vmax.f32 %v16014_v61, 0.0  ;;  %v16019_v44 = vadd.f32 %v8988_v36, %v5882_v60  ;;  %v9174_v7 = vmax.f32 %v16017_v22, 0.0  ;;  %v17096_v60 = vld [vmem:[%s18069_s6 + $0x324] ss:$16 sps:$4 sm:$0xff]   ;;  %v17099_v40 = vld [vmem:[%s18069_s6 + $0x32c] ss:$16 sps:$4 sm:$0xff]  }
 0x9a3   : > { %v9189_v62 = vmax.f32 %v16018_v41, 0.0  ;;  %v9188_v11 = vmax.f32 %v16015_v33, 0.0  ;;  %12361 = vmatpush1.bf16.msra.mxu1 %v17076_v19  ;;  %v17094_v4 = vld [vmem:[%s18069_s6 + $0x320] ss:$16 sps:$4 sm:$0xff]   ;;  %v17102_v63 = vld [vmem:[%s18069_s6 + $0x344] ss:$16 sps:$4 sm:$0xff]  }
 0x9a4   : > { %v19682_v8 = vpack.c.bf16 %v9187_v3, %v9171_v46  ;;  %v9190_v49 = vmax.f32 %v16019_v44, 0.0  ;;  %12705 = vmatpush1.bf16.msra.mxu0 %v17079_v55  ;;  %12362 = vmatprep.subr.bf16.mxu1 %v17084_v34  ;;  %v17105_v35 = vld [vmem:[%s18069_s6 + $0x34c] ss:$16 sps:$4 sm:$0xff]   ;;  %v17103_v17 = vld [vmem:[%s18069_s6 + $0x348] ss:$16 sps:$4 sm:$0xff]  }
 0x9a5   : > { %v19686_v12 = vpack.c.bf16 %v9189_v62, %v9173_v53  ;;  %v19688_v59 = vpack.c.bf16 %v9188_v11, %v9172_v0  ;;  %12706 = vmatprep.subr.bf16.mxu0 %v17087_v42  ;;  %v17108_v14 = vld [vmem:[%s18069_s6 + $0x364] ss:$16 sps:$4 sm:$0xff]   ;;  %v17111_v9 = vld [vmem:[%s18069_s6 + $0x36c] ss:$16 sps:$4 sm:$0xff]   ;;  %v17106_v48 = vld [vmem:[%s18069_s6 + $0x360] ss:$16 sps:$4 sm:$0xff]  }
 0x9a6   : > { %v19691_v13 = vpack.c.bf16 %v9190_v49, %v9174_v7  ;;  %v17109_v5 = vld [vmem:[%s18069_s6 + $0x368] ss:$16 sps:$4 sm:$0xff]   ;;  %v17114_v19 = vld [vmem:[%s18069_s6 + $0x384] ss:$16 sps:$4 sm:$0xff]   ;;  %v17117_v22 = vld [vmem:[%s18069_s6 + $0x38c] ss:$16 sps:$4 sm:$0xff]  }
 0x9a7   : > { %12363 = vmatpush1.bf16.msra.mxu1 %v17082_v18  ;;  %v17112_v61 = vld [vmem:[%s18069_s6 + $0x380] ss:$16 sps:$4 sm:$0xff]   ;;  %v17115_v21 = vld [vmem:[%s18069_s6 + $0x388] ss:$16 sps:$4 sm:$0xff]   ;;  %v17120_v27 = vld [vmem:[%s18069_s6 + $0x3a4] ss:$16 sps:$4 sm:$0xff]  }
 0x9a8   : > { %12707 = vmatpush1.bf16.msra.mxu0 %v17085_v51  ;;  %12364 = vmatprep.subr.bf16.mxu1 %v17090_v58  ;;  %v17123_v55 = vld [vmem:[%s18069_s6 + $0x3ac] ss:$16 sps:$4 sm:$0xff]   ;;  %v17118_v34 = vld [vmem:[%s18069_s6 + $0x3a0] ss:$16 sps:$4 sm:$0xff]   ;;  %v17121_v41 = vld [vmem:[%s18069_s6 + $0x3a8] ss:$16 sps:$4 sm:$0xff]  }
 0x9a9   : > { %12708 = vmatprep.subr.bf16.mxu0 %v17093_v32  ;;  %v17126_v33 = vld [vmem:[%s18069_s6 + $0x3c4] ss:$16 sps:$4 sm:$0xff]   ;;  %v17129_v36 = vld [vmem:[%s18069_s6 + $0x3cc] ss:$16 sps:$4 sm:$0xff]   ;;  %v17124_v42 = vld [vmem:[%s18069_s6 + $0x3c0] ss:$16 sps:$4 sm:$0xff]  }
 0x9aa   : > { %v17127_v46 = vld [vmem:[%s18069_s6 + $0x3c8] ss:$16 sps:$4 sm:$0xff]   ;;  %v17132_v3 = vld [vmem:[%s18069_s6 + $0x3e4] ss:$16 sps:$4 sm:$0xff]   ;;  %v17135_v44 = vld [vmem:[%s18069_s6 + $0x3ec] ss:$16 sps:$4 sm:$0xff]  }
 0x9ab   : > { %12365 = vmatpush1.bf16.msra.mxu1 %v17088_v56  ;;  %v17130_v53 = vld [vmem:[%s18069_s6 + $0x3e0] ss:$16 sps:$4 sm:$0xff]   ;;  %v17133_v0 = vld [vmem:[%s18069_s6 + $0x3e8] ss:$16 sps:$4 sm:$0xff]   ;;  %v17138_v62 = vld [vmem:[%s18069_s6 + $0x404] ss:$16 sps:$4 sm:$0xff]  }
 0x9ac   : > { %12709 = vmatpush1.bf16.msra.mxu0 %v17091_v57  ;;  %12366 = vmatprep.subr.bf16.mxu1 %v17096_v60  ;;  %v17141_v11 = vld [vmem:[%s18069_s6 + $0x40c] ss:$16 sps:$4 sm:$0xff]   ;;  %v17136_v18 = vld [vmem:[%s18069_s6 + $0x400] ss:$16 sps:$4 sm:$0xff]   ;;  %v17139_v7 = vld [vmem:[%s18069_s6 + $0x408] ss:$16 sps:$4 sm:$0xff]  }
 0x9ad   : > { %12710 = vmatprep.subr.bf16.mxu0 %v17099_v40  ;;  %v17144_v49 = vld [vmem:[%s18069_s6 + $0x424] ss:$16 sps:$4 sm:$0xff]   ;;  %v17147_v51 = vld [vmem:[%s18069_s6 + $0x42c] ss:$16 sps:$4 sm:$0xff]   ;;  %v17142_v58 = vld [vmem:[%s18069_s6 + $0x420] ss:$16 sps:$4 sm:$0xff]  }
 0x9ae   : > { %v17145_v32 = vld [vmem:[%s18069_s6 + $0x428] ss:$16 sps:$4 sm:$0xff]   ;;  %v17150_v56 = vld [vmem:[%s18069_s6 + $0x444] ss:$16 sps:$4 sm:$0xff]   ;;  %v17153_v57 = vld [vmem:[%s18069_s6 + $0x44c] ss:$16 sps:$4 sm:$0xff]  }
 0x9af   : > { %12367 = vmatpush1.bf16.msra.mxu1 %v17094_v4  ;;  %v17151_v60 = vld [vmem:[%s18069_s6 + $0x448] ss:$16 sps:$4 sm:$0xff]   ;;  %v17156_v40 = vld [vmem:[%s18069_s6 + $0x464] ss:$16 sps:$4 sm:$0xff]   ;;  %v17159_v4 = vld [vmem:[%s18069_s6 + $0x46c] ss:$16 sps:$4 sm:$0xff]  }
 0x9b0   : > { %12711 = vmatpush1.bf16.msra.mxu0 %v17097_v43  ;;  %12368 = vmatprep.subr.bf16.mxu1 %v17102_v63  ;;  %v17157_v43 = vld [vmem:[%s18069_s6 + $0x468] ss:$16 sps:$4 sm:$0xff]   ;;  %v17162_v63 = vld [vmem:[%s18069_s6 + $0x484] ss:$16 sps:$4 sm:$0xff]  }
 0x9b1   : > { %12712 = vmatprep.subr.bf16.mxu0 %v17105_v35  ;;  %v17165_v35 = vld [vmem:[%s18069_s6 + $0x48c] ss:$16 sps:$4 sm:$0xff]  }
 0x9b3   : > { %12369 = vmatpush1.bf16.msra.mxu1 %v17100_v47  ;;  %v17160_v47 = vld [vmem:[%s18069_s6 + $0x480] ss:$16 sps:$4 sm:$0xff]  }
 0x9b4   : > { %12713 = vmatpush1.bf16.msra.mxu0 %v17103_v17  ;;  %12370 = vmatprep.subr.bf16.mxu1 %v17108_v14  ;;  %v17163_v17 = vld [vmem:[%s18069_s6 + $0x488] ss:$16 sps:$4 sm:$0xff]   ;;  %v17168_v14 = vld [vmem:[%s18069_s6 + $0x4a4] ss:$16 sps:$4 sm:$0xff]  }
 0x9b5   : > { %12714 = vmatprep.subr.bf16.mxu0 %v17111_v9  ;;  %v17171_v9 = vld [vmem:[%s18069_s6 + $0x4ac] ss:$16 sps:$4 sm:$0xff]  }
 0x9b7   : > { %12371 = vmatpush1.bf16.msra.mxu1 %v17106_v48  ;;  %v17166_v48 = vld [vmem:[%s18069_s6 + $0x4a0] ss:$16 sps:$4 sm:$0xff]  }
 0x9b8   : > { %12715 = vmatpush1.bf16.msra.mxu0 %v17109_v5  ;;  %12372 = vmatprep.subr.bf16.mxu1 %v17114_v19  ;;  %v17169_v5 = vld [vmem:[%s18069_s6 + $0x4a8] ss:$16 sps:$4 sm:$0xff]   ;;  %v17174_v19 = vld [vmem:[%s18069_s6 + $0x4c4] ss:$16 sps:$4 sm:$0xff]  }
 0x9b9   : > { %12716 = vmatprep.subr.bf16.mxu0 %v17117_v22  ;;  %v17177_v22 = vld [vmem:[%s18069_s6 + $0x4cc] ss:$16 sps:$4 sm:$0xff]  }
 0x9bb   : > { %12373 = vmatpush1.bf16.msra.mxu1 %v17112_v61  ;;  %v17172_v61 = vld [vmem:[%s18069_s6 + $0x4c0] ss:$16 sps:$4 sm:$0xff]  }
 0x9bc   : > { %12717 = vmatpush1.bf16.msra.mxu0 %v17115_v21  ;;  %12374 = vmatprep.subr.bf16.mxu1 %v17120_v27  ;;  %v17175_v21 = vld [vmem:[%s18069_s6 + $0x4c8] ss:$16 sps:$4 sm:$0xff]   ;;  %v17180_v27 = vld [vmem:[%s18069_s6 + $0x4e4] ss:$16 sps:$4 sm:$0xff]  }
 0x9bd   : > { %12718 = vmatprep.subr.bf16.mxu0 %v17123_v55  ;;  %v17183_v55 = vld [vmem:[%s18069_s6 + $0x4ec] ss:$16 sps:$4 sm:$0xff]  }
 0x9bf   : > { %12375 = vmatpush1.bf16.msra.mxu1 %v17118_v34  ;;  %v17178_v34 = vld [vmem:[%s18069_s6 + $0x4e0] ss:$16 sps:$4 sm:$0xff]  }
 0x9c0   : > { %12719 = vmatpush1.bf16.msra.mxu0 %v17121_v41  ;;  %12376 = vmatprep.subr.bf16.mxu1 %v17126_v33  ;;  %v17181_v41 = vld [vmem:[%s18069_s6 + $0x4e8] ss:$16 sps:$4 sm:$0xff]   ;;  %v17186_v33 = vld [vmem:[%s18069_s6 + $0x504] ss:$16 sps:$4 sm:$0xff]  }
 0x9c1   : > { %12720 = vmatprep.subr.bf16.mxu0 %v17129_v36  ;;  %v17189_v36 = vld [vmem:[%s18069_s6 + $0x50c] ss:$16 sps:$4 sm:$0xff]  }
 0x9c3   : > { %12377 = vmatpush1.bf16.msra.mxu1 %v17124_v42  ;;  %v17184_v42 = vld [vmem:[%s18069_s6 + $0x500] ss:$16 sps:$4 sm:$0xff]  }
 0x9c4   : > { %12721 = vmatpush1.bf16.msra.mxu0 %v17127_v46  ;;  %12378 = vmatprep.subr.bf16.mxu1 %v17132_v3  ;;  %v17187_v46 = vld [vmem:[%s18069_s6 + $0x508] ss:$16 sps:$4 sm:$0xff]   ;;  %v17192_v3 = vld [vmem:[%s18069_s6 + $0x524] ss:$16 sps:$4 sm:$0xff]  }
 0x9c5   : > { %12722 = vmatprep.subr.bf16.mxu0 %v17135_v44  ;;  %v17195_v44 = vld [vmem:[%s18069_s6 + $0x52c] ss:$16 sps:$4 sm:$0xff]  }
 0x9c7   : > { %12379 = vmatpush1.bf16.msra.mxu1 %v17130_v53  ;;  %v17190_v53 = vld [vmem:[%s18069_s6 + $0x520] ss:$16 sps:$4 sm:$0xff]  }
 0x9c8   : > { %12723 = vmatpush1.bf16.msra.mxu0 %v17133_v0  ;;  %12391 = vmatprep.subr.bf16.mxu1 %v17138_v62  ;;  %v17193_v0 = vld [vmem:[%s18069_s6 + $0x528] ss:$16 sps:$4 sm:$0xff]   ;;  %v17198_v62 = vld [vmem:[%s18069_s6 + $0x544] ss:$16 sps:$4 sm:$0xff]  }
 0x9c9   : > { %12735 = vmatprep.subr.bf16.mxu0 %v17141_v11  ;;  %v17201_v11 = vld [vmem:[%s18069_s6 + $0x54c] ss:$16 sps:$4 sm:$0xff]  }
 0x9ca   : > { %12381 = vmatmul.mubr.bf16.vlgmr.msra.gmra.mrb[40].mxu1 %v19382_v16 }
 0x9cb   : > { %12725 = vmatmul.mubr.bf16.vlgmr.msra.gmra.mrb[40].mxu0 %v19382_v16  ;;  %12392 = vmatpush1.bf16.msra.mxu1 %v17136_v18  ;;  %v17148_v16 = vld [vmem:[%s18069_s6 + $0x440] ss:$16 sps:$4 sm:$0xff]  }
 0x9cc   : > { %12423 = vmatprep.mubr.bf16.mxu1 %v19536_v20  ;;  %12736 = vmatpush1.bf16.msra.mxu0 %v17139_v7  ;;  %v17196_v18 = vld [vmem:[%s18069_s6 + $0x540] ss:$16 sps:$4 sm:$0xff]   ;;  %v17199_v7 = vld [vmem:[%s18069_s6 + $0x548] ss:$16 sps:$4 sm:$0xff]  }
 0x9cd   : > { %12767 = vmatprep.mubr.bf16.mxu0 %v19536_v20  ;;  %12393 = vmatprep.subr.bf16.mxu1 %v17144_v49  ;;  %v17154_v20 = vld [vmem:[%s18069_s6 + $0x460] ss:$16 sps:$4 sm:$0xff]   ;;  %v17204_v49 = vld [vmem:[%s18069_s6 + $0x564] ss:$16 sps:$4 sm:$0xff]  }
 0x9ce   : > { %12737 = vmatprep.subr.bf16.mxu0 %v17147_v51  ;;  %v17207_v51 = vld [vmem:[%s18069_s6 + $0x56c] ss:$16 sps:$4 sm:$0xff]  }
 0x9cf   : > { %12394 = vmatpush1.bf16.msra.mxu1 %v17142_v58  ;;  %v17202_v58 = vld [vmem:[%s18069_s6 + $0x560] ss:$16 sps:$4 sm:$0xff]  }
 0x9d0   : > { %12738 = vmatpush1.bf16.msra.mxu0 %v17145_v32  ;;  %12395 = vmatprep.subr.bf16.mxu1 %v17150_v56  ;;  %v17205_v32 = vld [vmem:[%s18069_s6 + $0x568] ss:$16 sps:$4 sm:$0xff]   ;;  %v17210_v56 = vld [vmem:[%s18069_s6 + $0x584] ss:$16 sps:$4 sm:$0xff]  }
 0x9d1   : > { %12739 = vmatprep.subr.bf16.mxu0 %v17153_v57  ;;  %v17213_v57 = vld [vmem:[%s18069_s6 + $0x58c] ss:$16 sps:$4 sm:$0xff]  }
 0x9d3   : > { %12396 = vmatpush1.bf16.msra.mxu1 %v17148_v16  ;;  %v17208_v16 = vld [vmem:[%s18069_s6 + $0x580] ss:$16 sps:$4 sm:$0xff]  }
 0x9d4   : > { %12740 = vmatpush1.bf16.msra.mxu0 %v17151_v60  ;;  %12397 = vmatprep.subr.bf16.mxu1 %v17156_v40  ;;  %v17211_v60 = vld [vmem:[%s18069_s6 + $0x588] ss:$16 sps:$4 sm:$0xff]   ;;  %v17216_v40 = vld [vmem:[%s18069_s6 + $0x5a4] ss:$16 sps:$4 sm:$0xff]  }
 0x9d5   : > { %12741 = vmatprep.subr.bf16.mxu0 %v17159_v4  ;;  %v17219_v4 = vld [vmem:[%s18069_s6 + $0x5ac] ss:$16 sps:$4 sm:$0xff]  }
 0x9d7   : > { %12398 = vmatpush1.bf16.msra.mxu1 %v17154_v20  ;;  %v17214_v20 = vld [vmem:[%s18069_s6 + $0x5a0] ss:$16 sps:$4 sm:$0xff]  }
 0x9d8   : > { %12742 = vmatpush1.bf16.msra.mxu0 %v17157_v43  ;;  %12399 = vmatprep.subr.bf16.mxu1 %v17162_v63  ;;  %v17217_v43 = vld [vmem:[%s18069_s6 + $0x5a8] ss:$16 sps:$4 sm:$0xff]   ;;  %v17222_v63 = vld [vmem:[%s18069_s6 + $0x5c4] ss:$16 sps:$4 sm:$0xff]  }
 0x9d9   : > { %12743 = vmatprep.subr.bf16.mxu0 %v17165_v35  ;;  %v17225_v35 = vld [vmem:[%s18069_s6 + $0x5cc] ss:$16 sps:$4 sm:$0xff]  }
 0x9db   : > { %12400 = vmatpush1.bf16.msra.mxu1 %v17160_v47  ;;  %v17220_v47 = vld [vmem:[%s18069_s6 + $0x5c0] ss:$16 sps:$4 sm:$0xff]  }
 0x9dc   : > { %12744 = vmatpush1.bf16.msra.mxu0 %v17163_v17  ;;  %12401 = vmatprep.subr.bf16.mxu1 %v17168_v14  ;;  %v17223_v17 = vld [vmem:[%s18069_s6 + $0x5c8] ss:$16 sps:$4 sm:$0xff]   ;;  %v17228_v14 = vld [vmem:[%s18069_s6 + $0x5e4] ss:$16 sps:$4 sm:$0xff]  }
 0x9dd   : > { %12745 = vmatprep.subr.bf16.mxu0 %v17171_v9  ;;  %v17231_v9 = vld [vmem:[%s18069_s6 + $0x5ec] ss:$16 sps:$4 sm:$0xff]  }
 0x9df   : > { %12402 = vmatpush1.bf16.msra.mxu1 %v17166_v48  ;;  %v17226_v48 = vld [vmem:[%s18069_s6 + $0x5e0] ss:$16 sps:$4 sm:$0xff]  }
 0x9e0   : > { %12746 = vmatpush1.bf16.msra.mxu0 %v17169_v5  ;;  %12403 = vmatprep.subr.bf16.mxu1 %v17174_v19  ;;  %v17229_v5 = vld [vmem:[%s18069_s6 + $0x5e8] ss:$16 sps:$4 sm:$0xff]   ;;  %v17234_v19 = vld [vmem:[%s18069_s6 + $0x604] ss:$16 sps:$4 sm:$0xff]  }
 0x9e1   : > { %12747 = vmatprep.subr.bf16.mxu0 %v17177_v22  ;;  %v17237_v22 = vld [vmem:[%s18069_s6 + $0x60c] ss:$16 sps:$4 sm:$0xff]  }
 0x9e3   : > { %12404 = vmatpush1.bf16.msra.mxu1 %v17172_v61  ;;  %v17232_v61 = vld [vmem:[%s18069_s6 + $0x600] ss:$16 sps:$4 sm:$0xff]  }
 0x9e4   : > { %12748 = vmatpush1.bf16.msra.mxu0 %v17175_v21  ;;  %12405 = vmatprep.subr.bf16.mxu1 %v17180_v27  ;;  %v17235_v21 = vld [vmem:[%s18069_s6 + $0x608] ss:$16 sps:$4 sm:$0xff]   ;;  %v17240_v27 = vld [vmem:[%s18069_s6 + $0x624] ss:$16 sps:$4 sm:$0xff]  }
 0x9e5   : > { %12749 = vmatprep.subr.bf16.mxu0 %v17183_v55  ;;  %v17243_v55 = vld [vmem:[%s18069_s6 + $0x62c] ss:$16 sps:$4 sm:$0xff]  }
 0x9e7   : > { %12406 = vmatpush1.bf16.msra.mxu1 %v17178_v34  ;;  %v17238_v34 = vld [vmem:[%s18069_s6 + $0x620] ss:$16 sps:$4 sm:$0xff]  }
 0x9e8   : > { %12750 = vmatpush1.bf16.msra.mxu0 %v17181_v41  ;;  %12407 = vmatprep.subr.bf16.mxu1 %v17186_v33  ;;  %v17241_v41 = vld [vmem:[%s18069_s6 + $0x628] ss:$16 sps:$4 sm:$0xff]   ;;  %v17246_v33 = vld [vmem:[%s18069_s6 + $0x644] ss:$16 sps:$4 sm:$0xff]  }
 0x9e9   : > { %12751 = vmatprep.subr.bf16.mxu0 %v17189_v36  ;;  %v17249_v36 = vld [vmem:[%s18069_s6 + $0x64c] ss:$16 sps:$4 sm:$0xff]  }
 0x9eb   : > { %12408 = vmatpush1.bf16.msra.mxu1 %v17184_v42  ;;  %v17247_v42 = vld [vmem:[%s18069_s6 + $0x648] ss:$16 sps:$4 sm:$0xff]  }
 0x9ec   : > { %12752 = vmatpush1.bf16.msra.mxu0 %v17187_v46  ;;  %12409 = vmatprep.subr.bf16.mxu1 %v17192_v3  ;;  %v17252_v46 = vld [vmem:[%s18069_s6 + $0x664] ss:$16 sps:$4 sm:$0xff]   ;;  %v17255_v3 = vld [vmem:[%s18069_s6 + $0x66c] ss:$16 sps:$4 sm:$0xff]  }
 0x9ed   : > { %12753 = vmatprep.subr.bf16.mxu0 %v17195_v44  ;;  %v17253_v44 = vld [vmem:[%s18069_s6 + $0x668] ss:$16 sps:$4 sm:$0xff]  }
 0x9ef   : > { %12410 = vmatpush1.bf16.msra.mxu1 %v17190_v53  ;;  %v17258_v53 = vld [vmem:[%s18069_s6 + $0x684] ss:$16 sps:$4 sm:$0xff]  }
 0x9f0   : > { %12754 = vmatpush1.bf16.msra.mxu0 %v17193_v0  ;;  %12411 = vmatprep.subr.bf16.mxu1 %v17198_v62  ;;  %v17261_v0 = vld [vmem:[%s18069_s6 + $0x68c] ss:$16 sps:$4 sm:$0xff]   ;;  %v17256_v62 = vld [vmem:[%s18069_s6 + $0x680] ss:$16 sps:$4 sm:$0xff]  }
 0x9f1   : > { %12755 = vmatprep.subr.bf16.mxu0 %v17201_v11  ;;  %v17259_v11 = vld [vmem:[%s18069_s6 + $0x688] ss:$16 sps:$4 sm:$0xff]  }
 0x9f3   : > { %12412 = vmatpush1.bf16.msra.mxu1 %v17196_v18  ;;  %v17264_v18 = vld [vmem:[%s18069_s6 + $0x6a4] ss:$16 sps:$4 sm:$0xff]  }
 0x9f4   : > { %12756 = vmatpush1.bf16.msra.mxu0 %v17199_v7  ;;  %12413 = vmatprep.subr.bf16.mxu1 %v17204_v49  ;;  %v17267_v7 = vld [vmem:[%s18069_s6 + $0x6ac] ss:$16 sps:$4 sm:$0xff]   ;;  %v5886_v49 = vrot.slane %v19660_v10, %v18574_v38 }
 0x9f5   : > { %12757 = vmatprep.subr.bf16.mxu0 %v17207_v51  ;;  %v5894_v51 = vrot.slane %v19660_v10, %v18577_v29 }
 0x9f7   : > { %12414 = vmatpush1.bf16.msra.mxu1 %v17202_v58  ;;  %v5890_v58 = vrot.slane %v19660_v10, %v18580_v30 }
 0x9f8   : > { %12758 = vmatpush1.bf16.msra.mxu0 %v17205_v32  ;;  %12415 = vmatprep.subr.bf16.mxu1 %v17210_v56  ;;  %v17262_v32 = vld [vmem:[%s18069_s6 + $0x6a0] ss:$16 sps:$4 sm:$0xff]   ;;  %v5898_v56 = vrot.slane %v19660_v10, %v18583_v25 }
 0x9f9   : > { %12759 = vmatprep.subr.bf16.mxu0 %v17213_v57  ;;  %v17265_v57 = vld [vmem:[%s18069_s6 + $0x6a8] ss:$16 sps:$4 sm:$0xff]  }
 0x9fb   : > { %12416 = vmatpush1.bf16.msra.mxu1 %v17208_v16  ;;  %v17270_v16 = vld [vmem:[%s18069_s6 + $0x6c4] ss:$16 sps:$4 sm:$0xff]  }
 0x9fc   : > { %12760 = vmatpush1.bf16.msra.mxu0 %v17211_v60  ;;  %12417 = vmatprep.subr.bf16.mxu1 %v17216_v40  ;;  %v17273_v40 = vld [vmem:[%s18069_s6 + $0x6cc] ss:$16 sps:$4 sm:$0xff]  }
 0x9fd   : > { %12761 = vmatprep.subr.bf16.mxu0 %v17219_v4 }
 0x9ff   : > { %12418 = vmatpush1.bf16.msra.mxu1 %v17214_v20 }
 0xa00   : > { %12762 = vmatpush1.bf16.msra.mxu0 %v17217_v43  ;;  %12419 = vmatprep.subr.bf16.mxu1 %v17222_v63 }
 0xa01   : > { %12763 = vmatprep.subr.bf16.mxu0 %v17225_v35  ;;  %v17268_v35 = vld [vmem:[%s18069_s6 + $0x6c0] ss:$16 sps:$4 sm:$0xff]  }
 0xa03   : > { %12420 = vmatpush1.bf16.msra.mxu1 %v17220_v47 }
 0xa04   : > { %12764 = vmatpush1.bf16.msra.mxu0 %v17223_v17  ;;  %12421 = vmatprep.subr.bf16.mxu1 %v17228_v14  ;;  %v17271_v14 = vld [vmem:[%s18069_s6 + $0x6c8] ss:$16 sps:$4 sm:$0xff]  }
 0xa05   : > { %12765 = vmatprep.subr.bf16.mxu0 %v17231_v9  ;;  %v17276_v9 = vld [vmem:[%s18069_s6 + $0x6e4] ss:$16 sps:$4 sm:$0xff]  }
 0xa07   : > { %12422 = vmatpush1.bf16.msra.mxu1 %v17226_v48 }
 0xa08   : > { %12766 = vmatpush1.bf16.msra.mxu0 %v17229_v5  ;;  %12434 = vmatprep.subr.bf16.mxu1 %v17234_v19 }
 0xa09   : > { %12778 = vmatprep.subr.bf16.mxu0 %v17237_v22  ;;  %v17279_v22 = vld [vmem:[%s18069_s6 + $0x6ec] ss:$16 sps:$4 sm:$0xff]  }
 0xa0a   : > { %12424 = vmatmul.mubr.bf16.vlgmr.msra.gmra.mrb[40].mxu1 %v19532_v52 }
 0xa0b   : > { %12768 = vmatmul.mubr.bf16.vlgmr.msra.gmra.mrb[40].mxu0 %v19532_v52  ;;  %12435 = vmatpush1.bf16.msra.mxu1 %v17232_v61  ;;  %v17244_v52 = vld [vmem:[%s18069_s6 + $0x640] ss:$16 sps:$4 sm:$0xff]  }
 0xa0c   : > { %12466 = vmatprep.mubr.bf16.mxu1 %v19540_v54  ;;  %12779 = vmatpush1.bf16.msra.mxu0 %v17235_v21 }
 0xa0d   : > { %12810 = vmatprep.mubr.bf16.mxu0 %v19540_v54  ;;  %12436 = vmatprep.subr.bf16.mxu1 %v17240_v27  ;;  %v17250_v54 = vld [vmem:[%s18069_s6 + $0x660] ss:$16 sps:$4 sm:$0xff]  }
 0xa0e   : > { %12780 = vmatprep.subr.bf16.mxu0 %v17243_v55 }
 0xa0f   : > { %12437 = vmatpush1.bf16.msra.mxu1 %v17238_v34 }
 0xa10   : > { %12781 = vmatpush1.bf16.msra.mxu0 %v17241_v41  ;;  %12438 = vmatprep.subr.bf16.mxu1 %v17246_v33 }
 0xa11   : > { %12782 = vmatprep.subr.bf16.mxu0 %v17249_v36  ;;  %v17274_v36 = vld [vmem:[%s18069_s6 + $0x6e0] ss:$16 sps:$4 sm:$0xff]  }
 0xa13   : > { %12439 = vmatpush1.bf16.msra.mxu1 %v17244_v52 }
 0xa14   : > { %12783 = vmatpush1.bf16.msra.mxu0 %v17247_v42  ;;  %12440 = vmatprep.subr.bf16.mxu1 %v17252_v46 }
 0xa15   : > { %12784 = vmatprep.subr.bf16.mxu0 %v17255_v3  ;;  %v17277_v3 = vld [vmem:[%s18069_s6 + $0x6e8] ss:$16 sps:$4 sm:$0xff]  }
 0xa17   : > { %12441 = vmatpush1.bf16.msra.mxu1 %v17250_v54  ;;  %v17282_v54 = vld [vmem:[%s18069_s6 + $0x704] ss:$16 sps:$4 sm:$0xff]  }
 0xa18   : > { %12785 = vmatpush1.bf16.msra.mxu0 %v17253_v44  ;;  %12442 = vmatprep.subr.bf16.mxu1 %v17258_v53 }
 0xa19   : > { %12786 = vmatprep.subr.bf16.mxu0 %v17261_v0  ;;  %v17285_v0 = vld [vmem:[%s18069_s6 + $0x70c] ss:$16 sps:$4 sm:$0xff]  }
 0xa1b   : > { %12443 = vmatpush1.bf16.msra.mxu1 %v17256_v62 }
 0xa1c   : > { %12787 = vmatpush1.bf16.msra.mxu0 %v17259_v11  ;;  %12444 = vmatprep.subr.bf16.mxu1 %v17264_v18  ;;  %v17280_v11 = vld [vmem:[%s18069_s6 + $0x700] ss:$16 sps:$4 sm:$0xff]   ;;  %v17283_v18 = vld [vmem:[%s18069_s6 + $0x708] ss:$16 sps:$4 sm:$0xff]  }
 0xa1d   : > { %v9068_v60 = vpop.f32.mrb[36].mxu1  ;;  %12788 = vmatprep.subr.bf16.mxu0 %v17267_v7  ;;  %v17288_v7 = vld [vmem:[%s18069_s6 + $0x724] ss:$16 sps:$4 sm:$0xff]  }
 0xa1e   : > { %v16020_v38 = vadd.f32 %v9068_v60, %v5886_v49  ;;  %v9154_v4 = vpop.f32.mrb[36].mxu0  ;;  %v9070_v29 = vpop.f32.mrb[37].mxu1  ;;  %v17300_v60 = vld [vmem:[%s18069_s6 + $0x764] ss:$16 sps:$4 sm:$0xff]  }
 0xa1f   : > { %v16024_v20 = vadd.f32 %v9154_v4, %v5894_v51  ;;  %v16021_v43 = vadd.f32 %v9070_v29, %v5890_v58  ;;  %v9156_v30 = vpop.f32.mrb[37].mxu0  ;;  %v9072_v63 = vpop.f32.mrb[38].mxu1  ;;  %12445 = vmatpush1.bf16.msra.mxu1 %v17262_v32  ;;  %v17294_v32 = vld [vmem:[%s18069_s6 + $0x744] ss:$16 sps:$4 sm:$0xff]   ;;  %v17301_v4 = vld [vmem:[%s18069_s6 + $0x768] ss:$16 sps:$4 sm:$0xff]  }
 0xa20   : > { %v16025_v47 = vadd.f32 %v9156_v30, %v5898_v56  ;;  %v16022_v25 = vadd.f32 %v9072_v63, %v5886_v49  ;;  %v9158_v10 = vpop.f32.mrb[38].mxu0  ;;  %12789 = vmatpush1.bf16.msra.mxu0 %v17265_v57  ;;  %v9074_v17 = vpop.f32.mrb[39].mxu1  ;;  %12446 = vmatprep.subr.bf16.mxu1 %v17270_v16  ;;  %v9175_v61 = vmax.f32 %v16020_v38, 0.0  ;;  %v17291_v49 = vld [vmem:[%s18069_s6 + $0x72c] ss:$16 sps:$4 sm:$0xff]  }
 0xa21   : > { %v16026_v48 = vadd.f32 %v9158_v10, %v5894_v51  ;;  %v16023_v5 = vadd.f32 %v9074_v17, %v5890_v58  ;;  %v9160_v19 = vpop.f32.mrb[39].mxu0  ;;  %12790 = vmatprep.subr.bf16.mxu0 %v17273_v40  ;;  %v9177_v55 = vmax.f32 %v16024_v20, 0.0  ;;  %v9176_v34 = vmax.f32 %v16021_v43, 0.0  ;;  %v17286_v51 = vld [vmem:[%s18069_s6 + $0x720] ss:$16 sps:$4 sm:$0xff]  }
 0xa22   : > { %v9191_v21 = vmax.f32 %v16022_v25, 0.0  ;;  %v16027_v27 = vadd.f32 %v9160_v19, %v5898_v56  ;;  %v9178_v52 = vmax.f32 %v16025_v47, 0.0  ;;  %v17289_v58 = vld [vmem:[%s18069_s6 + $0x728] ss:$16 sps:$4 sm:$0xff]   ;;  %v17297_v56 = vld [vmem:[%s18069_s6 + $0x74c] ss:$16 sps:$4 sm:$0xff]  }
 0xa23   : > { %v9193_v41 = vmax.f32 %v16026_v48, 0.0  ;;  %v9192_v33 = vmax.f32 %v16023_v5, 0.0  ;;  %12447 = vmatpush1.bf16.msra.mxu1 %v17268_v35  ;;  %v17292_v57 = vld [vmem:[%s18069_s6 + $0x740] ss:$16 sps:$4 sm:$0xff]   ;;  %v17295_v16 = vld [vmem:[%s18069_s6 + $0x748] ss:$16 sps:$4 sm:$0xff]  }
 0xa24   : > { %v19834_v42 = vpack.c.bf16 %v9191_v21, %v9175_v61  ;;  %v9194_v46 = vmax.f32 %v16027_v27, 0.0  ;;  %12791 = vmatpush1.bf16.msra.mxu0 %v17271_v14  ;;  %12448 = vmatprep.subr.bf16.mxu1 %v17276_v9  ;;  %v17303_v40 = vld [vmem:[%s18069_s6 + $0x76c] ss:$16 sps:$4 sm:$0xff]   ;;  %v17298_v38 = vld [vmem:[%s18069_s6 + $0x760] ss:$16 sps:$4 sm:$0xff]  }
 0xa25   : > { %v19838_v44 = vpack.c.bf16 %v9193_v41, %v9177_v55  ;;  %v19840_v53 = vpack.c.bf16 %v9192_v33, %v9176_v34  ;;  %12792 = vmatprep.subr.bf16.mxu0 %v17279_v22  ;;  %v17306_v29 = vld [vmem:[%s18069_s6 + $0x784] ss:$16 sps:$4 sm:$0xff]   ;;  %v17309_v20 = vld [vmem:[%s18069_s6 + $0x78c] ss:$16 sps:$4 sm:$0xff]   ;;  %v17304_v43 = vld [vmem:[%s18069_s6 + $0x780] ss:$16 sps:$4 sm:$0xff]  }
 0xa26   : > { %v19843_v62 = vpack.c.bf16 %v9194_v46, %v9178_v52  ;;  %v17307_v30 = vld [vmem:[%s18069_s6 + $0x788] ss:$16 sps:$4 sm:$0xff]   ;;  %v17312_v63 = vld [vmem:[%s18069_s6 + $0x7a4] ss:$16 sps:$4 sm:$0xff]   ;;  %v17315_v35 = vld [vmem:[%s18069_s6 + $0x7ac] ss:$16 sps:$4 sm:$0xff]  }
 0xa27   : > { %12449 = vmatpush1.bf16.msra.mxu1 %v17274_v36  ;;  %v17310_v47 = vld [vmem:[%s18069_s6 + $0x7a0] ss:$16 sps:$4 sm:$0xff]   ;;  %v17313_v25 = vld [vmem:[%s18069_s6 + $0x7a8] ss:$16 sps:$4 sm:$0xff]   ;;  %v17318_v10 = vld [vmem:[%s18069_s6 + $0x7c4] ss:$16 sps:$4 sm:$0xff]  }
 0xa28   : > { %12793 = vmatpush1.bf16.msra.mxu0 %v17277_v3  ;;  %12450 = vmatprep.subr.bf16.mxu1 %v17282_v54  ;;  %v17321_v17 = vld [vmem:[%s18069_s6 + $0x7cc] ss:$16 sps:$4 sm:$0xff]   ;;  %v17316_v14 = vld [vmem:[%s18069_s6 + $0x7c0] ss:$16 sps:$4 sm:$0xff]   ;;  %v17319_v9 = vld [vmem:[%s18069_s6 + $0x7c8] ss:$16 sps:$4 sm:$0xff]  }
 0xa29   : > { %12794 = vmatprep.subr.bf16.mxu0 %v17285_v0  ;;  %v17324_v48 = vld [vmem:[%s18069_s6 + $0x7e4] ss:$16 sps:$4 sm:$0xff]   ;;  %v17327_v5 = vld [vmem:[%s18069_s6 + $0x7ec] ss:$16 sps:$4 sm:$0xff]   ;;  %v17322_v19 = vld [vmem:[%s18069_s6 + $0x7e0] ss:$16 sps:$4 sm:$0xff]  }
 0xa2a   : > { %v17325_v22 = vld [vmem:[%s18069_s6 + $0x7e8] ss:$16 sps:$4 sm:$0xff]   ;;  %v17330_v61 = vld [vmem:[%s18069_s6 + $0x804] ss:$16 sps:$4 sm:$0xff]   ;;  %v17333_v21 = vld [vmem:[%s18069_s6 + $0x80c] ss:$16 sps:$4 sm:$0xff]  }
 0xa2b   : > { %12451 = vmatpush1.bf16.msra.mxu1 %v17280_v11  ;;  %v17328_v27 = vld [vmem:[%s18069_s6 + $0x800] ss:$16 sps:$4 sm:$0xff]   ;;  %v17331_v55 = vld [vmem:[%s18069_s6 + $0x808] ss:$16 sps:$4 sm:$0xff]   ;;  %v17336_v34 = vld [vmem:[%s18069_s6 + $0x824] ss:$16 sps:$4 sm:$0xff]  }
 0xa2c   : > { %12795 = vmatpush1.bf16.msra.mxu0 %v17283_v18  ;;  %12452 = vmatprep.subr.bf16.mxu1 %v17288_v7  ;;  %v17339_v41 = vld [vmem:[%s18069_s6 + $0x82c] ss:$16 sps:$4 sm:$0xff]   ;;  %v17334_v33 = vld [vmem:[%s18069_s6 + $0x820] ss:$16 sps:$4 sm:$0xff]   ;;  %v17337_v36 = vld [vmem:[%s18069_s6 + $0x828] ss:$16 sps:$4 sm:$0xff]  }
 0xa2d   : > { %12796 = vmatprep.subr.bf16.mxu0 %v17291_v49  ;;  %v17342_v52 = vld [vmem:[%s18069_s6 + $0x844] ss:$16 sps:$4 sm:$0xff]   ;;  %v17345_v46 = vld [vmem:[%s18069_s6 + $0x84c] ss:$16 sps:$4 sm:$0xff]   ;;  %v17343_v3 = vld [vmem:[%s18069_s6 + $0x848] ss:$16 sps:$4 sm:$0xff]  }
 0xa2e   : > { %v17348_v54 = vld [vmem:[%s18069_s6 + $0x864] ss:$16 sps:$4 sm:$0xff]   ;;  %v17351_v0 = vld [vmem:[%s18069_s6 + $0x86c] ss:$16 sps:$4 sm:$0xff]   ;;  %v17349_v11 = vld [vmem:[%s18069_s6 + $0x868] ss:$16 sps:$4 sm:$0xff]  }
 0xa2f   : > { %12453 = vmatpush1.bf16.msra.mxu1 %v17286_v51  ;;  %v17354_v18 = vld [vmem:[%s18069_s6 + $0x884] ss:$16 sps:$4 sm:$0xff]   ;;  %v17357_v7 = vld [vmem:[%s18069_s6 + $0x88c] ss:$16 sps:$4 sm:$0xff]   ;;  %v17352_v49 = vld [vmem:[%s18069_s6 + $0x880] ss:$16 sps:$4 sm:$0xff]  }
 0xa30   : > { %12797 = vmatpush1.bf16.msra.mxu0 %v17289_v58  ;;  %12454 = vmatprep.subr.bf16.mxu1 %v17294_v32  ;;  %v17355_v51 = vld [vmem:[%s18069_s6 + $0x888] ss:$16 sps:$4 sm:$0xff]   ;;  %v17360_v58 = vld [vmem:[%s18069_s6 + $0x8a4] ss:$16 sps:$4 sm:$0xff]   ;;  %v17363_v32 = vld [vmem:[%s18069_s6 + $0x8ac] ss:$16 sps:$4 sm:$0xff]  }
 0xa31   : > { %12798 = vmatprep.subr.bf16.mxu0 %v17297_v56  ;;  %v17358_v56 = vld [vmem:[%s18069_s6 + $0x8a0] ss:$16 sps:$4 sm:$0xff]  }
 0xa33   : > { %12455 = vmatpush1.bf16.msra.mxu1 %v17292_v57  ;;  %v17361_v57 = vld [vmem:[%s18069_s6 + $0x8a8] ss:$16 sps:$4 sm:$0xff]  }
 0xa34   : > { %12799 = vmatpush1.bf16.msra.mxu0 %v17295_v16  ;;  %12456 = vmatprep.subr.bf16.mxu1 %v17300_v60  ;;  %v17366_v16 = vld [vmem:[%s18069_s6 + $0x8c4] ss:$16 sps:$4 sm:$0xff]   ;;  %v17369_v60 = vld [vmem:[%s18069_s6 + $0x8cc] ss:$16 sps:$4 sm:$0xff]  }
 0xa35   : > { %12800 = vmatprep.subr.bf16.mxu0 %v17303_v40  ;;  %v17364_v40 = vld [vmem:[%s18069_s6 + $0x8c0] ss:$16 sps:$4 sm:$0xff]  }
 0xa37   : > { %12457 = vmatpush1.bf16.msra.mxu1 %v17298_v38  ;;  %v17367_v38 = vld [vmem:[%s18069_s6 + $0x8c8] ss:$16 sps:$4 sm:$0xff]  }
 0xa38   : > { %12801 = vmatpush1.bf16.msra.mxu0 %v17301_v4  ;;  %12458 = vmatprep.subr.bf16.mxu1 %v17306_v29  ;;  %v17372_v4 = vld [vmem:[%s18069_s6 + $0x8e4] ss:$16 sps:$4 sm:$0xff]   ;;  %v17375_v29 = vld [vmem:[%s18069_s6 + $0x8ec] ss:$16 sps:$4 sm:$0xff]  }
 0xa39   : > { %12802 = vmatprep.subr.bf16.mxu0 %v17309_v20  ;;  %v17370_v20 = vld [vmem:[%s18069_s6 + $0x8e0] ss:$16 sps:$4 sm:$0xff]  }
 0xa3b   : > { %12459 = vmatpush1.bf16.msra.mxu1 %v17304_v43  ;;  %v17373_v43 = vld [vmem:[%s18069_s6 + $0x8e8] ss:$16 sps:$4 sm:$0xff]  }
 0xa3c   : > { %12803 = vmatpush1.bf16.msra.mxu0 %v17307_v30  ;;  %12460 = vmatprep.subr.bf16.mxu1 %v17312_v63  ;;  %v17378_v30 = vld [vmem:[%s18069_s6 + $0x904] ss:$16 sps:$4 sm:$0xff]   ;;  %v17381_v63 = vld [vmem:[%s18069_s6 + $0x90c] ss:$16 sps:$4 sm:$0xff]  }
 0xa3d   : > { %12804 = vmatprep.subr.bf16.mxu0 %v17315_v35  ;;  %v17376_v35 = vld [vmem:[%s18069_s6 + $0x900] ss:$16 sps:$4 sm:$0xff]  }
 0xa3f   : > { %12461 = vmatpush1.bf16.msra.mxu1 %v17310_v47  ;;  %v17379_v47 = vld [vmem:[%s18069_s6 + $0x908] ss:$16 sps:$4 sm:$0xff]  }
 0xa40   : > { %12805 = vmatpush1.bf16.msra.mxu0 %v17313_v25  ;;  %12462 = vmatprep.subr.bf16.mxu1 %v17318_v10  ;;  %v17384_v25 = vld [vmem:[%s18069_s6 + $0x924] ss:$16 sps:$4 sm:$0xff]   ;;  %v17387_v10 = vld [vmem:[%s18069_s6 + $0x92c] ss:$16 sps:$4 sm:$0xff]  }
 0xa41   : > { %12806 = vmatprep.subr.bf16.mxu0 %v17321_v17  ;;  %v17382_v17 = vld [vmem:[%s18069_s6 + $0x920] ss:$16 sps:$4 sm:$0xff]  }
 0xa43   : > { %12463 = vmatpush1.bf16.msra.mxu1 %v17316_v14  ;;  %v17385_v14 = vld [vmem:[%s18069_s6 + $0x928] ss:$16 sps:$4 sm:$0xff]  }
 0xa44   : > { %12807 = vmatpush1.bf16.msra.mxu0 %v17319_v9  ;;  %12464 = vmatprep.subr.bf16.mxu1 %v17324_v48  ;;  %v17390_v9 = vld [vmem:[%s18069_s6 + $0x944] ss:$16 sps:$4 sm:$0xff]   ;;  %v17393_v48 = vld [vmem:[%s18069_s6 + $0x94c] ss:$16 sps:$4 sm:$0xff]  }
 0xa45   : > { %12808 = vmatprep.subr.bf16.mxu0 %v17327_v5  ;;  %v17388_v5 = vld [vmem:[%s18069_s6 + $0x940] ss:$16 sps:$4 sm:$0xff]  }
 0xa47   : > { %12465 = vmatpush1.bf16.msra.mxu1 %v17322_v19  ;;  %v17391_v19 = vld [vmem:[%s18069_s6 + $0x948] ss:$16 sps:$4 sm:$0xff]  }
 0xa48   : > { %12809 = vmatpush1.bf16.msra.mxu0 %v17325_v22  ;;  %12477 = vmatprep.subr.bf16.mxu1 %v17330_v61  ;;  %v17396_v22 = vld [vmem:[%s18069_s6 + $0x964] ss:$16 sps:$4 sm:$0xff]   ;;  %v17399_v61 = vld [vmem:[%s18069_s6 + $0x96c] ss:$16 sps:$4 sm:$0xff]  }
 0xa49   : > { %12821 = vmatprep.subr.bf16.mxu0 %v17333_v21  ;;  %v17394_v21 = vld [vmem:[%s18069_s6 + $0x960] ss:$16 sps:$4 sm:$0xff]  }
 0xa4a   : > { %12467 = vmatmul.mubr.bf16.vlgmr.msra.gmra.mrb[40].mxu1 %v19534_v24 }
 0xa4b   : > { %12811 = vmatmul.mubr.bf16.vlgmr.msra.gmra.mrb[40].mxu0 %v19534_v24  ;;  %12478 = vmatpush1.bf16.msra.mxu1 %v17328_v27  ;;  %v17340_v24 = vld [vmem:[%s18069_s6 + $0x840] ss:$16 sps:$4 sm:$0xff]   ;;  %v17397_v27 = vld [vmem:[%s18069_s6 + $0x968] ss:$16 sps:$4 sm:$0xff]  }
 0xa4c   : > { %12509 = vmatprep.mubr.bf16.mxu1 %v19688_v59  ;;  %12822 = vmatpush1.bf16.msra.mxu0 %v17331_v55  ;;  %v17402_v55 = vld [vmem:[%s18069_s6 + $0x984] ss:$16 sps:$4 sm:$0xff]  }
 0xa4d   : > { %12853 = vmatprep.mubr.bf16.mxu0 %v19688_v59  ;;  %12479 = vmatprep.subr.bf16.mxu1 %v17336_v34  ;;  %v17346_v59 = vld [vmem:[%s18069_s6 + $0x860] ss:$16 sps:$4 sm:$0xff]   ;;  %v17405_v34 = vld [vmem:[%s18069_s6 + $0x98c] ss:$16 sps:$4 sm:$0xff]  }
 0xa4e   : > { %12823 = vmatprep.subr.bf16.mxu0 %v17339_v41  ;;  %v17400_v41 = vld [vmem:[%s18069_s6 + $0x980] ss:$16 sps:$4 sm:$0xff]  }
 0xa4f   : > { %12480 = vmatpush1.bf16.msra.mxu1 %v17334_v33  ;;  %v17403_v33 = vld [vmem:[%s18069_s6 + $0x988] ss:$16 sps:$4 sm:$0xff]  }
 0xa50   : > { %12824 = vmatpush1.bf16.msra.mxu0 %v17337_v36  ;;  %12481 = vmatprep.subr.bf16.mxu1 %v17342_v52  ;;  %v17408_v36 = vld [vmem:[%s18069_s6 + $0x9a4] ss:$16 sps:$4 sm:$0xff]   ;;  %v17411_v52 = vld [vmem:[%s18069_s6 + $0x9ac] ss:$16 sps:$4 sm:$0xff]  }
 0xa51   : > { %12825 = vmatprep.subr.bf16.mxu0 %v17345_v46  ;;  %v17406_v46 = vld [vmem:[%s18069_s6 + $0x9a0] ss:$16 sps:$4 sm:$0xff]  }
 0xa53   : > { %12482 = vmatpush1.bf16.msra.mxu1 %v17340_v24  ;;  %v17409_v24 = vld [vmem:[%s18069_s6 + $0x9a8] ss:$16 sps:$4 sm:$0xff]  }
 0xa54   : > { %12826 = vmatpush1.bf16.msra.mxu0 %v17343_v3  ;;  %12483 = vmatprep.subr.bf16.mxu1 %v17348_v54  ;;  %v17414_v3 = vld [vmem:[%s18069_s6 + $0x9c4] ss:$16 sps:$4 sm:$0xff]   ;;  %v17417_v54 = vld [vmem:[%s18069_s6 + $0x9cc] ss:$16 sps:$4 sm:$0xff]  }
 0xa55   : > { %12827 = vmatprep.subr.bf16.mxu0 %v17351_v0  ;;  %v17412_v0 = vld [vmem:[%s18069_s6 + $0x9c0] ss:$16 sps:$4 sm:$0xff]  }
 0xa57   : > { %12484 = vmatpush1.bf16.msra.mxu1 %v17346_v59  ;;  %v17415_v59 = vld [vmem:[%s18069_s6 + $0x9c8] ss:$16 sps:$4 sm:$0xff]  }
 0xa58   : > { %12828 = vmatpush1.bf16.msra.mxu0 %v17349_v11  ;;  %12485 = vmatprep.subr.bf16.mxu1 %v17354_v18  ;;  %v17420_v11 = vld [vmem:[%s18069_s6 + $0x9e4] ss:$16 sps:$4 sm:$0xff]   ;;  %v17423_v18 = vld [vmem:[%s18069_s6 + $0x9ec] ss:$16 sps:$4 sm:$0xff]  }
 0xa59   : > { %12829 = vmatprep.subr.bf16.mxu0 %v17357_v7  ;;  %v17418_v7 = vld [vmem:[%s18069_s6 + $0x9e0] ss:$16 sps:$4 sm:$0xff]  }
 0xa5b   : > { %12486 = vmatpush1.bf16.msra.mxu1 %v17352_v49  ;;  %v17421_v49 = vld [vmem:[%s18069_s6 + $0x9e8] ss:$16 sps:$4 sm:$0xff]  }
 0xa5c   : > { %12830 = vmatpush1.bf16.msra.mxu0 %v17355_v51  ;;  %12487 = vmatprep.subr.bf16.mxu1 %v17360_v58  ;;  %v17426_v51 = vld [vmem:[%s18069_s6 + $0xa04] ss:$16 sps:$4 sm:$0xff]   ;;  %v17429_v58 = vld [vmem:[%s18069_s6 + $0xa0c] ss:$16 sps:$4 sm:$0xff]  }
 0xa5d   : > { %12831 = vmatprep.subr.bf16.mxu0 %v17363_v32  ;;  %v17424_v32 = vld [vmem:[%s18069_s6 + $0xa00] ss:$16 sps:$4 sm:$0xff]  }
 0xa5f   : > { %12488 = vmatpush1.bf16.msra.mxu1 %v17358_v56  ;;  %v17427_v56 = vld [vmem:[%s18069_s6 + $0xa08] ss:$16 sps:$4 sm:$0xff]  }
 0xa60   : > { %12832 = vmatpush1.bf16.msra.mxu0 %v17361_v57  ;;  %12489 = vmatprep.subr.bf16.mxu1 %v17366_v16  ;;  %v17432_v57 = vld [vmem:[%s18069_s6 + $0xa24] ss:$16 sps:$4 sm:$0xff]   ;;  %v17435_v16 = vld [vmem:[%s18069_s6 + $0xa2c] ss:$16 sps:$4 sm:$0xff]  }
 0xa61   : > { %12833 = vmatprep.subr.bf16.mxu0 %v17369_v60  ;;  %v17430_v60 = vld [vmem:[%s18069_s6 + $0xa20] ss:$16 sps:$4 sm:$0xff]  }
 0xa63   : > { %12490 = vmatpush1.bf16.msra.mxu1 %v17364_v40  ;;  %v17433_v40 = vld [vmem:[%s18069_s6 + $0xa28] ss:$16 sps:$4 sm:$0xff]  }
 0xa64   : > { %12834 = vmatpush1.bf16.msra.mxu0 %v17367_v38  ;;  %12491 = vmatprep.subr.bf16.mxu1 %v17372_v4  ;;  %v17438_v38 = vld [vmem:[%s18069_s6 + $0xa44] ss:$16 sps:$4 sm:$0xff]   ;;  %v17441_v4 = vld [vmem:[%s18069_s6 + $0xa4c] ss:$16 sps:$4 sm:$0xff]  }
 0xa65   : > { %12835 = vmatprep.subr.bf16.mxu0 %v17375_v29  ;;  %v17439_v29 = vld [vmem:[%s18069_s6 + $0xa48] ss:$16 sps:$4 sm:$0xff]  }
 0xa67   : > { %12492 = vmatpush1.bf16.msra.mxu1 %v17370_v20  ;;  %v17444_v20 = vld [vmem:[%s18069_s6 + $0xa64] ss:$16 sps:$4 sm:$0xff]  }
 0xa68   : > { %12836 = vmatpush1.bf16.msra.mxu0 %v17373_v43  ;;  %12493 = vmatprep.subr.bf16.mxu1 %v17378_v30  ;;  %v17447_v43 = vld [vmem:[%s18069_s6 + $0xa6c] ss:$16 sps:$4 sm:$0xff]   ;;  %v17445_v30 = vld [vmem:[%s18069_s6 + $0xa68] ss:$16 sps:$4 sm:$0xff]  }
 0xa69   : > { %12837 = vmatprep.subr.bf16.mxu0 %v17381_v63  ;;  %v17450_v63 = vld [vmem:[%s18069_s6 + $0xa84] ss:$16 sps:$4 sm:$0xff]  }
 0xa6b   : > { %12494 = vmatpush1.bf16.msra.mxu1 %v17376_v35  ;;  %v17453_v35 = vld [vmem:[%s18069_s6 + $0xa8c] ss:$16 sps:$4 sm:$0xff]  }
 0xa6c   : > { %12838 = vmatpush1.bf16.msra.mxu0 %v17379_v47  ;;  %12495 = vmatprep.subr.bf16.mxu1 %v17384_v25  ;;  %v17448_v47 = vld [vmem:[%s18069_s6 + $0xa80] ss:$16 sps:$4 sm:$0xff]   ;;  %v17451_v25 = vld [vmem:[%s18069_s6 + $0xa88] ss:$16 sps:$4 sm:$0xff]  }
 0xa6d   : > { %12839 = vmatprep.subr.bf16.mxu0 %v17387_v10  ;;  %v17456_v10 = vld [vmem:[%s18069_s6 + $0xaa4] ss:$16 sps:$4 sm:$0xff]  }
 0xa6f   : > { %12496 = vmatpush1.bf16.msra.mxu1 %v17382_v17  ;;  %v17459_v17 = vld [vmem:[%s18069_s6 + $0xaac] ss:$16 sps:$4 sm:$0xff]  }
 0xa70   : > { %12840 = vmatpush1.bf16.msra.mxu0 %v17385_v14  ;;  %12497 = vmatprep.subr.bf16.mxu1 %v17390_v9  ;;  %v17454_v14 = vld [vmem:[%s18069_s6 + $0xaa0] ss:$16 sps:$4 sm:$0xff]   ;;  %v17457_v9 = vld [vmem:[%s18069_s6 + $0xaa8] ss:$16 sps:$4 sm:$0xff]  }
 0xa71   : > { %12841 = vmatprep.subr.bf16.mxu0 %v17393_v48  ;;  %v17462_v48 = vld [vmem:[%s18069_s6 + $0xac4] ss:$16 sps:$4 sm:$0xff]  }
 0xa73   : > { %12498 = vmatpush1.bf16.msra.mxu1 %v17388_v5  ;;  %v17465_v5 = vld [vmem:[%s18069_s6 + $0xacc] ss:$16 sps:$4 sm:$0xff]  }
 0xa74   : > { %12842 = vmatpush1.bf16.msra.mxu0 %v17391_v19  ;;  %12499 = vmatprep.subr.bf16.mxu1 %v17396_v22  ;;  %v17460_v19 = vld [vmem:[%s18069_s6 + $0xac0] ss:$16 sps:$4 sm:$0xff]   ;;  %v17463_v22 = vld [vmem:[%s18069_s6 + $0xac8] ss:$16 sps:$4 sm:$0xff]  }
 0xa75   : > { %12843 = vmatprep.subr.bf16.mxu0 %v17399_v61  ;;  %v17468_v61 = vld [vmem:[%s18069_s6 + $0xae4] ss:$16 sps:$4 sm:$0xff]  }
 0xa77   : > { %12500 = vmatpush1.bf16.msra.mxu1 %v17394_v21  ;;  %v17471_v21 = vld [vmem:[%s18069_s6 + $0xaec] ss:$16 sps:$4 sm:$0xff]  }
 0xa78   : > { %12844 = vmatpush1.bf16.msra.mxu0 %v17397_v27  ;;  %12501 = vmatprep.subr.bf16.mxu1 %v17402_v55  ;;  %v17466_v27 = vld [vmem:[%s18069_s6 + $0xae0] ss:$16 sps:$4 sm:$0xff]   ;;  %v17469_v55 = vld [vmem:[%s18069_s6 + $0xae8] ss:$16 sps:$4 sm:$0xff]  }
 0xa79   : > { %12845 = vmatprep.subr.bf16.mxu0 %v17405_v34  ;;  %v17474_v34 = vld [vmem:[%s18069_s6 + $0xb04] ss:$16 sps:$4 sm:$0xff]  }
 0xa7b   : > { %12502 = vmatpush1.bf16.msra.mxu1 %v17400_v41  ;;  %v17477_v41 = vld [vmem:[%s18069_s6 + $0xb0c] ss:$16 sps:$4 sm:$0xff]  }
 0xa7c   : > { %12846 = vmatpush1.bf16.msra.mxu0 %v17403_v33  ;;  %12503 = vmatprep.subr.bf16.mxu1 %v17408_v36  ;;  %v17472_v33 = vld [vmem:[%s18069_s6 + $0xb00] ss:$16 sps:$4 sm:$0xff]   ;;  %v17475_v36 = vld [vmem:[%s18069_s6 + $0xb08] ss:$16 sps:$4 sm:$0xff]  }
 0xa7d   : > { %12847 = vmatprep.subr.bf16.mxu0 %v17411_v52  ;;  %v17480_v52 = vld [vmem:[%s18069_s6 + $0xb24] ss:$16 sps:$4 sm:$0xff]  }
 0xa7f   : > { %12504 = vmatpush1.bf16.msra.mxu1 %v17406_v46  ;;  %v17483_v46 = vld [vmem:[%s18069_s6 + $0xb2c] ss:$16 sps:$4 sm:$0xff]  }
 0xa80   : > { %12848 = vmatpush1.bf16.msra.mxu0 %v17409_v24  ;;  %12505 = vmatprep.subr.bf16.mxu1 %v17414_v3  ;;  %v17478_v24 = vld [vmem:[%s18069_s6 + $0xb20] ss:$16 sps:$4 sm:$0xff]   ;;  %v17481_v3 = vld [vmem:[%s18069_s6 + $0xb28] ss:$16 sps:$4 sm:$0xff]  }
 0xa81   : > { %12849 = vmatprep.subr.bf16.mxu0 %v17417_v54  ;;  %v17486_v54 = vld [vmem:[%s18069_s6 + $0xb44] ss:$16 sps:$4 sm:$0xff]  }
 0xa83   : > { %12506 = vmatpush1.bf16.msra.mxu1 %v17412_v0  ;;  %v17489_v0 = vld [vmem:[%s18069_s6 + $0xb4c] ss:$16 sps:$4 sm:$0xff]  }
 0xa84   : > { %12850 = vmatpush1.bf16.msra.mxu0 %v17415_v59  ;;  %12507 = vmatprep.subr.bf16.mxu1 %v17420_v11  ;;  %v17484_v59 = vld [vmem:[%s18069_s6 + $0xb40] ss:$16 sps:$4 sm:$0xff]   ;;  %v17487_v11 = vld [vmem:[%s18069_s6 + $0xb48] ss:$16 sps:$4 sm:$0xff]  }
 0xa85   : > { %12851 = vmatprep.subr.bf16.mxu0 %v17423_v18  ;;  %v17492_v18 = vld [vmem:[%s18069_s6 + $0xb64] ss:$16 sps:$4 sm:$0xff]  }
 0xa87   : > { %12508 = vmatpush1.bf16.msra.mxu1 %v17418_v7  ;;  %v17495_v7 = vld [vmem:[%s18069_s6 + $0xb6c] ss:$16 sps:$4 sm:$0xff]  }
 0xa88   : > { %12852 = vmatpush1.bf16.msra.mxu0 %v17421_v49  ;;  %12520 = vmatprep.subr.bf16.mxu1 %v17426_v51  ;;  %v17490_v49 = vld [vmem:[%s18069_s6 + $0xb60] ss:$16 sps:$4 sm:$0xff]   ;;  %v17493_v51 = vld [vmem:[%s18069_s6 + $0xb68] ss:$16 sps:$4 sm:$0xff]  }
 0xa89   : > { %12864 = vmatprep.subr.bf16.mxu0 %v17429_v58  ;;  %v17498_v58 = vld [vmem:[%s18069_s6 + $0xb84] ss:$16 sps:$4 sm:$0xff]  }
 0xa8a   : > { %12510 = vmatmul.mubr.bf16.vlgmr.msra.gmra.mrb[40].mxu1 %v19682_v8 }
 0xa8b   : > { %12854 = vmatmul.mubr.bf16.vlgmr.msra.gmra.mrb[40].mxu0 %v19682_v8  ;;  %12521 = vmatpush1.bf16.msra.mxu1 %v17424_v32  ;;  %v17436_v8 = vld [vmem:[%s18069_s6 + $0xa40] ss:$16 sps:$4 sm:$0xff]   ;;  %v17501_v32 = vld [vmem:[%s18069_s6 + $0xb8c] ss:$16 sps:$4 sm:$0xff]  }
 0xa8c   : > { %12552 = vmatprep.mubr.bf16.mxu1 %v19691_v13  ;;  %12865 = vmatpush1.bf16.msra.mxu0 %v17427_v56  ;;  %v17496_v56 = vld [vmem:[%s18069_s6 + $0xb80] ss:$16 sps:$4 sm:$0xff]  }
 0xa8d   : > { %12896 = vmatprep.mubr.bf16.mxu0 %v19691_v13  ;;  %12522 = vmatprep.subr.bf16.mxu1 %v17432_v57  ;;  %v17442_v13 = vld [vmem:[%s18069_s6 + $0xa60] ss:$16 sps:$4 sm:$0xff]   ;;  %v17499_v57 = vld [vmem:[%s18069_s6 + $0xb88] ss:$16 sps:$4 sm:$0xff]  }
 0xa8e   : > { %12866 = vmatprep.subr.bf16.mxu0 %v17435_v16  ;;  %v17504_v16 = vld [vmem:[%s18069_s6 + $0xba4] ss:$16 sps:$4 sm:$0xff]  }
 0xa8f   : > { %12523 = vmatpush1.bf16.msra.mxu1 %v17430_v60  ;;  %v17507_v60 = vld [vmem:[%s18069_s6 + $0xbac] ss:$16 sps:$4 sm:$0xff]  }
 0xa90   : > { %12867 = vmatpush1.bf16.msra.mxu0 %v17433_v40  ;;  %12524 = vmatprep.subr.bf16.mxu1 %v17438_v38  ;;  %v17502_v40 = vld [vmem:[%s18069_s6 + $0xba0] ss:$16 sps:$4 sm:$0xff]   ;;  %v17505_v38 = vld [vmem:[%s18069_s6 + $0xba8] ss:$16 sps:$4 sm:$0xff]  }
 0xa91   : > { %12868 = vmatprep.subr.bf16.mxu0 %v17441_v4  ;;  %v17510_v4 = vld [vmem:[%s18069_s6 + $0xbc4] ss:$16 sps:$4 sm:$0xff]  }
 0xa93   : > { %12525 = vmatpush1.bf16.msra.mxu1 %v17436_v8  ;;  %v17513_v8 = vld [vmem:[%s18069_s6 + $0xbcc] ss:$16 sps:$4 sm:$0xff]  }
 0xa94   : > { %12869 = vmatpush1.bf16.msra.mxu0 %v17439_v29  ;;  %12526 = vmatprep.subr.bf16.mxu1 %v17444_v20  ;;  %v17508_v29 = vld [vmem:[%s18069_s6 + $0xbc0] ss:$16 sps:$4 sm:$0xff]   ;;  %v17511_v20 = vld [vmem:[%s18069_s6 + $0xbc8] ss:$16 sps:$4 sm:$0xff]  }
 0xa95   : > { %12870 = vmatprep.subr.bf16.mxu0 %v17447_v43  ;;  %v17516_v43 = vld [vmem:[%s18069_s6 + $0xbe4] ss:$16 sps:$4 sm:$0xff]  }
 0xa97   : > { %12527 = vmatpush1.bf16.msra.mxu1 %v17442_v13  ;;  %v17519_v13 = vld [vmem:[%s18069_s6 + $0xbec] ss:$16 sps:$4 sm:$0xff]  }
 0xa98   : > { %12871 = vmatpush1.bf16.msra.mxu0 %v17445_v30  ;;  %12528 = vmatprep.subr.bf16.mxu1 %v17450_v63  ;;  %v17514_v30 = vld [vmem:[%s18069_s6 + $0xbe0] ss:$16 sps:$4 sm:$0xff]   ;;  %v17517_v63 = vld [vmem:[%s18069_s6 + $0xbe8] ss:$16 sps:$4 sm:$0xff]  }
 0xa99   : > { %12872 = vmatprep.subr.bf16.mxu0 %v17453_v35  ;;  %v17522_v35 = vld [vmem:[%s18069_s6 + $0xc04] ss:$16 sps:$4 sm:$0xff]  }
 0xa9b   : > { %12529 = vmatpush1.bf16.msra.mxu1 %v17448_v47  ;;  %v17525_v47 = vld [vmem:[%s18069_s6 + $0xc0c] ss:$16 sps:$4 sm:$0xff]  }
 0xa9c   : > { %12873 = vmatpush1.bf16.msra.mxu0 %v17451_v25  ;;  %12530 = vmatprep.subr.bf16.mxu1 %v17456_v10  ;;  %v17520_v25 = vld [vmem:[%s18069_s6 + $0xc00] ss:$16 sps:$4 sm:$0xff]   ;;  %v17523_v10 = vld [vmem:[%s18069_s6 + $0xc08] ss:$16 sps:$4 sm:$0xff]  }
 0xa9d   : > { %12874 = vmatprep.subr.bf16.mxu0 %v17459_v17  ;;  %v17528_v17 = vld [vmem:[%s18069_s6 + $0xc24] ss:$16 sps:$4 sm:$0xff]  }
 0xa9f   : > { %12531 = vmatpush1.bf16.msra.mxu1 %v17454_v14  ;;  %v17531_v14 = vld [vmem:[%s18069_s6 + $0xc2c] ss:$16 sps:$4 sm:$0xff]  }
 0xaa0   : > { %12875 = vmatpush1.bf16.msra.mxu0 %v17457_v9  ;;  %12532 = vmatprep.subr.bf16.mxu1 %v17462_v48  ;;  %v17526_v9 = vld [vmem:[%s18069_s6 + $0xc20] ss:$16 sps:$4 sm:$0xff]   ;;  %v17529_v48 = vld [vmem:[%s18069_s6 + $0xc28] ss:$16 sps:$4 sm:$0xff]  }
 0xaa1   : > { %12876 = vmatprep.subr.bf16.mxu0 %v17465_v5  ;;  %v17534_v5 = vld [vmem:[%s18069_s6 + $0xc44] ss:$16 sps:$4 sm:$0xff]  }
 0xaa3   : > { %12533 = vmatpush1.bf16.msra.mxu1 %v17460_v19  ;;  %v17537_v19 = vld [vmem:[%s18069_s6 + $0xc4c] ss:$16 sps:$4 sm:$0xff]  }
 0xaa4   : > { %12877 = vmatpush1.bf16.msra.mxu0 %v17463_v22  ;;  %12534 = vmatprep.subr.bf16.mxu1 %v17468_v61  ;;  %v17535_v22 = vld [vmem:[%s18069_s6 + $0xc48] ss:$16 sps:$4 sm:$0xff]   ;;  %v17540_v61 = vld [vmem:[%s18069_s6 + $0xc64] ss:$16 sps:$4 sm:$0xff]  }
 0xaa5   : > { %12878 = vmatprep.subr.bf16.mxu0 %v17471_v21  ;;  %v17543_v21 = vld [vmem:[%s18069_s6 + $0xc6c] ss:$16 sps:$4 sm:$0xff]  }
 0xaa7   : > { %12535 = vmatpush1.bf16.msra.mxu1 %v17466_v27  ;;  %v17541_v27 = vld [vmem:[%s18069_s6 + $0xc68] ss:$16 sps:$4 sm:$0xff]  }
 0xaa8   : > { %12879 = vmatpush1.bf16.msra.mxu0 %v17469_v55  ;;  %12536 = vmatprep.subr.bf16.mxu1 %v17474_v34  ;;  %v17546_v55 = vld [vmem:[%s18069_s6 + $0xc84] ss:$16 sps:$4 sm:$0xff]   ;;  %v17549_v34 = vld [vmem:[%s18069_s6 + $0xc8c] ss:$16 sps:$4 sm:$0xff]  }
 0xaa9   : > { %12880 = vmatprep.subr.bf16.mxu0 %v17477_v41  ;;  %v17544_v41 = vld [vmem:[%s18069_s6 + $0xc80] ss:$16 sps:$4 sm:$0xff]  }
 0xaab   : > { %12537 = vmatpush1.bf16.msra.mxu1 %v17472_v33  ;;  %v17547_v33 = vld [vmem:[%s18069_s6 + $0xc88] ss:$16 sps:$4 sm:$0xff]  }
 0xaac   : > { %12881 = vmatpush1.bf16.msra.mxu0 %v17475_v36  ;;  %12538 = vmatprep.subr.bf16.mxu1 %v17480_v52  ;;  %v17552_v36 = vld [vmem:[%s18069_s6 + $0xca4] ss:$16 sps:$4 sm:$0xff]   ;;  %v17555_v52 = vld [vmem:[%s18069_s6 + $0xcac] ss:$16 sps:$4 sm:$0xff]  }
 0xaad   : > { %12882 = vmatprep.subr.bf16.mxu0 %v17483_v46  ;;  %v17550_v46 = vld [vmem:[%s18069_s6 + $0xca0] ss:$16 sps:$4 sm:$0xff]  }
 0xaaf   : > { %12539 = vmatpush1.bf16.msra.mxu1 %v17478_v24  ;;  %v17553_v24 = vld [vmem:[%s18069_s6 + $0xca8] ss:$16 sps:$4 sm:$0xff]  }
 0xab0   : > { %12883 = vmatpush1.bf16.msra.mxu0 %v17481_v3  ;;  %12540 = vmatprep.subr.bf16.mxu1 %v17486_v54  ;;  %v17558_v3 = vld [vmem:[%s18069_s6 + $0xcc4] ss:$16 sps:$4 sm:$0xff]   ;;  %v17561_v54 = vld [vmem:[%s18069_s6 + $0xccc] ss:$16 sps:$4 sm:$0xff]  }
 0xab1   : > { %12884 = vmatprep.subr.bf16.mxu0 %v17489_v0  ;;  %v17556_v0 = vld [vmem:[%s18069_s6 + $0xcc0] ss:$16 sps:$4 sm:$0xff]  }
 0xab3   : > { %12541 = vmatpush1.bf16.msra.mxu1 %v17484_v59  ;;  %v17559_v59 = vld [vmem:[%s18069_s6 + $0xcc8] ss:$16 sps:$4 sm:$0xff]  }
 0xab4   : > { %12885 = vmatpush1.bf16.msra.mxu0 %v17487_v11  ;;  %12542 = vmatprep.subr.bf16.mxu1 %v17492_v18  ;;  %v17564_v11 = vld [vmem:[%s18069_s6 + $0xce4] ss:$16 sps:$4 sm:$0xff]   ;;  %v17567_v18 = vld [vmem:[%s18069_s6 + $0xcec] ss:$16 sps:$4 sm:$0xff]  }
 0xab5   : > { %12886 = vmatprep.subr.bf16.mxu0 %v17495_v7  ;;  %v17562_v7 = vld [vmem:[%s18069_s6 + $0xce0] ss:$16 sps:$4 sm:$0xff]  }
 0xab7   : > { %12543 = vmatpush1.bf16.msra.mxu1 %v17490_v49  ;;  %v17565_v49 = vld [vmem:[%s18069_s6 + $0xce8] ss:$16 sps:$4 sm:$0xff]  }
 0xab8   : > { %12887 = vmatpush1.bf16.msra.mxu0 %v17493_v51  ;;  %12544 = vmatprep.subr.bf16.mxu1 %v17498_v58  ;;  %v17570_v51 = vld [vmem:[%s18069_s6 + $0xd04] ss:$16 sps:$4 sm:$0xff]   ;;  %v17573_v58 = vld [vmem:[%s18069_s6 + $0xd0c] ss:$16 sps:$4 sm:$0xff]  }
 0xab9   : > { %12888 = vmatprep.subr.bf16.mxu0 %v17501_v32  ;;  %v17568_v32 = vld [vmem:[%s18069_s6 + $0xd00] ss:$16 sps:$4 sm:$0xff]  }
 0xabb   : > { %12545 = vmatpush1.bf16.msra.mxu1 %v17496_v56  ;;  %v17571_v56 = vld [vmem:[%s18069_s6 + $0xd08] ss:$16 sps:$4 sm:$0xff]  }
 0xabc   : > { %12889 = vmatpush1.bf16.msra.mxu0 %v17499_v57  ;;  %12546 = vmatprep.subr.bf16.mxu1 %v17504_v16  ;;  %v17576_v57 = vld [vmem:[%s18069_s6 + $0xd24] ss:$16 sps:$4 sm:$0xff]   ;;  %v17579_v16 = vld [vmem:[%s18069_s6 + $0xd2c] ss:$16 sps:$4 sm:$0xff]  }
 0xabd   : > { %12890 = vmatprep.subr.bf16.mxu0 %v17507_v60  ;;  %v17574_v60 = vld [vmem:[%s18069_s6 + $0xd20] ss:$16 sps:$4 sm:$0xff]  }
 0xabf   : > { %12547 = vmatpush1.bf16.msra.mxu1 %v17502_v40  ;;  %v17577_v40 = vld [vmem:[%s18069_s6 + $0xd28] ss:$16 sps:$4 sm:$0xff]  }
 0xac0   : > { %12891 = vmatpush1.bf16.msra.mxu0 %v17505_v38  ;;  %12548 = vmatprep.subr.bf16.mxu1 %v17510_v4  ;;  %v17582_v38 = vld [vmem:[%s18069_s6 + $0xd44] ss:$16 sps:$4 sm:$0xff]   ;;  %v17585_v4 = vld [vmem:[%s18069_s6 + $0xd4c] ss:$16 sps:$4 sm:$0xff]  }
 0xac1   : > { %12892 = vmatprep.subr.bf16.mxu0 %v17513_v8  ;;  %v17580_v8 = vld [vmem:[%s18069_s6 + $0xd40] ss:$16 sps:$4 sm:$0xff]  }
 0xac3   : > { %12549 = vmatpush1.bf16.msra.mxu1 %v17508_v29  ;;  %v17583_v29 = vld [vmem:[%s18069_s6 + $0xd48] ss:$16 sps:$4 sm:$0xff]  }
 0xac4   : > { %12893 = vmatpush1.bf16.msra.mxu0 %v17511_v20  ;;  %12550 = vmatprep.subr.bf16.mxu1 %v17516_v43  ;;  %v17588_v20 = vld [vmem:[%s18069_s6 + $0xd64] ss:$16 sps:$4 sm:$0xff]   ;;  %v17591_v43 = vld [vmem:[%s18069_s6 + $0xd6c] ss:$16 sps:$4 sm:$0xff]  }
 0xac5   : > { %12894 = vmatprep.subr.bf16.mxu0 %v17519_v13  ;;  %v17586_v13 = vld [vmem:[%s18069_s6 + $0xd60] ss:$16 sps:$4 sm:$0xff]  }
 0xac7   : > { %12551 = vmatpush1.bf16.msra.mxu1 %v17514_v30  ;;  %v17589_v30 = vld [vmem:[%s18069_s6 + $0xd68] ss:$16 sps:$4 sm:$0xff]  }
 0xac8   : > { %12895 = vmatpush1.bf16.msra.mxu0 %v17517_v63  ;;  %12563 = vmatprep.subr.bf16.mxu1 %v17522_v35  ;;  %v17594_v63 = vld [vmem:[%s18069_s6 + $0xd84] ss:$16 sps:$4 sm:$0xff]   ;;  %v17597_v35 = vld [vmem:[%s18069_s6 + $0xd8c] ss:$16 sps:$4 sm:$0xff]  }
 0xac9   : > { %12907 = vmatprep.subr.bf16.mxu0 %v17525_v47  ;;  %v17592_v47 = vld [vmem:[%s18069_s6 + $0xd80] ss:$16 sps:$4 sm:$0xff]  }
 0xaca   : > { %12553 = vmatmul.mubr.bf16.vlgmr.msra.gmra.mrb[40].mxu1 %v19686_v12 }
 0xacb   : > { %12897 = vmatmul.mubr.bf16.vlgmr.msra.gmra.mrb[40].mxu0 %v19686_v12  ;;  %12564 = vmatpush1.bf16.msra.mxu1 %v17520_v25  ;;  %v17532_v12 = vld [vmem:[%s18069_s6 + $0xc40] ss:$16 sps:$4 sm:$0xff]   ;;  %v17595_v25 = vld [vmem:[%s18069_s6 + $0xd88] ss:$16 sps:$4 sm:$0xff]  }
 0xacc   : > { %12595 = vmatprep.mubr.bf16.mxu1 %v19840_v53  ;;  %12908 = vmatpush1.bf16.msra.mxu0 %v17523_v10  ;;  %v17600_v10 = vld [vmem:[%s18069_s6 + $0xda4] ss:$16 sps:$4 sm:$0xff]  }
 0xacd   : > { %12939 = vmatprep.mubr.bf16.mxu0 %v19840_v53  ;;  %12565 = vmatprep.subr.bf16.mxu1 %v17528_v17  ;;  %v17538_v53 = vld [vmem:[%s18069_s6 + $0xc60] ss:$16 sps:$4 sm:$0xff]   ;;  %v17603_v17 = vld [vmem:[%s18069_s6 + $0xdac] ss:$16 sps:$4 sm:$0xff]  }
 0xace   : > { %12909 = vmatprep.subr.bf16.mxu0 %v17531_v14  ;;  %v17598_v14 = vld [vmem:[%s18069_s6 + $0xda0] ss:$16 sps:$4 sm:$0xff]  }
 0xacf   : > { %12566 = vmatpush1.bf16.msra.mxu1 %v17526_v9  ;;  %v17601_v9 = vld [vmem:[%s18069_s6 + $0xda8] ss:$16 sps:$4 sm:$0xff]  }
 0xad0   : > { %12910 = vmatpush1.bf16.msra.mxu0 %v17529_v48  ;;  %12567 = vmatprep.subr.bf16.mxu1 %v17534_v5  ;;  %v17606_v48 = vld [vmem:[%s18069_s6 + $0xdc4] ss:$16 sps:$4 sm:$0xff]   ;;  %v17609_v5 = vld [vmem:[%s18069_s6 + $0xdcc] ss:$16 sps:$4 sm:$0xff]  }
 0xad1   : > { %12911 = vmatprep.subr.bf16.mxu0 %v17537_v19  ;;  %v17604_v19 = vld [vmem:[%s18069_s6 + $0xdc0] ss:$16 sps:$4 sm:$0xff]  }
 0xad3   : > { %12568 = vmatpush1.bf16.msra.mxu1 %v17532_v12  ;;  %v17607_v12 = vld [vmem:[%s18069_s6 + $0xdc8] ss:$16 sps:$4 sm:$0xff]  }
 0xad4   : > { %12912 = vmatpush1.bf16.msra.mxu0 %v17535_v22  ;;  %12569 = vmatprep.subr.bf16.mxu1 %v17540_v61  ;;  %v17612_v22 = vld [vmem:[%s18069_s6 + $0xde4] ss:$16 sps:$4 sm:$0xff]   ;;  %v17615_v61 = vld [vmem:[%s18069_s6 + $0xdec] ss:$16 sps:$4 sm:$0xff]  }
 0xad5   : > { %12913 = vmatprep.subr.bf16.mxu0 %v17543_v21  ;;  %v17610_v21 = vld [vmem:[%s18069_s6 + $0xde0] ss:$16 sps:$4 sm:$0xff]  }
 0xad7   : > { %12570 = vmatpush1.bf16.msra.mxu1 %v17538_v53  ;;  %v17613_v53 = vld [vmem:[%s18069_s6 + $0xde8] ss:$16 sps:$4 sm:$0xff]  }
 0xad8   : > { %12914 = vmatpush1.bf16.msra.mxu0 %v17541_v27  ;;  %12571 = vmatprep.subr.bf16.mxu1 %v17546_v55  ;;  %v17618_v27 = vld [vmem:[%s18069_s6 + $0xe04] ss:$16 sps:$4 sm:$0xff]   ;;  %v17621_v55 = vld [vmem:[%s18069_s6 + $0xe0c] ss:$16 sps:$4 sm:$0xff]  }
 0xad9   : > { %12915 = vmatprep.subr.bf16.mxu0 %v17549_v34  ;;  %v17616_v34 = vld [vmem:[%s18069_s6 + $0xe00] ss:$16 sps:$4 sm:$0xff]  }
 0xadb   : > { %12572 = vmatpush1.bf16.msra.mxu1 %v17544_v41  ;;  %v17619_v41 = vld [vmem:[%s18069_s6 + $0xe08] ss:$16 sps:$4 sm:$0xff]  }
 0xadc   : > { %12916 = vmatpush1.bf16.msra.mxu0 %v17547_v33  ;;  %12573 = vmatprep.subr.bf16.mxu1 %v17552_v36  ;;  %v17624_v33 = vld [vmem:[%s18069_s6 + $0xe24] ss:$16 sps:$4 sm:$0xff]   ;;  %v17627_v36 = vld [vmem:[%s18069_s6 + $0xe2c] ss:$16 sps:$4 sm:$0xff]  }
 0xadd   : > { %12917 = vmatprep.subr.bf16.mxu0 %v17555_v52  ;;  %v17622_v52 = vld [vmem:[%s18069_s6 + $0xe20] ss:$16 sps:$4 sm:$0xff]  }
 0xadf   : > { %12574 = vmatpush1.bf16.msra.mxu1 %v17550_v46  ;;  %v17625_v46 = vld [vmem:[%s18069_s6 + $0xe28] ss:$16 sps:$4 sm:$0xff]  }
 0xae0   : > { %12918 = vmatpush1.bf16.msra.mxu0 %v17553_v24  ;;  %12575 = vmatprep.subr.bf16.mxu1 %v17558_v3  ;;  %v17630_v24 = vld [vmem:[%s18069_s6 + $0xe44] ss:$16 sps:$4 sm:$0xff]   ;;  %v17633_v3 = vld [vmem:[%s18069_s6 + $0xe4c] ss:$16 sps:$4 sm:$0xff]  }
 0xae1   : > { %12919 = vmatprep.subr.bf16.mxu0 %v17561_v54  ;;  %v17631_v54 = vld [vmem:[%s18069_s6 + $0xe48] ss:$16 sps:$4 sm:$0xff]  }
 0xae3   : > { %12576 = vmatpush1.bf16.msra.mxu1 %v17556_v0  ;;  %v17636_v0 = vld [vmem:[%s18069_s6 + $0xe64] ss:$16 sps:$4 sm:$0xff]  }
 0xae4   : > { %12920 = vmatpush1.bf16.msra.mxu0 %v17559_v59  ;;  %12577 = vmatprep.subr.bf16.mxu1 %v17564_v11  ;;  %v17639_v59 = vld [vmem:[%s18069_s6 + $0xe6c] ss:$16 sps:$4 sm:$0xff]   ;;  %v17637_v11 = vld [vmem:[%s18069_s6 + $0xe68] ss:$16 sps:$4 sm:$0xff]  }
 0xae5   : > { %12921 = vmatprep.subr.bf16.mxu0 %v17567_v18  ;;  %v17642_v18 = vld [vmem:[%s18069_s6 + $0xe84] ss:$16 sps:$4 sm:$0xff]  }
 0xae7   : > { %12578 = vmatpush1.bf16.msra.mxu1 %v17562_v7  ;;  %v17645_v7 = vld [vmem:[%s18069_s6 + $0xe8c] ss:$16 sps:$4 sm:$0xff]  }
 0xae8   : > { %12922 = vmatpush1.bf16.msra.mxu0 %v17565_v49  ;;  %12579 = vmatprep.subr.bf16.mxu1 %v17570_v51  ;;  %v17640_v49 = vld [vmem:[%s18069_s6 + $0xe80] ss:$16 sps:$4 sm:$0xff]   ;;  %v17643_v51 = vld [vmem:[%s18069_s6 + $0xe88] ss:$16 sps:$4 sm:$0xff]  }
 0xae9   : > { %12923 = vmatprep.subr.bf16.mxu0 %v17573_v58  ;;  %v17648_v58 = vld [vmem:[%s18069_s6 + $0xea4] ss:$16 sps:$4 sm:$0xff]  }
 0xaeb   : > { %12580 = vmatpush1.bf16.msra.mxu1 %v17568_v32  ;;  %v17651_v32 = vld [vmem:[%s18069_s6 + $0xeac] ss:$16 sps:$4 sm:$0xff]  }
 0xaec   : > { %12924 = vmatpush1.bf16.msra.mxu0 %v17571_v56  ;;  %12581 = vmatprep.subr.bf16.mxu1 %v17576_v57  ;;  %v17646_v56 = vld [vmem:[%s18069_s6 + $0xea0] ss:$16 sps:$4 sm:$0xff]   ;;  %v17649_v57 = vld [vmem:[%s18069_s6 + $0xea8] ss:$16 sps:$4 sm:$0xff]  }
 0xaed   : > { %12925 = vmatprep.subr.bf16.mxu0 %v17579_v16  ;;  %v17654_v16 = vld [vmem:[%s18069_s6 + $0xec4] ss:$16 sps:$4 sm:$0xff]  }
 0xaef   : > { %12582 = vmatpush1.bf16.msra.mxu1 %v17574_v60  ;;  %v17657_v60 = vld [vmem:[%s18069_s6 + $0xecc] ss:$16 sps:$4 sm:$0xff]  }
 0xaf0   : > { %12926 = vmatpush1.bf16.msra.mxu0 %v17577_v40  ;;  %12583 = vmatprep.subr.bf16.mxu1 %v17582_v38  ;;  %v17652_v40 = vld [vmem:[%s18069_s6 + $0xec0] ss:$16 sps:$4 sm:$0xff]   ;;  %v17655_v38 = vld [vmem:[%s18069_s6 + $0xec8] ss:$16 sps:$4 sm:$0xff]  }
 0xaf1   : > { %12927 = vmatprep.subr.bf16.mxu0 %v17585_v4  ;;  %v17660_v4 = vld [vmem:[%s18069_s6 + $0xee4] ss:$16 sps:$4 sm:$0xff]  }
 0xaf3   : > { %12584 = vmatpush1.bf16.msra.mxu1 %v17580_v8  ;;  %v17663_v8 = vld [vmem:[%s18069_s6 + $0xeec] ss:$16 sps:$4 sm:$0xff]  }
 0xaf4   : > { %12928 = vmatpush1.bf16.msra.mxu0 %v17583_v29  ;;  %12585 = vmatprep.subr.bf16.mxu1 %v17588_v20  ;;  %v17658_v29 = vld [vmem:[%s18069_s6 + $0xee0] ss:$16 sps:$4 sm:$0xff]   ;;  %v17661_v20 = vld [vmem:[%s18069_s6 + $0xee8] ss:$16 sps:$4 sm:$0xff]  }
 0xaf5   : > { %12929 = vmatprep.subr.bf16.mxu0 %v17591_v43  ;;  %v17666_v43 = vld [vmem:[%s18069_s6 + $0xf04] ss:$16 sps:$4 sm:$0xff]  }
 0xaf7   : > { %12586 = vmatpush1.bf16.msra.mxu1 %v17586_v13  ;;  %v17669_v13 = vld [vmem:[%s18069_s6 + $0xf0c] ss:$16 sps:$4 sm:$0xff]  }
 0xaf8   : > { %12930 = vmatpush1.bf16.msra.mxu0 %v17589_v30  ;;  %12587 = vmatprep.subr.bf16.mxu1 %v17594_v63  ;;  %v17664_v30 = vld [vmem:[%s18069_s6 + $0xf00] ss:$16 sps:$4 sm:$0xff]   ;;  %v17667_v63 = vld [vmem:[%s18069_s6 + $0xf08] ss:$16 sps:$4 sm:$0xff]  }
 0xaf9   : > { %12931 = vmatprep.subr.bf16.mxu0 %v17597_v35  ;;  %v17672_v35 = vld [vmem:[%s18069_s6 + $0xf24] ss:$16 sps:$4 sm:$0xff]  }
 0xafb   : > { %12588 = vmatpush1.bf16.msra.mxu1 %v17592_v47  ;;  %v17675_v47 = vld [vmem:[%s18069_s6 + $0xf2c] ss:$16 sps:$4 sm:$0xff]  }
 0xafc   : > { %12932 = vmatpush1.bf16.msra.mxu0 %v17595_v25  ;;  %12589 = vmatprep.subr.bf16.mxu1 %v17600_v10  ;;  %v17670_v25 = vld [vmem:[%s18069_s6 + $0xf20] ss:$16 sps:$4 sm:$0xff]   ;;  %v17673_v10 = vld [vmem:[%s18069_s6 + $0xf28] ss:$16 sps:$4 sm:$0xff]  }
 0xafd   : > { %12933 = vmatprep.subr.bf16.mxu0 %v17603_v17  ;;  %v17678_v17 = vld [vmem:[%s18069_s6 + $0xf44] ss:$16 sps:$4 sm:$0xff]  }
 0xaff   : > { %12590 = vmatpush1.bf16.msra.mxu1 %v17598_v14  ;;  %v17681_v14 = vld [vmem:[%s18069_s6 + $0xf4c] ss:$16 sps:$4 sm:$0xff]  }
 0xb00   : > { %12934 = vmatpush1.bf16.msra.mxu0 %v17601_v9  ;;  %12591 = vmatprep.subr.bf16.mxu1 %v17606_v48  ;;  %v17676_v9 = vld [vmem:[%s18069_s6 + $0xf40] ss:$16 sps:$4 sm:$0xff]   ;;  %v17679_v48 = vld [vmem:[%s18069_s6 + $0xf48] ss:$16 sps:$4 sm:$0xff]  }
 0xb01   : > { %12935 = vmatprep.subr.bf16.mxu0 %v17609_v5  ;;  %v17684_v5 = vld [vmem:[%s18069_s6 + $0xf64] ss:$16 sps:$4 sm:$0xff]  }
 0xb03   : > { %12592 = vmatpush1.bf16.msra.mxu1 %v17604_v19  ;;  %v17687_v19 = vld [vmem:[%s18069_s6 + $0xf6c] ss:$16 sps:$4 sm:$0xff]  }
 0xb04   : > { %12936 = vmatpush1.bf16.msra.mxu0 %v17607_v12  ;;  %12593 = vmatprep.subr.bf16.mxu1 %v17612_v22  ;;  %v17682_v12 = vld [vmem:[%s18069_s6 + $0xf60] ss:$16 sps:$4 sm:$0xff]   ;;  %v17685_v22 = vld [vmem:[%s18069_s6 + $0xf68] ss:$16 sps:$4 sm:$0xff]  }
 0xb05   : > { %12937 = vmatprep.subr.bf16.mxu0 %v17615_v61  ;;  %v17690_v61 = vld [vmem:[%s18069_s6 + $0xf84] ss:$16 sps:$4 sm:$0xff]  }
 0xb07   : > { %12594 = vmatpush1.bf16.msra.mxu1 %v17610_v21  ;;  %v17693_v21 = vld [vmem:[%s18069_s6 + $0xf8c] ss:$16 sps:$4 sm:$0xff]  }
 0xb08   : > { %12938 = vmatpush1.bf16.msra.mxu0 %v17613_v53  ;;  %12606 = vmatprep.subr.bf16.mxu1 %v17618_v27  ;;  %v17688_v53 = vld [vmem:[%s18069_s6 + $0xf80] ss:$16 sps:$4 sm:$0xff]   ;;  %v17691_v27 = vld [vmem:[%s18069_s6 + $0xf88] ss:$16 sps:$4 sm:$0xff]  }
 0xb09   : > { %12950 = vmatprep.subr.bf16.mxu0 %v17621_v55  ;;  %v17696_v55 = vld [vmem:[%s18069_s6 + $0xfa4] ss:$16 sps:$4 sm:$0xff]  }
 0xb0a   : > { %12596 = vmatmul.mubr.bf16.vlgmr.msra.gmra.mrb[40].mxu1 %v19834_v42 }
 0xb0b   : > { %12940 = vmatmul.mubr.bf16.vlgmr.msra.gmra.mrb[40].mxu0 %v19834_v42  ;;  %12607 = vmatpush1.bf16.msra.mxu1 %v17616_v34  ;;  %v17628_v42 = vld [vmem:[%s18069_s6 + $0xe40] ss:$16 sps:$4 sm:$0xff]   ;;  %v17699_v34 = vld [vmem:[%s18069_s6 + $0xfac] ss:$16 sps:$4 sm:$0xff]  }
 0xb0c   : > { %12638 = vmatprep.mubr.bf16.mxu1 %v19843_v62  ;;  %12951 = vmatpush1.bf16.msra.mxu0 %v17619_v41  ;;  %v17694_v41 = vld [vmem:[%s18069_s6 + $0xfa0] ss:$16 sps:$4 sm:$0xff]  }
 0xb0d   : > { %12982 = vmatprep.mubr.bf16.mxu0 %v19843_v62  ;;  %12608 = vmatprep.subr.bf16.mxu1 %v17624_v33  ;;  %v17634_v62 = vld [vmem:[%s18069_s6 + $0xe60] ss:$16 sps:$4 sm:$0xff]   ;;  %v17697_v33 = vld [vmem:[%s18069_s6 + $0xfa8] ss:$16 sps:$4 sm:$0xff]  }
 0xb0e   : > { %12952 = vmatprep.subr.bf16.mxu0 %v17627_v36  ;;  %v17702_v36 = vld [vmem:[%s18069_s6 + $0xfc4] ss:$16 sps:$4 sm:$0xff]  }
 0xb0f   : > { %12609 = vmatpush1.bf16.msra.mxu1 %v17622_v52  ;;  %v17705_v52 = vld [vmem:[%s18069_s6 + $0xfcc] ss:$16 sps:$4 sm:$0xff]  }
 0xb10   : > { %12953 = vmatpush1.bf16.msra.mxu0 %v17625_v46  ;;  %12610 = vmatprep.subr.bf16.mxu1 %v17630_v24  ;;  %v17700_v46 = vld [vmem:[%s18069_s6 + $0xfc0] ss:$16 sps:$4 sm:$0xff]   ;;  %v17703_v24 = vld [vmem:[%s18069_s6 + $0xfc8] ss:$16 sps:$4 sm:$0xff]  }
 0xb11   : > { %12954 = vmatprep.subr.bf16.mxu0 %v17633_v3  ;;  %v17708_v3 = vld [vmem:[%s18069_s6 + $0xfe4] ss:$16 sps:$4 sm:$0xff]  }
 0xb13   : > { %12611 = vmatpush1.bf16.msra.mxu1 %v17628_v42  ;;  %v17711_v42 = vld [vmem:[%s18069_s6 + $0xfec] ss:$16 sps:$4 sm:$0xff]  }
 0xb14   : > { %12955 = vmatpush1.bf16.msra.mxu0 %v17631_v54  ;;  %12612 = vmatprep.subr.bf16.mxu1 %v17636_v0  ;;  %v17706_v54 = vld [vmem:[%s18069_s6 + $0xfe0] ss:$16 sps:$4 sm:$0xff]   ;;  %v17709_v0 = vld [vmem:[%s18069_s6 + $0xfe8] ss:$16 sps:$4 sm:$0xff]  }
 0xb15   : > { %12956 = vmatprep.subr.bf16.mxu0 %v17639_v59  ;;  %v9723_v59 = vld [vmem:[%s883_s29] sm:$0xf] }
 0xb17   : > { %12613 = vmatpush1.bf16.msra.mxu1 %v17634_v62  ;;  %v9728_v62 = vrot.slane %v9723_v59, %v18506_v39 }
 0xb18   : > { %12957 = vmatpush1.bf16.msra.mxu0 %v17637_v11  ;;  %12614 = vmatprep.subr.bf16.mxu1 %v17642_v18  ;;  %v9736_v11 = vrot.slane %v9723_v59, %v18597_v2  ;;  %v9732_v18 = vrot.slane %v9723_v59, %v18594_v1 }
 0xb19   : > { %12958 = vmatprep.subr.bf16.mxu0 %v17645_v7 }
 0xb1b   : > { %12615 = vmatpush1.bf16.msra.mxu1 %v17640_v49  ;;  %v9740_v49 = vrot.slane %v9723_v59, %v18602_v6 }
 0xb1c   : > { %12959 = vmatpush1.bf16.msra.mxu0 %v17643_v51  ;;  %12616 = vmatprep.subr.bf16.mxu1 %v17648_v58 }
 0xb1d   : > { %12960 = vmatprep.subr.bf16.mxu0 %v17651_v32 }
 0xb1f   : > { %12617 = vmatpush1.bf16.msra.mxu1 %v17646_v56 }
 0xb20   : > { %12961 = vmatpush1.bf16.msra.mxu0 %v17649_v57  ;;  %12618 = vmatprep.subr.bf16.mxu1 %v17654_v16 }
 0xb21   : > { %12962 = vmatprep.subr.bf16.mxu0 %v17657_v60 }
 0xb23   : > { %12619 = vmatpush1.bf16.msra.mxu1 %v17652_v40 }
 0xb24   : > { %12963 = vmatpush1.bf16.msra.mxu0 %v17655_v38  ;;  %12620 = vmatprep.subr.bf16.mxu1 %v17660_v4 }
 0xb25   : > { %12964 = vmatprep.subr.bf16.mxu0 %v17663_v8 }
 0xb27   : > { %12621 = vmatpush1.bf16.msra.mxu1 %v17658_v29 }
 0xb28   : > { %12965 = vmatpush1.bf16.msra.mxu0 %v17661_v20  ;;  %12622 = vmatprep.subr.bf16.mxu1 %v17666_v43 }
 0xb29   : > { %12966 = vmatprep.subr.bf16.mxu0 %v17669_v13 }
 0xb2b   : > { %12623 = vmatpush1.bf16.msra.mxu1 %v17664_v30 }
 0xb2c   : > { %12967 = vmatpush1.bf16.msra.mxu0 %v17667_v63  ;;  %12624 = vmatprep.subr.bf16.mxu1 %v17672_v35 }
 0xb2d   : > { %12968 = vmatprep.subr.bf16.mxu0 %v17675_v47 }
 0xb2f   : > { %12625 = vmatpush1.bf16.msra.mxu1 %v17670_v25 }
 0xb30   : > { %12969 = vmatpush1.bf16.msra.mxu0 %v17673_v10  ;;  %12626 = vmatprep.subr.bf16.mxu1 %v17678_v17 }
 0xb31   : > { %12970 = vmatprep.subr.bf16.mxu0 %v17681_v14 }
 0xb33   : > { %12627 = vmatpush1.bf16.msra.mxu1 %v17676_v9 }
 0xb34   : > { %12971 = vmatpush1.bf16.msra.mxu0 %v17679_v48  ;;  %12628 = vmatprep.subr.bf16.mxu1 %v17684_v5 }
 0xb35   : > { %12972 = vmatprep.subr.bf16.mxu0 %v17687_v19 }
 0xb37   : > { %12629 = vmatpush1.bf16.msra.mxu1 %v17682_v12 }
 0xb38   : > { %12973 = vmatpush1.bf16.msra.mxu0 %v17685_v22  ;;  %12630 = vmatprep.subr.bf16.mxu1 %v17690_v61 }
 0xb39   : > { %12974 = vmatprep.subr.bf16.mxu0 %v17693_v21 }
 0xb3b   : > { %12631 = vmatpush1.bf16.msra.mxu1 %v17688_v53 }
 0xb3c   : > { %12975 = vmatpush1.bf16.msra.mxu0 %v17691_v27  ;;  %12632 = vmatprep.subr.bf16.mxu1 %v17696_v55 }
 0xb3d   : > { %12976 = vmatprep.subr.bf16.mxu0 %v17699_v34 }
 0xb3f   : > { %12633 = vmatpush1.bf16.msra.mxu1 %v17694_v41 }
 0xb40   : > { %12977 = vmatpush1.bf16.msra.mxu0 %v17697_v33  ;;  %12634 = vmatprep.subr.bf16.mxu1 %v17702_v36 }
 0xb41   : > { %12978 = vmatprep.subr.bf16.mxu0 %v17705_v52 }
 0xb43   : > { %12635 = vmatpush1.bf16.msra.mxu1 %v17700_v46 }
 0xb44   : > { %12979 = vmatpush1.bf16.msra.mxu0 %v17703_v24  ;;  %12636 = vmatprep.subr.bf16.mxu1 %v17708_v3 }
 0xb45   : > { %12980 = vmatprep.subr.bf16.mxu0 %v17711_v42 }
 0xb47   : > { %12637 = vmatpush1.bf16.msra.mxu1 %v17706_v54 }
 0xb48   : > { %12981 = vmatpush1.bf16.msra.mxu0 %v17709_v0 }
 0xb4a   : > { %12639 = vmatmul.mubr.bf16.vlgmr.msra.gmra.mrb[40].mxu1 %v19838_v44 }
 0xb4b   : > { %12983 = vmatmul.mubr.bf16.vlgmr.msra.gmra.mrb[40].mxu0 %v19838_v44 }
 0xc1d   : > { %v12640_v7 = vpop.f32.mrb[40].mxu1 }
 0xc1e   : > { %v16028_v51 = vadd.f32 %v12640_v7, %v9728_v62  ;;  %v12984_v58 = vpop.f32.mrb[40].mxu0  ;;  %v12642_v32 = vpop.f32.mrb[41].mxu1 }
 0xc1f   : > { %v16032_v56 = vadd.f32 %v12984_v58, %v9736_v11  ;;  %v16029_v57 = vadd.f32 %v12642_v32, %v9732_v18  ;;  %v12986_v44 = vpop.f32.mrb[41].mxu0  ;;  %v12644_v16 = vpop.f32.mrb[42].mxu1  ;;  %v13001_v58 = vld [vmem:[%s887_s18] sm:$0xf] }
 0xc20   : > { %v12993_v60 = vadd.f32 %v16028_v51, %v19027_v23  ;;  %v16030_v40 = vadd.f32 %v12644_v16, %v9728_v62  ;;  %v12988_v38 = vpop.f32.mrb[42].mxu0  ;;  %v12646_v4 = vpop.f32.mrb[43].mxu1  ;;  %v16033_v29 = vadd.f32 %v12986_v44, %v9740_v49  ;;  %v13002_v32 = vld [vmem:[%s20619_s11] sm:$0xf]  ;;  %v13067_v44 = vrot.slane %v13001_v58, %v18597_v2  ;;  %s20624_s11 = sld [smem:[#allocation16_spill]] (!%p15697_p5) }
 0xc21   : > { %v12994_v8 = vadd.f32 %v16029_v57, %v19023_v31  ;;  %v16034_v20 = vadd.f32 %v12988_v38, %v9736_v11  ;;  %v16031_v43 = vadd.f32 %v12646_v4, %v9732_v18  ;;  %v12990_v13 = vpop.f32.mrb[43].mxu0  ;;  %v12995_v63 = vadd.f32 %v16032_v56, %v19021_v15 }
 0xc22   : > { %v12997_v30 = vadd.f32 %v16030_v40, %v19029_v26  ;;  %v16035_v25 = vadd.f32 %v12990_v13, %v9740_v49  ;;  %v12996_v10 = vadd.f32 %v16033_v29, %v19047_v50  ;;  %v13059_v56 = vrot.slane %v13001_v58, %v18506_v39 }
 0xc23   : > { %v13003_v35 = vadd.f32 %v12994_v8, %v12993_v60  ;;  %v12998_v47 = vadd.f32 %v16031_v43, %v19025_v28  ;;  %v12999_v23 = vadd.f32 %v16034_v20, %v19037_v45  ;;  %v13063_v57 = vrot.slane %v13001_v58, %v18594_v1 }
 0xc24   : > { %v13000_v31 = vadd.f32 %v16035_v25, %v19032_v37  ;;  %v13071_v16 = vrot.slane %v13001_v58, %v18602_v6  ;;  %v13088_v40 = vrot.slane %v13002_v32, %v18506_v39  ;;  %v13092_v38 = vrot.slane %v13002_v32, %v18594_v1  ;;  %v17791_v58 = vld [vmem:[%s20620_s30 + $0xa4] ss:$8 sps:$4 sm:$0xff] (!%p15697_p5)  }
 0xc25   : > { %v13008_v17 = vadd.f32 %v12998_v47, %v12997_v30  ;;  %v13004_v14 = vadd.f32 %v13003_v35, %v12995_v63  ;;  %v13096_v4 = vrot.slane %v13002_v32, %v18597_v2 }
 0xc27   : > { %v13005_v9 = vadd.f32 %v13004_v14, %v12996_v10  ;;  %v13009_v48 = vadd.f32 %v13008_v17, %v12999_v23 }
 0xc29   : > { %13006 = vadd.xlane.f32.xlu0 %v13005_v9  ;;  %v13010_v5 = vadd.f32 %v13009_v48, %v13000_v31 }
 0xc2b   : > { %13011 = vadd.xlane.f32.xlu1 %v13010_v5 }
 0xcb6   : > { %v13007_v26 = vpop.xlane.xlu0 %13006 }
 0xcb7   : > { %v13013_v19 = vmul.f32 0.001953125, %v13007_v26 }
 0xcb8   : > { %v13012_v15 = vpop.xlane.xlu1 %13011 }
 0xcb9   : > { %v13015_v12 = vsub.f32 %v12993_v60, %v13013_v19  ;;  %v13016_v22 = vsub.f32 %v12994_v8, %v13013_v19  ;;  %v13014_v28 = vmul.f32 0.001953125, %v13012_v15  ;;  %v13017_v61 = vsub.f32 %v12995_v63, %v13013_v19 }
 0xcba   : > { %v13018_v21 = vsub.f32 %v12996_v10, %v13013_v19  ;;  %v13100_v8 = vrot.slane %v13002_v32, %v18602_v6 }
 0xcbb   : > { %v13019_v50 = vsub.f32 %v12997_v30, %v13014_v28  ;;  %v13020_v53 = vsub.f32 %v12998_v47, %v13014_v28  ;;  %v13023_v45 = vmul.f32 %v13015_v12, %v13015_v12  ;;  %v13024_v27 = vmul.f32 %v13016_v22, %v13016_v22 }
 0xcbc   : > { %v13025_v55 = vmul.f32 %v13017_v61, %v13017_v61  ;;  %v13021_v34 = vsub.f32 %v12999_v23, %v13014_v28  ;;  %v13022_v41 = vsub.f32 %v13000_v31, %v13014_v28  ;;  %v13026_v52 = vmul.f32 %v13018_v21, %v13018_v21 }
 0xcbd   : > { %v13031_v37 = vadd.f32 %v13024_v27, %v13023_v45  ;;  %v13027_v33 = vmul.f32 %v13019_v50, %v13019_v50  ;;  %v13028_v36 = vmul.f32 %v13020_v53, %v13020_v53 }
 0xcbe   : > { %v13029_v24 = vmul.f32 %v13021_v34, %v13021_v34  ;;  %v13030_v54 = vmul.f32 %v13022_v41, %v13022_v41 }
 0xcbf   : > { %v13032_v46 = vadd.f32 %v13031_v37, %v13025_v55  ;;  %v13036_v3 = vadd.f32 %v13028_v36, %v13027_v33  ;;  %v17761_v55 = vld [vmem:[%s20620_s30 + $0x4] ss:$8 sps:$4 sm:$0xff] (!%p15697_p5)   ;;  %v17764_v37 = vld [vmem:[%s20620_s30 + $0x14] ss:$8 sps:$4 sm:$0xff] (!%p15697_p5)   ;;  %v17769_v36 = vld [vmem:[%s20620_s30 + $0x20] ss:$8 sps:$4 sm:$0xff] (!%p15697_p5)  }
 0xcc0   : > { %13577 = vmatprep.subr.bf16.mxu0 (!%p15697_p5), %v17761_v55  ;;  %v17767_v33 = vld [vmem:[%s20620_s30 + $0x24] ss:$8 sps:$4 sm:$0xff] (!%p15697_p5)  }
 0xcc1   : > { %v13033_v42 = vadd.f32 %v13032_v46, %v13026_v52  ;;  %v13037_v0 = vadd.f32 %v13036_v3, %v13029_v24  ;;  %v17770_v52 = vld [vmem:[%s20620_s30 + $0x34] ss:$8 sps:$4 sm:$0xff] (!%p15697_p5)   ;;  %v17772_v46 = vld [vmem:[%s20620_s30 + $0x30] ss:$8 sps:$4 sm:$0xff] (!%p15697_p5)   ;;  %v17773_v24 = vld [vmem:[%s20620_s30 + $0x44] ss:$8 sps:$4 sm:$0xff] (!%p15697_p5)  }
 0xcc2   : > { %v17775_v3 = vld [vmem:[%s20620_s30 + $0x40] ss:$8 sps:$4 sm:$0xff] (!%p15697_p5)  }
 0xcc3   : > { %13034 = vadd.xlane.f32.xlu0 %v13033_v42  ;;  %v13038_v59 = vadd.f32 %v13037_v0, %v13030_v54  ;;  %v17776_v42 = vld [vmem:[%s20620_s30 + $0x54] ss:$8 sps:$4 sm:$0xff] (!%p15697_p5)   ;;  %v17778_v54 = vld [vmem:[%s20620_s30 + $0x50] ss:$8 sps:$4 sm:$0xff] (!%p15697_p5)   ;;  %v17779_v0 = vld [vmem:[%s20620_s30 + $0x64] ss:$8 sps:$4 sm:$0xff] (!%p15697_p5)  }
 0xcc4   : > { %v17860_v55 = vld [vmem:[%s20621_s25 + $0x8] sm:$0xff] (!%p15697_p5)  }
 0xcc5   : > { %13039 = vadd.xlane.f32.xlu1 %v13038_v59  ;;  %v17781_v59 = vld [vmem:[%s20620_s30 + $0x60] ss:$8 sps:$4 sm:$0xff] (!%p15697_p5)  }
 0xd50   : > { %v13035_v62 = vpop.xlane.xlu0 %13034 }
 0xd51   : > { %v13041_v11 = vmul.f32 0.001953125, %v13035_v62  ;;  %v17782_v62 = vld [vmem:[%s20620_s30 + $0x74] ss:$8 sps:$4 sm:$0xff] (!%p15697_p5)  }
 0xd52   : > { %v13040_v18 = vpop.xlane.xlu1 %13039 }
 0xd53   : > { %v13043_v7 = vadd.f32 1e-05, %v13041_v11  ;;  %v13042_v49 = vmul.f32 0.001953125, %v13040_v18  ;;  %v17784_v11 = vld [vmem:[%s20620_s30 + $0x70] ss:$8 sps:$4 sm:$0xff] (!%p15697_p5)  }
 0xd54   : > { %v17785_v18 = vld [vmem:[%s20620_s30 + $0x84] ss:$8 sps:$4 sm:$0xff] (!%p15697_p5)  }
 0xd55   : > { %17748 = vrsqrt.f32 %v13043_v7  ;;  %v13044_v51 = vadd.f32 1e-05, %v13042_v49  ;;  %v17787_v7 = vld [vmem:[%s20620_s30 + $0x80] ss:$8 sps:$4 sm:$0xff] (!%p15697_p5)   ;;  %v17788_v49 = vld [vmem:[%s20620_s30 + $0x94] ss:$8 sps:$4 sm:$0xff] (!%p15697_p5)  }
 0xd57   : > { %17750 = vrsqrt.f32 %v13044_v51  ;;  %v17790_v51 = vld [vmem:[%s20620_s30 + $0x90] ss:$8 sps:$4 sm:$0xff] (!%p15697_p5)  }
 0xd5f   : > { %v17749_v60 = vpop.eup %17748 }
 0xd60   : > { %v13047_v29 = vmul.f32 %v17749_v60, %v13015_v12  ;;  %v13048_v20 = vmul.f32 %v17749_v60, %v13016_v22  ;;  %v13049_v43 = vmul.f32 %v17749_v60, %v13017_v61  ;;  %v13050_v13 = vmul.f32 %v17749_v60, %v13018_v21 }
 0xd61   : > { %v17751_v30 = vpop.eup %17750 }
 0xd62   : > { %v13076_v63 = vmul.f32 %v13059_v56, %v13047_v29  ;;  %v13077_v35 = vmul.f32 %v13063_v57, %v13048_v20  ;;  %v13078_v47 = vmul.f32 %v13067_v44, %v13049_v43  ;;  %v13079_v25 = vmul.f32 %v13071_v16, %v13050_v13 }
 0xd63   : > { %v13051_v10 = vmul.f32 %v17751_v30, %v13019_v50  ;;  %v13052_v23 = vmul.f32 %v17751_v30, %v13020_v53  ;;  %v13053_v17 = vmul.f32 %v17751_v30, %v13021_v34  ;;  %v13054_v14 = vmul.f32 %v17751_v30, %v13022_v41  ;;  %v17763_v34 = vld [vmem:[%s20620_s30] ss:$8 sps:$4 sm:$0xff] (!%p15697_p5)   ;;  %v17766_v41 = vld [vmem:[%s20620_s30 + $0x10] ss:$8 sps:$4 sm:$0xff] (!%p15697_p5)  }
 0xd64   : > { %v20184_v31 = vadd.f32 %v13088_v40, %v13076_v63  ;;  %v20186_v9 = vadd.f32 %v13092_v38, %v13077_v35  ;;  %v20188_v2 = vadd.f32 %v13096_v4, %v13078_v47  ;;  %v20190_v6 = vadd.f32 %v13100_v8, %v13079_v25  ;;  %13124 = sbr.rel (%p15697_p5) target bundleno = 4484 (0x1184), region = 120  ;;  %13578 = vmatpush1.bf16.msra.mxu0 (!%p15697_p5), %v17763_v34  ;;  %v17861_v34 = vld [vmem:[%s20621_s25 + $0x50] sm:$0xff] (!%p15697_p5)  }
 0xd65   : > { %v13080_v48 = vmul.f32 %v13059_v56, %v13051_v10  ;;  %v13081_v5 = vmul.f32 %v13063_v57, %v13052_v23  ;;  %v13082_v26 = vmul.f32 %v13067_v44, %v13053_v17  ;;  %v13083_v19 = vmul.f32 %v13071_v16, %v13054_v14  ;;  %13579 = vmatprep.subr.bf16.mxu0 (!%p15697_p5), %v17764_v37  ;;  %v17862_v37 = vld [vmem:[%s20621_s25 + $0x10] sm:$0xff] (!%p15697_p5)  }
 0xd66   : > { %13113 = vst [vmem:[#allocation2] sm:$0xff] %v20184_v31  ;;  %13114 = vst [vmem:[#allocation2 + $0x8] sm:$0xff] %v20186_v9  ;;  %v13125_v61 = vadd.f32 (!%p15697_p5), %v20186_v9, %v20184_v31 }
 0xd67   : > { %13115 = vst [vmem:[#allocation2 + $0x10] sm:$0xff] %v20188_v2  ;;  %13116 = vst [vmem:[#allocation2 + $0x18] sm:$0xff] %v20190_v6  ;;  %v20196_v15 = vadd.f32 %v13088_v40, %v13080_v48  ;;  %v20198_v12 = vadd.f32 %v13092_v38, %v13081_v5  ;;  %v20200_v22 = vadd.f32 %v13096_v4, %v13082_v26  ;;  %v17794_v48 = vld [vmem:[%s20620_s30 + $0xb4] ss:$8 sps:$4 sm:$0xff] (!%p15697_p5)   ;;  %v17796_v5 = vld [vmem:[%s20620_s30 + $0xb0] ss:$8 sps:$4 sm:$0xff] (!%p15697_p5)  }
 0xd68   : > { %v20202_v28 = vadd.f32 %v13100_v8, %v13083_v19  ;;  %v13126_v50 = vadd.f32 (!%p15697_p5), %v13125_v61, %v20188_v2  ;;  %13580 = vmatpush1.bf16.msra.mxu0 (!%p15697_p5), %v17766_v41  ;;  %v17797_v26 = vld [vmem:[%s20620_s30 + $0xc4] ss:$8 sps:$4 sm:$0xff] (!%p15697_p5)   ;;  %v17799_v19 = vld [vmem:[%s20620_s30 + $0xc0] ss:$8 sps:$4 sm:$0xff] (!%p15697_p5)   ;;  %v17806_v61 = vld [vmem:[%s20620_s30 + $0xf4] ss:$8 sps:$4 sm:$0xff] (!%p15697_p5)  }
 0xd69   : > { %13117 = vst [vmem:[#allocation2 + $0x20] sm:$0xff] %v20196_v15  ;;  %13118 = vst [vmem:[#allocation2 + $0x28] sm:$0xff] %v20198_v12  ;;  %v13130_v21 = vadd.f32 (!%p15697_p5), %v20198_v12, %v20196_v15  ;;  %13581 = vmatprep.subr.bf16.mxu0 (!%p15697_p5), %v17767_v33  ;;  %v17863_v41 = vld [vmem:[%s20621_s25 + $0x58] sm:$0xff] (!%p15697_p5)  }
 0xd6a   : > { %13119 = vst [vmem:[#allocation2 + $0x30] sm:$0xff] %v20200_v22  ;;  %13120 = vst [vmem:[#allocation2 + $0x38] sm:$0xff] %v20202_v28  ;;  %v13127_v45 = vadd.f32 (!%p15697_p5), %v13126_v50, %v20190_v6  ;;  %v17811_v50 = vld [vmem:[%s20620_s30 + $0x104] ss:$8 sps:$4 sm:$0xff] (!%p15697_p5)   ;;  %v17864_v33 = vld [vmem:[%s20621_s25 + $0x18] sm:$0xff] (!%p15697_p5)  }
 0xd6b   : > { %v13131_v53 = vadd.f32 %v13130_v21, %v20200_v22  ;;  %v17808_v21 = vld [vmem:[%s20620_s30 + $0xf0] ss:$8 sps:$4 sm:$0xff]  }
 0xd6c   : > { %13128 = vadd.xlane.f32.xlu0 %v13127_v45  ;;  %13582 = vmatpush1.bf16.msra.mxu0 %v17769_v36  ;;  %v17858_v45 = vld [vmem:[%s20621_s25] sm:$0xff]  }
 0xd6d   : > { %v13132_v27 = vadd.f32 %v13131_v53, %v20202_v28  ;;  %13583 = vmatprep.subr.bf16.mxu0 %v17770_v52  ;;  %v17857_v53 = vld [vmem:[%s20621_s25 + $0x40] sm:$0xff]  }
 0xd6e   : > { %15825 = vmatprep.subr.bf16.mxu1 %v17857_v53  ;;  %v17865_v36 = vld [vmem:[%s20621_s25 + $0x60] sm:$0xff]   ;;  %v17868_v53 = vld [vmem:[%s20621_s25 + $0x28] sm:$0xff]  }
 0xd6f   : > { %15826 = vmatpush3.bf16.msra.mxu1 %v17858_v45  ;;  %v17866_v52 = vld [vmem:[%s20621_s25 + $0x20] sm:$0xff]   ;;  %v17869_v45 = vld [vmem:[%s20621_s25 + $0x70] sm:$0xff]  }
 0xd70   : > { %13133 = vadd.xlane.f32.xlu0 %v13132_v27  ;;  %13584 = vmatpush1.bf16.msra.mxu0 %v17772_v46  ;;  %v17859_v27 = vld [vmem:[%s20621_s25 + $0x48] sm:$0xff]  }
 0xd71   : > { %13585 = vmatprep.subr.bf16.mxu0 %v17773_v24  ;;  %15827 = vmatprep.subr.bf16.mxu1 %v17859_v27  ;;  %v17870_v27 = vld [vmem:[%s20621_s25 + $0x30] sm:$0xff]  }
 0xd73   : > { %15828 = vmatpush3.bf16.msra.mxu1 %v17860_v55  ;;  %v17871_v55 = vld [vmem:[%s20621_s25 + $0x78] sm:$0xff]  }
 0xd74   : > { %13586 = vmatpush1.bf16.msra.mxu0 %v17775_v3  ;;  %15829 = vmatprep.subr.bf16.mxu1 %v17861_v34  ;;  %v17872_v34 = vld [vmem:[%s20621_s25 + $0x38] sm:$0xff]  }
 0xd75   : > { %13587 = vmatprep.subr.bf16.mxu0 %v17776_v42 }
 0xd77   : > { %15830 = vmatpush3.bf16.msra.mxu1 %v17862_v37  ;;  %v17893_v37 = vmov 0.0  }
 0xd78   : > { %13588 = vmatpush1.bf16.msra.mxu0 %v17778_v54  ;;  %15831 = vmatprep.subr.bf16.mxu1 %v17863_v41  ;;  %v13245_v41 = vld [vmem:[%s20622_s20] sm:$0x3] }
 0xd79   : > { %13589 = vmatprep.subr.bf16.mxu0 %v17779_v0 }
 0xd7b   : > { %15832 = vmatpush3.bf16.msra.mxu1 %v17864_v33  ;;  %v13250_v33 = vrot.slane %v13245_v41, %v18506_v39 }
 0xd7c   : > { %13590 = vmatpush1.bf16.msra.mxu0 %v17781_v59  ;;  %15833 = vmatprep.subr.bf16.mxu1 %v17865_v36  ;;  %v13254_v36 = vrot.slane %v13245_v41, %v18594_v1 }
 0xd7d   : > { %13591 = vmatprep.subr.bf16.mxu0 %v17782_v62 }
 0xd7f   : > { %15834 = vmatpush3.bf16.msra.mxu1 %v17866_v52 }
 0xd80   : > { %13592 = vmatpush1.bf16.msra.mxu0 %v17784_v11 }
 0xd81   : > { %13593 = vmatprep.subr.bf16.mxu0 %v17785_v18 }
 0xd84   : > { %13594 = vmatpush1.bf16.msra.mxu0 %v17787_v7 }
 0xd85   : > { %13595 = vmatprep.subr.bf16.mxu0 %v17788_v49 }
 0xd88   : > { %13596 = vmatpush1.bf16.msra.mxu0 %v17790_v51 }
 0xd89   : > { %13597 = vmatprep.subr.bf16.mxu0 %v17791_v58 }
 0xdf9   : > { %v13129_v32 = vpop.xlane.xlu0 %13128 }
 0xdfa   : > { %v13135_v56 = vmul.f32 0.001953125, %v13129_v32 }
 0xdfc   : > { %v20281_v57 = vsub.f32 %v20184_v31, %v13135_v56  ;;  %v20284_v44 = vsub.f32 %v20186_v9, %v13135_v56  ;;  %v20287_v16 = vsub.f32 %v20188_v2, %v13135_v56  ;;  %v20290_v40 = vsub.f32 %v20190_v6, %v13135_v56  ;;  %v17793_v6 = vld [vmem:[%s20620_s30 + $0xa0] ss:$8 sps:$4 sm:$0xff]  }
 0xdfd   : > { %v13134_v60 = vpop.xlane.xlu0 %13133  ;;  %13598 = vmatpush1.bf16.msra.mxu0 %v17793_v6  ;;  %v17839_v6 = vld [vmem:[%s20620_s30 + $0x1a0] ss:$8 sps:$4 sm:$0xff]  }
 0xdfe   : > { %v13136_v38 = vmul.f32 0.001953125, %v13134_v60  ;;  %v13145_v4 = vmul.f32 %v20281_v57, %v20281_v57  ;;  %v13146_v8 = vmul.f32 %v20284_v44, %v20284_v44  ;;  %v13147_v29 = vmul.f32 %v20287_v16, %v20287_v16  ;;  %13599 = vmatprep.subr.bf16.mxu0 %v17794_v48  ;;  %v17809_v60 = vld [vmem:[%s20620_s30 + $0x100] ss:$8 sps:$4 sm:$0xff]   ;;  %v17844_v48 = vld [vmem:[%s20620_s30 + $0x1b4] ss:$8 sps:$4 sm:$0xff]  }
 0xdff   : > { %v13148_v63 = vmul.f32 %v20290_v40, %v20290_v40 }
 0xe00   : > { %v20299_v20 = vsub.f32 %v20196_v15, %v13136_v38  ;;  %v20302_v43 = vsub.f32 %v20198_v12, %v13136_v38  ;;  %v13153_v13 = vadd.f32 %v13146_v8, %v13145_v4  ;;  %v20305_v30 = vsub.f32 %v20200_v22, %v13136_v38  ;;  %v17800_v15 = vld [vmem:[%s20620_s30 + $0xd4] ss:$8 sps:$4 sm:$0xff]   ;;  %v17802_v12 = vld [vmem:[%s20620_s30 + $0xd0] ss:$8 sps:$4 sm:$0xff]   ;;  %v17803_v22 = vld [vmem:[%s20620_s30 + $0xe4] ss:$8 sps:$4 sm:$0xff]  }
 0xe01   : > { %v20310_v47 = vsub.f32 %v20202_v28, %v13136_v38  ;;  %13600 = vmatpush1.bf16.msra.mxu0 %v17796_v5  ;;  %v17805_v28 = vld [vmem:[%s20620_s30 + $0xe0] ss:$8 sps:$4 sm:$0xff]   ;;  %v17814_v38 = vld [vmem:[%s20620_s30 + $0x114] ss:$8 sps:$4 sm:$0xff]   ;;  %v17812_v8 = vld [vmem:[%s20620_s30 + $0x110] ss:$8 sps:$4 sm:$0xff]  }
 0xe02   : > { %v13154_v35 = vadd.f32 %v13153_v13, %v13147_v29  ;;  %v13149_v25 = vmul.f32 %v20299_v20, %v20299_v20  ;;  %v13150_v10 = vmul.f32 %v20302_v43, %v20302_v43  ;;  %v13151_v17 = vmul.f32 %v20305_v30, %v20305_v30  ;;  %13601 = vmatprep.subr.bf16.mxu0 %v17797_v26  ;;  %v17815_v29 = vld [vmem:[%s20620_s30 + $0x120] ss:$8 sps:$4 sm:$0xff]   ;;  %v17823_v13 = vld [vmem:[%s20620_s30 + $0x144] ss:$8 sps:$4 sm:$0xff]   ;;  %v17842_v5 = vld [vmem:[%s20620_s30 + $0x1b0] ss:$8 sps:$4 sm:$0xff]  }
 0xe03   : > { %v13152_v31 = vmul.f32 %v20310_v47, %v20310_v47  ;;  %v17847_v26 = vld [vmem:[%s20620_s30 + $0x1c4] ss:$8 sps:$4 sm:$0xff]  }
 0xe04   : > { %v13155_v23 = vadd.f32 %v13154_v35, %v13148_v63  ;;  %v13158_v14 = vadd.f32 %v13150_v10, %v13149_v25  ;;  %v17826_v63 = vld [vmem:[%s20620_s30 + $0x154] ss:$8 sps:$4 sm:$0xff]   ;;  %v17824_v35 = vld [vmem:[%s20620_s30 + $0x150] ss:$8 sps:$4 sm:$0xff]   ;;  %v17827_v25 = vld [vmem:[%s20620_s30 + $0x160] ss:$8 sps:$4 sm:$0xff]  }
 0xe05   : > { %13602 = vmatpush1.bf16.msra.mxu0 %v17799_v19  ;;  %v17832_v10 = vld [vmem:[%s20620_s30 + $0x174] ss:$8 sps:$4 sm:$0xff]   ;;  %v17845_v19 = vld [vmem:[%s20620_s30 + $0x1c0] ss:$8 sps:$4 sm:$0xff]  }
 0xe06   : > { %13156 = vadd.xlane.f32.xlu1 %v13155_v23  ;;  %v13159_v9 = vadd.f32 %v13158_v14, %v13151_v17  ;;  %13603 = vmatprep.subr.bf16.mxu0 %v17800_v15  ;;  %v17830_v23 = vld [vmem:[%s20620_s30 + $0x170] ss:$8 sps:$4 sm:$0xff]   ;;  %v17835_v17 = vld [vmem:[%s20620_s30 + $0x184] ss:$8 sps:$4 sm:$0xff]   ;;  %v17833_v14 = vld [vmem:[%s20620_s30 + $0x180] ss:$8 sps:$4 sm:$0xff]  }
 0xe07   : > { %v17850_v15 = vld [vmem:[%s20620_s30 + $0x1d4] ss:$8 sps:$4 sm:$0xff]  }
 0xe08   : > { %v13160_v2 = vadd.f32 %v13159_v9, %v13152_v31  ;;  %v17838_v31 = vld [vmem:[%s20620_s30 + $0x194] ss:$8 sps:$4 sm:$0xff]   ;;  %v17836_v9 = vld [vmem:[%s20620_s30 + $0x190] ss:$8 sps:$4 sm:$0xff]  }
 0xe09   : > { %13604 = vmatpush1.bf16.msra.mxu0 %v17802_v12  ;;  %v17848_v12 = vld [vmem:[%s20620_s30 + $0x1d0] ss:$8 sps:$4 sm:$0xff]  }
 0xe0a   : > { %13161 = vadd.xlane.f32.xlu1 %v13160_v2  ;;  %13605 = vmatprep.subr.bf16.mxu0 %v17803_v22  ;;  %v17841_v2 = vld [vmem:[%s20620_s30 + $0x1a4] ss:$8 sps:$4 sm:$0xff]  }
 0xe0b   : > { %v17853_v22 = vld [vmem:[%s20620_s30 + $0x1e4] ss:$8 sps:$4 sm:$0xff]  }
 0xe0d   : > { %13606 = vmatpush1.bf16.msra.mxu0 %v17805_v28  ;;  %v17851_v28 = vld [vmem:[%s20620_s30 + $0x1e0] ss:$8 sps:$4 sm:$0xff]  }
 0xe0e   : > { %13607 = vmatprep.subr.bf16.mxu0 %v17806_v61  ;;  %v17856_v61 = vld [vmem:[%s20620_s30 + $0x1f4] ss:$8 sps:$4 sm:$0xff]  }
 0xe11   : > { %13608 = vmatpush1.bf16.msra.mxu0 %v17808_v21  ;;  %v17854_v21 = vld [vmem:[%s20620_s30 + $0x1f0] ss:$8 sps:$4 sm:$0xff]  }
 0xe12   : > { %13620 = vmatprep.subr.bf16.mxu0 %v17811_v50  ;;  %v17867_v50 = vld [vmem:[%s20621_s25 + $0x68] sm:$0xff]  }
 0xe13   : > { %15835 = vmatprep.subr.bf16.mxu1 %v17867_v50 }
 0xe14   : > { %15836 = vmatpush3.bf16.msra.mxu1 %v17868_v53 }
 0xe15   : > { %15837 = vmatprep.subr.bf16.mxu1 %v17869_v45 }
 0xe18   : > { %15838 = vmatpush3.bf16.msra.mxu1 %v17870_v27 }
 0xe19   : > { %15839 = vmatprep.subr.bf16.mxu1 %v17871_v55 }
 0xe1c   : > { %15840 = vmatpush3.bf16.msra.mxu1 %v17872_v34 }
 0xe1d   : > { %15912 = vmatprep.subr.bf16.mxu1 %v17893_v37 }
 0xe93   : > { %v13157_v46 = vpop.xlane.xlu1 %13156 }
 0xe94   : > { %v13163_v24 = vmul.f32 0.001953125, %v13157_v46 }
 0xe96   : > { %v13165_v3 = vadd.f32 1e-05, %v13163_v24 }
 0xe97   : > { %v13162_v42 = vpop.xlane.xlu1 %13161 }
 0xe98   : > { %v13164_v54 = vmul.f32 0.001953125, %v13162_v42  ;;  %17881 = vrsqrt.f32 %v13165_v3 }
 0xe9a   : > { %v13166_v0 = vadd.f32 1e-05, %v13164_v54 }
 0xe9c   : > { %17883 = vrsqrt.f32 %v13166_v0 }
 0xea2   : > { %v17882_v59 = vpop.eup %17881 }
 0xea3   : > { %v13170_v11 = vmul.f32 %v17882_v59, %v20284_v44  ;;  %v13169_v18 = vmul.f32 %v17882_v59, %v20281_v57  ;;  %v20389_v7 = vmul.f32 %v17882_v59, %v20287_v16  ;;  %v13172_v57 = vmul.f32 %v17882_v59, %v20290_v40  ;;  %v17817_v40 = vld [vmem:[%s20620_s30 + $0x124] ss:$8 sps:$4 sm:$0xff]  }
 0xea6   : > { %v17884_v62 = vpop.eup %17883 }
 0xea7   : > { %v13174_v49 = vmul.f32 %v17884_v62, %v20302_v43  ;;  %v13173_v51 = vmul.f32 %v17884_v62, %v20299_v20  ;;  %v13176_v58 = vmul.f32 %v17884_v62, %v20310_v47  ;;  %v20395_v32 = vmul.f32 %v17884_v62, %v20305_v30  ;;  %v17820_v20 = vld [vmem:[%s20620_s30 + $0x134] ss:$8 sps:$4 sm:$0xff]   ;;  %v17818_v43 = vld [vmem:[%s20620_s30 + $0x130] ss:$8 sps:$4 sm:$0xff]   ;;  %v17821_v30 = vld [vmem:[%s20620_s30 + $0x140] ss:$8 sps:$4 sm:$0xff]  }
 0xea8   : > { %v17829_v47 = vld [vmem:[%s20620_s30 + $0x164] ss:$8 sps:$4 sm:$0xff]  }
 0xea9   : > { %v13178_v56 = vpack.c.bf16 %v13174_v49, %v13170_v11  ;;  %v13177_v44 = vpack.c.bf16 %v13173_v51, %v13169_v18  ;;  %v13179_v16 = vpack.c.bf16 %v20395_v32, %v20389_v7  ;;  %v13180_v4 = vpack.c.bf16 %v13176_v58, %v13172_v57  ;;  %v17876_v57 = vld [vmem:[%s20623_s0 + $0x18] sm:$0xff]  }
 0xeab   : > { %13609 = vmatprep.mubr.bf16.mxu0 %v13178_v56  ;;  %v17873_v56 = vld [vmem:[%s20623_s0] sm:$0xff]  }
 0xeac   : > { %13610 = vmatmul.mubr.bf16.vlgmr.msra.gmra.mrb[0].mxu0 %v13177_v44  ;;  %v17875_v44 = vld [vmem:[%s20623_s0 + $0x10] sm:$0xff]  }
 0xead   : > { %13621 = vmatpush1.bf16.msra.mxu0 %v17809_v60  ;;  %13652 = vmatprep.mubr.bf16.mxu0 %v13180_v4  ;;  %v17874_v60 = vld [vmem:[%s20623_s0 + $0x8] sm:$0xff]   ;;  %v17879_v4 = vld [vmem:[%s20623_s0 + $0x30] sm:$0xff]  }
 0xeae   : > { %13622 = vmatprep.subr.bf16.mxu0 %v17814_v38  ;;  %v17878_v38 = vld [vmem:[%s20623_s0 + $0x28] sm:$0xff]  }
 0xeb1   : > { %13623 = vmatpush1.bf16.msra.mxu0 %v17812_v8  ;;  %v17880_v8 = vld [vmem:[%s20623_s0 + $0x38] sm:$0xff]  }
 0xeb2   : > { %13624 = vmatprep.subr.bf16.mxu0 %v17817_v40 }
 0xeb5   : > { %13625 = vmatpush1.bf16.msra.mxu0 %v17815_v29  ;;  %v15762_v29 = vld [vmem:[%s20624_s11] ss:$0 sm:$0xff] }
 0xeb6   : > { %13626 = vmatprep.subr.bf16.mxu0 %v17820_v20 }
 0xeb9   : > { %13627 = vmatpush1.bf16.msra.mxu0 %v17818_v43 }
 0xeba   : > { %13628 = vmatprep.subr.bf16.mxu0 %v17823_v13 }
 0xebd   : > { %13629 = vmatpush1.bf16.msra.mxu0 %v17821_v30 }
 0xebe   : > { %13630 = vmatprep.subr.bf16.mxu0 %v17826_v63 }
 0xec1   : > { %13631 = vmatpush1.bf16.msra.mxu0 %v17824_v35 }
 0xec2   : > { %13632 = vmatprep.subr.bf16.mxu0 %v17829_v47 }
 0xec5   : > { %13633 = vmatpush1.bf16.msra.mxu0 %v17827_v25 }
 0xec6   : > { %13634 = vmatprep.subr.bf16.mxu0 %v17832_v10 }
 0xec9   : > { %13635 = vmatpush1.bf16.msra.mxu0 %v17830_v23 }
 0xeca   : > { %13636 = vmatprep.subr.bf16.mxu0 %v17835_v17 }
 0xecd   : > { %13637 = vmatpush1.bf16.msra.mxu0 %v17833_v14 }
 0xece   : > { %13638 = vmatprep.subr.bf16.mxu0 %v17838_v31  ;;  %v15779_v31 = vld [vmem:[%s20625_s24] ss:$0 sm:$0xff] }
 0xed1   : > { %13639 = vmatpush1.bf16.msra.mxu0 %v17836_v9 }
 0xed2   : > { %13640 = vmatprep.subr.bf16.mxu0 %v17841_v2 }
 0xed5   : > { %13641 = vmatpush1.bf16.msra.mxu0 %v17839_v6 }
 0xed6   : > { %13642 = vmatprep.subr.bf16.mxu0 %v17844_v48 }
 0xed9   : > { %13643 = vmatpush1.bf16.msra.mxu0 %v17842_v5 }
 0xeda   : > { %13644 = vmatprep.subr.bf16.mxu0 %v17847_v26 }
 0xedd   : > { %13645 = vmatpush1.bf16.msra.mxu0 %v17845_v19 }
 0xede   : > { %13646 = vmatprep.subr.bf16.mxu0 %v17850_v15 }
 0xee1   : > { %13647 = vmatpush1.bf16.msra.mxu0 %v17848_v12 }
 0xee2   : > { %13648 = vmatprep.subr.bf16.mxu0 %v17853_v22 }
 0xee5   : > { %13649 = vmatpush1.bf16.msra.mxu0 %v17851_v28 }
 0xee6   : > { %13650 = vmatprep.subr.bf16.mxu0 %v17856_v61 }
 0xee9   : > { %13651 = vmatpush1.bf16.msra.mxu0 %v17854_v21 }
 0xeec   : > { %13653 = vmatmul.mubr.bf16.vlgmr.msra.gmra.mrb[0].mxu0 %v13179_v16  ;;  %v17877_v16 = vld [vmem:[%s20623_s0 + $0x20] sm:$0xff]  }
 0xfbf   : > { %v13654_v52 = vpop.f32.mrb[0].mxu0 }
 0xfc0   : > { %v16156_v46 = vadd.f32 %v13654_v52, %v13250_v33  ;;  %v13656_v24 = vpop.f32.mrb[1].mxu0 }
 0xfc1   : > { %v16157_v3 = vadd.f32 %v13656_v24, %v13254_v36  ;;  %v13658_v42 = vpop.f32.mrb[2].mxu0 }
 0xfc2   : > { %v13667_v54 = vmul.f32 0.01, %v16156_v46  ;;  %v16158_v0 = vadd.f32 %v13658_v42, %v13250_v33  ;;  %v13660_v59 = vpop.f32.mrb[3].mxu0  ;;  %vm13663_vm1 = vcmp.ge.f32.partialorder %v16156_v46, 0.0 }
 0xfc3   : > { %v13668_v62 = vmul.f32 0.01, %v16157_v3  ;;  %v16159_v11 = vadd.f32 %v13660_v59, %v13254_v36  ;;  %vm13664_vm3 = vcmp.ge.f32.partialorder %v16157_v3, 0.0 }
 0xfc4   : > { %vm13665_vm2 = vcmp.ge.f32.partialorder %v16158_v0, 0.0  ;;  %v13669_v18 = vmul.f32 0.01, %v16158_v0  ;;  %v13671_v49 = vsel %vm13663_vm1, %v16156_v46, %v13667_v54 }
 0xfc5   : > { %v13670_v7 = vmul.f32 0.01, %v16159_v11  ;;  %vm13666_vm4 = vcmp.ge.f32.partialorder %v16159_v11, 0.0  ;;  %v13672_v51 = vsel %vm13664_vm3, %v16157_v3, %v13668_v62 }
 0xfc6   : > { %v13673_v39 = vsel %vm13665_vm2, %v16158_v0, %v13669_v18 }
 0xfc7   : > { %v13674_v1 = vsel %vm13666_vm4, %v16159_v11, %v13670_v7  ;;  %v13675_v58 = vpack.c.bf16 %v13673_v39, %v13671_v49 }
 0xfc8   : > { %v13676_v32 = vpack.c.bf16 %v13674_v1, %v13672_v51 }
 0xfca   : > { %13844 = vmatprep.mubr.bf16.mxu1 %v13676_v32 }
 0xfcb   : > { %13845 = vmatmul.mubr.bf16.vlgmr.msra.gmra.mrb[0].mxu1 %v13675_v58 }
 0xfcc   : > { %15913 = vmatpush3.bf16.msra.mxu1 %v17873_v56  ;;  %15928 = vmatprep.mubr.msk.bf16.mxu1 %vm17894_vm5, %v17893_v37 }
 0xfcd   : > { %15914 = vmatprep.subr.bf16.mxu1 %v17893_v37 }
 0xfd0   : > { %15915 = vmatpush3.bf16.msra.mxu1 %v17874_v60 }
 0xfd1   : > { %15916 = vmatprep.subr.bf16.mxu1 %v17893_v37 }
 0xfd4   : > { %15917 = vmatpush3.bf16.msra.mxu1 %v17875_v44 }
 0xfd5   : > { %15918 = vmatprep.subr.bf16.mxu1 %v17893_v37 }
 0xfd8   : > { %15919 = vmatpush3.bf16.msra.mxu1 %v17876_v57 }
 0xfd9   : > { %15920 = vmatprep.subr.bf16.mxu1 %v17893_v37 }
 0xfdc   : > { %15921 = vmatpush3.bf16.msra.mxu1 %v17877_v16 }
 0xfdd   : > { %15922 = vmatprep.subr.bf16.mxu1 %v17893_v37 }
 0xfe0   : > { %15923 = vmatpush3.bf16.msra.mxu1 %v17878_v38 }
 0xfe1   : > { %15924 = vmatprep.subr.bf16.mxu1 %v17893_v37 }
 0xfe4   : > { %15925 = vmatpush3.bf16.msra.mxu1 %v17879_v4 }
 0xfe5   : > { %15926 = vmatprep.subr.bf16.mxu1 %v17893_v37 }
 0xfe8   : > { %15927 = vmatpush3.bf16.msra.mxu1 %v17880_v8 }
0x109e   : > { %v15841_v40 = vpop.f32.mrb[0].mxu1 }
0x109f   : > { %v15842_v20 = vpop.f32.mrb[1].mxu1 }
0x10a0   : > { %v15843_v43 = vadd.f32 %v15842_v20, %v15841_v40  ;;  %v15844_v13 = vpop.f32.mrb[2].mxu1 }
0x10a1   : > { %v15845_v30 = vpop.f32.mrb[3].mxu1 }
0x10a2   : > { %v13847_v63 = vadd.f32 %v15843_v43, %v15762_v29  ;;  %v15846_v35 = vadd.f32 %v15845_v30, %v15844_v13 }
0x10a4   : > { %v13855_v47 = vmul.f32 0.01, %v13847_v63  ;;  %v13850_v25 = vadd.f32 %v15846_v35, %v15762_v29  ;;  %vm13853_vm6 = vcmp.ge.f32.partialorder %v13847_v63, 0.0 }
0x10a6   : > { %vm13854_vm7 = vcmp.ge.f32.partialorder %v13850_v25, 0.0  ;;  %v13856_v10 = vmul.f32 0.01, %v13850_v25  ;;  %v13857_v23 = vsel %vm13853_vm6, %v13847_v63, %v13855_v47 }
0x10a8   : > { %v13858_v17 = vsel %vm13854_vm7, %v13850_v25, %v13856_v10 }
0x10a9   : > { %v13859_v14 = vpack.c.bf16 %v13858_v17, %v13857_v23 }
0x10ab   : > { %15929 = vmatmul.mubr.bf16.vlgmr.msra.gmra.mrb[4].mxu1 %v13859_v14 }
0x117e   : > { %v13965_v9 = vpop.f32.mrb[4].mxu1 }
0x117f   : > { %v13966_v2 = vadd.f32 %v15779_v31, %v13965_v9  ;;  %v15930_v6 = vpop.f32.mrb[5].mxu1 }
0x1180   : > { %v13968_v48 = vpop.f32.mrb[6].mxu1 }
0x1181   : > { %13972 = vst [vmem:[%s20626_s27] sm:$0xff] %v13966_v2  ;;  %v13969_v5 = vadd.f32 %v15779_v31, %v13968_v48  ;;  %v15931_v26 = vpop.f32.mrb[7].mxu1 }
0x1183   : > { %13973 = vst [vmem:[%s20626_s27 + $0x8] sm:$0xff] %v13969_v5 }
0x1184 PF: > { %s20627_s1 = sld [smem:[#allocation3_spill]] }
0x118a   : > { %s33_s4 = sadd.s32 1, %s20627_s1  }
0x118b   : > { %p30_p6 = scmp.ge.s32.totalorder %s33_s4, 4  }
0x118d   :  { %32 = sbr.rel (!%p30_p6) target bundleno = 17 (0x11), region = 179 }

</bundles_post_ra>
